<compile_context>
chip_gen: v7x
topology: tpu7x:2x2x1
jax: 0.10.0
libtpu: 0.0.40
codegen_flags: <defaults>
</compile_context>

<pallas_src>
import functools

import jax
import jax.numpy as jnp
from jax import lax
from jax.experimental import pallas as pl
from jax.experimental.pallas import tpu as pltpu
from jax.scipy.special import erf as _erf_ref

_EPS = 1e-5
_ROW_TILE = 512   # rows per block (multiple of 8); sized well under VMEM budget
_COL_TILE = 512   # output columns per block (multiple of 128; 256-matched MXU)


# ------------------------------ tile pickers --------------------------------

def _pick_row_tile(dim, target=_ROW_TILE):
    if dim <= target:
        return dim
    t = (target // 8) * 8
    while t >= 8:
        if dim % t == 0:
            return t
        t -= 8
    return dim


def _pick_col_tile(dim, target=_COL_TILE):
    if dim <= target:
        return dim
    t = (target // 128) * 128
    while t >= 128:
        if dim % t == 0:
            return t
        t -= 128
    return dim


# ----------------------------- in-kernel helpers -----------------------------

def _layernorm_f32(x, g, b, eps):
    mean = jnp.mean(x, axis=-1, keepdims=True)
    var = jnp.mean(jnp.square(x - mean), axis=-1, keepdims=True)
    return (x - mean) * lax.rsqrt(var + eps) * g + b


def _erf_approx(x):
    # Abramowitz & Stegun 7.1.26, max abs err ~1.5e-7. Uses only exp (EUP),
    # avoiding reliance on an in-kernel erf primitive.
    a1, a2, a3, a4, a5 = 0.254829592, -0.284496736, 1.421413741, -1.453152027, 1.061405429
    p = 0.3275911
    z = jnp.abs(x)
    t = 1.0 / (1.0 + p * z)
    poly = ((((a5 * t + a4) * t + a3) * t + a2) * t + a1) * t
    y = 1.0 - poly * jnp.exp(-z * z)
    return jnp.where(x < 0, -y, y)


def _gelu_exact(x):
    # nn.GELU() default (exact / erf variant).
    return 0.5 * x * (1.0 + _erf_approx(x * (2.0 ** -0.5)))


# ------------------------------ Pallas kernels -------------------------------

def _ln_matmul_kernel(x_ref, g_ref, b_ref, w_ref, bias_ref, o_ref, *, eps):
    # Fused LayerNorm(x) @ W + bias for one (row-tile, col-tile) block.
    x = x_ref[...].astype(jnp.float32)
    xn = _layernorm_f32(x, g_ref[...], b_ref[...], eps)
    acc = jnp.dot(xn, w_ref[...].astype(jnp.float32),
                  preferred_element_type=jnp.float32)
    o_ref[...] = (acc + bias_ref[...]).astype(o_ref.dtype)


def ln_matmul(x2d, gamma, beta, w, bias, *, eps=_EPS):
    n, din = x2d.shape
    dout = w.shape[1]
    tm = _pick_row_tile(n)
    tn = _pick_col_tile(dout)
    return pl.pallas_call(
        functools.partial(_ln_matmul_kernel, eps=eps),
        out_shape=jax.ShapeDtypeStruct((n, dout), x2d.dtype),
        grid=(n // tm, dout // tn),
        in_specs=[
            pl.BlockSpec((tm, din), lambda i, j: (i, 0)),   # x tile resident over j
            pl.BlockSpec((1, din), lambda i, j: (0, 0)),
            pl.BlockSpec((1, din), lambda i, j: (0, 0)),
            pl.BlockSpec((din, tn), lambda i, j: (0, j)),
            pl.BlockSpec((1, tn), lambda i, j: (0, j)),
        ],
        out_specs=pl.BlockSpec((tm, tn), lambda i, j: (i, j)),
        compiler_params=pltpu.CompilerParams(
            dimension_semantics=("parallel", "parallel")),
    )(x2d, gamma.reshape(1, din), beta.reshape(1, din), w, bias.reshape(1, dout))


def _matmul_bias_res_kernel(x_ref, w_ref, bias_ref, res_ref, o_ref):
    # x @ W + bias + residual (residual add fused into the epilogue).
    acc = jnp.dot(x_ref[...].astype(jnp.float32), w_ref[...].astype(jnp.float32),
                  preferred_element_type=jnp.float32)
    o_ref[...] = (acc + bias_ref[...] + res_ref[...].astype(jnp.float32)
                  ).astype(o_ref.dtype)


def matmul_bias_residual(x2d, w, bias, residual2d):
    n, din = x2d.shape
    dout = w.shape[1]
    tm = _pick_row_tile(n)
    tn = _pick_col_tile(dout)
    return pl.pallas_call(
        _matmul_bias_res_kernel,
        out_shape=jax.ShapeDtypeStruct((n, dout), x2d.dtype),
        grid=(n // tm, dout // tn),
        in_specs=[
            pl.BlockSpec((tm, din), lambda i, j: (i, 0)),
            pl.BlockSpec((din, tn), lambda i, j: (0, j)),
            pl.BlockSpec((1, tn), lambda i, j: (0, j)),
            pl.BlockSpec((tm, tn), lambda i, j: (i, j)),
        ],
        out_specs=pl.BlockSpec((tm, tn), lambda i, j: (i, j)),
        compiler_params=pltpu.CompilerParams(
            dimension_semantics=("parallel", "parallel")),
    )(x2d, w, bias.reshape(1, dout), residual2d)


def _attn_kernel(q_ref, k_ref, v_ref, o_ref, *, scale):
    q = q_ref[0].astype(jnp.float32)   # [Sq, dh]
    k = k_ref[0].astype(jnp.float32)   # [L,  dh]
    v = v_ref[0].astype(jnp.float32)   # [L,  dh]
    s = lax.dot_general(q, k, (((1,), (1,)), ((), ())),
                        preferred_element_type=jnp.float32) * scale
    m = jnp.max(s, axis=-1, keepdims=True)
    p = jnp.exp(s - m)
    denom = jnp.sum(p, axis=-1, keepdims=True)
    attn = p * pl.reciprocal(denom, approx=True)   # EUP vrcp, off the VALU path
    o = jnp.dot(attn, v, preferred_element_type=jnp.float32)
    o_ref[0] = o.astype(o_ref.dtype)


def attention_core(q_src, kv_src, *, num_heads, head_dim,
                   q_head_offset, k_head_offset, v_head_offset):
    # q_src:  [B, Sq, *] with head h of Q at column block q_head_offset + h
    # kv_src: [B, L,  *] with head h of K/V at k/v_head_offset + h
    # Per-head column slices are taken by BlockSpec index maps directly from the
    # fused projection output -> no host-side transpose copies.
    # TODO(synk): for head_dim < 128, batch several heads per block instead.
    b, sq, _ = q_src.shape
    l = kv_src.shape[1]
    dh = head_dim
    scale = 1.0 / (dh ** 0.5)
    return pl.pallas_call(
        functools.partial(_attn_kernel, scale=scale),
        out_shape=jax.ShapeDtypeStruct((b, sq, num_heads * dh), q_src.dtype),
        grid=(b, num_heads),
        in_specs=[
            pl.BlockSpec((1, sq, dh), lambda bi, h: (bi, 0, q_head_offset + h)),
            pl.BlockSpec((1, l, dh), lambda bi, h: (bi, 0, k_head_offset + h)),
            pl.BlockSpec((1, l, dh), lambda bi, h: (bi, 0, v_head_offset + h)),
        ],
        out_specs=pl.BlockSpec((1, sq, dh), lambda bi, h: (bi, 0, h)),
        compiler_params=pltpu.CompilerParams(
            dimension_semantics=("parallel", "parallel")),
    )(q_src, kv_src, kv_src)


def _ffn_kernel(x_ref, g_ref, b_ref, w1_ref, b1_ref, w2_ref, b2_ref, o_ref, *, eps):
    # Fused: LayerNorm -> Linear -> GELU -> (Dropout=identity) -> Linear -> +residual.
    # The (tm, F) hidden activation lives entirely in VMEM/vregs.
    x = x_ref[...].astype(jnp.float32)
    xn = _layernorm_f32(x, g_ref[...], b_ref[...], eps)
    h = jnp.dot(xn, w1_ref[...].astype(jnp.float32),
                preferred_element_type=jnp.float32) + b1_ref[...]
    h = _gelu_exact(h)
    y = jnp.dot(h, w2_ref[...].astype(jnp.float32),
                preferred_element_type=jnp.float32) + b2_ref[...]
    o_ref[...] = (y + x).astype(o_ref.dtype)   # residual = pre-norm input tile


def ffn_fused(x2d, gamma, beta, w1, b1, w2, b2, *, eps=_EPS):
    # TODO(synk): for very large ff_dim, tile F with an f32 accumulator instead
    # of keeping W1/W2 fully resident.
    n, d = x2d.shape
    f = w1.shape[1]
    tm = _pick_row_tile(n)
    return pl.pallas_call(
        functools.partial(_ffn_kernel, eps=eps),
        out_shape=jax.ShapeDtypeStruct((n, d), x2d.dtype),
        grid=(n // tm,),
        in_specs=[
            pl.BlockSpec((tm, d), lambda i: (i, 0)),
            pl.BlockSpec((1, d), lambda i: (0, 0)),
            pl.BlockSpec((1, d), lambda i: (0, 0)),
            pl.BlockSpec((d, f), lambda i: (0, 0)),   # resident across row tiles
            pl.BlockSpec((1, f), lambda i: (0, 0)),
            pl.BlockSpec((f, d), lambda i: (0, 0)),   # resident across row tiles
            pl.BlockSpec((1, d), lambda i: (0, 0)),
        ],
        out_specs=pl.BlockSpec((tm, d), lambda i: (i, 0)),
        compiler_params=pltpu.CompilerParams(dimension_semantics=("parallel",)),
    )(x2d, gamma.reshape(1, d), beta.reshape(1, d), w1, b1.reshape(1, f),
      w2, b2.reshape(1, d))


# -------------------------------- Model glue ---------------------------------

def reactive_transformer_layer(x, stm, params, num_heads):
    b, s, d = x.shape
    m = stm.shape[1]
    dh = d // num_heads
    n, nm = b * s, b * m
    x2 = x.reshape(n, d)

    sa, ca = params["self_attn"], params["cross_attn"]

    # --- self-attention block (pre-norm; norm + QKV fused; residual fused) ---
    w_qkv = jnp.concatenate([sa["wq"], sa["wk"], sa["wv"]], axis=1)
    b_qkv = jnp.concatenate([sa["bq"], sa["bk"], sa["bv"]], axis=0)
    qkv = ln_matmul(x2, params["norm1_g"], params["norm1_b"], w_qkv, b_qkv)
    qkv3 = qkv.reshape(b, s, 3 * d)                      # free leading-dim split
    attn = attention_core(qkv3, qkv3, num_heads=num_heads, head_dim=dh,
                          q_head_offset=0, k_head_offset=num_heads,
                          v_head_offset=2 * num_heads)
    x2 = matmul_bias_residual(attn.reshape(n, d), sa["wo"], sa["bo"], x2)

    # --- memory cross-attention block ---
    w_kv = jnp.concatenate([ca["wk"], ca["wv"]], axis=1)
    b_kv = jnp.concatenate([ca["bk"], ca["bv"]], axis=0)
    q = ln_matmul(x2, params["norm2_g"], params["norm2_b"], ca["wq"], ca["bq"])
    kv = ln_matmul(stm.reshape(nm, d), params["stm_norm_g"], params["stm_norm_b"],
                   w_kv, b_kv)
    attn = attention_core(q.reshape(b, s, d), kv.reshape(b, m, 2 * d),
                          num_heads=num_heads, head_dim=dh,
                          q_head_offset=0, k_head_offset=0,
                          v_head_offset=num_heads)
    x2 = matmul_bias_residual(attn.reshape(n, d), ca["wo"], ca["bo"], x2)

    # --- feed-forward block (fully fused) ---
    x2 = ffn_fused(x2, params["norm3_g"], params["norm3_b"],
                   params["ff_w1"], params["ff_b1"],
                   params["ff_w2"], params["ff_b2"])
    return x2.reshape(b, s, d)
    # TODO(synk): mask=None and inference (dropout identity) path only; MoE /
    # gated / post-norm / RoPE / kv-cache variants are not exercised by defaults.


def init_params(key, embed_dim, ff_dim, dtype=jnp.float32):
    def w(k, shape):
        return (0.02 * jax.random.normal(k, shape)).astype(dtype)

    def attn_params(k):
        kk = jax.random.split(k, 8)
        return {
            "wq": w(kk[0], (embed_dim, embed_dim)), "bq": w(kk[1], (embed_dim,)),
            "wk": w(kk[2], (embed_dim, embed_dim)), "bk": w(kk[3], (embed_dim,)),
            "wv": w(kk[4], (embed_dim, embed_dim)), "bv": w(kk[5], (embed_dim,)),
            "wo": w(kk[6], (embed_dim, embed_dim)), "bo": w(kk[7], (embed_dim,)),
        }

    ks = jax.random.split(key, 6)
    return {
        "self_attn": attn_params(ks[0]),
        "cross_attn": attn_params(ks[1]),
        "ff_w1": w(ks[2], (embed_dim, ff_dim)), "ff_b1": w(ks[3], (ff_dim,)),
        "ff_w2": w(ks[4], (ff_dim, embed_dim)), "ff_b2": w(ks[5], (embed_dim,)),
        "norm1_g": jnp.ones((embed_dim,), dtype), "norm1_b": jnp.zeros((embed_dim,), dtype),
        "norm2_g": jnp.ones((embed_dim,), dtype), "norm2_b": jnp.zeros((embed_dim,), dtype),
        "norm3_g": jnp.ones((embed_dim,), dtype), "norm3_b": jnp.zeros((embed_dim,), dtype),
        "stm_norm_g": jnp.ones((embed_dim,), dtype), "stm_norm_b": jnp.zeros((embed_dim,), dtype),
    }


# ----------------------------- Pure-JAX reference ----------------------------

def _ref_layernorm(x, g, b, eps=_EPS):
    mean = x.mean(-1, keepdims=True)
    var = ((x - mean) ** 2).mean(-1, keepdims=True)
    return (x - mean) / jnp.sqrt(var + eps) * g + b


def _ref_gelu(x):
    return 0.5 * x * (1.0 + _erf_ref(x * (2.0 ** -0.5)))


def _ref_mha(xq, xkv, p, h):
    b, sq, d = xq.shape
    skv = xkv.shape[1]
    dh = d // h
    q = (xq @ p["wq"] + p["bq"]).reshape(b, sq, h, dh).transpose(0, 2, 1, 3)
    k = (xkv @ p["wk"] + p["bk"]).reshape(b, skv, h, dh).transpose(0, 2, 1, 3)
    v = (xkv @ p["wv"] + p["bv"]).reshape(b, skv, h, dh).transpose(0, 2, 1, 3)
    s = jnp.einsum("bhqd,bhkd->bhqk", q, k) / jnp.sqrt(jnp.float32(dh))
    a = jax.nn.softmax(s, axis=-1)
    o = jnp.einsum("bhqk,bhkd->bhqd", a, v).transpose(0, 2, 1, 3).reshape(b, sq, d)
    return o @ p["wo"] + p["bo"]


def _ref_forward(x, stm, params, h):
    r = x
    xn = _ref_layernorm(x, params["norm1_g"], params["norm1_b"])
    x = r + _ref_mha(xn, xn, params["self_attn"], h)
    r = x
    xn = _ref_layernorm(x, params["norm2_g"], params["norm2_b"])
    stm_n = _ref_layernorm(stm, params["stm_norm_g"], params["stm_norm_b"])
    x = r + _ref_mha(xn, stm_n, params["cross_attn"], h)
    r = x
    xn = _ref_layernorm(x, params["norm3_g"], params["norm3_b"])
    hh = _ref_gelu(xn @ params["ff_w1"] + params["ff_b1"])
    x = r + (hh @ params["ff_w2"] + params["ff_b2"])
    return x


# ------------------------------------ Main ------------------------------------

if __name__ == "__main__":
    # Small but TPU-tiling-friendly shapes: head_dim = 256/2 = 128 (lane dense),
    # rows B*S = 128 and B*M = 32 (multiples of 8), feature dims multiples of 128.
    B, S, M, D, F, H = 2, 64, 16, 256, 512, 2

    key = jax.random.PRNGKey(0)
    kx, ks, kp = jax.random.split(key, 3)
    x = jax.random.normal(kx, (B, S, D), jnp.float32)
    stm = jax.random.normal(ks, (B, M, D), jnp.float32)
    params = init_params(kp, D, F)

    fwd = jax.jit(functools.partial(reactive_transformer_layer, num_heads=H))
    out = jax.block_until_ready(fwd(x, stm, params))

    with jax.default_matmul_precision("highest"):
        ref = _ref_forward(x, stm, params, H)

    assert out.shape == (B, S, D), out.shape
    max_diff = float(jnp.max(jnp.abs(out - ref)))
    assert bool(jnp.allclose(out, ref, atol=2e-2, rtol=2e-2)), (
        "max abs diff: %r" % max_diff)
    print("KERNEL_OK")
</pallas_src>

<mosaic_0001>
module attributes {stable_mosaic.version = 11 : i64} {
  func.func @_ln_matmul_kernel(%arg0: i32, %arg1: i32, %arg2: memref<128x256xf32, #tpu.memory_space<vmem>>, %arg3: memref<1x256xf32, #tpu.memory_space<vmem>>, %arg4: memref<1x256xf32, #tpu.memory_space<vmem>>, %arg5: memref<256x384xf32, #tpu.memory_space<vmem>>, %arg6: memref<1x384xf32, #tpu.memory_space<vmem>>, %arg7: memref<128x384xf32, #tpu.memory_space<vmem>>) attributes {dimension_semantics = [#tpu.dimension_semantics<parallel>, #tpu.dimension_semantics<parallel>], iteration_bounds = array<i64: 1, 2>, scalar_prefetch = 0 : i64, scratch_operands = 0 : i64, tpu.core_type = #tpu.core_type<tc>, window_params = [{transform_indices = @transform_0, window_bounds = array<i64: 128, 256>}, {pipeline_mode = #tpu.pipeline_mode<synchronous>, transform_indices = @transform_1, window_bounds = array<i64: 1, 256>}, {pipeline_mode = #tpu.pipeline_mode<synchronous>, transform_indices = @transform_2, window_bounds = array<i64: 1, 256>}, {transform_indices = @transform_3, window_bounds = array<i64: 256, 384>}, {transform_indices = @transform_4, window_bounds = array<i64: 1, 384>}, {transform_indices = @transform_5, window_bounds = array<i64: 128, 384>}]} {
    %c0 = arith.constant 0 : index
    %c0_0 = arith.constant 0 : index
    %0 = vector.load %arg2[%c0, %c0_0] : memref<128x256xf32, #tpu.memory_space<vmem>>, vector<128x256xf32>
    %c0_1 = arith.constant 0 : index
    %c0_2 = arith.constant 0 : index
    %1 = vector.load %arg3[%c0_1, %c0_2] : memref<1x256xf32, #tpu.memory_space<vmem>>, vector<1x256xf32>
    %c0_3 = arith.constant 0 : index
    %c0_4 = arith.constant 0 : index
    %2 = vector.load %arg4[%c0_3, %c0_4] : memref<1x256xf32, #tpu.memory_space<vmem>>, vector<1x256xf32>
    %cst = arith.constant dense<0.000000e+00> : vector<128xf32>
    %3 = vector.multi_reduction <add>, %0, %cst [1] : vector<128x256xf32> to vector<128xf32>
    %4 = vector.shape_cast %3 : vector<128xf32> to vector<128x1xf32>
    %cst_5 = arith.constant 2.560000e+02 : f32
    %5 = vector.broadcast %cst_5 : f32 to vector<128x1xf32>
    %6 = arith.divf %4, %5 : vector<128x1xf32>
    %7 = vector.broadcast %6 : vector<128x1xf32> to vector<128x256xf32>
    %8 = arith.subf %0, %7 : vector<128x256xf32>
    %9 = arith.mulf %8, %8 : vector<128x256xf32>
    %cst_6 = arith.constant dense<0.000000e+00> : vector<128xf32>
    %10 = vector.multi_reduction <add>, %9, %cst_6 [1] : vector<128x256xf32> to vector<128xf32>
    %11 = vector.shape_cast %10 : vector<128xf32> to vector<128x1xf32>
    %cst_7 = arith.constant 2.560000e+02 : f32
    %12 = vector.broadcast %cst_7 : f32 to vector<128x1xf32>
    %13 = arith.divf %11, %12 : vector<128x1xf32>
    %14 = vector.broadcast %6 : vector<128x1xf32> to vector<128x256xf32>
    %15 = arith.subf %0, %14 : vector<128x256xf32>
    %cst_8 = arith.constant 9.99999974E-6 : f32
    %16 = vector.broadcast %cst_8 : f32 to vector<128x1xf32>
    %17 = arith.addf %13, %16 : vector<128x1xf32>
    %18 = math.rsqrt %17 : vector<128x1xf32>
    %19 = vector.broadcast %18 : vector<128x1xf32> to vector<128x256xf32>
    %20 = arith.mulf %15, %19 : vector<128x256xf32>
    %21 = vector.broadcast %1 : vector<1x256xf32> to vector<128x256xf32>
    %22 = arith.mulf %20, %21 : vector<128x256xf32>
    %23 = vector.broadcast %2 : vector<1x256xf32> to vector<128x256xf32>
    %24 = arith.addf %22, %23 : vector<128x256xf32>
    %c0_9 = arith.constant 0 : index
    %c0_10 = arith.constant 0 : index
    %25 = vector.load %arg5[%c0_9, %c0_10] : memref<256x384xf32, #tpu.memory_space<vmem>>, vector<256x384xf32>
    %cst_11 = arith.constant dense<0.000000e+00> : vector<128x384xf32>
    %26 = tpu.matmul %24, %25, %cst_11 {dimension_numbers = #tpu.dot_dimension_numbers<[1], [0], [0], [1], [0, 0, 1, 1], [], []>} : vector<128x256xf32>, vector<256x384xf32>, vector<128x384xf32> -> vector<128x384xf32>
    %c0_12 = arith.constant 0 : index
    %c0_13 = arith.constant 0 : index
    %27 = vector.load %arg6[%c0_12, %c0_13] : memref<1x384xf32, #tpu.memory_space<vmem>>, vector<1x384xf32>
    %28 = vector.broadcast %27 : vector<1x384xf32> to vector<128x384xf32>
    %29 = arith.addf %26, %28 : vector<128x384xf32>
    %c0_14 = arith.constant 0 : index
    %c0_15 = arith.constant 0 : index
    %30 = vector.load %arg7[%c0_14, %c0_15] : memref<128x384xf32, #tpu.memory_space<vmem>>, vector<128x384xf32>
    tpu.vector_store %arg7[%c0_14, %c0_15], %29 {strides = array<i32>} : memref<128x384xf32, #tpu.memory_space<vmem>>, vector<128x384xf32>,
    return
  }
  func.func @transform_0(%arg0: i32, %arg1: i32) -> (i32, i32) {
    %c0_i32 = arith.constant 0 : i32
    %c0_i32_0 = arith.constant 0 : i32
    return %arg0, %c0_i32 : i32, i32
  }
  func.func @transform_1(%arg0: i32, %arg1: i32) -> (i32, i32) {
    %c0_i32 = arith.constant 0 : i32
    %c0_i32_0 = arith.constant 0 : i32
    %c0_i32_1 = arith.constant 0 : i32
    return %c0_i32, %c0_i32_0 : i32, i32
  }
  func.func @transform_2(%arg0: i32, %arg1: i32) -> (i32, i32) {
    %c0_i32 = arith.constant 0 : i32
    %c0_i32_0 = arith.constant 0 : i32
    %c0_i32_1 = arith.constant 0 : i32
    return %c0_i32, %c0_i32_0 : i32, i32
  }
  func.func @transform_3(%arg0: i32, %arg1: i32) -> (i32, i32) {
    %c0_i32 = arith.constant 0 : i32
    %c0_i32_0 = arith.constant 0 : i32
    return %c0_i32, %arg1 : i32, i32
  }
  func.func @transform_4(%arg0: i32, %arg1: i32) -> (i32, i32) {
    %c0_i32 = arith.constant 0 : i32
    %c0_i32_0 = arith.constant 0 : i32
    return %c0_i32, %arg1 : i32, i32
  }
  func.func @transform_5(%arg0: i32, %arg1: i32) -> (i32, i32) {
    %c0_i32 = arith.constant 0 : i32
    return %arg0, %arg1 : i32, i32
  }
}

module attributes {stable_mosaic.version = 11 : i64} {
  func.func @_attn_kernel(%arg0: i32, %arg1: i32, %arg2: memref<1x64x128xf32, #tpu.memory_space<vmem>>, %arg3: memref<1x64x128xf32, #tpu.memory_space<vmem>>, %arg4: memref<1x64x128xf32, #tpu.memory_space<vmem>>, %arg5: memref<1x64x128xf32, #tpu.memory_space<vmem>>) attributes {dimension_semantics = [#tpu.dimension_semantics<parallel>, #tpu.dimension_semantics<parallel>], iteration_bounds = array<i64: 2, 2>, scalar_prefetch = 0 : i64, scratch_operands = 0 : i64, tpu.core_type = #tpu.core_type<tc>, window_params = [{transform_indices = @transform_0, window_bounds = array<i64: 1, 64, 128>}, {transform_indices = @transform_1, window_bounds = array<i64: 1, 64, 128>}, {transform_indices = @transform_2, window_bounds = array<i64: 1, 64, 128>}, {transform_indices = @transform_3, window_bounds = array<i64: 1, 64, 128>}]} {
    %c0 = arith.constant 0 : index
    %c0_0 = arith.constant 0 : index
    %c0_1 = arith.constant 0 : index
    %0 = vector.load %arg2[%c0, %c0_0, %c0_1] : memref<1x64x128xf32, #tpu.memory_space<vmem>>, vector<1x64x128xf32>
    %1 = vector.shape_cast %0 : vector<1x64x128xf32> to vector<64x128xf32>
    %c0_2 = arith.constant 0 : index
    %c0_3 = arith.constant 0 : index
    %c0_4 = arith.constant 0 : index
    %2 = vector.load %arg3[%c0_2, %c0_3, %c0_4] : memref<1x64x128xf32, #tpu.memory_space<vmem>>, vector<1x64x128xf32>
    %3 = vector.shape_cast %2 : vector<1x64x128xf32> to vector<64x128xf32>
    %c0_5 = arith.constant 0 : index
    %c0_6 = arith.constant 0 : index
    %c0_7 = arith.constant 0 : index
    %4 = vector.load %arg4[%c0_5, %c0_6, %c0_7] : memref<1x64x128xf32, #tpu.memory_space<vmem>>, vector<1x64x128xf32>
    %5 = vector.shape_cast %4 : vector<1x64x128xf32> to vector<64x128xf32>
    %cst = arith.constant dense<0.000000e+00> : vector<64x64xf32>
    %6 = tpu.matmul %1, %3, %cst {dimension_numbers = #tpu.dot_dimension_numbers<[1], [1], [0], [0], [0, 0, 1, 0], [], []>} : vector<64x128xf32>, vector<64x128xf32>, vector<64x64xf32> -> vector<64x64xf32>
    %cst_8 = arith.constant 0.0883883461 : f32
    %7 = vector.broadcast %cst_8 : f32 to vector<64x64xf32>
    %8 = arith.mulf %6, %7 : vector<64x64xf32>
    %cst_9 = arith.constant dense<0xFF800000> : vector<64xf32>
    %9 = vector.multi_reduction <maximumf>, %8, %cst_9 [1] : vector<64x64xf32> to vector<64xf32>
    %10 = vector.shape_cast %9 : vector<64xf32> to vector<64x1xf32>
    %11 = vector.broadcast %10 : vector<64x1xf32> to vector<64x64xf32>
    %12 = arith.subf %8, %11 : vector<64x64xf32>
    %13 = math.exp %12 : vector<64x64xf32>
    %cst_10 = arith.constant dense<0.000000e+00> : vector<64xf32>
    %14 = vector.multi_reduction <add>, %13, %cst_10 [1] : vector<64x64xf32> to vector<64xf32>
    %15 = vector.shape_cast %14 : vector<64xf32> to vector<64x1xf32>
    %16 = tpu.reciprocal %15 {approx = true} : vector<64x1xf32> -> vector<64x1xf32>
    %17 = vector.broadcast %16 : vector<64x1xf32> to vector<64x64xf32>
    %18 = arith.mulf %13, %17 : vector<64x64xf32>
    %cst_11 = arith.constant dense<0.000000e+00> : vector<64x128xf32>
    %19 = tpu.matmul %18, %5, %cst_11 {dimension_numbers = #tpu.dot_dimension_numbers<[1], [0], [0], [1], [0, 0, 1, 1], [], []>} : vector<64x64xf32>, vector<64x128xf32>, vector<64x128xf32> -> vector<64x128xf32>
    %c0_12 = arith.constant 0 : index
    %c0_13 = arith.constant 0 : index
    %c0_14 = arith.constant 0 : index
    %20 = vector.load %arg5[%c0_12, %c0_13, %c0_14] : memref<1x64x128xf32, #tpu.memory_space<vmem>>, vector<1x64x128xf32>
    %21 = vector.shape_cast %20 : vector<1x64x128xf32> to vector<64x128xf32>
    %22 = vector.shape_cast %19 : vector<64x128xf32> to vector<1x64x128xf32>
    tpu.vector_store %arg5[%c0_12, %c0_13, %c0_14], %22 {strides = array<i32>} : memref<1x64x128xf32, #tpu.memory_space<vmem>>, vector<1x64x128xf32>,
    return
  }
  func.func @transform_0(%arg0: i32, %arg1: i32) -> (i32, i32, i32) {
    %c0_i32 = arith.constant 0 : i32
    %0 = arith.addi %c0_i32, %arg1 : i32
    %c0_i32_0 = arith.constant 0 : i32
    %c0_i32_1 = arith.constant 0 : i32
    return %arg0, %c0_i32_0, %0 : i32, i32, i32
  }
  func.func @transform_1(%arg0: i32, %arg1: i32) -> (i32, i32, i32) {
    %c2_i32 = arith.constant 2 : i32
    %0 = arith.addi %c2_i32, %arg1 : i32
    %c0_i32 = arith.constant 0 : i32
    %c0_i32_0 = arith.constant 0 : i32
    return %arg0, %c0_i32, %0 : i32, i32, i32
  }
  func.func @transform_2(%arg0: i32, %arg1: i32) -> (i32, i32, i32) {
    %c4_i32 = arith.constant 4 : i32
    %0 = arith.addi %c4_i32, %arg1 : i32
    %c0_i32 = arith.constant 0 : i32
    %c0_i32_0 = arith.constant 0 : i32
    return %arg0, %c0_i32, %0 : i32, i32, i32
  }
  func.func @transform_3(%arg0: i32, %arg1: i32) -> (i32, i32, i32) {
    %c0_i32 = arith.constant 0 : i32
    %c0_i32_0 = arith.constant 0 : i32
    return %arg0, %c0_i32, %arg1 : i32, i32, i32
  }
}

module attributes {stable_mosaic.version = 11 : i64} {
  func.func @_matmul_bias_res_kernel(%arg0: i32, %arg1: i32, %arg2: memref<128x256xf32, #tpu.memory_space<vmem>>, %arg3: memref<256x256xf32, #tpu.memory_space<vmem>>, %arg4: memref<1x256xf32, #tpu.memory_space<vmem>>, %arg5: memref<128x256xf32, #tpu.memory_space<vmem>>, %arg6: memref<128x256xf32, #tpu.memory_space<vmem>>) attributes {dimension_semantics = [#tpu.dimension_semantics<parallel>, #tpu.dimension_semantics<parallel>], iteration_bounds = array<i64: 1, 1>, scalar_prefetch = 0 : i64, scratch_operands = 0 : i64, tpu.core_type = #tpu.core_type<tc>, window_params = [{transform_indices = @transform_0, window_bounds = array<i64: 128, 256>}, {transform_indices = @transform_1, window_bounds = array<i64: 256, 256>}, {transform_indices = @transform_2, window_bounds = array<i64: 1, 256>}, {transform_indices = @transform_3, window_bounds = array<i64: 128, 256>}, {transform_indices = @transform_4, window_bounds = array<i64: 128, 256>}]} {
    %c0 = arith.constant 0 : index
    %c0_0 = arith.constant 0 : index
    %0 = vector.load %arg2[%c0, %c0_0] : memref<128x256xf32, #tpu.memory_space<vmem>>, vector<128x256xf32>
    %c0_1 = arith.constant 0 : index
    %c0_2 = arith.constant 0 : index
    %1 = vector.load %arg3[%c0_1, %c0_2] : memref<256x256xf32, #tpu.memory_space<vmem>>, vector<256x256xf32>
    %cst = arith.constant dense<0.000000e+00> : vector<128x256xf32>
    %2 = tpu.matmul %0, %1, %cst {dimension_numbers = #tpu.dot_dimension_numbers<[1], [0], [0], [1], [0, 0, 1, 1], [], []>} : vector<128x256xf32>, vector<256x256xf32>, vector<128x256xf32> -> vector<128x256xf32>
    %c0_3 = arith.constant 0 : index
    %c0_4 = arith.constant 0 : index
    %3 = vector.load %arg4[%c0_3, %c0_4] : memref<1x256xf32, #tpu.memory_space<vmem>>, vector<1x256xf32>
    %4 = vector.broadcast %3 : vector<1x256xf32> to vector<128x256xf32>
    %5 = arith.addf %2, %4 : vector<128x256xf32>
    %c0_5 = arith.constant 0 : index
    %c0_6 = arith.constant 0 : index
    %6 = vector.load %arg5[%c0_5, %c0_6] : memref<128x256xf32, #tpu.memory_space<vmem>>, vector<128x256xf32>
    %7 = arith.addf %5, %6 : vector<128x256xf32>
    %c0_7 = arith.constant 0 : index
    %c0_8 = arith.constant 0 : index
    %8 = vector.load %arg6[%c0_7, %c0_8] : memref<128x256xf32, #tpu.memory_space<vmem>>, vector<128x256xf32>
    tpu.vector_store %arg6[%c0_7, %c0_8], %7 {strides = array<i32>} : memref<128x256xf32, #tpu.memory_space<vmem>>, vector<128x256xf32>,
    return
  }
  func.func @transform_0(%arg0: i32, %arg1: i32) -> (i32, i32) {
    %c0_i32 = arith.constant 0 : i32
    %c0_i32_0 = arith.constant 0 : i32
    return %arg0, %c0_i32 : i32, i32
  }
  func.func @transform_1(%arg0: i32, %arg1: i32) -> (i32, i32) {
    %c0_i32 = arith.constant 0 : i32
    %c0_i32_0 = arith.constant 0 : i32
    return %c0_i32, %arg1 : i32, i32
  }
  func.func @transform_2(%arg0: i32, %arg1: i32) -> (i32, i32) {
    %c0_i32 = arith.constant 0 : i32
    %c0_i32_0 = arith.constant 0 : i32
    return %c0_i32, %arg1 : i32, i32
  }
  func.func @transform_3(%arg0: i32, %arg1: i32) -> (i32, i32) {
    %c0_i32 = arith.constant 0 : i32
    return %arg0, %arg1 : i32, i32
  }
  func.func @transform_4(%arg0: i32, %arg1: i32) -> (i32, i32) {
    %c0_i32 = arith.constant 0 : i32
    return %arg0, %arg1 : i32, i32
  }
}

module attributes {stable_mosaic.version = 11 : i64} {
  func.func @_ln_matmul_kernel(%arg0: i32, %arg1: i32, %arg2: memref<128x256xf32, #tpu.memory_space<vmem>>, %arg3: memref<1x256xf32, #tpu.memory_space<vmem>>, %arg4: memref<1x256xf32, #tpu.memory_space<vmem>>, %arg5: memref<256x256xf32, #tpu.memory_space<vmem>>, %arg6: memref<1x256xf32, #tpu.memory_space<vmem>>, %arg7: memref<128x256xf32, #tpu.memory_space<vmem>>) attributes {dimension_semantics = [#tpu.dimension_semantics<parallel>, #tpu.dimension_semantics<parallel>], iteration_bounds = array<i64: 1, 1>, scalar_prefetch = 0 : i64, scratch_operands = 0 : i64, tpu.core_type = #tpu.core_type<tc>, window_params = [{transform_indices = @transform_0, window_bounds = array<i64: 128, 256>}, {pipeline_mode = #tpu.pipeline_mode<synchronous>, transform_indices = @transform_1, window_bounds = array<i64: 1, 256>}, {pipeline_mode = #tpu.pipeline_mode<synchronous>, transform_indices = @transform_2, window_bounds = array<i64: 1, 256>}, {transform_indices = @transform_3, window_bounds = array<i64: 256, 256>}, {transform_indices = @transform_4, window_bounds = array<i64: 1, 256>}, {transform_indices = @transform_5, window_bounds = array<i64: 128, 256>}]} {
    %c0 = arith.constant 0 : index
    %c0_0 = arith.constant 0 : index
    %0 = vector.load %arg2[%c0, %c0_0] : memref<128x256xf32, #tpu.memory_space<vmem>>, vector<128x256xf32>
    %c0_1 = arith.constant 0 : index
    %c0_2 = arith.constant 0 : index
    %1 = vector.load %arg3[%c0_1, %c0_2] : memref<1x256xf32, #tpu.memory_space<vmem>>, vector<1x256xf32>
    %c0_3 = arith.constant 0 : index
    %c0_4 = arith.constant 0 : index
    %2 = vector.load %arg4[%c0_3, %c0_4] : memref<1x256xf32, #tpu.memory_space<vmem>>, vector<1x256xf32>
    %cst = arith.constant dense<0.000000e+00> : vector<128xf32>
    %3 = vector.multi_reduction <add>, %0, %cst [1] : vector<128x256xf32> to vector<128xf32>
    %4 = vector.shape_cast %3 : vector<128xf32> to vector<128x1xf32>
    %cst_5 = arith.constant 2.560000e+02 : f32
    %5 = vector.broadcast %cst_5 : f32 to vector<128x1xf32>
    %6 = arith.divf %4, %5 : vector<128x1xf32>
    %7 = vector.broadcast %6 : vector<128x1xf32> to vector<128x256xf32>
    %8 = arith.subf %0, %7 : vector<128x256xf32>
    %9 = arith.mulf %8, %8 : vector<128x256xf32>
    %cst_6 = arith.constant dense<0.000000e+00> : vector<128xf32>
    %10 = vector.multi_reduction <add>, %9, %cst_6 [1] : vector<128x256xf32> to vector<128xf32>
    %11 = vector.shape_cast %10 : vector<128xf32> to vector<128x1xf32>
    %cst_7 = arith.constant 2.560000e+02 : f32
    %12 = vector.broadcast %cst_7 : f32 to vector<128x1xf32>
    %13 = arith.divf %11, %12 : vector<128x1xf32>
    %14 = vector.broadcast %6 : vector<128x1xf32> to vector<128x256xf32>
    %15 = arith.subf %0, %14 : vector<128x256xf32>
    %cst_8 = arith.constant 9.99999974E-6 : f32
    %16 = vector.broadcast %cst_8 : f32 to vector<128x1xf32>
    %17 = arith.addf %13, %16 : vector<128x1xf32>
    %18 = math.rsqrt %17 : vector<128x1xf32>
    %19 = vector.broadcast %18 : vector<128x1xf32> to vector<128x256xf32>
    %20 = arith.mulf %15, %19 : vector<128x256xf32>
    %21 = vector.broadcast %1 : vector<1x256xf32> to vector<128x256xf32>
    %22 = arith.mulf %20, %21 : vector<128x256xf32>
    %23 = vector.broadcast %2 : vector<1x256xf32> to vector<128x256xf32>
    %24 = arith.addf %22, %23 : vector<128x256xf32>
    %c0_9 = arith.constant 0 : index
    %c0_10 = arith.constant 0 : index
    %25 = vector.load %arg5[%c0_9, %c0_10] : memref<256x256xf32, #tpu.memory_space<vmem>>, vector<256x256xf32>
    %cst_11 = arith.constant dense<0.000000e+00> : vector<128x256xf32>
    %26 = tpu.matmul %24, %25, %cst_11 {dimension_numbers = #tpu.dot_dimension_numbers<[1], [0], [0], [1], [0, 0, 1, 1], [], []>} : vector<128x256xf32>, vector<256x256xf32>, vector<128x256xf32> -> vector<128x256xf32>
    %c0_12 = arith.constant 0 : index
    %c0_13 = arith.constant 0 : index
    %27 = vector.load %arg6[%c0_12, %c0_13] : memref<1x256xf32, #tpu.memory_space<vmem>>, vector<1x256xf32>
    %28 = vector.broadcast %27 : vector<1x256xf32> to vector<128x256xf32>
    %29 = arith.addf %26, %28 : vector<128x256xf32>
    %c0_14 = arith.constant 0 : index
    %c0_15 = arith.constant 0 : index
    %30 = vector.load %arg7[%c0_14, %c0_15] : memref<128x256xf32, #tpu.memory_space<vmem>>, vector<128x256xf32>
    tpu.vector_store %arg7[%c0_14, %c0_15], %29 {strides = array<i32>} : memref<128x256xf32, #tpu.memory_space<vmem>>, vector<128x256xf32>,
    return
  }
  func.func @transform_0(%arg0: i32, %arg1: i32) -> (i32, i32) {
    %c0_i32 = arith.constant 0 : i32
    %c0_i32_0 = arith.constant 0 : i32
    return %arg0, %c0_i32 : i32, i32
  }
  func.func @transform_1(%arg0: i32, %arg1: i32) -> (i32, i32) {
    %c0_i32 = arith.constant 0 : i32
    %c0_i32_0 = arith.constant 0 : i32
    %c0_i32_1 = arith.constant 0 : i32
    return %c0_i32, %c0_i32_0 : i32, i32
  }
  func.func @transform_2(%arg0: i32, %arg1: i32) -> (i32, i32) {
    %c0_i32 = arith.constant 0 : i32
    %c0_i32_0 = arith.constant 0 : i32
    %c0_i32_1 = arith.constant 0 : i32
    return %c0_i32, %c0_i32_0 : i32, i32
  }
  func.func @transform_3(%arg0: i32, %arg1: i32) -> (i32, i32) {
    %c0_i32 = arith.constant 0 : i32
    %c0_i32_0 = arith.constant 0 : i32
    return %c0_i32, %arg1 : i32, i32
  }
  func.func @transform_4(%arg0: i32, %arg1: i32) -> (i32, i32) {
    %c0_i32 = arith.constant 0 : i32
    %c0_i32_0 = arith.constant 0 : i32
    return %c0_i32, %arg1 : i32, i32
  }
  func.func @transform_5(%arg0: i32, %arg1: i32) -> (i32, i32) {
    %c0_i32 = arith.constant 0 : i32
    return %arg0, %arg1 : i32, i32
  }
}

module attributes {stable_mosaic.version = 11 : i64} {
  func.func @_ln_matmul_kernel(%arg0: i32, %arg1: i32, %arg2: memref<32x256xf32, #tpu.memory_space<vmem>>, %arg3: memref<1x256xf32, #tpu.memory_space<vmem>>, %arg4: memref<1x256xf32, #tpu.memory_space<vmem>>, %arg5: memref<256x512xf32, #tpu.memory_space<vmem>>, %arg6: memref<1x512xf32, #tpu.memory_space<vmem>>, %arg7: memref<32x512xf32, #tpu.memory_space<vmem>>) attributes {dimension_semantics = [#tpu.dimension_semantics<parallel>, #tpu.dimension_semantics<parallel>], iteration_bounds = array<i64: 1, 1>, scalar_prefetch = 0 : i64, scratch_operands = 0 : i64, tpu.core_type = #tpu.core_type<tc>, window_params = [{transform_indices = @transform_0, window_bounds = array<i64: 32, 256>}, {pipeline_mode = #tpu.pipeline_mode<synchronous>, transform_indices = @transform_1, window_bounds = array<i64: 1, 256>}, {pipeline_mode = #tpu.pipeline_mode<synchronous>, transform_indices = @transform_2, window_bounds = array<i64: 1, 256>}, {transform_indices = @transform_3, window_bounds = array<i64: 256, 512>}, {transform_indices = @transform_4, window_bounds = array<i64: 1, 512>}, {transform_indices = @transform_5, window_bounds = array<i64: 32, 512>}]} {
    %c0 = arith.constant 0 : index
    %c0_0 = arith.constant 0 : index
    %0 = vector.load %arg2[%c0, %c0_0] : memref<32x256xf32, #tpu.memory_space<vmem>>, vector<32x256xf32>
    %c0_1 = arith.constant 0 : index
    %c0_2 = arith.constant 0 : index
    %1 = vector.load %arg3[%c0_1, %c0_2] : memref<1x256xf32, #tpu.memory_space<vmem>>, vector<1x256xf32>
    %c0_3 = arith.constant 0 : index
    %c0_4 = arith.constant 0 : index
    %2 = vector.load %arg4[%c0_3, %c0_4] : memref<1x256xf32, #tpu.memory_space<vmem>>, vector<1x256xf32>
    %cst = arith.constant dense<0.000000e+00> : vector<32xf32>
    %3 = vector.multi_reduction <add>, %0, %cst [1] : vector<32x256xf32> to vector<32xf32>
    %4 = vector.shape_cast %3 : vector<32xf32> to vector<32x1xf32>
    %cst_5 = arith.constant 2.560000e+02 : f32
    %5 = vector.broadcast %cst_5 : f32 to vector<32x1xf32>
    %6 = arith.divf %4, %5 : vector<32x1xf32>
    %7 = vector.broadcast %6 : vector<32x1xf32> to vector<32x256xf32>
    %8 = arith.subf %0, %7 : vector<32x256xf32>
    %9 = arith.mulf %8, %8 : vector<32x256xf32>
    %cst_6 = arith.constant dense<0.000000e+00> : vector<32xf32>
    %10 = vector.multi_reduction <add>, %9, %cst_6 [1] : vector<32x256xf32> to vector<32xf32>
    %11 = vector.shape_cast %10 : vector<32xf32> to vector<32x1xf32>
    %cst_7 = arith.constant 2.560000e+02 : f32
    %12 = vector.broadcast %cst_7 : f32 to vector<32x1xf32>
    %13 = arith.divf %11, %12 : vector<32x1xf32>
    %14 = vector.broadcast %6 : vector<32x1xf32> to vector<32x256xf32>
    %15 = arith.subf %0, %14 : vector<32x256xf32>
    %cst_8 = arith.constant 9.99999974E-6 : f32
    %16 = vector.broadcast %cst_8 : f32 to vector<32x1xf32>
    %17 = arith.addf %13, %16 : vector<32x1xf32>
    %18 = math.rsqrt %17 : vector<32x1xf32>
    %19 = vector.broadcast %18 : vector<32x1xf32> to vector<32x256xf32>
    %20 = arith.mulf %15, %19 : vector<32x256xf32>
    %21 = vector.broadcast %1 : vector<1x256xf32> to vector<32x256xf32>
    %22 = arith.mulf %20, %21 : vector<32x256xf32>
    %23 = vector.broadcast %2 : vector<1x256xf32> to vector<32x256xf32>
    %24 = arith.addf %22, %23 : vector<32x256xf32>
    %c0_9 = arith.constant 0 : index
    %c0_10 = arith.constant 0 : index
    %25 = vector.load %arg5[%c0_9, %c0_10] : memref<256x512xf32, #tpu.memory_space<vmem>>, vector<256x512xf32>
    %cst_11 = arith.constant dense<0.000000e+00> : vector<32x512xf32>
    %26 = tpu.matmul %24, %25, %cst_11 {dimension_numbers = #tpu.dot_dimension_numbers<[1], [0], [0], [1], [0, 0, 1, 1], [], []>} : vector<32x256xf32>, vector<256x512xf32>, vector<32x512xf32> -> vector<32x512xf32>
    %c0_12 = arith.constant 0 : index
    %c0_13 = arith.constant 0 : index
    %27 = vector.load %arg6[%c0_12, %c0_13] : memref<1x512xf32, #tpu.memory_space<vmem>>, vector<1x512xf32>
    %28 = vector.broadcast %27 : vector<1x512xf32> to vector<32x512xf32>
    %29 = arith.addf %26, %28 : vector<32x512xf32>
    %c0_14 = arith.constant 0 : index
    %c0_15 = arith.constant 0 : index
    %30 = vector.load %arg7[%c0_14, %c0_15] : memref<32x512xf32, #tpu.memory_space<vmem>>, vector<32x512xf32>
    tpu.vector_store %arg7[%c0_14, %c0_15], %29 {strides = array<i32>} : memref<32x512xf32, #tpu.memory_space<vmem>>, vector<32x512xf32>,
    return
  }
  func.func @transform_0(%arg0: i32, %arg1: i32) -> (i32, i32) {
    %c0_i32 = arith.constant 0 : i32
    %c0_i32_0 = arith.constant 0 : i32
    return %arg0, %c0_i32 : i32, i32
  }
  func.func @transform_1(%arg0: i32, %arg1: i32) -> (i32, i32) {
    %c0_i32 = arith.constant 0 : i32
    %c0_i32_0 = arith.constant 0 : i32
    %c0_i32_1 = arith.constant 0 : i32
    return %c0_i32, %c0_i32_0 : i32, i32
  }
  func.func @transform_2(%arg0: i32, %arg1: i32) -> (i32, i32) {
    %c0_i32 = arith.constant 0 : i32
    %c0_i32_0 = arith.constant 0 : i32
    %c0_i32_1 = arith.constant 0 : i32
    return %c0_i32, %c0_i32_0 : i32, i32
  }
  func.func @transform_3(%arg0: i32, %arg1: i32) -> (i32, i32) {
    %c0_i32 = arith.constant 0 : i32
    %c0_i32_0 = arith.constant 0 : i32
    return %c0_i32, %arg1 : i32, i32
  }
  func.func @transform_4(%arg0: i32, %arg1: i32) -> (i32, i32) {
    %c0_i32 = arith.constant 0 : i32
    %c0_i32_0 = arith.constant 0 : i32
    return %c0_i32, %arg1 : i32, i32
  }
  func.func @transform_5(%arg0: i32, %arg1: i32) -> (i32, i32) {
    %c0_i32 = arith.constant 0 : i32
    return %arg0, %arg1 : i32, i32
  }
}

module attributes {stable_mosaic.version = 11 : i64} {
  func.func @_attn_kernel(%arg0: i32, %arg1: i32, %arg2: memref<1x64x128xf32, #tpu.memory_space<vmem>>, %arg3: memref<1x16x128xf32, #tpu.memory_space<vmem>>, %arg4: memref<1x16x128xf32, #tpu.memory_space<vmem>>, %arg5: memref<1x64x128xf32, #tpu.memory_space<vmem>>) attributes {dimension_semantics = [#tpu.dimension_semantics<parallel>, #tpu.dimension_semantics<parallel>], iteration_bounds = array<i64: 2, 2>, scalar_prefetch = 0 : i64, scratch_operands = 0 : i64, tpu.core_type = #tpu.core_type<tc>, window_params = [{transform_indices = @transform_0, window_bounds = array<i64: 1, 64, 128>}, {transform_indices = @transform_1, window_bounds = array<i64: 1, 16, 128>}, {transform_indices = @transform_2, window_bounds = array<i64: 1, 16, 128>}, {transform_indices = @transform_3, window_bounds = array<i64: 1, 64, 128>}]} {
    %c0 = arith.constant 0 : index
    %c0_0 = arith.constant 0 : index
    %c0_1 = arith.constant 0 : index
    %0 = vector.load %arg2[%c0, %c0_0, %c0_1] : memref<1x64x128xf32, #tpu.memory_space<vmem>>, vector<1x64x128xf32>
    %1 = vector.shape_cast %0 : vector<1x64x128xf32> to vector<64x128xf32>
    %c0_2 = arith.constant 0 : index
    %c0_3 = arith.constant 0 : index
    %c0_4 = arith.constant 0 : index
    %2 = vector.load %arg3[%c0_2, %c0_3, %c0_4] : memref<1x16x128xf32, #tpu.memory_space<vmem>>, vector<1x16x128xf32>
    %3 = vector.shape_cast %2 : vector<1x16x128xf32> to vector<16x128xf32>
    %c0_5 = arith.constant 0 : index
    %c0_6 = arith.constant 0 : index
    %c0_7 = arith.constant 0 : index
    %4 = vector.load %arg4[%c0_5, %c0_6, %c0_7] : memref<1x16x128xf32, #tpu.memory_space<vmem>>, vector<1x16x128xf32>
    %5 = vector.shape_cast %4 : vector<1x16x128xf32> to vector<16x128xf32>
    %cst = arith.constant dense<0.000000e+00> : vector<64x16xf32>
    %6 = tpu.matmul %1, %3, %cst {dimension_numbers = #tpu.dot_dimension_numbers<[1], [1], [0], [0], [0, 0, 1, 0], [], []>} : vector<64x128xf32>, vector<16x128xf32>, vector<64x16xf32> -> vector<64x16xf32>
    %cst_8 = arith.constant 0.0883883461 : f32
    %7 = vector.broadcast %cst_8 : f32 to vector<64x16xf32>
    %8 = arith.mulf %6, %7 : vector<64x16xf32>
    %cst_9 = arith.constant dense<0xFF800000> : vector<64xf32>
    %9 = vector.multi_reduction <maximumf>, %8, %cst_9 [1] : vector<64x16xf32> to vector<64xf32>
    %10 = vector.shape_cast %9 : vector<64xf32> to vector<64x1xf32>
    %11 = vector.broadcast %10 : vector<64x1xf32> to vector<64x16xf32>
    %12 = arith.subf %8, %11 : vector<64x16xf32>
    %13 = math.exp %12 : vector<64x16xf32>
    %cst_10 = arith.constant dense<0.000000e+00> : vector<64xf32>
    %14 = vector.multi_reduction <add>, %13, %cst_10 [1] : vector<64x16xf32> to vector<64xf32>
    %15 = vector.shape_cast %14 : vector<64xf32> to vector<64x1xf32>
    %16 = tpu.reciprocal %15 {approx = true} : vector<64x1xf32> -> vector<64x1xf32>
    %17 = vector.broadcast %16 : vector<64x1xf32> to vector<64x16xf32>
    %18 = arith.mulf %13, %17 : vector<64x16xf32>
    %cst_11 = arith.constant dense<0.000000e+00> : vector<64x128xf32>
    %19 = tpu.matmul %18, %5, %cst_11 {dimension_numbers = #tpu.dot_dimension_numbers<[1], [0], [0], [1], [0, 0, 1, 1], [], []>} : vector<64x16xf32>, vector<16x128xf32>, vector<64x128xf32> -> vector<64x128xf32>
    %c0_12 = arith.constant 0 : index
    %c0_13 = arith.constant 0 : index
    %c0_14 = arith.constant 0 : index
    %20 = vector.load %arg5[%c0_12, %c0_13, %c0_14] : memref<1x64x128xf32, #tpu.memory_space<vmem>>, vector<1x64x128xf32>
    %21 = vector.shape_cast %20 : vector<1x64x128xf32> to vector<64x128xf32>
    %22 = vector.shape_cast %19 : vector<64x128xf32> to vector<1x64x128xf32>
    tpu.vector_store %arg5[%c0_12, %c0_13, %c0_14], %22 {strides = array<i32>} : memref<1x64x128xf32, #tpu.memory_space<vmem>>, vector<1x64x128xf32>,
    return
  }
  func.func @transform_0(%arg0: i32, %arg1: i32) -> (i32, i32, i32) {
    %c0_i32 = arith.constant 0 : i32
    %0 = arith.addi %c0_i32, %arg1 : i32
    %c0_i32_0 = arith.constant 0 : i32
    %c0_i32_1 = arith.constant 0 : i32
    return %arg0, %c0_i32_0, %0 : i32, i32, i32
  }
  func.func @transform_1(%arg0: i32, %arg1: i32) -> (i32, i32, i32) {
    %c0_i32 = arith.constant 0 : i32
    %0 = arith.addi %c0_i32, %arg1 : i32
    %c0_i32_0 = arith.constant 0 : i32
    %c0_i32_1 = arith.constant 0 : i32
    return %arg0, %c0_i32_0, %0 : i32, i32, i32
  }
  func.func @transform_2(%arg0: i32, %arg1: i32) -> (i32, i32, i32) {
    %c2_i32 = arith.constant 2 : i32
    %0 = arith.addi %c2_i32, %arg1 : i32
    %c0_i32 = arith.constant 0 : i32
    %c0_i32_0 = arith.constant 0 : i32
    return %arg0, %c0_i32, %0 : i32, i32, i32
  }
  func.func @transform_3(%arg0: i32, %arg1: i32) -> (i32, i32, i32) {
    %c0_i32 = arith.constant 0 : i32
    %c0_i32_0 = arith.constant 0 : i32
    return %arg0, %c0_i32, %arg1 : i32, i32, i32
  }
}

module attributes {stable_mosaic.version = 11 : i64} {
  func.func @_ffn_kernel(%arg0: i32, %arg1: memref<128x256xf32, #tpu.memory_space<vmem>>, %arg2: memref<1x256xf32, #tpu.memory_space<vmem>>, %arg3: memref<1x256xf32, #tpu.memory_space<vmem>>, %arg4: memref<256x512xf32, #tpu.memory_space<vmem>>, %arg5: memref<1x512xf32, #tpu.memory_space<vmem>>, %arg6: memref<512x256xf32, #tpu.memory_space<vmem>>, %arg7: memref<1x256xf32, #tpu.memory_space<vmem>>, %arg8: memref<128x256xf32, #tpu.memory_space<vmem>>) attributes {dimension_semantics = [#tpu.dimension_semantics<parallel>], iteration_bounds = array<i64: 1>, scalar_prefetch = 0 : i64, scratch_operands = 0 : i64, tpu.core_type = #tpu.core_type<tc>, window_params = [{transform_indices = @transform_0, window_bounds = array<i64: 128, 256>}, {pipeline_mode = #tpu.pipeline_mode<synchronous>, transform_indices = @transform_1, window_bounds = array<i64: 1, 256>}, {pipeline_mode = #tpu.pipeline_mode<synchronous>, transform_indices = @transform_2, window_bounds = array<i64: 1, 256>}, {pipeline_mode = #tpu.pipeline_mode<synchronous>, transform_indices = @transform_3, window_bounds = array<i64: 256, 512>}, {pipeline_mode = #tpu.pipeline_mode<synchronous>, transform_indices = @transform_4, window_bounds = array<i64: 1, 512>}, {pipeline_mode = #tpu.pipeline_mode<synchronous>, transform_indices = @transform_5, window_bounds = array<i64: 512, 256>}, {pipeline_mode = #tpu.pipeline_mode<synchronous>, transform_indices = @transform_6, window_bounds = array<i64: 1, 256>}, {transform_indices = @transform_7, window_bounds = array<i64: 128, 256>}]} {
    %c0 = arith.constant 0 : index
    %c0_0 = arith.constant 0 : index
    %0 = vector.load %arg1[%c0, %c0_0] : memref<128x256xf32, #tpu.memory_space<vmem>>, vector<128x256xf32>
    %c0_1 = arith.constant 0 : index
    %c0_2 = arith.constant 0 : index
    %1 = vector.load %arg2[%c0_1, %c0_2] : memref<1x256xf32, #tpu.memory_space<vmem>>, vector<1x256xf32>
    %c0_3 = arith.constant 0 : index
    %c0_4 = arith.constant 0 : index
    %2 = vector.load %arg3[%c0_3, %c0_4] : memref<1x256xf32, #tpu.memory_space<vmem>>, vector<1x256xf32>
    %cst = arith.constant dense<0.000000e+00> : vector<128xf32>
    %3 = vector.multi_reduction <add>, %0, %cst [1] : vector<128x256xf32> to vector<128xf32>
    %4 = vector.shape_cast %3 : vector<128xf32> to vector<128x1xf32>
    %cst_5 = arith.constant 2.560000e+02 : f32
    %5 = vector.broadcast %cst_5 : f32 to vector<128x1xf32>
    %6 = arith.divf %4, %5 : vector<128x1xf32>
    %7 = vector.broadcast %6 : vector<128x1xf32> to vector<128x256xf32>
    %8 = arith.subf %0, %7 : vector<128x256xf32>
    %9 = arith.mulf %8, %8 : vector<128x256xf32>
    %cst_6 = arith.constant dense<0.000000e+00> : vector<128xf32>
    %10 = vector.multi_reduction <add>, %9, %cst_6 [1] : vector<128x256xf32> to vector<128xf32>
    %11 = vector.shape_cast %10 : vector<128xf32> to vector<128x1xf32>
    %cst_7 = arith.constant 2.560000e+02 : f32
    %12 = vector.broadcast %cst_7 : f32 to vector<128x1xf32>
    %13 = arith.divf %11, %12 : vector<128x1xf32>
    %14 = vector.broadcast %6 : vector<128x1xf32> to vector<128x256xf32>
    %15 = arith.subf %0, %14 : vector<128x256xf32>
    %cst_8 = arith.constant 9.99999974E-6 : f32
    %16 = vector.broadcast %cst_8 : f32 to vector<128x1xf32>
    %17 = arith.addf %13, %16 : vector<128x1xf32>
    %18 = math.rsqrt %17 : vector<128x1xf32>
    %19 = vector.broadcast %18 : vector<128x1xf32> to vector<128x256xf32>
    %20 = arith.mulf %15, %19 : vector<128x256xf32>
    %21 = vector.broadcast %1 : vector<1x256xf32> to vector<128x256xf32>
    %22 = arith.mulf %20, %21 : vector<128x256xf32>
    %23 = vector.broadcast %2 : vector<1x256xf32> to vector<128x256xf32>
    %24 = arith.addf %22, %23 : vector<128x256xf32>
    %c0_9 = arith.constant 0 : index
    %c0_10 = arith.constant 0 : index
    %25 = vector.load %arg4[%c0_9, %c0_10] : memref<256x512xf32, #tpu.memory_space<vmem>>, vector<256x512xf32>
    %cst_11 = arith.constant dense<0.000000e+00> : vector<128x512xf32>
    %26 = tpu.matmul %24, %25, %cst_11 {dimension_numbers = #tpu.dot_dimension_numbers<[1], [0], [0], [1], [0, 0, 1, 1], [], []>} : vector<128x256xf32>, vector<256x512xf32>, vector<128x512xf32> -> vector<128x512xf32>
    %c0_12 = arith.constant 0 : index
    %c0_13 = arith.constant 0 : index
    %27 = vector.load %arg5[%c0_12, %c0_13] : memref<1x512xf32, #tpu.memory_space<vmem>>, vector<1x512xf32>
    %28 = vector.broadcast %27 : vector<1x512xf32> to vector<128x512xf32>
    %29 = arith.addf %26, %28 : vector<128x512xf32>
    %cst_14 = arith.constant 5.000000e-01 : f32
    %30 = vector.broadcast %cst_14 : f32 to vector<128x512xf32>
    %31 = arith.mulf %30, %29 : vector<128x512xf32>
    %cst_15 = arith.constant 0.707106769 : f32
    %32 = vector.broadcast %cst_15 : f32 to vector<128x512xf32>
    %33 = arith.mulf %29, %32 : vector<128x512xf32>
    %34 = math.absf %33 : vector<128x512xf32>
    %cst_16 = arith.constant 0.327591091 : f32
    %35 = vector.broadcast %cst_16 : f32 to vector<128x512xf32>
    %36 = arith.mulf %35, %34 : vector<128x512xf32>
    %cst_17 = arith.constant 1.000000e+00 : f32
    %37 = vector.broadcast %cst_17 : f32 to vector<128x512xf32>
    %38 = arith.addf %37, %36 : vector<128x512xf32>
    %cst_18 = arith.constant 1.000000e+00 : f32
    %39 = vector.broadcast %cst_18 : f32 to vector<128x512xf32>
    %40 = arith.divf %39, %38 : vector<128x512xf32>
    %cst_19 = arith.constant 1.06140542 : f32
    %41 = vector.broadcast %cst_19 : f32 to vector<128x512xf32>
    %42 = arith.mulf %41, %40 : vector<128x512xf32>
    %cst_20 = arith.constant -1.45315206 : f32
    %43 = vector.broadcast %cst_20 : f32 to vector<128x512xf32>
    %44 = arith.addf %42, %43 : vector<128x512xf32>
    %45 = arith.mulf %44, %40 : vector<128x512xf32>
    %cst_21 = arith.constant 1.42141378 : f32
    %46 = vector.broadcast %cst_21 : f32 to vector<128x512xf32>
    %47 = arith.addf %45, %46 : vector<128x512xf32>
    %48 = arith.mulf %47, %40 : vector<128x512xf32>
    %cst_22 = arith.constant -0.284496725 : f32
    %49 = vector.broadcast %cst_22 : f32 to vector<128x512xf32>
    %50 = arith.addf %48, %49 : vector<128x512xf32>
    %51 = arith.mulf %50, %40 : vector<128x512xf32>
    %cst_23 = arith.constant 0.254829586 : f32
    %52 = vector.broadcast %cst_23 : f32 to vector<128x512xf32>
    %53 = arith.addf %51, %52 : vector<128x512xf32>
    %54 = arith.mulf %53, %40 : vector<128x512xf32>
    %cst_24 = arith.constant 0.000000e+00 : f32
    %55 = vector.broadcast %cst_24 : f32 to vector<128x512xf32>
    %56 = arith.subf %55, %34 : vector<128x512xf32>
    %57 = arith.mulf %56, %34 : vector<128x512xf32>
    %58 = math.exp %57 : vector<128x512xf32>
    %59 = arith.mulf %54, %58 : vector<128x512xf32>
    %cst_25 = arith.constant 1.000000e+00 : f32
    %60 = vector.broadcast %cst_25 : f32 to vector<128x512xf32>
    %61 = arith.subf %60, %59 : vector<128x512xf32>
    %cst_26 = arith.constant 0.000000e+00 : f32
    %62 = vector.broadcast %cst_26 : f32 to vector<128x512xf32>
    %63 = arith.cmpf olt, %33, %62 : vector<128x512xf32>
    %cst_27 = arith.constant 0.000000e+00 : f32
    %64 = vector.broadcast %cst_27 : f32 to vector<128x512xf32>
    %65 = arith.subf %64, %61 : vector<128x512xf32>
    %66 = arith.select %63, %65, %61 : vector<128x512xi1>, vector<128x512xf32>
    %cst_28 = arith.constant 1.000000e+00 : f32
    %67 = vector.broadcast %cst_28 : f32 to vector<128x512xf32>
    %68 = arith.addf %67, %66 : vector<128x512xf32>
    %69 = arith.mulf %31, %68 : vector<128x512xf32>
    %c0_29 = arith.constant 0 : index
    %c0_30 = arith.constant 0 : index
    %70 = vector.load %arg6[%c0_29, %c0_30] : memref<512x256xf32, #tpu.memory_space<vmem>>, vector<512x256xf32>
    %cst_31 = arith.constant dense<0.000000e+00> : vector<128x256xf32>
    %71 = tpu.matmul %69, %70, %cst_31 {dimension_numbers = #tpu.dot_dimension_numbers<[1], [0], [0], [1], [0, 0, 1, 1], [], []>} : vector<128x512xf32>, vector<512x256xf32>, vector<128x256xf32> -> vector<128x256xf32>
    %c0_32 = arith.constant 0 : index
    %c0_33 = arith.constant 0 : index
    %72 = vector.load %arg7[%c0_32, %c0_33] : memref<1x256xf32, #tpu.memory_space<vmem>>, vector<1x256xf32>
    %73 = vector.broadcast %72 : vector<1x256xf32> to vector<128x256xf32>
    %74 = arith.addf %71, %73 : vector<128x256xf32>
    %75 = arith.addf %74, %0 : vector<128x256xf32>
    %c0_34 = arith.constant 0 : index
    %c0_35 = arith.constant 0 : index
    %76 = vector.load %arg8[%c0_34, %c0_35] : memref<128x256xf32, #tpu.memory_space<vmem>>, vector<128x256xf32>
    tpu.vector_store %arg8[%c0_34, %c0_35], %75 {strides = array<i32>} : memref<128x256xf32, #tpu.memory_space<vmem>>, vector<128x256xf32>,
    return
  }
  func.func @transform_0(%arg0: i32) -> (i32, i32) {
    %c0_i32 = arith.constant 0 : i32
    %c0_i32_0 = arith.constant 0 : i32
    return %arg0, %c0_i32 : i32, i32
  }
  func.func @transform_1(%arg0: i32) -> (i32, i32) {
    %c0_i32 = arith.constant 0 : i32
    %c0_i32_0 = arith.constant 0 : i32
    %c0_i32_1 = arith.constant 0 : i32
    return %c0_i32, %c0_i32_0 : i32, i32
  }
  func.func @transform_2(%arg0: i32) -> (i32, i32) {
    %c0_i32 = arith.constant 0 : i32
    %c0_i32_0 = arith.constant 0 : i32
    %c0_i32_1 = arith.constant 0 : i32
    return %c0_i32, %c0_i32_0 : i32, i32
  }
  func.func @transform_3(%arg0: i32) -> (i32, i32) {
    %c0_i32 = arith.constant 0 : i32
    %c0_i32_0 = arith.constant 0 : i32
    %c0_i32_1 = arith.constant 0 : i32
    return %c0_i32, %c0_i32_0 : i32, i32
  }
  func.func @transform_4(%arg0: i32) -> (i32, i32) {
    %c0_i32 = arith.constant 0 : i32
    %c0_i32_0 = arith.constant 0 : i32
    %c0_i32_1 = arith.constant 0 : i32
    return %c0_i32, %c0_i32_0 : i32, i32
  }
  func.func @transform_5(%arg0: i32) -> (i32, i32) {
    %c0_i32 = arith.constant 0 : i32
    %c0_i32_0 = arith.constant 0 : i32
    %c0_i32_1 = arith.constant 0 : i32
    return %c0_i32, %c0_i32_0 : i32, i32
  }
  func.func @transform_6(%arg0: i32) -> (i32, i32) {
    %c0_i32 = arith.constant 0 : i32
    %c0_i32_0 = arith.constant 0 : i32
    %c0_i32_1 = arith.constant 0 : i32
    return %c0_i32, %c0_i32_0 : i32, i32
  }
  func.func @transform_7(%arg0: i32) -> (i32, i32) {
    %c0_i32 = arith.constant 0 : i32
    %c0_i32_0 = arith.constant 0 : i32
    return %arg0, %c0_i32 : i32, i32
  }
}

</mosaic_0001>

<bundles_post_ra>
// kernel: reactive_transformer_layer.9
= control target key start
LH: loop header
LB: loop body
LE: loop exit
PB: predicated region body
PF: predicated region fallthrough
CT: control target
= control target key end

     0   :  { %s1612_s0 = inlined_call_operand.vmem [shape: f32[2,64,768], index: 0, kind: input, shape index: {}, may-alias: {0,1,2}]   ;;  %s1613_s1 = inlined_call_operand.vmem [shape: f32[2,64,768], index: 1, kind: input, shape index: {}, may-alias: {0,1,2}]   ;;  %s1614_s2 = inlined_call_operand.vmem [shape: f32[2,64,768], index: 2, kind: input, shape index: {}, may-alias: {0,1,2}]   ;;  %s1615_s3 = inlined_call_operand.vmem [shape: f32[2,64,256], index: 3, kind: output, shape index: {}]  }
   0x1   :  { %1617 = sst [smem:[#allocation7_spill]] %s1615_s3 }
   0x2   :  { %s1366_s12 = smov 0   ;;  %s1368_s13 = smov 0  }
   0x3   :  { %s1370_s14 = smov 0   ;;  %s1372_s15 = smov 0  }
   0x4   :  { %s1374_s16 = smov 0   ;;  %s1376_s17 = smov 0  }
   0x5   :  { %s1378_s18 = smov 0   ;;  %s1380_s19 = smov 0  }
   0x6   :  { %s1382_s20 = smov 0   ;;  %s1384_s21 = smov 0  }
   0x7   :  { %s1386_s22 = smov 0  }
   0x8 LB: > { %s22_s24 = sadd.s32 1, %s1336_s20  ;;  %s25_s25 = sadd.s32 1, %s1340_s21  ;;  %s1344_s22 = sphi %s1386_s22, %s13_s22   ;;  %s1340_s21 = sphi %s1384_s21, %s1635_s21   ;;  %s1336_s20 = sphi %s1382_s20, %s1634_s20   ;;  %s1332_s19 = sphi %s1380_s19, %s1633_s19   ;;  %s1328_s18 = sphi %s1378_s18, %s1632_s18   ;;  %s1324_s17 = sphi %s1376_s17, %s1631_s17   ;;  %s1320_s16 = sphi %s1374_s16, %s1630_s16   ;;  %s1316_s15 = sphi %s1372_s15, %s1629_s15   ;;  %s1312_s14 = sphi %s1370_s14, %s1628_s14   ;;  %s1308_s13 = sphi %s1368_s13, %s1627_s13   ;;  %s1304_s12 = sphi %s1366_s12, %s1626_s12  }
   0x9   : > { %p23_p0 = scmp.ge.s32.totalorder %s22_s24, 2  ;;  %s34_s26 = sadd.s32 1, %s1324_s17 }
   0xa   : > { %p41_p1 = scmp.ne.s32.totalorder %s1324_s17, %s1320_s16  ;;  %p42_p2 = scmp.eq.s32.totalorder %s1344_s22, 0 }
   0xb   : > { %s1637_s24 = smov (%p23_p0, %s22_s24), 0  ;;  %s1639_s25 = smov (!%p23_p0, %s25_s25), %s1340_s21 }
   0xc   : > { %s30_s27 = ssub.s32 %s1336_s20, %s1637_s24  ;;  %p27_p3 = scmp.ge.s32.totalorder %s1639_s25, 2 }
   0xd   : > { %s57_s28 = sadd.s32 2, %s1336_s20  ;;  %p1439_p4 = por %p42_p2, %p41_p1 }
   0xe   : > { %s58_s30 = sadd.s32 2, %s1637_s24  ;;  %s1641_s25 = smov (%p27_p3, %s1639_s25), 0 }
   0xf   : > { %1619 = sst [smem:[#allocation6_spill]] %s1641_s25  ;;  %s60_s4 = ssub.s32 %s57_s28, %s58_s30 }
  0x10   : > { %s64_s5 = sadd.s32 1, %s1316_s15  ;;  %s29_s6 = ssub.s32 %s1340_s21, %s1641_s25 }
  0x11   : > { %p71_p5 = scmp.ne.s32.totalorder %s1316_s15, %s1312_s14  ;;  %s31_s7 = sor.u32 %s30_s27, %s29_s6 }
  0x12   : > { %s61_s8 = sor.u32 %s60_s4, %s29_s6  ;;  %p32_p6 = scmp.eq.s32.totalorder %s31_s7, 0 }
  0x13   : > { %p62_p7 = scmp.eq.s32.totalorder %s61_s8, 0  ;;  %p1453_p8 = por %p71_p5, %p42_p2 }
  0x14   : > { %s87_s10 = sadd.s32 4, %s1336_s20  ;;  %s88_s30 = sadd.s32 4, %s1637_s24 }
  0x15   : > { %s1459_s11 = scalar_select %p32_p6, %s1324_s17, %s34_s26  }
  0x16   : > { %s1462_s28 = scalar_select %p62_p7, %s1316_s15, %s64_s5  }
  0x17   : > { %s94_s23 = sadd.s32 1, %s1308_s13  ;;  %s90_s25 = ssub.s32 %s87_s10, %s88_s30 }
  0x18   : > { %p101_p9 = scmp.ne.s32.totalorder %s1308_s13, %s1304_s12  ;;  %s91_s27 = sor.u32 %s90_s25, %s29_s6 }
  0x19   : > { %s1621_s3 = sadd.s32 4294967295, %s1344_s22   ;;  %p92_p11 = scmp.eq.s32.totalorder %s91_s27, 0 }
  0x1a   : > { %p133_p10 = scmp.eq.s32.totalorder %s1621_s3, 3  ;;  %p1472_p12 = por %p101_p9, %p42_p2 }
  0x1b   : > { %s1484_s26 = scalar_select %p92_p11, %s1308_s13, %s94_s23  }
  0x1c   : > { %p1479_p13 = por %p133_p10, %p41_p1  ;;  %p976_p0 = scmp.ge.s32.totalorder %s1344_s22, 4 }
  0x1e   : > { %155 = sbr.rel (%p976_p0) target bundleno = 70 (0x46), region = 16 }
  0x25   : > { %158 = sbr.rel (!%p1439_p4) target bundleno = 48 (0x30), region = 20  ;;  %s160_s3 = sand.u32 (%p1439_p4), 1, %s1324_s17  }
  0x26   : > { %s1137_s25 = smul.u32 (%p1439_p4), 48, %s1340_s21  ;;  %s977_s5 = sshll.u32 (%p1439_p4), %s160_s3, 6 }
  0x27   : > { %s162_s23 = scalar_lea.vmem (%p1439_p4), [#allocation2], %s977_s5 }
  0x28   : > { %s164_s6 = sadd.s32 (%p1439_p4), %s1336_s20, %s1137_s25 }
  0x29   : > { %s978_s8 = sshll.u32 (%p1439_p4), %s164_s6, 3 }
  0x2a   : > { %s166_s27 = scalar_lea.vmem (%p1439_p4), %s1612_s0, %s978_s8 }
  0x2b   : > { %v208_v0 = vld [vmem:[%s166_s27] sm:$0xff] (%p1439_p4)  ;;  %v210_v1 = vld [vmem:[%s166_s27 + $0x30] sm:$0xff] (%p1439_p4) }
  0x2c   : > { %v212_v2 = vld [vmem:[%s166_s27 + $0x60] sm:$0xff]  ;;  %209 = vst [vmem:[%s162_s23] sm:$0xff] %v208_v0  ;;  %211 = vst [vmem:[%s162_s23 + $0x8] sm:$0xff] %v210_v1  ;;  %v214_v3 = vld [vmem:[%s166_s27 + $0x90] sm:$0xff] }
  0x2d   : > { %213 = vst [vmem:[%s162_s23 + $0x10] sm:$0xff] %v212_v2  ;;  %v216_v4 = vld [vmem:[%s166_s27 + $0xc0] sm:$0xff]  ;;  %v218_v5 = vld [vmem:[%s166_s27 + $0xf0] sm:$0xff]  ;;  %215 = vst [vmem:[%s162_s23 + $0x18] sm:$0xff] %v214_v3 }
  0x2e   : > { %217 = vst [vmem:[%s162_s23 + $0x20] sm:$0xff] %v216_v4  ;;  %219 = vst [vmem:[%s162_s23 + $0x28] sm:$0xff] %v218_v5  ;;  %v220_v6 = vld [vmem:[%s166_s27 + $0x120] sm:$0xff]  ;;  %v222_v7 = vld [vmem:[%s166_s27 + $0x150] sm:$0xff] }
  0x2f   : > { %221 = vst [vmem:[%s162_s23 + $0x30] sm:$0xff] %v220_v6  ;;  %223 = vst [vmem:[%s162_s23 + $0x38] sm:$0xff] %v222_v7 }
  0x30 PF: > { %229 = sbr.rel (!%p1453_p8) target bundleno = 59 (0x3b), region = 58  ;;  %s231_s29 = sand.u32 (%p1453_p8), 1, %s1316_s15  }
  0x31   : > { %s879_s3 = smul.u32 (%p1453_p8), 48, %s1340_s21  ;;  %s979_s25 = sshll.u32 (%p1453_p8), %s231_s29, 6 }
  0x32   : > { %s233_s27 = scalar_lea.vmem (%p1453_p8), [#allocation3], %s979_s25 }
  0x33   : > { %s880_s5 = sadd.s32 (%p1453_p8), %s1336_s20, %s879_s3 }
  0x34   : > { %s980_s6 = sshll.u32 (%p1453_p8), %s880_s5, 3 }
  0x35   : > { %s882_s30 = scalar_lea.vmem (%p1453_p8), %s1613_s1, %s980_s6 }
  0x36   : > { %v981_v8 = vld [vmem:[%s882_s30 + $0x10] sm:$0xff] (%p1453_p8)  ;;  %v982_v9 = vld [vmem:[%s882_s30 + $0x40] sm:$0xff] (%p1453_p8) }
  0x37   : > { %v983_v10 = vld [vmem:[%s882_s30 + $0x70] sm:$0xff]  ;;  %281 = vst [vmem:[%s233_s27] sm:$0xff] %v981_v8  ;;  %283 = vst [vmem:[%s233_s27 + $0x8] sm:$0xff] %v982_v9  ;;  %v984_v11 = vld [vmem:[%s882_s30 + $0xa0] sm:$0xff] }
  0x38   : > { %285 = vst [vmem:[%s233_s27 + $0x10] sm:$0xff] %v983_v10  ;;  %v985_v12 = vld [vmem:[%s882_s30 + $0xd0] sm:$0xff]  ;;  %v986_v13 = vld [vmem:[%s882_s30 + $0x100] sm:$0xff]  ;;  %287 = vst [vmem:[%s233_s27 + $0x18] sm:$0xff] %v984_v11 }
  0x39   : > { %289 = vst [vmem:[%s233_s27 + $0x20] sm:$0xff] %v985_v12  ;;  %291 = vst [vmem:[%s233_s27 + $0x28] sm:$0xff] %v986_v13  ;;  %v987_v14 = vld [vmem:[%s882_s30 + $0x130] sm:$0xff]  ;;  %v988_v15 = vld [vmem:[%s882_s30 + $0x160] sm:$0xff] }
  0x3a   : > { %293 = vst [vmem:[%s233_s27 + $0x30] sm:$0xff] %v987_v14  ;;  %295 = vst [vmem:[%s233_s27 + $0x38] sm:$0xff] %v988_v15 }
  0x3b PF: > { %301 = sbr.rel (!%p1472_p12) target bundleno = 70 (0x46), region = 96  ;;  %s303_s9 = sand.u32 (%p1472_p12), 1, %s1308_s13  }
  0x3c   : > { %s886_s23 = smul.u32 (%p1472_p12), 48, %s1340_s21  ;;  %s989_s29 = sshll.u32 (%p1472_p12), %s303_s9, 6 }
  0x3d   : > { %s305_s10 = scalar_lea.vmem (%p1472_p12), [#allocation4], %s989_s29 }
  0x3e   : > { %s887_s3 = sadd.s32 (%p1472_p12), %s1336_s20, %s886_s23 }
  0x3f   : > { %s990_s25 = sshll.u32 (%p1472_p12), %s887_s3, 3 }
  0x40   : > { %s889_s8 = scalar_lea.vmem (%p1472_p12), %s1614_s2, %s990_s25 }
  0x41   : > { %v991_v16 = vld [vmem:[%s889_s8 + $0x20] sm:$0xff] (%p1472_p12)  ;;  %v992_v17 = vld [vmem:[%s889_s8 + $0x50] sm:$0xff] (%p1472_p12) }
  0x42   : > { %v993_v18 = vld [vmem:[%s889_s8 + $0x80] sm:$0xff]  ;;  %353 = vst [vmem:[%s305_s10] sm:$0xff] %v991_v16  ;;  %355 = vst [vmem:[%s305_s10 + $0x8] sm:$0xff] %v992_v17  ;;  %v994_v19 = vld [vmem:[%s889_s8 + $0xb0] sm:$0xff] }
  0x43   : > { %357 = vst [vmem:[%s305_s10 + $0x10] sm:$0xff] %v993_v18  ;;  %v995_v20 = vld [vmem:[%s889_s8 + $0xe0] sm:$0xff]  ;;  %v996_v21 = vld [vmem:[%s889_s8 + $0x110] sm:$0xff]  ;;  %359 = vst [vmem:[%s305_s10 + $0x18] sm:$0xff] %v994_v19 }
  0x44   : > { %361 = vst [vmem:[%s305_s10 + $0x20] sm:$0xff] %v995_v20  ;;  %363 = vst [vmem:[%s305_s10 + $0x28] sm:$0xff] %v996_v21  ;;  %v997_v22 = vld [vmem:[%s889_s8 + $0x140] sm:$0xff]  ;;  %v998_v23 = vld [vmem:[%s889_s8 + $0x170] sm:$0xff] }
  0x45   : > { %365 = vst [vmem:[%s305_s10 + $0x30] sm:$0xff] %v997_v22  ;;  %367 = vst [vmem:[%s305_s10 + $0x38] sm:$0xff] %v998_v23 }
  0x46 PF: > { %p999_p1 = scmp.ge.s32.totalorder %s1344_s22, 1  ;;  %p372_p2 = scmp.lt.s32.totalorder %s1344_s22, 5 }
  0x48   : > { %p373_p3 = pnand %p999_p1, %p372_p2 }
  0x49   : > { %s386_s4 = sand.u32 (!%p373_p3), 1, %s1312_s14   ;;  %s379_s30 = sand.u32 (!%p373_p3), 1, %s1320_s16   ;;  %vm562_vm0 = vcmask (!%p373_p3), 523264  }
  0x4a   : > { %376 = sbr.rel (%p373_p3) target bundleno = 878 (0x36e), region = 134  ;;  %s1001_s27 = sshll.u32 (!%p373_p3), %s386_s4, 6 }
  0x4b   : > { %s1515_s9 = sshll.u32 (!%p373_p3), %s379_s30, 6  ;;  %s388_s23 = scalar_lea.vmem (!%p373_p3), [#allocation3], %s1001_s27 }
  0x4c   : > { %v433_v24 = vld [vmem:[%s388_s23] sm:$0xff] (!%p373_p3)  ;;  %v434_v25 = vld [vmem:[%s388_s23 + $0x8] sm:$0xff] (!%p373_p3)  ;;  %v435_v26 = vld [vmem:[%s388_s23 + $0x10] sm:$0xff] (!%p373_p3)  ;;  %s381_s29 = scalar_lea.vmem (!%p373_p3), [#allocation2], %s1515_s9  ;;  %s393_s14 = sand.u32 (!%p373_p3), 1, %s1304_s12  }
  0x4d   : > { %v1105_v27 = vpack.c.bf16 (!%p373_p3), %v434_v25, %v433_v24  ;;  %v436_v28 = vld [vmem:[%s388_s23 + $0x18] sm:$0xff] (!%p373_p3)  ;;  %v425_v30 = vld [vmem:[%s381_s29] sm:$0xff] (!%p373_p3)  ;;  %v438_v32 = vld [vmem:[%s388_s23 + $0x28] sm:$0xff] (!%p373_p3)  ;;  %s1002_s16 = sshll.u32 (!%p373_p3), %s393_s14, 6  ;;  %s422_s12 = scalar_lea.vmem (!%p373_p3), [#allocation5], %s1515_s9 }
  0x4e   : > { %v1109_v29 = vpack.c.bf16 (!%p373_p3), %v436_v28, %v435_v26  ;;  %1065 = vmatprep.mubr.f32.mxu0 (!%p373_p3), %v425_v30  ;;  %v437_v31 = vld [vmem:[%s388_s23 + $0x20] sm:$0xff] (!%p373_p3)  ;;  %v439_v34 = vld [vmem:[%s388_s23 + $0x30] sm:$0xff] (!%p373_p3)  ;;  %v440_v35 = vld [vmem:[%s388_s23 + $0x38] sm:$0xff] (!%p373_p3)  ;;  %s395_s3 = scalar_lea.vmem (!%p373_p3), [#allocation4], %s1002_s16 }
  0x4f   : > { %1106 = vmatprep.subr.bf16.mxu0 (!%p373_p3), %v1105_v27  ;;  %v1113_v33 = vpack.c.bf16 (!%p373_p3), %v438_v32, %v437_v31  ;;  %v1117_v36 = vpack.c.bf16 (!%p373_p3), %v440_v35, %v439_v34  ;;  %v426_v37 = vld [vmem:[%s381_s29 + $0x8] sm:$0xff] (!%p373_p3)  ;;  %v427_v38 = vld [vmem:[%s381_s29 + $0x10] sm:$0xff] (!%p373_p3)  ;;  %v428_v39 = vld [vmem:[%s381_s29 + $0x18] sm:$0xff] (!%p373_p3) }
  0x50   : > { %1108 = vmatpush3.bf16.xpose.msra.mxu0 (!%p373_p3), %v1105_v27  ;;  %v429_v40 = vld [vmem:[%s381_s29 + $0x20] sm:$0xff] (!%p373_p3)  ;;  %v430_v41 = vld [vmem:[%s381_s29 + $0x28] sm:$0xff] (!%p373_p3)  ;;  %v431_v42 = vld [vmem:[%s381_s29 + $0x30] sm:$0xff] (!%p373_p3) }
  0x51   : > { %1110 = vmatprep.subr.bf16.mxu0 %v1109_v29  ;;  %v432_v43 = vld [vmem:[%s381_s29 + $0x38] sm:$0xff]  ;;  %s1013_s25 = sshll.u32 (%p1479_p13), %s1332_s19, 4  ;;  %s1624_s4 = sld [smem:[#allocation7_spill]] (%p1479_p13) }
  0x52   : > { %s796_s5 = sadd.s32 (%p1479_p13), %s1328_s18, %s1013_s25 }
  0x53   : > { %s1014_s6 = sshll.u32 (%p1479_p13), %s796_s5, 3 }
  0x57   : > { %s798_s30 = scalar_lea.vmem (%p1479_p13), %s1624_s4, %s1014_s6 }
  0x58   : > { %1112 = vmatpush3.bf16.xpose.msra.mxu0 %v1109_v29 }
  0x59   : > { %1114 = vmatprep.subr.bf16.mxu0 %v1113_v33 }
  0x60   : > { %1116 = vmatpush3.bf16.xpose.msra.mxu0 %v1113_v33 }
  0x61   : > { %1118 = vmatprep.subr.bf16.mxu0 %v1117_v36 }
  0x68   : > { %1120 = vmatpush3.bf16.xpose.msra.mxu0 %v1117_v36 }
  0x6f   : > { %1066 = vmatmul.mubr.f32.vlgmr.msra.gmra.mrb[0].mxu0 %v426_v37 }
  0x70   : > { %1068 = vmatprep.mubr.f32.mxu0 %v427_v38 }
  0x73   : > { %1069 = vmatmul.mubr.f32.gmra.mrb[2].mxu0 %v428_v39 }
  0x74   : > { %1071 = vmatprep.mubr.f32.mxu0 %v429_v40 }
  0x77   : > { %1072 = vmatmul.mubr.f32.gmra.mrb[4].mxu0 %v430_v41 }
  0x78   : > { %1074 = vmatprep.mubr.f32.mxu0 %v431_v42  ;;  %v441_v42 = vld [vmem:[%s395_s3] sm:$0xff] }
  0x7b   : > { %1075 = vmatmul.mubr.f32.gmra.mrb[6].mxu0 %v432_v43  ;;  %v442_v43 = vld [vmem:[%s395_s3 + $0x8] sm:$0xff] }
 0x142   : > { %v1067_v44 = vpop.f32.mrb[0].mxu0 }
 0x143   : > { %v515_v45 = vpop.f32.mrb[1].mxu0  ;;  %v555_v47 = vmul.f32 0.088388346, %v1067_v44 }
 0x144   : > { %v554_v46 = vmul.f32 0.088388346, %v515_v45  ;;  %v1121_v45 = vpack.c.bf16 %v442_v43, %v441_v42 }
 0x145   : > { %v566_v54 = vsel %vm562_vm0, %v555_v47, -inf }
 0x146   : > { %v1070_v48 = vpop.f32.mrb[2].mxu0  ;;  %v563_v49 = vsel %vm562_vm0, %v554_v46, -inf  ;;  %1122 = vmatprep.subr.bf16.mxu1 %v1121_v45 }
 0x147   : > { %564 = vmax.xlane.f32.xlu0 %v563_v49  ;;  %v525_v50 = vpop.f32.mrb[3].mxu0  ;;  %v557_v52 = vmul.f32 0.088388346, %v1070_v48  ;;  %1124 = vmatpush3.bf16.msra.mxu1 %v1121_v45  ;;  %v444_v48 = vld [vmem:[%s395_s3 + $0x18] sm:$0xff] }
 0x148   : > { %v556_v51 = vmul.f32 0.088388346, %v525_v50  ;;  %v445_v50 = vld [vmem:[%s395_s3 + $0x20] sm:$0xff] }
 0x149   : > { %v572_v60 = vsel %vm562_vm0, %v557_v52, -inf }
 0x14a   : > { %v1073_v53 = vpop.f32.mrb[4].mxu0  ;;  %v569_v55 = vsel %vm562_vm0, %v556_v51, -inf }
 0x14b   : > { %567 = vmax.xlane.f32.xlu0 %v566_v54  ;;  %570 = vmax.xlane.f32.xlu1 %v569_v55  ;;  %v535_v56 = vpop.f32.mrb[5].mxu0  ;;  %v559_v58 = vmul.f32 0.088388346, %v1073_v53  ;;  %v447_v53 = vld [vmem:[%s395_s3 + $0x30] sm:$0xff]  ;;  %v448_v54 = vld [vmem:[%s395_s3 + $0x38] sm:$0xff] }
 0x14c   : > { %v558_v57 = vmul.f32 0.088388346, %v535_v56  ;;  %v1133_v55 = vpack.c.bf16 %v448_v54, %v447_v53 }
 0x14d   : > { %v578_v1 = vsel %vm562_vm0, %v559_v58, -inf }
 0x14e   : > { %v1076_v59 = vpop.f32.mrb[6].mxu0  ;;  %v575_v61 = vsel %vm562_vm0, %v558_v57, -inf }
 0x14f   : > { %573 = vmax.xlane.f32.xlu1 %v572_v60  ;;  %576 = vmax.xlane.f32.xlu0 %v575_v61  ;;  %v545_v62 = vpop.f32.mrb[7].mxu0  ;;  %v561_v0 = vmul.f32 0.088388346, %v1076_v59 }
 0x150   : > { %v560_v63 = vmul.f32 0.088388346, %v545_v62 }
 0x151   : > { %v584_v3 = vsel %vm562_vm0, %v561_v0, -inf }
 0x152   : > { %v581_v2 = vsel %vm562_vm0, %v560_v63, -inf }
 0x153   : > { %579 = vmax.xlane.f32.xlu1 %v578_v1  ;;  %582 = vmax.xlane.f32.xlu0 %v581_v2 }
 0x157   : > { %585 = vmax.xlane.f32.xlu1 %v584_v3 }
 0x1d4   : > { %v565_v4 = vpop.xlane.xlu0 %564 }
 0x1d5   : > { %v587_v5 = vsub.f32 %v554_v46, %v565_v4 }
 0x1d7   : > { %v595_v6 = vmul.f32 1.442695, %v587_v5 }
 0x1d8   : > { %v568_v7 = vpop.xlane.xlu0 %567  ;;  %v571_v8 = vpop.xlane.xlu1 %570 }
 0x1d9   : > { %1226 = vpow2.f32 %v595_v6  ;;  %v588_v9 = vsub.f32 %v555_v47, %v568_v7  ;;  %v589_v10 = vsub.f32 %v556_v51, %v571_v8  ;;  %v443_v47 = vld [vmem:[%s395_s3 + $0x10] sm:$0xff]  ;;  %v446_v51 = vld [vmem:[%s395_s3 + $0x28] sm:$0xff] }
 0x1da   : > { %v1125_v49 = vpack.c.bf16 %v444_v48, %v443_v47 }
 0x1db   : > { %v597_v11 = vmul.f32 1.442695, %v588_v9  ;;  %v599_v12 = vmul.f32 1.442695, %v589_v10 }
 0x1dc   : > { %v574_v13 = vpop.xlane.xlu1 %573  ;;  %v577_v14 = vpop.xlane.xlu0 %576  ;;  %1126 = vmatprep.subr.bf16.mxu1 %v1125_v49 }
 0x1dd   : > { %1228 = vpow2.f32 %v597_v11  ;;  %v590_v15 = vsub.f32 %v557_v52, %v574_v13  ;;  %v591_v16 = vsub.f32 %v558_v57, %v577_v14  ;;  %1128 = vmatpush3.bf16.msra.mxu1 %v1125_v49  ;;  %v1129_v52 = vpack.c.bf16 %v446_v51, %v445_v50 }
 0x1de   : > { %1230 = vpow2.f32 %v599_v12 }
 0x1df   : > { %v601_v17 = vmul.f32 1.442695, %v590_v15  ;;  %v603_v18 = vmul.f32 1.442695, %v591_v16  ;;  %1130 = vmatprep.subr.bf16.mxu1 %v1129_v52 }
 0x1e0   : > { %v580_v19 = vpop.xlane.xlu1 %579  ;;  %v583_v20 = vpop.xlane.xlu0 %582 }
 0x1e1   : > { %1232 = vpow2.f32 %v601_v17  ;;  %v592_v21 = vsub.f32 %v559_v58, %v580_v19  ;;  %v593_v22 = vsub.f32 %v560_v63, %v583_v20  ;;  %1132 = vmatpush3.bf16.msra.mxu1 %v1129_v52 }
 0x1e2   : > { %1234 = vpow2.f32 %v603_v18  ;;  %1134 = vmatprep.subr.bf16.mxu1 %v1133_v55 }
 0x1e3   : > { %v1526_v23 = vpop.eup %1226  ;;  %v605_v24 = vmul.f32 1.442695, %v592_v21  ;;  %v607_v25 = vmul.f32 1.442695, %v593_v22 }
 0x1e4   : > { %v586_v26 = vpop.xlane.xlu1 %585  ;;  %v611_v27 = vsel %vm562_vm0, %v1526_v23, 0.0 }
 0x1e5   : > { %1236 = vpow2.f32 %v605_v24  ;;  %v594_v28 = vsub.f32 %v561_v0, %v586_v26  ;;  %612 = vadd.xlane.f32.xlu0 %v611_v27  ;;  %1136 = vmatpush3.bf16.msra.mxu1 %v1133_v55 }
 0x1e6   : > { %1238 = vpow2.f32 %v607_v25 }
 0x1e7   : > { %v1530_v29 = vpop.eup %1228  ;;  %v609_v30 = vmul.f32 1.442695, %v594_v28 }
 0x1e8   : > { %v1532_v31 = vpop.eup %1230  ;;  %v614_v32 = vsel %vm562_vm0, %v1530_v29, 0.0 }
 0x1e9   : > { %1240 = vpow2.f32 %v609_v30  ;;  %615 = vadd.xlane.f32.xlu1 %v614_v32  ;;  %v617_v33 = vsel %vm562_vm0, %v1532_v31, 0.0 }
 0x1ea   : > { %618 = vadd.xlane.f32.xlu0 %v617_v33 }
 0x1eb   : > { %v1538_v34 = vpop.eup %1232 }
 0x1ec   : > { %v1540_v35 = vpop.eup %1234  ;;  %v620_v36 = vsel %vm562_vm0, %v1538_v34, 0.0 }
 0x1ed   : > { %621 = vadd.xlane.f32.xlu1 %v620_v36  ;;  %v623_v37 = vsel %vm562_vm0, %v1540_v35, 0.0 }
 0x1ee   : > { %624 = vadd.xlane.f32.xlu0 %v623_v37 }
 0x1ef   : > { %v1546_v38 = vpop.eup %1236 }
 0x1f0   : > { %v1549_v39 = vpop.eup %1238  ;;  %v626_v40 = vsel %vm562_vm0, %v1546_v38, 0.0 }
 0x1f1   : > { %627 = vadd.xlane.f32.xlu1 %v626_v40  ;;  %v629_v41 = vsel %vm562_vm0, %v1549_v39, 0.0 }
 0x1f2   : > { %630 = vadd.xlane.f32.xlu0 %v629_v41 }
 0x1f3   : > { %v1241_v44 = vpop.eup %1240 }
 0x1f4   : > { %v632_v46 = vsel %vm562_vm0, %v1241_v44, 0.0 }
 0x1f5   : > { %633 = vadd.xlane.f32.xlu1 %v632_v46 }
 0x272   : > { %v613_v56 = vpop.xlane.xlu0 %612 }
 0x273   : > { %1242 = vrcp.f32 %v613_v56 }
 0x276   : > { %v616_v57 = vpop.xlane.xlu1 %615 }
 0x277   : > { %1244 = vrcp.f32 %v616_v57  ;;  %v619_v58 = vpop.xlane.xlu0 %618 }
 0x278   : > { %1246 = vrcp.f32 %v619_v58 }
 0x27a   : > { %v622_v59 = vpop.xlane.xlu1 %621 }
 0x27b   : > { %1248 = vrcp.f32 %v622_v59  ;;  %v625_v60 = vpop.xlane.xlu0 %624 }
 0x27c   : > { %1250 = vrcp.f32 %v625_v60 }
 0x27d   : > { %v1243_v61 = vpop.eup %1242 }
 0x27e   : > { %v628_v62 = vpop.xlane.xlu1 %627  ;;  %v643_v63 = vmul.f32 %v1243_v61, %v1526_v23 }
 0x27f   : > { %1252 = vrcp.f32 %v628_v62  ;;  %v631_v0 = vpop.xlane.xlu0 %630 }
 0x280   : > { %1254 = vrcp.f32 %v631_v0  ;;  %1093 = vmatprep.mubr.msk.f32.mxu1 %vm562_vm0, %v643_v63 }
 0x281   : > { %v1245_v1 = vpop.eup %1244 }
 0x282   : > { %v1247_v2 = vpop.eup %1246  ;;  %v634_v3 = vpop.xlane.xlu1 %633  ;;  %v644_v4 = vmul.f32 %v1245_v1, %v1530_v29 }
 0x283   : > { %1256 = vrcp.f32 %v634_v3  ;;  %v645_v5 = vmul.f32 %v1247_v2, %v1532_v31 }
 0x284   : > { %1094 = vmatmul.mubr.msk.f32.vlgmr.msra.gmra.mrb[0].mxu1 %vm562_vm0, %v644_v4 }
 0x285   : > { %v1249_v6 = vpop.eup %1248  ;;  %1096 = vmatprep.mubr.msk.f32.mxu1 %vm562_vm0, %v645_v5 }
 0x286   : > { %v1251_v7 = vpop.eup %1250  ;;  %v646_v8 = vmul.f32 %v1249_v6, %v1538_v34 }
 0x287   : > { %v647_v9 = vmul.f32 %v1251_v7, %v1540_v35 }
 0x288   : > { %1097 = vmatmul.mubr.msk.f32.gmra.mrb[2].mxu1 %vm562_vm0, %v646_v8 }
 0x289   : > { %v1253_v10 = vpop.eup %1252  ;;  %1099 = vmatprep.mubr.msk.f32.mxu1 %vm562_vm0, %v647_v9 }
 0x28a   : > { %v1255_v11 = vpop.eup %1254  ;;  %v648_v12 = vmul.f32 %v1253_v10, %v1546_v38 }
 0x28b   : > { %v649_v13 = vmul.f32 %v1255_v11, %v1549_v39 }
 0x28c   : > { %1100 = vmatmul.mubr.msk.f32.gmra.mrb[4].mxu1 %vm562_vm0, %v648_v12 }
 0x28d   : > { %v1257_v14 = vpop.eup %1256  ;;  %1102 = vmatprep.mubr.msk.f32.mxu1 %vm562_vm0, %v649_v13 }
 0x28e   : > { %v650_v15 = vmul.f32 %v1257_v14, %v1241_v44 }
 0x290   : > { %1103 = vmatmul.mubr.msk.f32.gmra.mrb[6].mxu1 %vm562_vm0, %v650_v15 }
 0x357   : > { %v1095_v16 = vpop.f32.mrb[0].mxu1 }
 0x358   : > { %781 = vst [vmem:[%s422_s12 + $0x8] sm:$0xff] %v1095_v16  ;;  %v741_v17 = vpop.f32.mrb[1].mxu1 }
 0x359   : > { %780 = vst [vmem:[%s422_s12] sm:$0xff] %v741_v17 }
 0x35b   : > { %v1098_v18 = vpop.f32.mrb[2].mxu1 }
 0x35c   : > { %783 = vst [vmem:[%s422_s12 + $0x18] sm:$0xff] %v1098_v18  ;;  %v751_v19 = vpop.f32.mrb[3].mxu1 }
 0x35d   : > { %782 = vst [vmem:[%s422_s12 + $0x10] sm:$0xff] %v751_v19 }
 0x35f   : > { %v1101_v20 = vpop.f32.mrb[4].mxu1  ;;  %794 = sbr.rel (!%p1479_p13) target bundleno = 878 (0x36e), region = 150  ;;  %v842_v25 = vld [vmem:[%s422_s12 + $0x8] sm:$0xff] (%p1479_p13) }
 0x360   : > { %785 = vst [vmem:[%s422_s12 + $0x28] sm:$0xff] %v1101_v20  ;;  %v761_v21 = vpop.f32.mrb[5].mxu1  ;;  %v840_v24 = vld [vmem:[%s422_s12] sm:$0xff] (%p1479_p13)  ;;  %843 = vst [vmem:[%s798_s30 + $0x10] sm:$0xff] (%p1479_p13), %v842_v25 }
 0x361   : > { %784 = vst [vmem:[%s422_s12 + $0x20] sm:$0xff] %v761_v21  ;;  %841 = vst [vmem:[%s798_s30] sm:$0xff] (%p1479_p13), %v840_v24 }
 0x363   : > { %v1104_v22 = vpop.f32.mrb[6].mxu1  ;;  %v846_v27 = vld [vmem:[%s422_s12 + $0x18] sm:$0xff] (%p1479_p13) }
 0x364   : > { %787 = vst [vmem:[%s422_s12 + $0x38] sm:$0xff] %v1104_v22  ;;  %v771_v23 = vpop.f32.mrb[7].mxu1  ;;  %v844_v26 = vld [vmem:[%s422_s12 + $0x10] sm:$0xff] (%p1479_p13)  ;;  %847 = vst [vmem:[%s798_s30 + $0x30] sm:$0xff] (%p1479_p13), %v846_v27 }
 0x365   : > { %786 = vst [vmem:[%s422_s12 + $0x30] sm:$0xff] %v771_v23  ;;  %845 = vst [vmem:[%s798_s30 + $0x20] sm:$0xff] (%p1479_p13), %v844_v26 }
 0x367   : > { %v850_v29 = vld [vmem:[%s422_s12 + $0x28] sm:$0xff] }
 0x368   : > { %v848_v28 = vld [vmem:[%s422_s12 + $0x20] sm:$0xff]  ;;  %851 = vst [vmem:[%s798_s30 + $0x50] sm:$0xff] %v850_v29 }
 0x369   : > { %849 = vst [vmem:[%s798_s30 + $0x40] sm:$0xff] %v848_v28 }
 0x36b   : > { %v854_v31 = vld [vmem:[%s422_s12 + $0x38] sm:$0xff] }
 0x36c   : > { %v852_v30 = vld [vmem:[%s422_s12 + $0x30] sm:$0xff]  ;;  %855 = vst [vmem:[%s798_s30 + $0x70] sm:$0xff] %v854_v31 }
 0x36d   : > { %853 = vst [vmem:[%s798_s30 + $0x60] sm:$0xff] %v852_v30 }
 0x36e PF: > { %s13_s22 = sadd.s32 1, %s1344_s22   ;;  %s1625_s7 = sld [smem:[#allocation6_spill]] }
 0x36f   : > { %p10_p4 = scmp.ge.s32.totalorder %s13_s22, 6   ;;  %s1626_s12 = smov %s1308_s13 }
 0x370   : > { %s1627_s13 = smov %s1484_s26  ;;  %s1628_s14 = smov %s1316_s15 }
 0x371   : > { %s1629_s15 = smov %s1462_s28  ;;  %s1630_s16 = smov %s1324_s17 }
 0x372   : > { %s1631_s17 = smov %s1459_s11  ;;  %s1632_s18 = smov %s1336_s20 }
 0x373   : > { %s1633_s19 = smov %s1340_s21  ;;  %s1634_s20 = smov %s1637_s24 }
 0x374   : > { %s1635_s21 = smov %s1625_s7  ;;  %12 = sbr.rel (!%p10_p4) target bundleno = 8 (0x8), region = 235 }

// kernel: reactive_transformer_layer.10
= control target key start
LH: loop header
LB: loop body
LE: loop exit
PB: predicated region body
PF: predicated region fallthrough
CT: control target
= control target key end

     0   :  { %s1026_s1 = inlined_call_operand.vmem [shape: f32[256,256], index: 1, kind: input, shape index: {}]   ;;  %s1027_s0 = inlined_call_operand.vmem [shape: f32[128,256], index: 0, kind: input, shape index: {}]   ;;  %s1028_s2 = inlined_call_operand.vmem [shape: f32[1,256], index: 2, kind: input, shape index: {}]   ;;  %s1029_s3 = inlined_call_operand.vmem [shape: f32[128,256], index: 3, kind: input, shape index: {}]   ;;  %s1030_s4 = inlined_call_operand.vmem [shape: f32[128,256], index: 4, kind: output, shape index: {}]  }
   0x1   :  { %v50_v0 = vld [vmem:[%s1026_s1 + $0x8] sm:$0xff]  ;;  %v52_v1 = vld [vmem:[%s1026_s1 + $0x18] sm:$0xff]  ;;  %v49_v2 = vld [vmem:[%s1026_s1] sm:$0xff] }
   0x2   :  { %v386_v3 = vpack.c.bf16 %v52_v1, %v50_v0  ;;  %v51_v4 = vld [vmem:[%s1026_s1 + $0x10] sm:$0xff]  ;;  %v54_v5 = vld [vmem:[%s1026_s1 + $0x28] sm:$0xff]  ;;  %v56_v6 = vld [vmem:[%s1026_s1 + $0x38] sm:$0xff] }
   0x3   :  { %v388_v7 = vpack.c.bf16 %v51_v4, %v49_v2  ;;  %v390_v8 = vpack.c.bf16 %v56_v6, %v54_v5  ;;  %v53_v9 = vld [vmem:[%s1026_s1 + $0x20] sm:$0xff]  ;;  %v55_v10 = vld [vmem:[%s1026_s1 + $0x30] sm:$0xff]  ;;  %v58_v11 = vld [vmem:[%s1026_s1 + $0x48] sm:$0xff] }
   0x4   :  { %387 = vmatprep.subr.bf16.mxu0 %v386_v3  ;;  %450 = vmatprep.subr.bf16.mxu1 %v386_v3  ;;  %v60_v12 = vld [vmem:[%s1026_s1 + $0x58] sm:$0xff]  ;;  %v392_v13 = vpack.c.bf16 %v55_v10, %v53_v9  ;;  %v57_v15 = vld [vmem:[%s1026_s1 + $0x40] sm:$0xff]  ;;  %v59_v16 = vld [vmem:[%s1026_s1 + $0x50] sm:$0xff] }
   0x5   :  { %389 = vmatpush1.bf16.msra.mxu0 %v388_v7  ;;  %466 = vmatpush1.bf16.msra.mxu1 %v388_v7  ;;  %v394_v14 = vpack.c.bf16 %v60_v12, %v58_v11  ;;  %v62_v17 = vld [vmem:[%s1026_s1 + $0x68] sm:$0xff]  ;;  %v64_v18 = vld [vmem:[%s1026_s1 + $0x78] sm:$0xff]  ;;  %v396_v19 = vpack.c.bf16 %v59_v16, %v57_v15  ;;  %v61_v21 = vld [vmem:[%s1026_s1 + $0x60] sm:$0xff] }
   0x6   :  { %391 = vmatprep.subr.bf16.mxu0 %v390_v8  ;;  %451 = vmatprep.subr.bf16.mxu1 %v390_v8  ;;  %v398_v20 = vpack.c.bf16 %v64_v18, %v62_v17  ;;  %v63_v22 = vld [vmem:[%s1026_s1 + $0x70] sm:$0xff]  ;;  %v66_v23 = vld [vmem:[%s1026_s1 + $0x88] sm:$0xff]  ;;  %v68_v24 = vld [vmem:[%s1026_s1 + $0x98] sm:$0xff] }
   0x7   :  { %v400_v25 = vpack.c.bf16 %v63_v22, %v61_v21  ;;  %v402_v26 = vpack.c.bf16 %v68_v24, %v66_v23  ;;  %v65_v27 = vld [vmem:[%s1026_s1 + $0x80] sm:$0xff]  ;;  %v67_v28 = vld [vmem:[%s1026_s1 + $0x90] sm:$0xff]  ;;  %v70_v29 = vld [vmem:[%s1026_s1 + $0xa8] sm:$0xff] }
   0x8   :  { %v72_v30 = vld [vmem:[%s1026_s1 + $0xb8] sm:$0xff]  ;;  %v404_v31 = vpack.c.bf16 %v67_v28, %v65_v27  ;;  %v69_v33 = vld [vmem:[%s1026_s1 + $0xa0] sm:$0xff]  ;;  %v71_v34 = vld [vmem:[%s1026_s1 + $0xb0] sm:$0xff] }
   0x9   :  { %393 = vmatpush1.bf16.msra.mxu0 %v392_v13  ;;  %467 = vmatpush1.bf16.msra.mxu1 %v392_v13  ;;  %v406_v32 = vpack.c.bf16 %v72_v30, %v70_v29  ;;  %v74_v35 = vld [vmem:[%s1026_s1 + $0xc8] sm:$0xff]  ;;  %v76_v36 = vld [vmem:[%s1026_s1 + $0xd8] sm:$0xff]  ;;  %v408_v37 = vpack.c.bf16 %v71_v34, %v69_v33  ;;  %v73_v38 = vld [vmem:[%s1026_s1 + $0xc0] sm:$0xff] }
   0xa   :  { %395 = vmatprep.subr.bf16.mxu0 %v394_v14  ;;  %452 = vmatprep.subr.bf16.mxu1 %v394_v14  ;;  %v410_v39 = vpack.c.bf16 %v76_v36, %v74_v35  ;;  %v75_v40 = vld [vmem:[%s1026_s1 + $0xd0] sm:$0xff]  ;;  %v18_v41 = vld [vmem:[%s1027_s0 + $0x8] sm:$0xff]  ;;  %v80_v44 = vld [vmem:[%s1026_s1 + $0xf8] sm:$0xff] }
   0xb   :  { %v34_v42 = vld [vmem:[%s1027_s0 + $0x88] sm:$0xff]  ;;  %189 = vmatprep.mubr.f32.mxu0 %v18_v41  ;;  %v412_v45 = vpack.c.bf16 %v75_v40, %v73_v38  ;;  %v77_v47 = vld [vmem:[%s1026_s1 + $0xe0] sm:$0xff]  ;;  %v79_v48 = vld [vmem:[%s1026_s1 + $0xf0] sm:$0xff] }
   0xc   :  { %v78_v43 = vld [vmem:[%s1026_s1 + $0xe8] sm:$0xff]  ;;  %237 = vmatprep.mubr.f32.mxu1 %v34_v42  ;;  %v84_v50 = vld [vmem:[%s1026_s1 + $0x118] sm:$0xff]  ;;  %v416_v51 = vpack.c.bf16 %v79_v48, %v77_v47  ;;  %v81_v53 = vld [vmem:[%s1026_s1 + $0x100] sm:$0xff] }
   0xd   :  { %397 = vmatpush1.bf16.msra.mxu0 %v396_v19  ;;  %468 = vmatpush1.bf16.msra.mxu1 %v396_v19  ;;  %v414_v46 = vpack.c.bf16 %v80_v44, %v78_v43  ;;  %v82_v49 = vld [vmem:[%s1026_s1 + $0x108] sm:$0xff]  ;;  %v83_v54 = vld [vmem:[%s1026_s1 + $0x110] sm:$0xff]  ;;  %v88_v56 = vld [vmem:[%s1026_s1 + $0x138] sm:$0xff] }
   0xe   :  { %399 = vmatprep.subr.bf16.mxu0 %v398_v20  ;;  %453 = vmatprep.subr.bf16.mxu1 %v398_v20  ;;  %v418_v52 = vpack.c.bf16 %v84_v50, %v82_v49  ;;  %v86_v55 = vld [vmem:[%s1026_s1 + $0x128] sm:$0xff]  ;;  %v420_v57 = vpack.c.bf16 %v83_v54, %v81_v53  ;;  %v85_v59 = vld [vmem:[%s1026_s1 + $0x120] sm:$0xff]  ;;  %v87_v60 = vld [vmem:[%s1026_s1 + $0x130] sm:$0xff] }
   0xf   :  { %v422_v58 = vpack.c.bf16 %v88_v56, %v86_v55  ;;  %v90_v61 = vld [vmem:[%s1026_s1 + $0x148] sm:$0xff]  ;;  %v92_v62 = vld [vmem:[%s1026_s1 + $0x158] sm:$0xff]  ;;  %v424_v63 = vpack.c.bf16 %v87_v60, %v85_v59  ;;  %v89_v1 = vld [vmem:[%s1026_s1 + $0x140] sm:$0xff] }
  0x10   :  { %v426_v0 = vpack.c.bf16 %v92_v62, %v90_v61  ;;  %v91_v2 = vld [vmem:[%s1026_s1 + $0x150] sm:$0xff]  ;;  %v94_v3 = vld [vmem:[%s1026_s1 + $0x168] sm:$0xff]  ;;  %v96_v4 = vld [vmem:[%s1026_s1 + $0x178] sm:$0xff] }
  0x11   :  { %401 = vmatpush1.bf16.msra.mxu0 %v400_v25  ;;  %469 = vmatpush1.bf16.msra.mxu1 %v400_v25  ;;  %v428_v5 = vpack.c.bf16 %v91_v2, %v89_v1  ;;  %v430_v6 = vpack.c.bf16 %v96_v4, %v94_v3  ;;  %v93_v7 = vld [vmem:[%s1026_s1 + $0x160] sm:$0xff]  ;;  %v95_v8 = vld [vmem:[%s1026_s1 + $0x170] sm:$0xff]  ;;  %v98_v9 = vld [vmem:[%s1026_s1 + $0x188] sm:$0xff] }
  0x12   :  { %403 = vmatprep.subr.bf16.mxu0 %v402_v26  ;;  %454 = vmatprep.subr.bf16.mxu1 %v402_v26  ;;  %v100_v10 = vld [vmem:[%s1026_s1 + $0x198] sm:$0xff]  ;;  %v432_v11 = vpack.c.bf16 %v95_v8, %v93_v7  ;;  %v97_v13 = vld [vmem:[%s1026_s1 + $0x180] sm:$0xff]  ;;  %v99_v14 = vld [vmem:[%s1026_s1 + $0x190] sm:$0xff] }
  0x13   :  { %v434_v12 = vpack.c.bf16 %v100_v10, %v98_v9  ;;  %v102_v15 = vld [vmem:[%s1026_s1 + $0x1a8] sm:$0xff]  ;;  %v104_v16 = vld [vmem:[%s1026_s1 + $0x1b8] sm:$0xff]  ;;  %v436_v17 = vpack.c.bf16 %v99_v14, %v97_v13  ;;  %v101_v19 = vld [vmem:[%s1026_s1 + $0x1a0] sm:$0xff] }
  0x14   :  { %v438_v18 = vpack.c.bf16 %v104_v16, %v102_v15  ;;  %v103_v20 = vld [vmem:[%s1026_s1 + $0x1b0] sm:$0xff]  ;;  %v106_v21 = vld [vmem:[%s1026_s1 + $0x1c8] sm:$0xff]  ;;  %v108_v22 = vld [vmem:[%s1026_s1 + $0x1d8] sm:$0xff] }
  0x15   :  { %405 = vmatpush1.bf16.msra.mxu0 %v404_v31  ;;  %470 = vmatpush1.bf16.msra.mxu1 %v404_v31  ;;  %v440_v23 = vpack.c.bf16 %v103_v20, %v101_v19  ;;  %v442_v24 = vpack.c.bf16 %v108_v22, %v106_v21  ;;  %v105_v25 = vld [vmem:[%s1026_s1 + $0x1c0] sm:$0xff]  ;;  %v107_v26 = vld [vmem:[%s1026_s1 + $0x1d0] sm:$0xff]  ;;  %v110_v27 = vld [vmem:[%s1026_s1 + $0x1e8] sm:$0xff] }
  0x16   :  { %407 = vmatprep.subr.bf16.mxu0 %v406_v32  ;;  %455 = vmatprep.subr.bf16.mxu1 %v406_v32  ;;  %v112_v28 = vld [vmem:[%s1026_s1 + $0x1f8] sm:$0xff]  ;;  %v444_v29 = vpack.c.bf16 %v107_v26, %v105_v25  ;;  %v109_v31 = vld [vmem:[%s1026_s1 + $0x1e0] sm:$0xff]  ;;  %v111_v32 = vld [vmem:[%s1026_s1 + $0x1f0] sm:$0xff] }
  0x17   :  { %v446_v30 = vpack.c.bf16 %v112_v28, %v110_v27  ;;  %v448_v33 = vpack.c.bf16 %v111_v32, %v109_v31  ;;  %v17_v34 = vld [vmem:[%s1027_s0] sm:$0xff]  ;;  %v20_v36 = vld [vmem:[%s1027_s0 + $0x18] sm:$0xff]  ;;  %v19_v38 = vld [vmem:[%s1027_s0 + $0x10] sm:$0xff] }
  0x18   :  { %v33_v35 = vld [vmem:[%s1027_s0 + $0x80] sm:$0xff]  ;;  %v22_v40 = vld [vmem:[%s1027_s0 + $0x28] sm:$0xff]  ;;  %v24_v44 = vld [vmem:[%s1027_s0 + $0x38] sm:$0xff] }
  0x19   :  { %409 = vmatpush1.bf16.msra.mxu0 %v408_v37  ;;  %471 = vmatpush1.bf16.msra.mxu1 %v408_v37  ;;  %v36_v37 = vld [vmem:[%s1027_s0 + $0x98] sm:$0xff]  ;;  %v38_v41 = vld [vmem:[%s1027_s0 + $0xa8] sm:$0xff]  ;;  %v21_v42 = vld [vmem:[%s1027_s0 + $0x20] sm:$0xff] }
  0x1a   :  { %411 = vmatprep.subr.bf16.mxu0 %v410_v39  ;;  %456 = vmatprep.subr.bf16.mxu1 %v410_v39  ;;  %v35_v39 = vld [vmem:[%s1027_s0 + $0x90] sm:$0xff]  ;;  %v37_v43 = vld [vmem:[%s1027_s0 + $0xa0] sm:$0xff]  ;;  %v26_v48 = vld [vmem:[%s1027_s0 + $0x48] sm:$0xff] }
  0x1b   :  { %v39_v47 = vld [vmem:[%s1027_s0 + $0xb0] sm:$0xff]  ;;  %v42_v49 = vld [vmem:[%s1027_s0 + $0xc8] sm:$0xff]  ;;  %v25_v50 = vld [vmem:[%s1027_s0 + $0x40] sm:$0xff] }
  0x1c   :  { %v44_v53 = vld [vmem:[%s1027_s0 + $0xd8] sm:$0xff]  ;;  %v27_v54 = vld [vmem:[%s1027_s0 + $0x50] sm:$0xff]  ;;  %v30_v56 = vld [vmem:[%s1027_s0 + $0x68] sm:$0xff] }
  0x1d   :  { %413 = vmatpush1.bf16.msra.mxu0 %v412_v45  ;;  %472 = vmatpush1.bf16.msra.mxu1 %v412_v45  ;;  %v40_v45 = vld [vmem:[%s1027_s0 + $0xb8] sm:$0xff]  ;;  %v43_v55 = vld [vmem:[%s1027_s0 + $0xd0] sm:$0xff]  ;;  %v45_v59 = vld [vmem:[%s1027_s0 + $0xe0] sm:$0xff] }
  0x1e   :  { %415 = vmatprep.subr.bf16.mxu0 %v414_v46  ;;  %457 = vmatprep.subr.bf16.mxu1 %v414_v46  ;;  %v23_v46 = vld [vmem:[%s1027_s0 + $0x30] sm:$0xff]  ;;  %v32_v60 = vld [vmem:[%s1027_s0 + $0x78] sm:$0xff]  ;;  %v113_v3 = vld [vmem:[%s1028_s2] sm:$0x3] }
  0x1f   :  { %v48_v61 = vld [vmem:[%s1027_s0 + $0xf8] sm:$0xff]  ;;  %v31_v62 = vld [vmem:[%s1027_s0 + $0x70] sm:$0xff]  ;;  %v286_v8 = vld [vmem:[%s1029_s3] sm:$0xff] }
  0x20   :  { %v302_v10 = vld [vmem:[%s1029_s3 + $0x80] sm:$0xff]  ;;  %v287_v14 = vld [vmem:[%s1029_s3 + $0x8] sm:$0xff]  ;;  %v304_v26 = vld [vmem:[%s1029_s3 + $0x90] sm:$0xff] }
  0x21   :  { %417 = vmatpush1.bf16.msra.mxu0 %v416_v51  ;;  %473 = vmatpush1.bf16.msra.mxu1 %v416_v51  ;;  %v41_v51 = vld [vmem:[%s1027_s0 + $0xc0] sm:$0xff]  ;;  %v303_v16 = vld [vmem:[%s1029_s3 + $0x88] sm:$0xff]  ;;  %v305_v32 = vld [vmem:[%s1029_s3 + $0x98] sm:$0xff] }
  0x22   :  { %419 = vmatprep.subr.bf16.mxu0 %v418_v52  ;;  %458 = vmatprep.subr.bf16.mxu1 %v418_v52  ;;  %v28_v52 = vld [vmem:[%s1027_s0 + $0x58] sm:$0xff] }
  0x25   :  { %421 = vmatpush1.bf16.msra.mxu0 %v420_v57  ;;  %474 = vmatpush1.bf16.msra.mxu1 %v420_v57  ;;  %v46_v57 = vld [vmem:[%s1027_s0 + $0xe8] sm:$0xff] }
  0x26   :  { %423 = vmatprep.subr.bf16.mxu0 %v422_v58  ;;  %459 = vmatprep.subr.bf16.mxu1 %v422_v58  ;;  %v29_v58 = vld [vmem:[%s1027_s0 + $0x60] sm:$0xff] }
  0x29   :  { %425 = vmatpush1.bf16.msra.mxu0 %v424_v63  ;;  %475 = vmatpush1.bf16.msra.mxu1 %v424_v63  ;;  %v47_v63 = vld [vmem:[%s1027_s0 + $0xf0] sm:$0xff] }
  0x2a   :  { %427 = vmatprep.subr.bf16.mxu0 %v426_v0  ;;  %460 = vmatprep.subr.bf16.mxu1 %v426_v0  ;;  %v115_v0 = vlaneseq }
  0x2c   :  { %v116_v1 = vshrl.u32 %v115_v0, 7  ;;  %v309_v0 = vld [vmem:[%s1029_s3 + $0xb8] sm:$0xff] }
  0x2d   :  { %429 = vmatpush1.bf16.msra.mxu0 %v428_v5  ;;  %476 = vmatpush1.bf16.msra.mxu1 %v428_v5 }
  0x2e   :  { %431 = vmatprep.subr.bf16.mxu0 %v430_v6  ;;  %461 = vmatprep.subr.bf16.mxu1 %v430_v6  ;;  %v117_v2 = vsub.s32 0, %v116_v1  ;;  %v121_v4 = vsub.s32 1, %v116_v1 }
  0x30   :  { %v798_v5 = vrot.slane %v113_v3, %v117_v2  ;;  %v800_v6 = vrot.slane %v113_v3, %v121_v4 }
  0x31   :  { %433 = vmatpush1.bf16.msra.mxu0 %v432_v11  ;;  %477 = vmatpush1.bf16.msra.mxu1 %v432_v11 }
  0x32   :  { %435 = vmatprep.subr.bf16.mxu0 %v434_v12  ;;  %462 = vmatprep.subr.bf16.mxu1 %v434_v12 }
  0x35   :  { %437 = vmatpush1.bf16.msra.mxu0 %v436_v17  ;;  %478 = vmatpush1.bf16.msra.mxu1 %v436_v17 }
  0x36   :  { %439 = vmatprep.subr.bf16.mxu0 %v438_v18  ;;  %463 = vmatprep.subr.bf16.mxu1 %v438_v18 }
  0x39   :  { %441 = vmatpush1.bf16.msra.mxu0 %v440_v23  ;;  %479 = vmatpush1.bf16.msra.mxu1 %v440_v23 }
  0x3a   :  { %443 = vmatprep.subr.bf16.mxu0 %v442_v24  ;;  %464 = vmatprep.subr.bf16.mxu1 %v442_v24  ;;  %v288_v24 = vld [vmem:[%s1029_s3 + $0x10] sm:$0xff] }
  0x3d   :  { %445 = vmatpush1.bf16.msra.mxu0 %v444_v29  ;;  %480 = vmatpush1.bf16.msra.mxu1 %v444_v29 }
  0x3e   :  { %447 = vmatprep.subr.bf16.mxu0 %v446_v30  ;;  %465 = vmatprep.subr.bf16.mxu1 %v446_v30  ;;  %v289_v30 = vld [vmem:[%s1029_s3 + $0x18] sm:$0xff] }
  0x41   :  { %449 = vmatpush1.bf16.msra.mxu0 %v448_v33  ;;  %481 = vmatpush1.bf16.msra.mxu1 %v448_v33 }
  0x44   :  { %190 = vmatmul.mubr.f32.vlgmr.msra.gmra.mrb[0].mxu0 %v17_v34  ;;  %238 = vmatmul.mubr.f32.vlgmr.msra.gmra.mrb[0].mxu1 %v33_v35 }
  0x45   :  { %195 = vmatprep.mubr.f32.mxu0 %v20_v36  ;;  %243 = vmatprep.mubr.f32.mxu1 %v36_v37 }
  0x48   :  { %196 = vmatmul.mubr.f32.gmra.mrb[2].mxu0 %v19_v38  ;;  %244 = vmatmul.mubr.f32.gmra.mrb[2].mxu1 %v35_v39 }
  0x49   :  { %201 = vmatprep.mubr.f32.mxu0 %v22_v40  ;;  %249 = vmatprep.mubr.f32.mxu1 %v38_v41  ;;  %v290_v40 = vld [vmem:[%s1029_s3 + $0x20] sm:$0xff] }
  0x4c   :  { %202 = vmatmul.mubr.f32.gmra.mrb[4].mxu0 %v21_v42  ;;  %250 = vmatmul.mubr.f32.gmra.mrb[4].mxu1 %v37_v43  ;;  %v306_v42 = vld [vmem:[%s1029_s3 + $0xa0] sm:$0xff] }
  0x4d   :  { %207 = vmatprep.mubr.f32.mxu0 %v24_v44  ;;  %255 = vmatprep.mubr.f32.mxu1 %v40_v45 }
  0x50   :  { %208 = vmatmul.mubr.f32.gmra.mrb[6].mxu0 %v23_v46  ;;  %256 = vmatmul.mubr.f32.gmra.mrb[6].mxu1 %v39_v47  ;;  %v291_v46 = vld [vmem:[%s1029_s3 + $0x28] sm:$0xff] }
  0x51   :  { %213 = vmatprep.mubr.f32.mxu0 %v26_v48  ;;  %261 = vmatprep.mubr.f32.mxu1 %v42_v49  ;;  %v307_v48 = vld [vmem:[%s1029_s3 + $0xa8] sm:$0xff] }
  0x54   :  { %214 = vmatmul.mubr.f32.gmra.mrb[8].mxu0 %v25_v50  ;;  %262 = vmatmul.mubr.f32.gmra.mrb[8].mxu1 %v41_v51 }
  0x55   :  { %219 = vmatprep.mubr.f32.mxu0 %v28_v52  ;;  %267 = vmatprep.mubr.f32.mxu1 %v44_v53 }
  0x58   :  { %220 = vmatmul.mubr.f32.gmra.mrb[10].mxu0 %v27_v54  ;;  %268 = vmatmul.mubr.f32.gmra.mrb[10].mxu1 %v43_v55 }
  0x59   :  { %225 = vmatprep.mubr.f32.mxu0 %v30_v56  ;;  %273 = vmatprep.mubr.f32.mxu1 %v46_v57  ;;  %v292_v56 = vld [vmem:[%s1029_s3 + $0x30] sm:$0xff] }
  0x5c   :  { %226 = vmatmul.mubr.f32.gmra.mrb[12].mxu0 %v29_v58  ;;  %274 = vmatmul.mubr.f32.gmra.mrb[12].mxu1 %v45_v59  ;;  %v308_v58 = vld [vmem:[%s1029_s3 + $0xb0] sm:$0xff] }
  0x5d   :  { %231 = vmatprep.mubr.f32.mxu0 %v32_v60  ;;  %279 = vmatprep.mubr.f32.mxu1 %v48_v61 }
  0x60   :  { %232 = vmatmul.mubr.f32.gmra.mrb[14].mxu0 %v31_v62  ;;  %280 = vmatmul.mubr.f32.gmra.mrb[14].mxu1 %v47_v63  ;;  %v293_v62 = vld [vmem:[%s1029_s3 + $0x38] sm:$0xff] }
 0x117   :  { %v191_v7 = vpop.f32.mrb[0].mxu0  ;;  %v239_v9 = vpop.f32.mrb[0].mxu1 }
 0x118   :  { %v192_v11 = vadd.f32 %v191_v7, %v798_v5  ;;  %v240_v12 = vadd.f32 %v239_v9, %v798_v5  ;;  %v193_v13 = vpop.f32.mrb[1].mxu0  ;;  %v241_v15 = vpop.f32.mrb[1].mxu1 }
 0x119   :  { %v194_v17 = vadd.f32 %v193_v13, %v800_v6  ;;  %v242_v18 = vadd.f32 %v241_v15, %v800_v6 }
 0x11a   :  { %v318_v19 = vadd.f32 %v286_v8, %v192_v11  ;;  %v334_v20 = vadd.f32 %v302_v10, %v240_v12  ;;  %v294_v10 = vld [vmem:[%s1029_s3 + $0x40] sm:$0xff] }
 0x11b   :  { %v319_v21 = vadd.f32 %v287_v14, %v194_v17  ;;  %v335_v22 = vadd.f32 %v303_v16, %v242_v18  ;;  %v197_v23 = vpop.f32.mrb[2].mxu0  ;;  %v245_v25 = vpop.f32.mrb[2].mxu1  ;;  %v310_v12 = vld [vmem:[%s1029_s3 + $0xc0] sm:$0xff]  ;;  %v295_v16 = vld [vmem:[%s1029_s3 + $0x48] sm:$0xff] }
 0x11c   :  { %350 = vst [vmem:[%s1030_s4] sm:$0xff] %v318_v19  ;;  %366 = vst [vmem:[%s1030_s4 + $0x80] sm:$0xff] %v334_v20  ;;  %v198_v27 = vadd.f32 %v197_v23, %v798_v5  ;;  %v246_v28 = vadd.f32 %v245_v25, %v798_v5  ;;  %v199_v29 = vpop.f32.mrb[3].mxu0  ;;  %v247_v31 = vpop.f32.mrb[3].mxu1  ;;  %v311_v18 = vld [vmem:[%s1029_s3 + $0xc8] sm:$0xff] }
 0x11d   :  { %351 = vst [vmem:[%s1030_s4 + $0x8] sm:$0xff] %v319_v21  ;;  %367 = vst [vmem:[%s1030_s4 + $0x88] sm:$0xff] %v335_v22  ;;  %v200_v33 = vadd.f32 %v199_v29, %v800_v6  ;;  %v248_v34 = vadd.f32 %v247_v31, %v800_v6 }
 0x11e   :  { %v320_v35 = vadd.f32 %v288_v24, %v198_v27  ;;  %v336_v36 = vadd.f32 %v304_v26, %v246_v28  ;;  %v296_v26 = vld [vmem:[%s1029_s3 + $0x50] sm:$0xff] }
 0x11f   :  { %v321_v37 = vadd.f32 %v289_v30, %v200_v33  ;;  %v337_v38 = vadd.f32 %v305_v32, %v248_v34  ;;  %v203_v39 = vpop.f32.mrb[4].mxu0  ;;  %v251_v41 = vpop.f32.mrb[4].mxu1  ;;  %v312_v28 = vld [vmem:[%s1029_s3 + $0xd0] sm:$0xff]  ;;  %v297_v32 = vld [vmem:[%s1029_s3 + $0x58] sm:$0xff] }
 0x120   :  { %352 = vst [vmem:[%s1030_s4 + $0x10] sm:$0xff] %v320_v35  ;;  %368 = vst [vmem:[%s1030_s4 + $0x90] sm:$0xff] %v336_v36  ;;  %v204_v43 = vadd.f32 %v203_v39, %v798_v5  ;;  %v252_v44 = vadd.f32 %v251_v41, %v798_v5  ;;  %v205_v45 = vpop.f32.mrb[5].mxu0  ;;  %v253_v47 = vpop.f32.mrb[5].mxu1  ;;  %v313_v34 = vld [vmem:[%s1029_s3 + $0xd8] sm:$0xff] }
 0x121   :  { %353 = vst [vmem:[%s1030_s4 + $0x18] sm:$0xff] %v321_v37  ;;  %369 = vst [vmem:[%s1030_s4 + $0x98] sm:$0xff] %v337_v38  ;;  %v206_v49 = vadd.f32 %v205_v45, %v800_v6  ;;  %v254_v50 = vadd.f32 %v253_v47, %v800_v6 }
 0x122   :  { %v322_v51 = vadd.f32 %v290_v40, %v204_v43  ;;  %v338_v52 = vadd.f32 %v306_v42, %v252_v44  ;;  %v298_v42 = vld [vmem:[%s1029_s3 + $0x60] sm:$0xff] }
 0x123   :  { %v323_v53 = vadd.f32 %v291_v46, %v206_v49  ;;  %v339_v54 = vadd.f32 %v307_v48, %v254_v50  ;;  %v209_v55 = vpop.f32.mrb[6].mxu0  ;;  %v257_v57 = vpop.f32.mrb[6].mxu1  ;;  %v314_v44 = vld [vmem:[%s1029_s3 + $0xe0] sm:$0xff]  ;;  %v299_v48 = vld [vmem:[%s1029_s3 + $0x68] sm:$0xff] }
 0x124   :  { %354 = vst [vmem:[%s1030_s4 + $0x20] sm:$0xff] %v322_v51  ;;  %370 = vst [vmem:[%s1030_s4 + $0xa0] sm:$0xff] %v338_v52  ;;  %v210_v59 = vadd.f32 %v209_v55, %v798_v5  ;;  %v258_v60 = vadd.f32 %v257_v57, %v798_v5  ;;  %v211_v61 = vpop.f32.mrb[7].mxu0  ;;  %v259_v63 = vpop.f32.mrb[7].mxu1  ;;  %v315_v50 = vld [vmem:[%s1029_s3 + $0xe8] sm:$0xff] }
 0x125   :  { %355 = vst [vmem:[%s1030_s4 + $0x28] sm:$0xff] %v323_v53  ;;  %371 = vst [vmem:[%s1030_s4 + $0xa8] sm:$0xff] %v339_v54  ;;  %v212_v1 = vadd.f32 %v211_v61, %v800_v6  ;;  %v260_v2 = vadd.f32 %v259_v63, %v800_v6 }
 0x126   :  { %v324_v3 = vadd.f32 %v292_v56, %v210_v59  ;;  %v340_v4 = vadd.f32 %v308_v58, %v258_v60  ;;  %v300_v58 = vld [vmem:[%s1029_s3 + $0x70] sm:$0xff] }
 0x127   :  { %v325_v7 = vadd.f32 %v293_v62, %v212_v1  ;;  %v341_v8 = vadd.f32 %v309_v0, %v260_v2  ;;  %v215_v9 = vpop.f32.mrb[8].mxu0  ;;  %v263_v11 = vpop.f32.mrb[8].mxu1  ;;  %v316_v60 = vld [vmem:[%s1029_s3 + $0xf0] sm:$0xff]  ;;  %v301_v0 = vld [vmem:[%s1029_s3 + $0x78] sm:$0xff] }
 0x128   :  { %356 = vst [vmem:[%s1030_s4 + $0x30] sm:$0xff] %v324_v3  ;;  %372 = vst [vmem:[%s1030_s4 + $0xb0] sm:$0xff] %v340_v4  ;;  %v216_v13 = vadd.f32 %v215_v9, %v798_v5  ;;  %v264_v14 = vadd.f32 %v263_v11, %v798_v5  ;;  %v217_v15 = vpop.f32.mrb[9].mxu0  ;;  %v265_v17 = vpop.f32.mrb[9].mxu1  ;;  %v317_v2 = vld [vmem:[%s1029_s3 + $0xf8] sm:$0xff] }
 0x129   :  { %357 = vst [vmem:[%s1030_s4 + $0x38] sm:$0xff] %v325_v7  ;;  %373 = vst [vmem:[%s1030_s4 + $0xb8] sm:$0xff] %v341_v8  ;;  %v218_v19 = vadd.f32 %v217_v15, %v800_v6  ;;  %v266_v20 = vadd.f32 %v265_v17, %v800_v6 }
 0x12a   :  { %v326_v21 = vadd.f32 %v294_v10, %v216_v13  ;;  %v342_v22 = vadd.f32 %v310_v12, %v264_v14 }
 0x12b   :  { %v327_v23 = vadd.f32 %v295_v16, %v218_v19  ;;  %v343_v24 = vadd.f32 %v311_v18, %v266_v20  ;;  %v221_v25 = vpop.f32.mrb[10].mxu0  ;;  %v269_v27 = vpop.f32.mrb[10].mxu1 }
 0x12c   :  { %358 = vst [vmem:[%s1030_s4 + $0x40] sm:$0xff] %v326_v21  ;;  %374 = vst [vmem:[%s1030_s4 + $0xc0] sm:$0xff] %v342_v22  ;;  %v222_v29 = vadd.f32 %v221_v25, %v798_v5  ;;  %v270_v30 = vadd.f32 %v269_v27, %v798_v5  ;;  %v223_v31 = vpop.f32.mrb[11].mxu0  ;;  %v271_v33 = vpop.f32.mrb[11].mxu1 }
 0x12d   :  { %359 = vst [vmem:[%s1030_s4 + $0x48] sm:$0xff] %v327_v23  ;;  %375 = vst [vmem:[%s1030_s4 + $0xc8] sm:$0xff] %v343_v24  ;;  %v224_v35 = vadd.f32 %v223_v31, %v800_v6  ;;  %v272_v36 = vadd.f32 %v271_v33, %v800_v6 }
 0x12e   :  { %v328_v37 = vadd.f32 %v296_v26, %v222_v29  ;;  %v344_v38 = vadd.f32 %v312_v28, %v270_v30 }
 0x12f   :  { %v329_v39 = vadd.f32 %v297_v32, %v224_v35  ;;  %v345_v40 = vadd.f32 %v313_v34, %v272_v36  ;;  %v227_v41 = vpop.f32.mrb[12].mxu0  ;;  %v275_v43 = vpop.f32.mrb[12].mxu1 }
 0x130   :  { %360 = vst [vmem:[%s1030_s4 + $0x50] sm:$0xff] %v328_v37  ;;  %376 = vst [vmem:[%s1030_s4 + $0xd0] sm:$0xff] %v344_v38  ;;  %v228_v45 = vadd.f32 %v227_v41, %v798_v5  ;;  %v276_v46 = vadd.f32 %v275_v43, %v798_v5  ;;  %v229_v47 = vpop.f32.mrb[13].mxu0  ;;  %v277_v49 = vpop.f32.mrb[13].mxu1 }
 0x131   :  { %361 = vst [vmem:[%s1030_s4 + $0x58] sm:$0xff] %v329_v39  ;;  %377 = vst [vmem:[%s1030_s4 + $0xd8] sm:$0xff] %v345_v40  ;;  %v230_v51 = vadd.f32 %v229_v47, %v800_v6  ;;  %v278_v52 = vadd.f32 %v277_v49, %v800_v6 }
 0x132   :  { %v330_v53 = vadd.f32 %v298_v42, %v228_v45  ;;  %v346_v54 = vadd.f32 %v314_v44, %v276_v46 }
 0x133   :  { %v331_v55 = vadd.f32 %v299_v48, %v230_v51  ;;  %v347_v56 = vadd.f32 %v315_v50, %v278_v52  ;;  %v233_v57 = vpop.f32.mrb[14].mxu0  ;;  %v281_v59 = vpop.f32.mrb[14].mxu1 }
 0x134   :  { %362 = vst [vmem:[%s1030_s4 + $0x60] sm:$0xff] %v330_v53  ;;  %378 = vst [vmem:[%s1030_s4 + $0xe0] sm:$0xff] %v346_v54  ;;  %v234_v61 = vadd.f32 %v233_v57, %v798_v5  ;;  %v282_v62 = vadd.f32 %v281_v59, %v798_v5  ;;  %v235_v63 = vpop.f32.mrb[15].mxu0  ;;  %v283_v1 = vpop.f32.mrb[15].mxu1 }
 0x135   :  { %363 = vst [vmem:[%s1030_s4 + $0x68] sm:$0xff] %v331_v55  ;;  %379 = vst [vmem:[%s1030_s4 + $0xe8] sm:$0xff] %v347_v56  ;;  %v236_v5 = vadd.f32 %v235_v63, %v800_v6  ;;  %v284_v3 = vadd.f32 %v283_v1, %v800_v6 }
 0x136   :  { %v332_v4 = vadd.f32 %v300_v58, %v234_v61  ;;  %v348_v7 = vadd.f32 %v316_v60, %v282_v62 }
 0x137   :  { %v333_v8 = vadd.f32 %v301_v0, %v236_v5  ;;  %v349_v9 = vadd.f32 %v317_v2, %v284_v3 }
 0x138   :  { %364 = vst [vmem:[%s1030_s4 + $0x70] sm:$0xff] %v332_v4  ;;  %380 = vst [vmem:[%s1030_s4 + $0xf0] sm:$0xff] %v348_v7 }
 0x139   :  { %365 = vst [vmem:[%s1030_s4 + $0x78] sm:$0xff] %v333_v8  ;;  %381 = vst [vmem:[%s1030_s4 + $0xf8] sm:$0xff] %v349_v9 }

// kernel: reactive_transformer_layer.8
= control target key start
LH: loop header
LB: loop body
LE: loop exit
PB: predicated region body
PF: predicated region fallthrough
CT: control target
= control target key end

     0   :  { %s1883_s18 = smov 0   ;;  %s1885_s19 = smov 0   ;;  %s2936_s0 = inlined_call_operand.vmem [shape: f32[128,256], index: 0, kind: input, shape index: {}]   ;;  %s2937_s1 = inlined_call_operand.vmem [shape: f32[1,256], index: 1, kind: input, shape index: {}]   ;;  %s2938_s2 = inlined_call_operand.vmem [shape: f32[1,256], index: 2, kind: input, shape index: {}]   ;;  %s2939_s3 = inlined_call_operand.vmem [shape: f32[256,768], index: 3, kind: input, shape index: {}]   ;;  %s2940_s4 = inlined_call_operand.vmem [shape: f32[1,768], index: 4, kind: input, shape index: {}]   ;;  %s2941_s5 = inlined_call_operand.vmem [shape: f32[128,768], index: 5, kind: output, shape index: {}]  }
   0x1   :  { %s1887_s20 = smov 0   ;;  %s1889_s21 = smov 0  }
   0x2   :  { %s1891_s22 = smov 0  }
   0x3 LB: > { %s24_s23 = sadd.s32 1, %s1847_s21  ;;  %s1550_s24 = sadd.s32 4294967295, %s1851_s22   ;;  %s1851_s22 = sphi %s1891_s22, %s15_s22   ;;  %s1847_s21 = sphi %s1889_s21, %s2946_s21   ;;  %s1843_s20 = sphi %s1887_s20, %s2945_s20   ;;  %s1839_s19 = sphi %s1885_s19, %s2944_s19   ;;  %s1835_s18 = sphi %s1883_s18, %s2943_s18  }
   0x4   : > { %p25_p0 = scmp.ge.s32.totalorder %s24_s23, 2  ;;  %p109_p1 = scmp.ne.s32.totalorder %s1839_s19, %s1835_s18 }
   0x5   : > { %p110_p2 = scmp.eq.s32.totalorder %s1851_s22, 0  ;;  %p167_p4 = scmp.eq.s32.totalorder %s1550_s24, 1 }
   0x6   : > { %s2948_s23 = smov (%p25_p0, %s24_s23), 0  ;;  %s102_s26 = sadd.s32 1, %s1839_s19 }
   0x7   : > { %p111_p3 = por %p110_p2, %p109_p1  ;;  %s99_s25 = ssub.s32 %s1847_s21, %s2948_s23 }
   0x8   : > { %p100_p5 = scmp.eq.s32.totalorder %s99_s25, 0  ;;  %p1918_p6 = por %p167_p4, %p109_p1 }
   0x9   : > { %p1554_p7 = scmp.ge.s32.totalorder %s1851_s22, 2 }
   0xa   : > { %s1923_s28 = scalar_select %p100_p5, %s1839_s19, %s102_s26  }
   0xb   : > { %205 = sbr.rel (%p1554_p7) target bundleno = 71 (0x47), region = 28 }
  0x12   : > { %208 = sbr.rel (!%p111_p3) target bundleno = 71 (0x47), region = 32  ;;  %s210_s29 = sand.u32 (%p111_p3), 1, %s1839_s19  }
  0x13   : > { %s1560_s30 = smul.u32 (%p111_p3), 24, %s1847_s21 }
  0x14   : > { %s1738_s6 = smul.u32 (%p111_p3), 768, %s210_s29 }
  0x15   : > { %s1931_s9 = scalar_lea.vmem (%p111_p3), %s2939_s3, %s1560_s30 }
  0x16   : > { %v228_v0 = vld [vmem:[%s1931_s9] sm:$0xff] (%p111_p3)  ;;  %v230_v1 = vld [vmem:[%s1931_s9 + $0x8] sm:$0xff] (%p111_p3)  ;;  %v232_v2 = vld [vmem:[%s1931_s9 + $0x10] sm:$0xff] (%p111_p3)  ;;  %s1936_s10 = scalar_lea.vmem (%p111_p3), [#allocation2], %s1738_s6 }
  0x17   : > { %229 = vst [vmem:[%s1936_s10] sm:$0xff] (%p111_p3), %v228_v0  ;;  %231 = vst [vmem:[%s1936_s10 + $0x8] sm:$0xff] (%p111_p3), %v230_v1  ;;  %v234_v3 = vld [vmem:[%s1931_s9 + $0x30] sm:$0xff] (%p111_p3)  ;;  %v236_v4 = vld [vmem:[%s1931_s9 + $0x38] sm:$0xff] (%p111_p3) }
  0x18   : > { %233 = vst [vmem:[%s1936_s10 + $0x10] sm:$0xff] (%p111_p3), %v232_v2  ;;  %v238_v5 = vld [vmem:[%s1931_s9 + $0x40] sm:$0xff] (%p111_p3)  ;;  %235 = vst [vmem:[%s1936_s10 + $0x18] sm:$0xff] (%p111_p3), %v234_v3  ;;  %v242_v7 = vld [vmem:[%s1931_s9 + $0x68] sm:$0xff] (%p111_p3) }
  0x19   : > { %237 = vst [vmem:[%s1936_s10 + $0x20] sm:$0xff] %v236_v4  ;;  %239 = vst [vmem:[%s1936_s10 + $0x28] sm:$0xff] %v238_v5  ;;  %v240_v6 = vld [vmem:[%s1931_s9 + $0x60] sm:$0xff]  ;;  %v244_v8 = vld [vmem:[%s1931_s9 + $0x70] sm:$0xff] }
  0x1a   : > { %241 = vst [vmem:[%s1936_s10 + $0x30] sm:$0xff] %v240_v6  ;;  %243 = vst [vmem:[%s1936_s10 + $0x38] sm:$0xff] %v242_v7  ;;  %v246_v9 = vld [vmem:[%s1931_s9 + $0x90] sm:$0xff]  ;;  %v248_v10 = vld [vmem:[%s1931_s9 + $0x98] sm:$0xff] }
  0x1b   : > { %245 = vst [vmem:[%s1936_s10 + $0x40] sm:$0xff] %v244_v8  ;;  %v250_v11 = vld [vmem:[%s1931_s9 + $0xa0] sm:$0xff]  ;;  %247 = vst [vmem:[%s1936_s10 + $0x48] sm:$0xff] %v246_v9  ;;  %v254_v13 = vld [vmem:[%s1931_s9 + $0xc8] sm:$0xff] }
  0x1c   : > { %249 = vst [vmem:[%s1936_s10 + $0x50] sm:$0xff] %v248_v10  ;;  %251 = vst [vmem:[%s1936_s10 + $0x58] sm:$0xff] %v250_v11  ;;  %v252_v12 = vld [vmem:[%s1931_s9 + $0xc0] sm:$0xff]  ;;  %v256_v14 = vld [vmem:[%s1931_s9 + $0xd0] sm:$0xff] }
  0x1d   : > { %253 = vst [vmem:[%s1936_s10 + $0x60] sm:$0xff] %v252_v12  ;;  %255 = vst [vmem:[%s1936_s10 + $0x68] sm:$0xff] %v254_v13  ;;  %v258_v15 = vld [vmem:[%s1931_s9 + $0xf0] sm:$0xff]  ;;  %v260_v16 = vld [vmem:[%s1931_s9 + $0xf8] sm:$0xff] }
  0x1e   : > { %257 = vst [vmem:[%s1936_s10 + $0x70] sm:$0xff] %v256_v14  ;;  %v262_v17 = vld [vmem:[%s1931_s9 + $0x100] sm:$0xff]  ;;  %259 = vst [vmem:[%s1936_s10 + $0x78] sm:$0xff] %v258_v15  ;;  %v266_v19 = vld [vmem:[%s1931_s9 + $0x128] sm:$0xff] }
  0x1f   : > { %261 = vst [vmem:[%s1936_s10 + $0x80] sm:$0xff] %v260_v16  ;;  %263 = vst [vmem:[%s1936_s10 + $0x88] sm:$0xff] %v262_v17  ;;  %v264_v18 = vld [vmem:[%s1931_s9 + $0x120] sm:$0xff]  ;;  %v268_v20 = vld [vmem:[%s1931_s9 + $0x130] sm:$0xff] }
  0x20   : > { %265 = vst [vmem:[%s1936_s10 + $0x90] sm:$0xff] %v264_v18  ;;  %267 = vst [vmem:[%s1936_s10 + $0x98] sm:$0xff] %v266_v19  ;;  %v270_v21 = vld [vmem:[%s1931_s9 + $0x150] sm:$0xff]  ;;  %v272_v22 = vld [vmem:[%s1931_s9 + $0x158] sm:$0xff] }
  0x21   : > { %269 = vst [vmem:[%s1936_s10 + $0xa0] sm:$0xff] %v268_v20  ;;  %v274_v23 = vld [vmem:[%s1931_s9 + $0x160] sm:$0xff]  ;;  %271 = vst [vmem:[%s1936_s10 + $0xa8] sm:$0xff] %v270_v21  ;;  %v278_v25 = vld [vmem:[%s1931_s9 + $0x188] sm:$0xff] }
  0x22   : > { %273 = vst [vmem:[%s1936_s10 + $0xb0] sm:$0xff] %v272_v22  ;;  %275 = vst [vmem:[%s1936_s10 + $0xb8] sm:$0xff] %v274_v23  ;;  %v276_v24 = vld [vmem:[%s1931_s9 + $0x180] sm:$0xff]  ;;  %v280_v26 = vld [vmem:[%s1931_s9 + $0x190] sm:$0xff] }
  0x23   : > { %277 = vst [vmem:[%s1936_s10 + $0xc0] sm:$0xff] %v276_v24  ;;  %279 = vst [vmem:[%s1936_s10 + $0xc8] sm:$0xff] %v278_v25  ;;  %v282_v27 = vld [vmem:[%s1931_s9 + $0x1b0] sm:$0xff]  ;;  %v284_v28 = vld [vmem:[%s1931_s9 + $0x1b8] sm:$0xff] }
  0x24   : > { %281 = vst [vmem:[%s1936_s10 + $0xd0] sm:$0xff] %v280_v26  ;;  %v286_v29 = vld [vmem:[%s1931_s9 + $0x1c0] sm:$0xff]  ;;  %283 = vst [vmem:[%s1936_s10 + $0xd8] sm:$0xff] %v282_v27  ;;  %v290_v31 = vld [vmem:[%s1931_s9 + $0x1e8] sm:$0xff] }
  0x25   : > { %285 = vst [vmem:[%s1936_s10 + $0xe0] sm:$0xff] %v284_v28  ;;  %287 = vst [vmem:[%s1936_s10 + $0xe8] sm:$0xff] %v286_v29  ;;  %v288_v30 = vld [vmem:[%s1931_s9 + $0x1e0] sm:$0xff]  ;;  %v292_v32 = vld [vmem:[%s1931_s9 + $0x1f0] sm:$0xff] }
  0x26   : > { %289 = vst [vmem:[%s1936_s10 + $0xf0] sm:$0xff] %v288_v30  ;;  %291 = vst [vmem:[%s1936_s10 + $0xf8] sm:$0xff] %v290_v31  ;;  %v294_v33 = vld [vmem:[%s1931_s9 + $0x210] sm:$0xff]  ;;  %v296_v34 = vld [vmem:[%s1931_s9 + $0x218] sm:$0xff] }
  0x27   : > { %293 = vst [vmem:[%s1936_s10 + $0x100] sm:$0xff] %v292_v32  ;;  %v298_v35 = vld [vmem:[%s1931_s9 + $0x220] sm:$0xff]  ;;  %295 = vst [vmem:[%s1936_s10 + $0x108] sm:$0xff] %v294_v33  ;;  %v302_v37 = vld [vmem:[%s1931_s9 + $0x248] sm:$0xff] }
  0x28   : > { %297 = vst [vmem:[%s1936_s10 + $0x110] sm:$0xff] %v296_v34  ;;  %299 = vst [vmem:[%s1936_s10 + $0x118] sm:$0xff] %v298_v35  ;;  %v300_v36 = vld [vmem:[%s1931_s9 + $0x240] sm:$0xff]  ;;  %v304_v38 = vld [vmem:[%s1931_s9 + $0x250] sm:$0xff] }
  0x29   : > { %301 = vst [vmem:[%s1936_s10 + $0x120] sm:$0xff] %v300_v36  ;;  %303 = vst [vmem:[%s1936_s10 + $0x128] sm:$0xff] %v302_v37  ;;  %v306_v39 = vld [vmem:[%s1931_s9 + $0x270] sm:$0xff]  ;;  %v308_v40 = vld [vmem:[%s1931_s9 + $0x278] sm:$0xff] }
  0x2a   : > { %305 = vst [vmem:[%s1936_s10 + $0x130] sm:$0xff] %v304_v38  ;;  %v310_v41 = vld [vmem:[%s1931_s9 + $0x280] sm:$0xff]  ;;  %307 = vst [vmem:[%s1936_s10 + $0x138] sm:$0xff] %v306_v39  ;;  %v314_v43 = vld [vmem:[%s1931_s9 + $0x2a8] sm:$0xff] }
  0x2b   : > { %309 = vst [vmem:[%s1936_s10 + $0x140] sm:$0xff] %v308_v40  ;;  %311 = vst [vmem:[%s1936_s10 + $0x148] sm:$0xff] %v310_v41  ;;  %v312_v42 = vld [vmem:[%s1931_s9 + $0x2a0] sm:$0xff]  ;;  %v316_v44 = vld [vmem:[%s1931_s9 + $0x2b0] sm:$0xff] }
  0x2c   : > { %313 = vst [vmem:[%s1936_s10 + $0x150] sm:$0xff] %v312_v42  ;;  %315 = vst [vmem:[%s1936_s10 + $0x158] sm:$0xff] %v314_v43  ;;  %v318_v45 = vld [vmem:[%s1931_s9 + $0x2d0] sm:$0xff]  ;;  %v320_v46 = vld [vmem:[%s1931_s9 + $0x2d8] sm:$0xff] }
  0x2d   : > { %317 = vst [vmem:[%s1936_s10 + $0x160] sm:$0xff] %v316_v44  ;;  %v322_v47 = vld [vmem:[%s1931_s9 + $0x2e0] sm:$0xff]  ;;  %319 = vst [vmem:[%s1936_s10 + $0x168] sm:$0xff] %v318_v45  ;;  %v326_v49 = vld [vmem:[%s1931_s9 + $0x308] sm:$0xff] }
  0x2e   : > { %321 = vst [vmem:[%s1936_s10 + $0x170] sm:$0xff] %v320_v46  ;;  %323 = vst [vmem:[%s1936_s10 + $0x178] sm:$0xff] %v322_v47  ;;  %v324_v48 = vld [vmem:[%s1931_s9 + $0x300] sm:$0xff]  ;;  %v328_v50 = vld [vmem:[%s1931_s9 + $0x310] sm:$0xff] }
  0x2f   : > { %325 = vst [vmem:[%s1936_s10 + $0x180] sm:$0xff] %v324_v48  ;;  %327 = vst [vmem:[%s1936_s10 + $0x188] sm:$0xff] %v326_v49  ;;  %v330_v51 = vld [vmem:[%s1931_s9 + $0x330] sm:$0xff]  ;;  %v332_v52 = vld [vmem:[%s1931_s9 + $0x338] sm:$0xff] }
  0x30   : > { %329 = vst [vmem:[%s1936_s10 + $0x190] sm:$0xff] %v328_v50  ;;  %v334_v53 = vld [vmem:[%s1931_s9 + $0x340] sm:$0xff]  ;;  %331 = vst [vmem:[%s1936_s10 + $0x198] sm:$0xff] %v330_v51  ;;  %v338_v55 = vld [vmem:[%s1931_s9 + $0x368] sm:$0xff] }
  0x31   : > { %333 = vst [vmem:[%s1936_s10 + $0x1a0] sm:$0xff] %v332_v52  ;;  %335 = vst [vmem:[%s1936_s10 + $0x1a8] sm:$0xff] %v334_v53  ;;  %v336_v54 = vld [vmem:[%s1931_s9 + $0x360] sm:$0xff]  ;;  %v340_v56 = vld [vmem:[%s1931_s9 + $0x370] sm:$0xff] }
  0x32   : > { %337 = vst [vmem:[%s1936_s10 + $0x1b0] sm:$0xff] %v336_v54  ;;  %339 = vst [vmem:[%s1936_s10 + $0x1b8] sm:$0xff] %v338_v55  ;;  %v342_v57 = vld [vmem:[%s1931_s9 + $0x390] sm:$0xff]  ;;  %v344_v58 = vld [vmem:[%s1931_s9 + $0x398] sm:$0xff] }
  0x33   : > { %341 = vst [vmem:[%s1936_s10 + $0x1c0] sm:$0xff] %v340_v56  ;;  %v346_v59 = vld [vmem:[%s1931_s9 + $0x3a0] sm:$0xff]  ;;  %343 = vst [vmem:[%s1936_s10 + $0x1c8] sm:$0xff] %v342_v57  ;;  %v350_v61 = vld [vmem:[%s1931_s9 + $0x3c8] sm:$0xff] }
  0x34   : > { %345 = vst [vmem:[%s1936_s10 + $0x1d0] sm:$0xff] %v344_v58  ;;  %347 = vst [vmem:[%s1936_s10 + $0x1d8] sm:$0xff] %v346_v59  ;;  %v348_v60 = vld [vmem:[%s1931_s9 + $0x3c0] sm:$0xff]  ;;  %v352_v62 = vld [vmem:[%s1931_s9 + $0x3d0] sm:$0xff] }
  0x35   : > { %349 = vst [vmem:[%s1936_s10 + $0x1e0] sm:$0xff] %v348_v60  ;;  %351 = vst [vmem:[%s1936_s10 + $0x1e8] sm:$0xff] %v350_v61  ;;  %v354_v63 = vld [vmem:[%s1931_s9 + $0x3f0] sm:$0xff]  ;;  %v356_v0 = vld [vmem:[%s1931_s9 + $0x3f8] sm:$0xff] }
  0x36   : > { %353 = vst [vmem:[%s1936_s10 + $0x1f0] sm:$0xff] %v352_v62  ;;  %v358_v1 = vld [vmem:[%s1931_s9 + $0x400] sm:$0xff]  ;;  %355 = vst [vmem:[%s1936_s10 + $0x1f8] sm:$0xff] %v354_v63  ;;  %v362_v3 = vld [vmem:[%s1931_s9 + $0x428] sm:$0xff] }
  0x37   : > { %357 = vst [vmem:[%s1936_s10 + $0x200] sm:$0xff] %v356_v0  ;;  %359 = vst [vmem:[%s1936_s10 + $0x208] sm:$0xff] %v358_v1  ;;  %v360_v2 = vld [vmem:[%s1931_s9 + $0x420] sm:$0xff]  ;;  %v364_v4 = vld [vmem:[%s1931_s9 + $0x430] sm:$0xff] }
  0x38   : > { %361 = vst [vmem:[%s1936_s10 + $0x210] sm:$0xff] %v360_v2  ;;  %363 = vst [vmem:[%s1936_s10 + $0x218] sm:$0xff] %v362_v3  ;;  %v366_v5 = vld [vmem:[%s1931_s9 + $0x450] sm:$0xff]  ;;  %v368_v6 = vld [vmem:[%s1931_s9 + $0x458] sm:$0xff] }
  0x39   : > { %365 = vst [vmem:[%s1936_s10 + $0x220] sm:$0xff] %v364_v4  ;;  %v370_v7 = vld [vmem:[%s1931_s9 + $0x460] sm:$0xff]  ;;  %367 = vst [vmem:[%s1936_s10 + $0x228] sm:$0xff] %v366_v5  ;;  %v374_v9 = vld [vmem:[%s1931_s9 + $0x488] sm:$0xff] }
  0x3a   : > { %369 = vst [vmem:[%s1936_s10 + $0x230] sm:$0xff] %v368_v6  ;;  %371 = vst [vmem:[%s1936_s10 + $0x238] sm:$0xff] %v370_v7  ;;  %v372_v8 = vld [vmem:[%s1931_s9 + $0x480] sm:$0xff]  ;;  %v376_v10 = vld [vmem:[%s1931_s9 + $0x490] sm:$0xff] }
  0x3b   : > { %373 = vst [vmem:[%s1936_s10 + $0x240] sm:$0xff] %v372_v8  ;;  %375 = vst [vmem:[%s1936_s10 + $0x248] sm:$0xff] %v374_v9  ;;  %v378_v11 = vld [vmem:[%s1931_s9 + $0x4b0] sm:$0xff]  ;;  %v380_v12 = vld [vmem:[%s1931_s9 + $0x4b8] sm:$0xff] }
  0x3c   : > { %377 = vst [vmem:[%s1936_s10 + $0x250] sm:$0xff] %v376_v10  ;;  %v382_v13 = vld [vmem:[%s1931_s9 + $0x4c0] sm:$0xff]  ;;  %379 = vst [vmem:[%s1936_s10 + $0x258] sm:$0xff] %v378_v11  ;;  %v386_v15 = vld [vmem:[%s1931_s9 + $0x4e8] sm:$0xff] }
  0x3d   : > { %381 = vst [vmem:[%s1936_s10 + $0x260] sm:$0xff] %v380_v12  ;;  %383 = vst [vmem:[%s1936_s10 + $0x268] sm:$0xff] %v382_v13  ;;  %v384_v14 = vld [vmem:[%s1931_s9 + $0x4e0] sm:$0xff]  ;;  %v388_v16 = vld [vmem:[%s1931_s9 + $0x4f0] sm:$0xff] }
  0x3e   : > { %385 = vst [vmem:[%s1936_s10 + $0x270] sm:$0xff] %v384_v14  ;;  %387 = vst [vmem:[%s1936_s10 + $0x278] sm:$0xff] %v386_v15  ;;  %v390_v17 = vld [vmem:[%s1931_s9 + $0x510] sm:$0xff]  ;;  %v392_v18 = vld [vmem:[%s1931_s9 + $0x518] sm:$0xff] }
  0x3f   : > { %389 = vst [vmem:[%s1936_s10 + $0x280] sm:$0xff] %v388_v16  ;;  %v394_v19 = vld [vmem:[%s1931_s9 + $0x520] sm:$0xff]  ;;  %391 = vst [vmem:[%s1936_s10 + $0x288] sm:$0xff] %v390_v17  ;;  %v398_v21 = vld [vmem:[%s1931_s9 + $0x548] sm:$0xff] }
  0x40   : > { %393 = vst [vmem:[%s1936_s10 + $0x290] sm:$0xff] %v392_v18  ;;  %395 = vst [vmem:[%s1936_s10 + $0x298] sm:$0xff] %v394_v19  ;;  %v396_v20 = vld [vmem:[%s1931_s9 + $0x540] sm:$0xff]  ;;  %v400_v22 = vld [vmem:[%s1931_s9 + $0x550] sm:$0xff] }
  0x41   : > { %397 = vst [vmem:[%s1936_s10 + $0x2a0] sm:$0xff] %v396_v20  ;;  %399 = vst [vmem:[%s1936_s10 + $0x2a8] sm:$0xff] %v398_v21  ;;  %v402_v23 = vld [vmem:[%s1931_s9 + $0x570] sm:$0xff]  ;;  %v404_v24 = vld [vmem:[%s1931_s9 + $0x578] sm:$0xff] }
  0x42   : > { %401 = vst [vmem:[%s1936_s10 + $0x2b0] sm:$0xff] %v400_v22  ;;  %v406_v25 = vld [vmem:[%s1931_s9 + $0x580] sm:$0xff]  ;;  %403 = vst [vmem:[%s1936_s10 + $0x2b8] sm:$0xff] %v402_v23  ;;  %v410_v27 = vld [vmem:[%s1931_s9 + $0x5a8] sm:$0xff] }
  0x43   : > { %405 = vst [vmem:[%s1936_s10 + $0x2c0] sm:$0xff] %v404_v24  ;;  %407 = vst [vmem:[%s1936_s10 + $0x2c8] sm:$0xff] %v406_v25  ;;  %v408_v26 = vld [vmem:[%s1931_s9 + $0x5a0] sm:$0xff]  ;;  %v412_v28 = vld [vmem:[%s1931_s9 + $0x5b0] sm:$0xff] }
  0x44   : > { %409 = vst [vmem:[%s1936_s10 + $0x2d0] sm:$0xff] %v408_v26  ;;  %411 = vst [vmem:[%s1936_s10 + $0x2d8] sm:$0xff] %v410_v27  ;;  %v414_v29 = vld [vmem:[%s1931_s9 + $0x5d0] sm:$0xff]  ;;  %v416_v30 = vld [vmem:[%s1931_s9 + $0x5d8] sm:$0xff] }
  0x45   : > { %413 = vst [vmem:[%s1936_s10 + $0x2e0] sm:$0xff] %v412_v28  ;;  %v418_v31 = vld [vmem:[%s1931_s9 + $0x5e0] sm:$0xff]  ;;  %415 = vst [vmem:[%s1936_s10 + $0x2e8] sm:$0xff] %v414_v29 }
  0x46   : > { %417 = vst [vmem:[%s1936_s10 + $0x2f0] sm:$0xff] %v416_v30  ;;  %419 = vst [vmem:[%s1936_s10 + $0x2f8] sm:$0xff] %v418_v31 }
  0x47 PF: > { %p1556_p8 = scmp.ge.s32.totalorder %s1851_s22, 1  ;;  %p432_p9 = scmp.lt.s32.totalorder %s1851_s22, 3 }
  0x49   : > { %p433_p10 = pnand %p1556_p8, %p432_p9 }
  0x4a   : > { %v2132_v32 = vld [vmem:[%s2936_s0] sm:$0xff] (!%p433_p10)  ;;  %v2137_v33 = vld [vmem:[%s2936_s0 + $0x8] sm:$0xff] (!%p433_p10)  ;;  %v2154_v37 = vld [vmem:[%s2936_s0 + $0x10] sm:$0xff] (!%p433_p10)  ;;  %s439_s7 = sand.u32 (!%p433_p10), 1, %s1835_s18   ;;  %s483_s14 = smul.u32 (!%p433_p10), 3, %s1843_s20 }
  0x4b   : > { %436 = sbr.rel (%p433_p10) target bundleno = 677 (0x2a5), region = 59  ;;  %v2142_v34 = vld [vmem:[%s2936_s0 + $0x20] sm:$0xff] (!%p433_p10)  ;;  %v524_v35 = vadd.f32 (!%p433_p10), %v2137_v33, %v2132_v32  ;;  %v2149_v36 = vld [vmem:[%s2936_s0 + $0x28] sm:$0xff] (!%p433_p10)  ;;  %v2159_v38 = vld [vmem:[%s2936_s0 + $0x18] sm:$0xff] (!%p433_p10) }
  0x4c   : > { %v530_v39 = vadd.f32 (!%p433_p10), %v2149_v36, %v2142_v34  ;;  %v2166_v40 = vld [vmem:[%s2936_s0 + $0x30] sm:$0xff] (!%p433_p10)  ;;  %v2171_v41 = vld [vmem:[%s2936_s0 + $0x38] sm:$0xff] (!%p433_p10)  ;;  %v527_v42 = vadd.f32 (!%p433_p10), %v2159_v38, %v2154_v37  ;;  %v2180_v44 = vld [vmem:[%s2936_s0 + $0x40] sm:$0xff] (!%p433_p10)  ;;  %s1739_s8 = smul.u32 (!%p433_p10), 768, %s439_s7  ;;  %p484_p11 = scmp.lt.s32.totalorder (!%p433_p10), %s483_s14, 5 }
  0x4d   : > { %525 = vadd.xlane.f32.xlu0 (!%p433_p10), %v524_v35  ;;  %v533_v43 = vadd.f32 (!%p433_p10), %v2171_v41, %v2166_v40  ;;  %v2185_v45 = vld [vmem:[%s2936_s0 + $0x48] sm:$0xff] (!%p433_p10)  ;;  %v2190_v46 = vld [vmem:[%s2936_s0 + $0x50] sm:$0xff] (!%p433_p10)  ;;  %v2195_v47 = vld [vmem:[%s2936_s0 + $0x58] sm:$0xff] (!%p433_p10)  ;;  %s1740_s24 = smul.u32 (!%p433_p10), 384, %s439_s7 }
  0x4e   : > { %531 = vadd.xlane.f32.xlu1 (!%p433_p10), %v530_v39  ;;  %v536_v48 = vadd.f32 (!%p433_p10), %v2185_v45, %v2180_v44  ;;  %v539_v49 = vadd.f32 (!%p433_p10), %v2195_v47, %v2190_v46  ;;  %v2204_v50 = vld [vmem:[%s2936_s0 + $0x60] sm:$0xff] (!%p433_p10)  ;;  %v2209_v51 = vld [vmem:[%s2936_s0 + $0x68] sm:$0xff] (!%p433_p10)  ;;  %v2214_v52 = vld [vmem:[%s2936_s0 + $0x70] sm:$0xff] (!%p433_p10)  ;;  %s2324_s9 = scalar_lea.vmem (!%p433_p10), [#allocation2], %s1739_s8 }
  0x4f   : > { %v2219_v53 = vld [vmem:[%s2936_s0 + $0x78] sm:$0xff] (!%p433_p10)  ;;  %v542_v54 = vadd.f32 (!%p433_p10), %v2209_v51, %v2204_v50  ;;  %v2228_v56 = vld [vmem:[%s2936_s0 + $0x80] sm:$0xff] (!%p433_p10)  ;;  %v2233_v57 = vld [vmem:[%s2936_s0 + $0x88] sm:$0xff] (!%p433_p10)  ;;  %s2721_s18 = scalar_lea.vmem (!%p433_p10), [#allocation3], %s1740_s24 }
  0x50   : > { %v545_v55 = vadd.f32 (!%p433_p10), %v2219_v53, %v2214_v52  ;;  %v2238_v58 = vld [vmem:[%s2936_s0 + $0x90] sm:$0xff] (!%p433_p10)  ;;  %v2243_v59 = vld [vmem:[%s2936_s0 + $0x98] sm:$0xff] (!%p433_p10)  ;;  %v548_v60 = vadd.f32 (!%p433_p10), %v2233_v57, %v2228_v56  ;;  %v2252_v62 = vld [vmem:[%s2936_s0 + $0xa0] sm:$0xff] (!%p433_p10) }
  0x51   : > { %528 = vadd.xlane.f32.xlu0 (!%p433_p10), %v527_v42  ;;  %v551_v61 = vadd.f32 (!%p433_p10), %v2243_v59, %v2238_v58  ;;  %v2257_v63 = vld [vmem:[%s2936_s0 + $0xa8] sm:$0xff] (!%p433_p10)  ;;  %v2262_v0 = vld [vmem:[%s2936_s0 + $0xb0] sm:$0xff] (!%p433_p10)  ;;  %v2267_v1 = vld [vmem:[%s2936_s0 + $0xb8] sm:$0xff] (!%p433_p10) }
  0x52   : > { %534 = vadd.xlane.f32.xlu1 %v533_v43  ;;  %v554_v2 = vadd.f32 %v2257_v63, %v2252_v62  ;;  %v557_v3 = vadd.f32 %v2267_v1, %v2262_v0  ;;  %v2276_v4 = vld [vmem:[%s2936_s0 + $0xc0] sm:$0xff]  ;;  %v2281_v5 = vld [vmem:[%s2936_s0 + $0xc8] sm:$0xff]  ;;  %v2286_v6 = vld [vmem:[%s2936_s0 + $0xd0] sm:$0xff]  ;;  %s2950_s14 = smov (!%p484_p11, %s483_s14), 5  ;;  %s1561_s25 = smul.u32 (%p1918_p6), 24, %s1843_s20 }
  0x53   : > { %v2291_v7 = vld [vmem:[%s2936_s0 + $0xd8] sm:$0xff]  ;;  %v560_v8 = vadd.f32 %v2281_v5, %v2276_v4  ;;  %v2300_v10 = vld [vmem:[%s2936_s0 + $0xe0] sm:$0xff]  ;;  %v2305_v11 = vld [vmem:[%s2936_s0 + $0xe8] sm:$0xff]  ;;  %s486_s17 = scalar_lea.vmem %s2940_s4, %s2950_s14 }
  0x54   : > { %v563_v9 = vadd.f32 %v2291_v7, %v2286_v6  ;;  %v2310_v12 = vld [vmem:[%s2936_s0 + $0xf0] sm:$0xff]  ;;  %v2315_v13 = vld [vmem:[%s2936_s0 + $0xf8] sm:$0xff]  ;;  %v566_v14 = vadd.f32 %v2305_v11, %v2300_v10  ;;  %v868_v16 = vld [vmem:[%s2324_s9 + $0x8] sm:$0xff]  ;;  %s2829_s29 = scalar_lea.vmem (%p1918_p6), %s2941_s5, %s1561_s25 }
  0x55   : > { %537 = vadd.xlane.f32.xlu0 %v536_v48  ;;  %v569_v15 = vadd.f32 %v2315_v13, %v2310_v12  ;;  %v871_v17 = vld [vmem:[%s2324_s9 + $0x20] sm:$0xff]  ;;  %v870_v20 = vld [vmem:[%s2324_s9 + $0x18] sm:$0xff]  ;;  %v877_v22 = vld [vmem:[%s2324_s9 + $0x50] sm:$0xff] }
  0x56   : > { %540 = vadd.xlane.f32.xlu1 %v539_v49  ;;  %v867_v18 = vld [vmem:[%s2324_s9] sm:$0xff]  ;;  %v1642_v19 = vpack.c.bf16 %v871_v17, %v868_v16  ;;  %v874_v21 = vld [vmem:[%s2324_s9 + $0x38] sm:$0xff]  ;;  %v873_v25 = vld [vmem:[%s2324_s9 + $0x30] sm:$0xff] }
  0x57   : > { %v1644_v23 = vpack.c.bf16 %v870_v20, %v867_v18  ;;  %v1646_v24 = vpack.c.bf16 %v877_v22, %v874_v21  ;;  %v876_v26 = vld [vmem:[%s2324_s9 + $0x48] sm:$0xff]  ;;  %v883_v28 = vld [vmem:[%s2324_s9 + $0x80] sm:$0xff]  ;;  %v882_v35 = vld [vmem:[%s2324_s9 + $0x78] sm:$0xff] }
  0x58   : > { %v880_v27 = vld [vmem:[%s2324_s9 + $0x68] sm:$0xff]  ;;  %1643 = vmatprep.subr.bf16.mxu0 %v1642_v19  ;;  %v1648_v29 = vpack.c.bf16 %v876_v26, %v873_v25  ;;  %v879_v31 = vld [vmem:[%s2324_s9 + $0x60] sm:$0xff]  ;;  %v886_v39 = vld [vmem:[%s2324_s9 + $0x98] sm:$0xff] }
  0x59   : > { %543 = vadd.xlane.f32.xlu0 %v542_v54  ;;  %1645 = vmatpush1.bf16.msra.mxu0 %v1644_v23  ;;  %v1650_v30 = vpack.c.bf16 %v883_v28, %v880_v27  ;;  %v889_v42 = vld [vmem:[%s2324_s9 + $0xb0] sm:$0xff]  ;;  %v1652_v43 = vpack.c.bf16 %v882_v35, %v879_v31  ;;  %v888_v54 = vld [vmem:[%s2324_s9 + $0xa8] sm:$0xff]  ;;  %v894_v16 = vld [vmem:[%s2324_s9 + $0xd8] sm:$0xff] }
  0x5a   : > { %546 = vadd.xlane.f32.xlu1 %v545_v55  ;;  %1647 = vmatprep.subr.bf16.mxu0 %v1646_v24  ;;  %v1654_v48 = vpack.c.bf16 %v889_v42, %v886_v39  ;;  %v885_v49 = vld [vmem:[%s2324_s9 + $0x90] sm:$0xff]  ;;  %v892_v55 = vld [vmem:[%s2324_s9 + $0xc8] sm:$0xff]  ;;  %v898_v17 = vld [vmem:[%s2324_s9 + $0xf8] sm:$0xff] }
  0x5b   : > { %v872_v18 = vld [vmem:[%s2324_s9 + $0x28] sm:$0xff]  ;;  %v901_v19 = vld [vmem:[%s2324_s9 + $0x110] sm:$0xff]  ;;  %v923_v21 = vld [vmem:[%s2324_s9 + $0x1c0] sm:$0xff] }
  0x5c   : > { %v926_v22 = vld [vmem:[%s2324_s9 + $0x1d8] sm:$0xff]  ;;  %v875_v24 = vld [vmem:[%s2324_s9 + $0x40] sm:$0xff]  ;;  %v929_v28 = vld [vmem:[%s2324_s9 + $0x1f0] sm:$0xff] }
  0x5d   : > { %549 = vadd.xlane.f32.xlu0 %v548_v60  ;;  %1649 = vmatpush1.bf16.msra.mxu0 %v1648_v29  ;;  %v895_v60 = vld [vmem:[%s2324_s9 + $0xe0] sm:$0xff]  ;;  %v1710_v23 = vpack.c.bf16 %v926_v22, %v923_v21  ;;  %v878_v25 = vld [vmem:[%s2324_s9 + $0x58] sm:$0xff]  ;;  %v1662_v29 = vpack.c.bf16 %v901_v19, %v898_v17  ;;  %v900_v31 = vld [vmem:[%s2324_s9 + $0x108] sm:$0xff] }
  0x5e   : > { %552 = vadd.xlane.f32.xlu1 %v551_v61  ;;  %1651 = vmatprep.subr.bf16.mxu0 %v1650_v30  ;;  %v917_v61 = vld [vmem:[%s2324_s9 + $0x190] sm:$0xff]  ;;  %v1712_v27 = vpack.c.bf16 %v878_v25, %v875_v24  ;;  %v932_v35 = vld [vmem:[%s2324_s9 + $0x208] sm:$0xff]  ;;  %v907_v42 = vld [vmem:[%s2324_s9 + $0x140] sm:$0xff] }
  0x5f   : > { %v897_v30 = vld [vmem:[%s2324_s9 + $0xf0] sm:$0xff]  ;;  %v904_v39 = vld [vmem:[%s2324_s9 + $0x128] sm:$0xff]  ;;  %v918_v19 = vld [vmem:[%s2324_s9 + $0x198] sm:$0xff] }
  0x60   : > { %v925_v21 = vld [vmem:[%s2324_s9 + $0x1d0] sm:$0xff]  ;;  %v924_v25 = vld [vmem:[%s2324_s9 + $0x1c8] sm:$0xff] }
  0x61   : > { %555 = vadd.xlane.f32.xlu0 %v554_v2  ;;  %v920_v2 = vld [vmem:[%s2324_s9 + $0x1a8] sm:$0xff]  ;;  %1653 = vmatpush1.bf16.msra.mxu0 %v1652_v43  ;;  %v1714_v43 = vpack.c.bf16 %v932_v35, %v929_v28  ;;  %v921_v24 = vld [vmem:[%s2324_s9 + $0x1b0] sm:$0xff] }
  0x62   : > { %558 = vadd.xlane.f32.xlu1 %v557_v3  ;;  %v1656_v3 = vpack.c.bf16 %v888_v54, %v885_v49  ;;  %1655 = vmatprep.subr.bf16.mxu0 %v1654_v48  ;;  %v1664_v48 = vpack.c.bf16 %v900_v31, %v897_v30  ;;  %v1666_v49 = vpack.c.bf16 %v907_v42, %v904_v39  ;;  %v903_v54 = vld [vmem:[%s2324_s9 + $0x120] sm:$0xff] }
  0x63   : > { %v1680_v28 = vpack.c.bf16 %v924_v25, %v921_v24 }
  0x65   : > { %561 = vadd.xlane.f32.xlu0 %v560_v8  ;;  %v891_v8 = vld [vmem:[%s2324_s9 + $0xc0] sm:$0xff]  ;;  %1657 = vmatpush1.bf16.msra.mxu0 %v1656_v3 }
  0x66   : > { %564 = vadd.xlane.f32.xlu1 %v563_v9  ;;  %v1706_v9 = vpack.c.bf16 %v920_v2, %v917_v61  ;;  %v1660_v26 = vpack.c.bf16 %v894_v16, %v891_v8  ;;  %v913_v61 = vld [vmem:[%s2324_s9 + $0x170] sm:$0xff] }
  0x67   : > { %v909_v8 = vld [vmem:[%s2324_s9 + $0x150] sm:$0xff] }
  0x68   : > { %1707 = vmatprep.subr.bf16.mxu1 %v1706_v9  ;;  %v912_v9 = vld [vmem:[%s2324_s9 + $0x168] sm:$0xff] }
  0x69   : > { %567 = vadd.xlane.f32.xlu0 %v566_v14  ;;  %v869_v14 = vld [vmem:[%s2324_s9 + $0x10] sm:$0xff]  ;;  %v1672_v16 = vpack.c.bf16 %v912_v9, %v909_v8 }
  0x6a   : > { %570 = vadd.xlane.f32.xlu1 %v569_v15  ;;  %v1658_v15 = vpack.c.bf16 %v895_v60, %v892_v55  ;;  %v1708_v20 = vpack.c.bf16 %v872_v18, %v869_v14  ;;  %v906_v55 = vld [vmem:[%s2324_s9 + $0x138] sm:$0xff]  ;;  %v916_v14 = vld [vmem:[%s2324_s9 + $0x188] sm:$0xff]  ;;  %v915_v18 = vld [vmem:[%s2324_s9 + $0x180] sm:$0xff] }
  0x6b   : > { %v910_v60 = vld [vmem:[%s2324_s9 + $0x158] sm:$0xff]  ;;  %v1668_v2 = vpack.c.bf16 %v906_v55, %v903_v54  ;;  %v1676_v22 = vpack.c.bf16 %v918_v19, %v915_v18 }
  0x6c   : > { %1709 = vmatpush3.bf16.msra.mxu1 %v1708_v20  ;;  %1659 = vmatprep.subr.bf16.mxu0 %v1658_v15  ;;  %v1670_v3 = vpack.c.bf16 %v913_v61, %v910_v60  ;;  %v919_v15 = vld [vmem:[%s2324_s9 + $0x1a0] sm:$0xff]  ;;  %v922_v20 = vld [vmem:[%s2324_s9 + $0x1b8] sm:$0xff] }
  0x6d   : > { %1711 = vmatprep.subr.bf16.mxu1 %v1710_v23  ;;  %1661 = vmatpush1.bf16.msra.mxu0 %v1660_v26  ;;  %v1674_v17 = vpack.c.bf16 %v919_v15, %v916_v14  ;;  %v1678_v23 = vpack.c.bf16 %v925_v21, %v922_v20  ;;  %v928_v26 = vld [vmem:[%s2324_s9 + $0x1e8] sm:$0xff] }
  0x6e   : > { %1663 = vmatprep.subr.bf16.mxu0 %v1662_v29 }
  0x70   : > { %1713 = vmatpush3.bf16.msra.mxu1 %v1712_v27  ;;  %v931_v27 = vld [vmem:[%s2324_s9 + $0x200] sm:$0xff] }
  0x71   : > { %1715 = vmatprep.subr.bf16.mxu1 %v1714_v43  ;;  %1665 = vmatpush1.bf16.msra.mxu0 %v1664_v48  ;;  %v1682_v29 = vpack.c.bf16 %v931_v27, %v928_v26 }
  0x72   : > { %1667 = vmatprep.subr.bf16.mxu0 %v1666_v49 }
  0x75   : > { %1669 = vmatpush1.bf16.msra.mxu0 %v1668_v2 }
  0x76   : > { %1671 = vmatprep.subr.bf16.mxu0 %v1670_v3 }
  0x79   : > { %1673 = vmatpush1.bf16.msra.mxu0 %v1672_v16 }
  0x7a   : > { %1675 = vmatprep.subr.bf16.mxu0 %v1674_v17 }
  0x7d   : > { %1677 = vmatpush1.bf16.msra.mxu0 %v1676_v22 }
  0x7e   : > { %1679 = vmatprep.subr.bf16.mxu0 %v1678_v23 }
  0x81   : > { %1681 = vmatpush1.bf16.msra.mxu0 %v1680_v28 }
  0x82   : > { %1683 = vmatprep.subr.bf16.mxu0 %v1682_v29 }
  0xda   : > { %v526_v30 = vpop.xlane.xlu0 %525 }
  0xdb   : > { %v573_v31 = vmul.f32 0.00390625, %v526_v30  ;;  %v532_v35 = vpop.xlane.xlu1 %531 }
  0xdc   : > { %v575_v39 = vmul.f32 0.00390625, %v532_v35 }
  0xdd   : > { %v2379_v42 = vsub.f32 %v2132_v32, %v573_v31  ;;  %v2382_v43 = vsub.f32 %v2137_v33, %v573_v31 }
  0xde   : > { %v2385_v48 = vsub.f32 %v2142_v34, %v575_v39  ;;  %v2388_v49 = vsub.f32 %v2149_v36, %v575_v39  ;;  %v529_v54 = vpop.xlane.xlu0 %528 }
  0xdf   : > { %v574_v55 = vmul.f32 0.00390625, %v529_v54  ;;  %v535_v60 = vpop.xlane.xlu1 %534  ;;  %v621_v61 = vmul.f32 %v2379_v42, %v2379_v42  ;;  %v622_v2 = vmul.f32 %v2382_v43, %v2382_v43 }
  0xe0   : > { %v576_v32 = vmul.f32 0.00390625, %v535_v60  ;;  %v625_v33 = vmul.f32 %v2385_v48, %v2385_v48  ;;  %v626_v34 = vmul.f32 %v2388_v49, %v2388_v49 }
  0xe1   : > { %v2399_v3 = vsub.f32 %v2154_v37, %v574_v55  ;;  %v2402_v36 = vsub.f32 %v2159_v38, %v574_v55  ;;  %v653_v8 = vadd.f32 %v622_v2, %v621_v61 }
  0xe2   : > { %v2405_v9 = vsub.f32 %v2166_v40, %v576_v32  ;;  %v2408_v14 = vsub.f32 %v2171_v41, %v576_v32  ;;  %v538_v15 = vpop.xlane.xlu0 %537  ;;  %v659_v18 = vadd.f32 %v626_v34, %v625_v33 }
  0xe3   : > { %v577_v16 = vmul.f32 0.00390625, %v538_v15  ;;  %654 = vadd.xlane.f32.xlu0 %v653_v8  ;;  %v541_v17 = vpop.xlane.xlu1 %540  ;;  %v623_v19 = vmul.f32 %v2399_v3, %v2399_v3  ;;  %v624_v37 = vmul.f32 %v2402_v36, %v2402_v36  ;;  %v927_v15 = vld [vmem:[%s2324_s9 + $0x1e0] sm:$0xff] }
  0xe4   : > { %v578_v38 = vmul.f32 0.00390625, %v541_v17  ;;  %v627_v20 = vmul.f32 %v2405_v9, %v2405_v9  ;;  %v628_v40 = vmul.f32 %v2408_v14, %v2408_v14  ;;  %v881_v17 = vld [vmem:[%s2324_s9 + $0x70] sm:$0xff] }
  0xe5   : > { %v2419_v41 = vsub.f32 %v2180_v44, %v577_v16  ;;  %v2422_v21 = vsub.f32 %v2185_v45, %v577_v16  ;;  %v656_v22 = vadd.f32 %v624_v37, %v623_v19  ;;  %v930_v16 = vld [vmem:[%s2324_s9 + $0x1f8] sm:$0xff] }
  0xe6   : > { %v2425_v23 = vsub.f32 %v2190_v46, %v578_v38  ;;  %v2428_v24 = vsub.f32 %v2195_v47, %v578_v38  ;;  %v544_v25 = vpop.xlane.xlu0 %543  ;;  %v662_v28 = vadd.f32 %v628_v40, %v627_v20  ;;  %v884_v20 = vld [vmem:[%s2324_s9 + $0x88] sm:$0xff] }
  0xe7   : > { %v579_v26 = vmul.f32 0.00390625, %v544_v25  ;;  %660 = vadd.xlane.f32.xlu0 %v659_v18  ;;  %657 = vadd.xlane.f32.xlu1 %v656_v22  ;;  %v547_v27 = vpop.xlane.xlu1 %546  ;;  %v629_v44 = vmul.f32 %v2419_v41, %v2419_v41  ;;  %v630_v45 = vmul.f32 %v2422_v21, %v2422_v21 }
  0xe8   : > { %v580_v29 = vmul.f32 0.00390625, %v547_v27  ;;  %v631_v46 = vmul.f32 %v2425_v23, %v2425_v23  ;;  %v632_v47 = vmul.f32 %v2428_v24, %v2428_v24 }
  0xe9   : > { %v2439_v30 = vsub.f32 %v2204_v50, %v579_v26  ;;  %v2442_v31 = vsub.f32 %v2209_v51, %v579_v26  ;;  %v665_v35 = vadd.f32 %v630_v45, %v629_v44  ;;  %v937_v44 = vld [vmem:[%s2324_s9 + $0x230] sm:$0xff]  ;;  %v935_v45 = vld [vmem:[%s2324_s9 + $0x220] sm:$0xff] }
  0xea   : > { %v2445_v39 = vsub.f32 %v2214_v52, %v580_v29  ;;  %v2448_v54 = vsub.f32 %v2219_v53, %v580_v29  ;;  %v550_v55 = vpop.xlane.xlu0 %549  ;;  %v668_v50 = vadd.f32 %v632_v47, %v631_v46 }
  0xeb   : > { %v581_v60 = vmul.f32 0.00390625, %v550_v55  ;;  %663 = vadd.xlane.f32.xlu1 %v662_v28  ;;  %666 = vadd.xlane.f32.xlu0 %v665_v35  ;;  %v553_v61 = vpop.xlane.xlu1 %552  ;;  %v633_v51 = vmul.f32 %v2439_v30, %v2439_v30  ;;  %v634_v52 = vmul.f32 %v2442_v31, %v2442_v31  ;;  %v934_v28 = vld [vmem:[%s2324_s9 + $0x218] sm:$0xff] }
  0xec   : > { %v582_v2 = vmul.f32 0.00390625, %v553_v61  ;;  %v635_v53 = vmul.f32 %v2445_v39, %v2445_v39  ;;  %v636_v32 = vmul.f32 %v2448_v54, %v2448_v54  ;;  %v1686_v35 = vpack.c.bf16 %v937_v44, %v934_v28  ;;  %v938_v55 = vld [vmem:[%s2324_s9 + $0x238] sm:$0xff]  ;;  %v944_v28 = vld [vmem:[%s2324_s9 + $0x268] sm:$0xff] }
  0xed   : > { %v2459_v33 = vsub.f32 %v2228_v56, %v581_v60  ;;  %v2462_v34 = vsub.f32 %v2233_v57, %v581_v60  ;;  %v671_v8 = vadd.f32 %v634_v52, %v633_v51  ;;  %v1684_v56 = vpack.c.bf16 %v930_v16, %v927_v15  ;;  %v890_v15 = vld [vmem:[%s2324_s9 + $0xb8] sm:$0xff] }
  0xee   : > { %v2468_v18 = vsub.f32 %v2238_v58, %v582_v2  ;;  %v2471_v19 = vsub.f32 %v2243_v59, %v582_v2  ;;  %v556_v37 = vpop.xlane.xlu0 %555  ;;  %v674_v38 = vadd.f32 %v636_v32, %v635_v53  ;;  %v1716_v59 = vpack.c.bf16 %v884_v20, %v881_v17  ;;  %v933_v2 = vld [vmem:[%s2324_s9 + $0x210] sm:$0xff]  ;;  %v887_v53 = vld [vmem:[%s2324_s9 + $0xa0] sm:$0xff]  ;;  %v942_v44 = vld [vmem:[%s2324_s9 + $0x258] sm:$0xff] }
  0xef   : > { %v583_v40 = vmul.f32 0.00390625, %v556_v37  ;;  %669 = vadd.xlane.f32.xlu1 %v668_v50  ;;  %672 = vadd.xlane.f32.xlu0 %v671_v8  ;;  %v559_v57 = vpop.xlane.xlu1 %558  ;;  %v637_v22 = vmul.f32 %v2459_v33, %v2459_v33  ;;  %v638_v58 = vmul.f32 %v2462_v34, %v2462_v34  ;;  %v1718_v52 = vpack.c.bf16 %v938_v55, %v935_v45  ;;  %v893_v55 = vld [vmem:[%s2324_s9 + $0xd0] sm:$0xff] }
  0xf0   : > { %v584_v25 = vmul.f32 0.00390625, %v559_v57  ;;  %v639_v26 = vmul.f32 %v2468_v18, %v2468_v18  ;;  %v640_v27 = vmul.f32 %v2471_v19, %v2471_v19  ;;  %1685 = vmatpush1.bf16.msra.mxu0 %v1684_v56  ;;  %1717 = vmatpush3.bf16.msra.mxu1 %v1716_v59  ;;  %v940_v57 = vld [vmem:[%s2324_s9 + $0x248] sm:$0xff] }
  0xf1   : > { %v2486_v29 = vsub.f32 %v2252_v62, %v583_v40  ;;  %v2489_v46 = vsub.f32 %v2257_v63, %v583_v40  ;;  %v677_v47 = vadd.f32 %v638_v58, %v637_v22  ;;  %v936_v62 = vld [vmem:[%s2324_s9 + $0x228] sm:$0xff]  ;;  %1687 = vmatprep.subr.bf16.mxu0 %v1686_v35  ;;  %1719 = vmatprep.subr.bf16.mxu1 %v1718_v52  ;;  %v943_v22 = vld [vmem:[%s2324_s9 + $0x260] sm:$0xff]  ;;  %v941_v58 = vld [vmem:[%s2324_s9 + $0x250] sm:$0xff] }
  0xf2   : > { %v2493_v60 = vsub.f32 %v2262_v0, %v584_v25  ;;  %v2496_v61 = vsub.f32 %v2267_v1, %v584_v25  ;;  %v562_v50 = vpop.xlane.xlu0 %561  ;;  %v680_v51 = vadd.f32 %v640_v27, %v639_v26  ;;  %v1688_v1 = vpack.c.bf16 %v936_v62, %v933_v2 }
  0xf3   : > { %v585_v32 = vmul.f32 0.00390625, %v562_v50  ;;  %675 = vadd.xlane.f32.xlu1 %v674_v38  ;;  %678 = vadd.xlane.f32.xlu0 %v677_v47  ;;  %v565_v63 = vpop.xlane.xlu1 %564  ;;  %v641_v8 = vmul.f32 %v2486_v29, %v2486_v29  ;;  %v642_v0 = vmul.f32 %v2489_v46, %v2489_v46  ;;  %v1720_v38 = vpack.c.bf16 %v890_v15, %v887_v53  ;;  %v896_v50 = vld [vmem:[%s2324_s9 + $0xe8] sm:$0xff]  ;;  %v947_v15 = vld [vmem:[%s2324_s9 + $0x280] sm:$0xff] }
  0xf4   : > { %v586_v16 = vmul.f32 0.00390625, %v565_v63  ;;  %v643_v17 = vmul.f32 %v2493_v60, %v2493_v60  ;;  %v644_v37 = vmul.f32 %v2496_v61, %v2496_v61  ;;  %1689 = vmatpush1.bf16.msra.mxu0 %v1688_v1  ;;  %v1722_v35 = vpack.c.bf16 %v944_v28, %v941_v58  ;;  %v949_v1 = vld [vmem:[%s2324_s9 + $0x290] sm:$0xff]  ;;  %v902_v58 = vld [vmem:[%s2324_s9 + $0x118] sm:$0xff] }
  0xf5   : > { %v2511_v56 = vsub.f32 %v2276_v4, %v585_v32  ;;  %v2514_v20 = vsub.f32 %v2281_v5, %v585_v32  ;;  %v683_v40 = vadd.f32 %v642_v0, %v641_v8  ;;  %1721 = vmatpush3.bf16.msra.mxu1 %v1720_v38  ;;  %v1690_v4 = vpack.c.bf16 %v943_v22, %v940_v57  ;;  %v939_v5 = vld [vmem:[%s2324_s9 + $0x240] sm:$0xff]  ;;  %v946_v0 = vld [vmem:[%s2324_s9 + $0x278] sm:$0xff] }
  0xf6   : > { %v2520_v59 = vsub.f32 %v2286_v6, %v586_v16  ;;  %v2523_v25 = vsub.f32 %v2291_v7, %v586_v16  ;;  %v568_v26 = vpop.xlane.xlu0 %567  ;;  %v686_v27 = vadd.f32 %v644_v37, %v643_v17  ;;  %v1692_v62 = vpack.c.bf16 %v942_v44, %v939_v5  ;;  %1723 = vmatprep.subr.bf16.mxu1 %v1722_v35  ;;  %v950_v38 = vld [vmem:[%s2324_s9 + $0x298] sm:$0xff]  ;;  %v952_v44 = vld [vmem:[%s2324_s9 + $0x2a8] sm:$0xff]  ;;  %v951_v35 = vld [vmem:[%s2324_s9 + $0x2a0] sm:$0xff] }
  0xf7   : > { %v587_v45 = vmul.f32 0.00390625, %v568_v26  ;;  %681 = vadd.xlane.f32.xlu1 %v680_v51  ;;  %684 = vadd.xlane.f32.xlu0 %v683_v40  ;;  %v571_v47 = vpop.xlane.xlu1 %570  ;;  %v645_v6 = vmul.f32 %v2511_v56, %v2511_v56  ;;  %v646_v7 = vmul.f32 %v2514_v20, %v2514_v20  ;;  %v1724_v8 = vpack.c.bf16 %v896_v50, %v893_v55  ;;  %v948_v40 = vld [vmem:[%s2324_s9 + $0x288] sm:$0xff]  ;;  %v954_v55 = vld [vmem:[%s2324_s9 + $0x2b8] sm:$0xff] }
  0xf8   : > { %v588_v52 = vmul.f32 0.00390625, %v571_v47  ;;  %v647_v2 = vmul.f32 %v2520_v59, %v2520_v59  ;;  %v648_v51 = vmul.f32 %v2523_v25, %v2523_v25  ;;  %1691 = vmatprep.subr.bf16.mxu0 %v1690_v4  ;;  %v1726_v22 = vpack.c.bf16 %v950_v38, %v947_v15  ;;  %v953_v47 = vld [vmem:[%s2324_s9 + $0x2b0] sm:$0xff]  ;;  %v960_v38 = vld [vmem:[%s2324_s9 + $0x2e8] sm:$0xff] }
  0xf9   : > { %v2539_v53 = vsub.f32 %v2300_v10, %v587_v45  ;;  %v2542_v32 = vsub.f32 %v2305_v11, %v587_v45  ;;  %v689_v63 = vadd.f32 %v646_v7, %v645_v6  ;;  %1693 = vmatpush1.bf16.msra.mxu0 %v1692_v62  ;;  %v1694_v10 = vpack.c.bf16 %v949_v1, %v946_v0  ;;  %v945_v11 = vld [vmem:[%s2324_s9 + $0x270] sm:$0xff]  ;;  %v955_v45 = vld [vmem:[%s2324_s9 + $0x2c0] sm:$0xff]  ;;  %v956_v7 = vld [vmem:[%s2324_s9 + $0x2c8] sm:$0xff] }
  0xfa   : > { %v2548_v16 = vsub.f32 %v2310_v12, %v588_v52  ;;  %v2551_v17 = vsub.f32 %v2315_v13, %v588_v52  ;;  %v692_v37 = vadd.f32 %v648_v51, %v647_v2  ;;  %v899_v13 = vld [vmem:[%s2324_s9 + $0x100] sm:$0xff]  ;;  %1725 = vmatpush3.bf16.msra.mxu1 %v1724_v8  ;;  %v1696_v4 = vpack.c.bf16 %v948_v40, %v945_v11  ;;  %v905_v51 = vld [vmem:[%s2324_s9 + $0x130] sm:$0xff]  ;;  %v908_v62 = vld [vmem:[%s2324_s9 + $0x148] sm:$0xff] }
  0xfb   : > { %687 = vadd.xlane.f32.xlu1 %v686_v27  ;;  %690 = vadd.xlane.f32.xlu0 %v689_v63  ;;  %v649_v57 = vmul.f32 %v2539_v53, %v2539_v53  ;;  %v650_v12 = vmul.f32 %v2542_v32, %v2542_v32  ;;  %v1728_v5 = vpack.c.bf16 %v902_v58, %v899_v13  ;;  %v958_v8 = vld [vmem:[%s2324_s9 + $0x2d8] sm:$0xff]  ;;  %v961_v0 = vld [vmem:[%s2324_s9 + $0x2f0] sm:$0xff]  ;;  %v959_v1 = vld [vmem:[%s2324_s9 + $0x2e0] sm:$0xff] }
  0xfc   : > { %v651_v26 = vmul.f32 %v2548_v16, %v2548_v16  ;;  %v652_v27 = vmul.f32 %v2551_v17, %v2551_v17  ;;  %1695 = vmatprep.subr.bf16.mxu0 %v1694_v10  ;;  %1727 = vmatprep.subr.bf16.mxu1 %v1726_v22  ;;  %v1698_v6 = vpack.c.bf16 %v955_v45, %v952_v44  ;;  %v957_v10 = vld [vmem:[%s2324_s9 + $0x2d0] sm:$0xff] }
  0xfd   : > { %v695_v28 = vadd.f32 %v650_v12, %v649_v57  ;;  %1697 = vmatpush1.bf16.msra.mxu0 %v1696_v4  ;;  %v1730_v52 = vpack.c.bf16 %v956_v7, %v953_v47  ;;  %v1700_v2 = vpack.c.bf16 %v954_v55, %v951_v35  ;;  %v1732_v63 = vpack.c.bf16 %v908_v62, %v905_v51  ;;  %v911_v57 = vld [vmem:[%s2324_s9 + $0x160] sm:$0xff]  ;;  %v914_v12 = vld [vmem:[%s2324_s9 + $0x178] sm:$0xff] }
  0xfe   : > { %v698_v50 = vadd.f32 %v652_v27, %v651_v26  ;;  %1729 = vmatpush3.bf16.msra.mxu1 %v1728_v5  ;;  %1699 = vmatprep.subr.bf16.mxu0 %v1698_v6  ;;  %v1702_v15 = vpack.c.bf16 %v961_v0, %v958_v8  ;;  %v1704_v40 = vpack.c.bf16 %v960_v38, %v957_v10  ;;  %v782_v26 = vlaneseq }
  0xff   : > { %693 = vadd.xlane.f32.xlu1 %v692_v37  ;;  %696 = vadd.xlane.f32.xlu0 %v695_v28  ;;  %v962_v37 = vld [vmem:[%s2324_s9 + $0x2f8] sm:$0xff]  ;;  %v1736_v22 = vpack.c.bf16 %v914_v12, %v911_v57 }
 0x100   : > { %1731 = vmatprep.subr.bf16.mxu1 %v1730_v52  ;;  %v1734_v11 = vpack.c.bf16 %v962_v37, %v959_v1  ;;  %v2582_v45 = vshrl.u32 %v782_v26, 7  ;;  %v523_v37 = vld [vmem:[%s2938_s2] sm:$0x3] }
 0x101   : > { %1701 = vmatpush1.bf16.msra.mxu0 %v1700_v2 }
 0x102   : > { %1733 = vmatpush3.bf16.msra.mxu1 %v1732_v63  ;;  %1703 = vmatprep.subr.bf16.mxu0 %v1702_v15  ;;  %v2585_v52 = vsub.s32 0, %v2582_v45  ;;  %v2588_v2 = vsub.s32 1, %v2582_v45  ;;  %v522_v63 = vld [vmem:[%s2937_s1] sm:$0x3] }
 0x103   : > { %699 = vadd.xlane.f32.xlu1 %v698_v50  ;;  %1735 = vmatprep.subr.bf16.mxu1 %v1734_v11 }
 0x104   : > { %v2597_v10 = vrot.slane %v522_v63, %v2585_v52  ;;  %v2600_v38 = vrot.slane %v522_v63, %v2588_v2 }
 0x105   : > { %1705 = vmatpush1.bf16.msra.mxu0 %v1704_v40 }
 0x106   : > { %1737 = vmatpush3.bf16.msra.mxu1 %v1736_v22  ;;  %v2604_v22 = vrot.slane %v523_v37, %v2585_v52 }
 0x170   : > { %v655_v13 = vpop.xlane.xlu0 %654 }
 0x171   : > { %v701_v58 = vmul.f32 0.00390625, %v655_v13  ;;  %v2607_v13 = vrot.slane %v523_v37, %v2588_v2 }
 0x173   : > { %v717_v27 = vadd.f32 1e-05, %v701_v58 }
 0x174   : > { %v658_v4 = vpop.xlane.xlu1 %657  ;;  %v661_v28 = vpop.xlane.xlu0 %660 }
 0x175   : > { %1781 = vrsqrt.f32 %v717_v27  ;;  %v702_v5 = vmul.f32 0.00390625, %v658_v4  ;;  %v703_v44 = vmul.f32 0.00390625, %v661_v28 }
 0x177   : > { %v718_v47 = vadd.f32 1e-05, %v702_v5  ;;  %v719_v6 = vadd.f32 1e-05, %v703_v44 }
 0x178   : > { %v664_v7 = vpop.xlane.xlu1 %663  ;;  %v667_v35 = vpop.xlane.xlu0 %666 }
 0x179   : > { %1783 = vrsqrt.f32 %v718_v47  ;;  %v704_v55 = vmul.f32 0.00390625, %v664_v7  ;;  %v705_v50 = vmul.f32 0.00390625, %v667_v35 }
 0x17a   : > { %1785 = vrsqrt.f32 %v719_v6 }
 0x17b   : > { %v720_v51 = vadd.f32 1e-05, %v704_v55  ;;  %v721_v62 = vadd.f32 1e-05, %v705_v50 }
 0x17c   : > { %v670_v8 = vpop.xlane.xlu1 %669  ;;  %v673_v0 = vpop.xlane.xlu0 %672 }
 0x17d   : > { %1787 = vrsqrt.f32 %v720_v51  ;;  %v706_v1 = vmul.f32 0.00390625, %v670_v8  ;;  %v707_v15 = vmul.f32 0.00390625, %v673_v0 }
 0x17e   : > { %1789 = vrsqrt.f32 %v721_v62 }
 0x17f   : > { %v1782_v11 = vpop.eup %1781  ;;  %v722_v40 = vadd.f32 1e-05, %v706_v1  ;;  %v723_v26 = vadd.f32 1e-05, %v707_v15 }
 0x180   : > { %v676_v57 = vpop.xlane.xlu1 %675  ;;  %v750_v12 = vmul.f32 %v1782_v11, %v2382_v43  ;;  %v749_v58 = vmul.f32 %v1782_v11, %v2379_v42  ;;  %v679_v4 = vpop.xlane.xlu0 %678 }
 0x181   : > { %1791 = vrsqrt.f32 %v722_v40  ;;  %v708_v27 = vmul.f32 0.00390625, %v676_v57  ;;  %v709_v55 = vmul.f32 0.00390625, %v679_v4 }
 0x182   : > { %v793_v28 = vmul.f32 %v2600_v38, %v750_v12  ;;  %v792_v5 = vmul.f32 %v2597_v10, %v749_v58  ;;  %1793 = vrsqrt.f32 %v723_v26 }
 0x183   : > { %v1784_v44 = vpop.eup %1783  ;;  %v724_v42 = vadd.f32 1e-05, %v708_v27  ;;  %v725_v11 = vadd.f32 1e-05, %v709_v55 }
 0x184   : > { %v1786_v47 = vpop.eup %1785  ;;  %v836_v43 = vadd.f32 %v2607_v13, %v793_v28  ;;  %v835_v6 = vadd.f32 %v2604_v22, %v792_v5  ;;  %v752_v7 = vmul.f32 %v1784_v44, %v2402_v36  ;;  %v751_v35 = vmul.f32 %v1784_v44, %v2399_v3  ;;  %v682_v50 = vpop.xlane.xlu1 %681 }
 0x185   : > { %v754_v51 = vmul.f32 %v1786_v47, %v2388_v49  ;;  %v753_v8 = vmul.f32 %v1786_v47, %v2385_v48  ;;  %v710_v1 = vmul.f32 0.00390625, %v682_v50  ;;  %1795 = vrsqrt.f32 %v724_v42  ;;  %v685_v40 = vpop.xlane.xlu0 %684 }
 0x186   : > { %1044 = vmatprep.mubr.f32.mxu0 %v836_v43  ;;  %1205 = vmatprep.mubr.f32.mxu1 %v836_v43  ;;  %v795_v62 = vmul.f32 %v2600_v38, %v752_v7  ;;  %v794_v63 = vmul.f32 %v2597_v10, %v751_v35  ;;  %1797 = vrsqrt.f32 %v725_v11 }
 0x187   : > { %v1788_v0 = vpop.eup %1787  ;;  %1045 = vmatmul.mubr.f32.vlgmr.msra.gmra.mrb[0].mxu0 %v835_v6  ;;  %1206 = vmatmul.mubr.f32.vlgmr.msra.gmra.mrb[0].mxu1 %v835_v6  ;;  %v797_v36 = vmul.f32 %v2600_v38, %v754_v51  ;;  %v796_v57 = vmul.f32 %v2597_v10, %v753_v8  ;;  %v726_v4 = vadd.f32 1e-05, %v710_v1 }
 0x188   : > { %v1790_v3 = vpop.eup %1789  ;;  %v838_v15 = vadd.f32 %v2607_v13, %v795_v62  ;;  %v837_v37 = vadd.f32 %v2604_v22, %v794_v63  ;;  %v756_v49 = vmul.f32 %v1788_v0, %v2408_v14  ;;  %v755_v58 = vmul.f32 %v1788_v0, %v2405_v9  ;;  %v688_v47 = vpop.xlane.xlu1 %687 }
 0x189   : > { %v840_v48 = vadd.f32 %v2607_v13, %v797_v36  ;;  %v758_v27 = vmul.f32 %v1790_v3, %v2422_v21  ;;  %v711_v14 = vmul.f32 0.00390625, %v685_v40  ;;  %v839_v28 = vadd.f32 %v2604_v22, %v796_v57  ;;  %v691_v42 = vpop.xlane.xlu0 %690 }
 0x18a   : > { %1050 = vmatprep.mubr.f32.mxu0 %v838_v15  ;;  %1210 = vmatprep.mubr.f32.mxu1 %v838_v15  ;;  %v799_v12 = vmul.f32 %v2600_v38, %v756_v49  ;;  %v798_v5 = vmul.f32 %v2597_v10, %v755_v58  ;;  %v757_v44 = vmul.f32 %v1790_v3, %v2419_v41  ;;  %1799 = vrsqrt.f32 %v726_v4 }
 0x18b   : > { %v1792_v26 = vpop.eup %1791  ;;  %1051 = vmatmul.mubr.f32.gmra.mrb[2].mxu0 %v837_v37  ;;  %1211 = vmatmul.mubr.f32.gmra.mrb[2].mxu1 %v837_v37  ;;  %v801_v9 = vmul.f32 %v2600_v38, %v758_v27  ;;  %v727_v21 = vadd.f32 1e-05, %v711_v14  ;;  %v712_v35 = vmul.f32 0.00390625, %v688_v47  ;;  %v713_v8 = vmul.f32 0.00390625, %v691_v42 }
 0x18c   : > { %1056 = vmatprep.mubr.f32.mxu0 %v840_v48  ;;  %1215 = vmatprep.mubr.f32.mxu1 %v840_v48  ;;  %v842_v43 = vadd.f32 %v2607_v13, %v799_v12  ;;  %v760_v6 = vmul.f32 %v1792_v26, %v2428_v24  ;;  %v1794_v7 = vpop.eup %1793  ;;  %v841_v55 = vadd.f32 %v2604_v22, %v798_v5  ;;  %v694_v36 = vpop.xlane.xlu1 %693 }
 0x18d   : > { %v800_v41 = vmul.f32 %v2597_v10, %v757_v44  ;;  %v759_v50 = vmul.f32 %v1792_v26, %v2425_v23  ;;  %v844_v51 = vadd.f32 %v2607_v13, %v801_v9  ;;  %v762_v24 = vmul.f32 %v1794_v7, %v2442_v31  ;;  %v697_v57 = vpop.xlane.xlu0 %696 }
 0x18e   : > { %v803_v62 = vmul.f32 %v2600_v38, %v760_v6  ;;  %1801 = vrsqrt.f32 %v727_v21  ;;  %v728_v0 = vadd.f32 1e-05, %v712_v35  ;;  %v761_v23 = vmul.f32 %v1794_v7, %v2439_v30 }
 0x18f   : > { %1057 = vmatmul.mubr.f32.gmra.mrb[4].mxu0 %v839_v28  ;;  %1216 = vmatmul.mubr.f32.gmra.mrb[4].mxu1 %v839_v28  ;;  %v1796_v63 = vpop.eup %1795  ;;  %v843_v3 = vadd.f32 %v2604_v22, %v800_v41  ;;  %v802_v1 = vmul.f32 %v2597_v10, %v759_v50  ;;  %v805_v37 = vmul.f32 %v2600_v38, %v762_v24  ;;  %v729_v11 = vadd.f32 1e-05, %v713_v8 }
 0x190   : > { %1062 = vmatprep.mubr.f32.mxu0 %v842_v43  ;;  %1220 = vmatprep.mubr.f32.mxu1 %v842_v43  ;;  %v846_v15 = vadd.f32 %v2607_v13, %v803_v62  ;;  %v764_v31 = vmul.f32 %v1796_v63, %v2448_v54  ;;  %v1798_v49 = vpop.eup %1797  ;;  %v714_v40 = vmul.f32 0.00390625, %v694_v36  ;;  %1803 = vrsqrt.f32 %v728_v0  ;;  %v700_v47 = vpop.xlane.xlu1 %699 }
 0x191   : > { %v845_v48 = vadd.f32 %v2604_v22, %v802_v1  ;;  %v804_v12 = vmul.f32 %v2597_v10, %v761_v23  ;;  %v763_v30 = vmul.f32 %v1796_v63, %v2445_v39  ;;  %v848_v26 = vadd.f32 %v2607_v13, %v805_v37 }
 0x192   : > { %v807_v54 = vmul.f32 %v2600_v38, %v764_v31  ;;  %v766_v27 = vmul.f32 %v1798_v49, %v2462_v34  ;;  %v730_v4 = vadd.f32 1e-05, %v714_v40  ;;  %v715_v14 = vmul.f32 0.00390625, %v697_v57 }
 0x193   : > { %1063 = vmatmul.mubr.f32.gmra.mrb[6].mxu0 %v841_v55  ;;  %1221 = vmatmul.mubr.f32.gmra.mrb[6].mxu1 %v841_v55  ;;  %1805 = vrsqrt.f32 %v729_v11  ;;  %v847_v28 = vadd.f32 %v2604_v22, %v804_v12  ;;  %v806_v5 = vmul.f32 %v2597_v10, %v763_v30  ;;  %v765_v39 = vmul.f32 %v1798_v49, %v2459_v33 }
 0x194   : > { %1068 = vmatprep.mubr.f32.mxu0 %v844_v51  ;;  %1225 = vmatprep.mubr.f32.mxu1 %v844_v51  ;;  %v1800_v58 = vpop.eup %1799  ;;  %v850_v43 = vadd.f32 %v2607_v13, %v807_v54  ;;  %v809_v9 = vmul.f32 %v2600_v38, %v766_v27  ;;  %1807 = vrsqrt.f32 %v730_v4  ;;  %v731_v6 = vadd.f32 1e-05, %v715_v14 }
 0x195   : > { %v768_v34 = vmul.f32 %v1800_v58, %v2471_v19  ;;  %v716_v7 = vmul.f32 0.00390625, %v700_v47  ;;  %v849_v21 = vadd.f32 %v2604_v22, %v806_v5  ;;  %v808_v35 = vmul.f32 %v2597_v10, %v765_v39 }
 0x196   : > { %v767_v33 = vmul.f32 %v1800_v58, %v2468_v18  ;;  %v852_v42 = vadd.f32 %v2607_v13, %v809_v9  ;;  %1809 = vrsqrt.f32 %v731_v6 }
 0x197   : > { %1069 = vmatmul.mubr.f32.gmra.mrb[8].mxu0 %v843_v3  ;;  %1226 = vmatmul.mubr.f32.gmra.mrb[8].mxu1 %v843_v3  ;;  %v811_v55 = vmul.f32 %v2600_v38, %v768_v34  ;;  %v732_v50 = vadd.f32 1e-05, %v716_v7  ;;  %v851_v51 = vadd.f32 %v2604_v22, %v808_v35 }
 0x198   : > { %1074 = vmatprep.mubr.f32.mxu0 %v846_v15  ;;  %1230 = vmatprep.mubr.f32.mxu1 %v846_v15  ;;  %v1802_v44 = vpop.eup %1801  ;;  %v810_v62 = vmul.f32 %v2597_v10, %v767_v33 }
 0x199   : > { %v770_v41 = vmul.f32 %v1802_v44, %v2489_v46  ;;  %v769_v24 = vmul.f32 %v1802_v44, %v2486_v29  ;;  %v854_v18 = vadd.f32 %v2607_v13, %v811_v55  ;;  %1811 = vrsqrt.f32 %v732_v50 }
 0x19a   : > { %v1804_v19 = vpop.eup %1803  ;;  %v853_v0 = vadd.f32 %v2604_v22, %v810_v62 }
 0x19b   : > { %1075 = vmatmul.mubr.f32.gmra.mrb[10].mxu0 %v845_v48  ;;  %1231 = vmatmul.mubr.f32.gmra.mrb[10].mxu1 %v845_v48  ;;  %v813_v63 = vmul.f32 %v2600_v38, %v770_v41  ;;  %v772_v8 = vmul.f32 %v1804_v19, %v2496_v61  ;;  %v812_v36 = vmul.f32 %v2597_v10, %v769_v24 }
 0x19c   : > { %1080 = vmatprep.mubr.f32.mxu0 %v848_v26  ;;  %1235 = vmatprep.mubr.f32.mxu1 %v848_v26  ;;  %v771_v3 = vmul.f32 %v1804_v19, %v2493_v60 }
 0x19d   : > { %v1806_v46 = vpop.eup %1805  ;;  %v856_v29 = vadd.f32 %v2607_v13, %v813_v63  ;;  %v815_v23 = vmul.f32 %v2600_v38, %v772_v8  ;;  %v855_v61 = vadd.f32 %v2604_v22, %v812_v36 }
 0x19e   : > { %v1808_v1 = vpop.eup %1807  ;;  %v774_v15 = vmul.f32 %v1806_v46, %v2514_v20  ;;  %v814_v37 = vmul.f32 %v2597_v10, %v771_v3  ;;  %v773_v31 = vmul.f32 %v1806_v46, %v2511_v56 }
 0x19f   : > { %1081 = vmatmul.mubr.f32.gmra.mrb[12].mxu0 %v847_v28  ;;  %1236 = vmatmul.mubr.f32.gmra.mrb[12].mxu1 %v847_v28  ;;  %v858_v60 = vadd.f32 %v2607_v13, %v815_v23  ;;  %v776_v40 = vmul.f32 %v1808_v1, %v2523_v25  ;;  %v775_v48 = vmul.f32 %v1808_v1, %v2520_v59 }
 0x1a0   : > { %1086 = vmatprep.mubr.f32.mxu0 %v850_v43  ;;  %1240 = vmatprep.mubr.f32.mxu1 %v850_v43  ;;  %v1810_v49 = vpop.eup %1809  ;;  %v817_v11 = vmul.f32 %v2600_v38, %v774_v15  ;;  %v857_v20 = vadd.f32 %v2604_v22, %v814_v37  ;;  %v816_v57 = vmul.f32 %v2597_v10, %v773_v31 }
 0x1a1   : > { %v819_v56 = vmul.f32 %v2600_v38, %v776_v40  ;;  %v778_v30 = vmul.f32 %v1810_v49, %v2542_v32  ;;  %v818_v26 = vmul.f32 %v2597_v10, %v775_v48  ;;  %v777_v54 = vmul.f32 %v1810_v49, %v2539_v53 }
 0x1a2   : > { %v860_v12 = vadd.f32 %v2607_v13, %v817_v11  ;;  %v859_v25 = vadd.f32 %v2604_v22, %v816_v57 }
 0x1a3   : > { %1087 = vmatmul.mubr.f32.gmra.mrb[14].mxu0 %v849_v21  ;;  %1241 = vmatmul.mubr.f32.gmra.mrb[14].mxu1 %v849_v21  ;;  %v1812_v58 = vpop.eup %1811  ;;  %v862_v27 = vadd.f32 %v2607_v13, %v819_v56  ;;  %v821_v59 = vmul.f32 %v2600_v38, %v778_v30  ;;  %v861_v32 = vadd.f32 %v2604_v22, %v818_v26 }
 0x1a4   : > { %1092 = vmatprep.mubr.f32.mxu0 %v852_v42  ;;  %1245 = vmatprep.mubr.f32.mxu1 %v852_v42  ;;  %v780_v4 = vmul.f32 %v1812_v58, %v2551_v17  ;;  %v820_v14 = vmul.f32 %v2597_v10, %v777_v54  ;;  %v779_v28 = vmul.f32 %v1812_v58, %v2548_v16 }
 0x1a5   : > { %v864_v5 = vadd.f32 %v2607_v13, %v821_v59 }
 0x1a6   : > { %v823_v53 = vmul.f32 %v2600_v38, %v780_v4  ;;  %v863_v17 = vadd.f32 %v2604_v22, %v820_v14  ;;  %v822_v39 = vmul.f32 %v2597_v10, %v779_v28  ;;  %v963_v38 = vld [vmem:[%s486_s17] sm:$0x7]  ;;  %v975_v10 = vsub.s32 2, %v2582_v45 }
 0x1a7   : > { %1093 = vmatmul.mubr.f32.gmra.mrb[16].mxu0 %v851_v51  ;;  %1246 = vmatmul.mubr.f32.gmra.mrb[16].mxu1 %v851_v51  ;;  %v2715_v47 = vrot.slane %v963_v38, %v2588_v2 }
 0x1a8   : > { %1098 = vmatprep.mubr.f32.mxu0 %v854_v18  ;;  %1250 = vmatprep.mubr.f32.mxu1 %v854_v18  ;;  %v866_v44 = vadd.f32 %v2607_v13, %v823_v53  ;;  %v865_v16 = vadd.f32 %v2604_v22, %v822_v39  ;;  %v2712_v13 = vrot.slane %v963_v38, %v2585_v52 }
 0x1a9   : > { %v2717_v9 = vrot.slane %v963_v38, %v975_v10 }
 0x1ab   : > { %1099 = vmatmul.mubr.f32.gmra.mrb[18].mxu0 %v853_v0  ;;  %1251 = vmatmul.mubr.f32.gmra.mrb[18].mxu1 %v853_v0 }
 0x1ac   : > { %1104 = vmatprep.mubr.f32.mxu0 %v856_v29  ;;  %1255 = vmatprep.mubr.f32.mxu1 %v856_v29 }
 0x1af   : > { %1105 = vmatmul.mubr.f32.gmra.mrb[20].mxu0 %v855_v61  ;;  %1256 = vmatmul.mubr.f32.gmra.mrb[20].mxu1 %v855_v61 }
 0x1b0   : > { %1110 = vmatprep.mubr.f32.mxu0 %v858_v60  ;;  %1260 = vmatprep.mubr.f32.mxu1 %v858_v60 }
 0x1b3   : > { %1111 = vmatmul.mubr.f32.gmra.mrb[22].mxu0 %v857_v20  ;;  %1261 = vmatmul.mubr.f32.gmra.mrb[22].mxu1 %v857_v20 }
 0x1b4   : > { %1116 = vmatprep.mubr.f32.mxu0 %v860_v12  ;;  %1265 = vmatprep.mubr.f32.mxu1 %v860_v12 }
 0x1b7   : > { %1117 = vmatmul.mubr.f32.gmra.mrb[24].mxu0 %v859_v25  ;;  %1266 = vmatmul.mubr.f32.gmra.mrb[24].mxu1 %v859_v25 }
 0x1b8   : > { %1122 = vmatprep.mubr.f32.mxu0 %v862_v27  ;;  %1270 = vmatprep.mubr.f32.mxu1 %v862_v27 }
 0x1bb   : > { %1123 = vmatmul.mubr.f32.gmra.mrb[26].mxu0 %v861_v32  ;;  %1271 = vmatmul.mubr.f32.gmra.mrb[26].mxu1 %v861_v32 }
 0x1bc   : > { %1128 = vmatprep.mubr.f32.mxu0 %v864_v5  ;;  %1275 = vmatprep.mubr.f32.mxu1 %v864_v5 }
 0x1bf   : > { %1129 = vmatmul.mubr.f32.gmra.mrb[28].mxu0 %v863_v17  ;;  %1276 = vmatmul.mubr.f32.gmra.mrb[28].mxu1 %v863_v17 }
 0x1c0   : > { %1134 = vmatprep.mubr.f32.mxu0 %v866_v44  ;;  %1280 = vmatprep.mubr.f32.mxu1 %v866_v44 }
 0x1c3   : > { %1135 = vmatmul.mubr.f32.gmra.mrb[30].mxu0 %v865_v16  ;;  %1281 = vmatmul.mubr.f32.gmra.mrb[30].mxu1 %v865_v16 }
 0x25a   : > { %v1046_v22 = vpop.f32.mrb[0].mxu0  ;;  %v1594_v43 = vpop.f32.mrb[0].mxu1 }
 0x25b   : > { %v1047_v34 = vadd.f32 %v1046_v22, %v2712_v13  ;;  %v1048_v6 = vpop.f32.mrb[1].mxu0  ;;  %v1595_v7 = vpop.f32.mrb[1].mxu1 }
 0x25c   : > { %v1049_v21 = vadd.f32 %v1048_v6, %v2715_v47  ;;  %v1596_v35 = vadd.f32 %v1595_v7, %v1594_v43 }
 0x25d   : > { %1286 = vst [vmem:[%s2721_s18] sm:$0xff] %v1047_v34 }
 0x25e   : > { %1287 = vst [vmem:[%s2721_s18 + $0x8] sm:$0xff] %v1049_v21  ;;  %v1208_v45 = vadd.f32 %v1596_v35, %v2717_v9  ;;  %v1052_v52 = vpop.f32.mrb[2].mxu0  ;;  %v1597_v2 = vpop.f32.mrb[2].mxu1 }
 0x25f   : > { %v1053_v33 = vadd.f32 %v1052_v52, %v2712_v13  ;;  %v1054_v42 = vpop.f32.mrb[3].mxu0  ;;  %v1598_v55 = vpop.f32.mrb[3].mxu1 }
 0x260   : > { %1288 = vst [vmem:[%s2721_s18 + $0x10] sm:$0xff] %v1208_v45  ;;  %v1055_v41 = vadd.f32 %v1054_v42, %v2715_v47  ;;  %v1599_v19 = vadd.f32 %v1598_v55, %v1597_v2 }
 0x261   : > { %1289 = vst [vmem:[%s2721_s18 + $0x18] sm:$0xff] %v1053_v33 }
 0x262   : > { %1290 = vst [vmem:[%s2721_s18 + $0x20] sm:$0xff] %v1055_v41  ;;  %v1213_v50 = vadd.f32 %v1599_v19, %v2717_v9  ;;  %v1058_v51 = vpop.f32.mrb[4].mxu0  ;;  %v1600_v62 = vpop.f32.mrb[4].mxu1 }
 0x263   : > { %v1059_v24 = vadd.f32 %v1058_v51, %v2712_v13  ;;  %v1060_v18 = vpop.f32.mrb[5].mxu0  ;;  %v1601_v63 = vpop.f32.mrb[5].mxu1 }
 0x264   : > { %1291 = vst [vmem:[%s2721_s18 + $0x28] sm:$0xff] %v1213_v50  ;;  %v1061_v8 = vadd.f32 %v1060_v18, %v2715_v47  ;;  %v1602_v46 = vadd.f32 %v1601_v63, %v1600_v62 }
 0x265   : > { %1292 = vst [vmem:[%s2721_s18 + $0x30] sm:$0xff] %v1059_v24 }
 0x266   : > { %1293 = vst [vmem:[%s2721_s18 + $0x38] sm:$0xff] %v1061_v8  ;;  %v1218_v0 = vadd.f32 %v1602_v46, %v2717_v9  ;;  %v1064_v36 = vpop.f32.mrb[6].mxu0  ;;  %v1603_v3 = vpop.f32.mrb[6].mxu1 }
 0x267   : > { %v1065_v1 = vadd.f32 %v1064_v36, %v2712_v13  ;;  %v1066_v29 = vpop.f32.mrb[7].mxu0  ;;  %v1604_v23 = vpop.f32.mrb[7].mxu1 }
 0x268   : > { %1294 = vst [vmem:[%s2721_s18 + $0x40] sm:$0xff] %v1218_v0  ;;  %v1067_v15 = vadd.f32 %v1066_v29, %v2715_v47  ;;  %v1605_v61 = vadd.f32 %v1604_v23, %v1603_v3 }
 0x269   : > { %1295 = vst [vmem:[%s2721_s18 + $0x48] sm:$0xff] %v1065_v1 }
 0x26a   : > { %1296 = vst [vmem:[%s2721_s18 + $0x50] sm:$0xff] %v1067_v15  ;;  %v1223_v37 = vadd.f32 %v1605_v61, %v2717_v9  ;;  %v1070_v31 = vpop.f32.mrb[8].mxu0  ;;  %v1606_v49 = vpop.f32.mrb[8].mxu1 }
 0x26b   : > { %v1071_v60 = vadd.f32 %v1070_v31, %v2712_v13  ;;  %v1072_v11 = vpop.f32.mrb[9].mxu0  ;;  %v1607_v40 = vpop.f32.mrb[9].mxu1 }
 0x26c   : > { %1297 = vst [vmem:[%s2721_s18 + $0x58] sm:$0xff] %v1223_v37  ;;  %v1073_v20 = vadd.f32 %v1072_v11, %v2715_v47  ;;  %v1608_v57 = vadd.f32 %v1607_v40, %v1606_v49 }
 0x26d   : > { %1298 = vst [vmem:[%s2721_s18 + $0x60] sm:$0xff] %v1071_v60 }
 0x26e   : > { %1299 = vst [vmem:[%s2721_s18 + $0x68] sm:$0xff] %v1073_v20  ;;  %v1228_v48 = vadd.f32 %v1608_v57, %v2717_v9  ;;  %v1076_v12 = vpop.f32.mrb[10].mxu0  ;;  %v1609_v56 = vpop.f32.mrb[10].mxu1 }
 0x26f   : > { %v1077_v30 = vadd.f32 %v1076_v12, %v2712_v13  ;;  %v1078_v58 = vpop.f32.mrb[11].mxu0  ;;  %v1610_v25 = vpop.f32.mrb[11].mxu1 }
 0x270   : > { %1300 = vst [vmem:[%s2721_s18 + $0x70] sm:$0xff] %v1228_v48  ;;  %v1079_v26 = vadd.f32 %v1078_v58, %v2715_v47  ;;  %v1611_v54 = vadd.f32 %v1610_v25, %v1609_v56 }
 0x271   : > { %1301 = vst [vmem:[%s2721_s18 + $0x78] sm:$0xff] %v1077_v30 }
 0x272   : > { %1302 = vst [vmem:[%s2721_s18 + $0x80] sm:$0xff] %v1079_v26  ;;  %v1233_v27 = vadd.f32 %v1611_v54, %v2717_v9  ;;  %v1082_v59 = vpop.f32.mrb[12].mxu0  ;;  %v1612_v4 = vpop.f32.mrb[12].mxu1 }
 0x273   : > { %v1083_v32 = vadd.f32 %v1082_v59, %v2712_v13  ;;  %v1084_v14 = vpop.f32.mrb[13].mxu0  ;;  %v1613_v28 = vpop.f32.mrb[13].mxu1 }
 0x274   : > { %1303 = vst [vmem:[%s2721_s18 + $0x88] sm:$0xff] %v1233_v27  ;;  %v1085_v5 = vadd.f32 %v1084_v14, %v2715_v47  ;;  %v1614_v53 = vadd.f32 %v1613_v28, %v1612_v4 }
 0x275   : > { %1304 = vst [vmem:[%s2721_s18 + $0x90] sm:$0xff] %v1083_v32 }
 0x276   : > { %1305 = vst [vmem:[%s2721_s18 + $0x98] sm:$0xff] %v1085_v5  ;;  %v1238_v17 = vadd.f32 %v1614_v53, %v2717_v9  ;;  %v1088_v39 = vpop.f32.mrb[14].mxu0  ;;  %v1615_v44 = vpop.f32.mrb[14].mxu1 }
 0x277   : > { %v1089_v16 = vadd.f32 %v1088_v39, %v2712_v13  ;;  %v1090_v38 = vpop.f32.mrb[15].mxu0  ;;  %v1616_v10 = vpop.f32.mrb[15].mxu1 }
 0x278   : > { %1306 = vst [vmem:[%s2721_s18 + $0xa0] sm:$0xff] %v1238_v17  ;;  %v1091_v22 = vadd.f32 %v1090_v38, %v2715_v47  ;;  %v1617_v43 = vadd.f32 %v1616_v10, %v1615_v44 }
 0x279   : > { %1307 = vst [vmem:[%s2721_s18 + $0xa8] sm:$0xff] %v1089_v16 }
 0x27a   : > { %1308 = vst [vmem:[%s2721_s18 + $0xb0] sm:$0xff] %v1091_v22  ;;  %v1243_v34 = vadd.f32 %v1617_v43, %v2717_v9  ;;  %v1094_v6 = vpop.f32.mrb[16].mxu0  ;;  %v1618_v7 = vpop.f32.mrb[16].mxu1 }
 0x27b   : > { %v1095_v21 = vadd.f32 %v1094_v6, %v2712_v13  ;;  %v1096_v35 = vpop.f32.mrb[17].mxu0  ;;  %v1619_v45 = vpop.f32.mrb[17].mxu1 }
 0x27c   : > { %1309 = vst [vmem:[%s2721_s18 + $0xb8] sm:$0xff] %v1243_v34  ;;  %v1097_v52 = vadd.f32 %v1096_v35, %v2715_v47  ;;  %v1620_v2 = vadd.f32 %v1619_v45, %v1618_v7  ;;  %v1363_v35 = vld [vmem:[%s2721_s18 + $0x10] sm:$0xff] (%p1918_p6)  ;;  %v1365_v45 = vld [vmem:[%s2721_s18 + $0x18] sm:$0xff] (%p1918_p6) }
 0x27d   : > { %1310 = vst [vmem:[%s2721_s18 + $0xc0] sm:$0xff] %v1095_v21  ;;  %1364 = vst [vmem:[%s2829_s29 + $0x10] sm:$0xff] (%p1918_p6), %v1363_v35 }
 0x27e   : > { %1311 = vst [vmem:[%s2721_s18 + $0xc8] sm:$0xff] %v1097_v52  ;;  %v1248_v33 = vadd.f32 %v1620_v2, %v2717_v9  ;;  %v1100_v42 = vpop.f32.mrb[18].mxu0  ;;  %v1621_v55 = vpop.f32.mrb[18].mxu1  ;;  %v1369_v52 = vld [vmem:[%s2721_s18 + $0x28] sm:$0xff] (%p1918_p6)  ;;  %v1371_v2 = vld [vmem:[%s2721_s18 + $0x30] sm:$0xff] (%p1918_p6)  ;;  %1366 = vst [vmem:[%s2829_s29 + $0x30] sm:$0xff] (%p1918_p6), %v1365_v45 }
 0x27f   : > { %v1101_v41 = vadd.f32 %v1100_v42, %v2712_v13  ;;  %v1102_v19 = vpop.f32.mrb[19].mxu0  ;;  %v1622_v50 = vpop.f32.mrb[19].mxu1  ;;  %v1375_v42 = vld [vmem:[%s2721_s18 + $0x40] sm:$0xff] (%p1918_p6)  ;;  %1370 = vst [vmem:[%s2829_s29 + $0x40] sm:$0xff] (%p1918_p6), %v1369_v52  ;;  %1372 = vst [vmem:[%s2829_s29 + $0x60] sm:$0xff] (%p1918_p6), %v1371_v2 }
 0x280   : > { %1312 = vst [vmem:[%s2721_s18 + $0xd0] sm:$0xff] %v1248_v33  ;;  %v1103_v51 = vadd.f32 %v1102_v19, %v2715_v47  ;;  %v1623_v62 = vadd.f32 %v1622_v50, %v1621_v55  ;;  %v1373_v33 = vld [vmem:[%s2721_s18 + $0x38] sm:$0xff] (%p1918_p6)  ;;  %1376 = vst [vmem:[%s2829_s29 + $0x70] sm:$0xff] (%p1918_p6), %v1375_v42  ;;  %v1377_v55 = vld [vmem:[%s2721_s18 + $0x48] sm:$0xff] (%p1918_p6) }
 0x281   : > { %1313 = vst [vmem:[%s2721_s18 + $0xd8] sm:$0xff] %v1101_v41  ;;  %1374 = vst [vmem:[%s2829_s29 + $0x68] sm:$0xff] (%p1918_p6), %v1373_v33  ;;  %v1379_v41 = vld [vmem:[%s2721_s18 + $0x50] sm:$0xff] (%p1918_p6)  ;;  %v1381_v19 = vld [vmem:[%s2721_s18 + $0x58] sm:$0xff] (%p1918_p6) }
 0x282   : > { %1314 = vst [vmem:[%s2721_s18 + $0xe0] sm:$0xff] %v1103_v51  ;;  %v1253_v24 = vadd.f32 %v1623_v62, %v2717_v9  ;;  %v1106_v18 = vpop.f32.mrb[20].mxu0  ;;  %v1624_v63 = vpop.f32.mrb[20].mxu1  ;;  %1378 = vst [vmem:[%s2829_s29 + $0x90] sm:$0xff] (%p1918_p6), %v1377_v55  ;;  %v1383_v50 = vld [vmem:[%s2721_s18 + $0x60] sm:$0xff] (%p1918_p6)  ;;  %v1385_v51 = vld [vmem:[%s2721_s18 + $0x68] sm:$0xff] (%p1918_p6) }
 0x283   : > { %v1107_v8 = vadd.f32 %v1106_v18, %v2712_v13  ;;  %v1108_v46 = vpop.f32.mrb[21].mxu0  ;;  %v1625_v0 = vpop.f32.mrb[21].mxu1  ;;  %1380 = vst [vmem:[%s2829_s29 + $0x98] sm:$0xff] (%p1918_p6), %v1379_v41  ;;  %1382 = vst [vmem:[%s2829_s29 + $0xa0] sm:$0xff] (%p1918_p6), %v1381_v19  ;;  %v1387_v62 = vld [vmem:[%s2721_s18 + $0x70] sm:$0xff] (%p1918_p6)  ;;  %v1391_v18 = vld [vmem:[%s2721_s18 + $0x80] sm:$0xff] (%p1918_p6) }
 0x284   : > { %1315 = vst [vmem:[%s2721_s18 + $0xe8] sm:$0xff] %v1253_v24  ;;  %v1109_v36 = vadd.f32 %v1108_v46, %v2715_v47  ;;  %v1626_v3 = vadd.f32 %v1625_v0, %v1624_v63  ;;  %1384 = vst [vmem:[%s2829_s29 + $0xc0] sm:$0xff] (%p1918_p6), %v1383_v50  ;;  %v1389_v24 = vld [vmem:[%s2721_s18 + $0x78] sm:$0xff] (%p1918_p6)  ;;  %v1393_v63 = vld [vmem:[%s2721_s18 + $0x88] sm:$0xff] (%p1918_p6) }
 0x285   : > { %1316 = vst [vmem:[%s2721_s18 + $0xf0] sm:$0xff] %v1107_v8  ;;  %1386 = vst [vmem:[%s2829_s29 + $0xc8] sm:$0xff] (%p1918_p6), %v1385_v51  ;;  %v1395_v8 = vld [vmem:[%s2721_s18 + $0x90] sm:$0xff] (%p1918_p6)  ;;  %v1397_v46 = vld [vmem:[%s2721_s18 + $0x98] sm:$0xff] (%p1918_p6) }
 0x286   : > { %1317 = vst [vmem:[%s2721_s18 + $0xf8] sm:$0xff] %v1109_v36  ;;  %v1258_v1 = vadd.f32 %v1626_v3, %v2717_v9  ;;  %v1112_v29 = vpop.f32.mrb[22].mxu0  ;;  %v1627_v23 = vpop.f32.mrb[22].mxu1  ;;  %1388 = vst [vmem:[%s2829_s29 + $0xd0] sm:$0xff] (%p1918_p6), %v1387_v62  ;;  %v1399_v0 = vld [vmem:[%s2721_s18 + $0xa0] sm:$0xff] (%p1918_p6)  ;;  %v1401_v36 = vld [vmem:[%s2721_s18 + $0xa8] sm:$0xff] (%p1918_p6) }
 0x287   : > { %v1113_v15 = vadd.f32 %v1112_v29, %v2712_v13  ;;  %v1114_v61 = vpop.f32.mrb[23].mxu0  ;;  %v1628_v37 = vpop.f32.mrb[23].mxu1  ;;  %1390 = vst [vmem:[%s2829_s29 + $0xf0] sm:$0xff] (%p1918_p6), %v1389_v24  ;;  %1392 = vst [vmem:[%s2829_s29 + $0xf8] sm:$0xff] (%p1918_p6), %v1391_v18  ;;  %v1403_v3 = vld [vmem:[%s2721_s18 + $0xb0] sm:$0xff] (%p1918_p6)  ;;  %v1407_v29 = vld [vmem:[%s2721_s18 + $0xc0] sm:$0xff] (%p1918_p6) }
 0x288   : > { %1318 = vst [vmem:[%s2721_s18 + $0x100] sm:$0xff] %v1258_v1  ;;  %v1115_v31 = vadd.f32 %v1114_v61, %v2715_v47  ;;  %v1629_v49 = vadd.f32 %v1628_v37, %v1627_v23  ;;  %1394 = vst [vmem:[%s2829_s29 + $0x100] sm:$0xff] (%p1918_p6), %v1393_v63  ;;  %v1405_v1 = vld [vmem:[%s2721_s18 + $0xb8] sm:$0xff] (%p1918_p6)  ;;  %v1409_v23 = vld [vmem:[%s2721_s18 + $0xc8] sm:$0xff] (%p1918_p6) }
 0x289   : > { %1319 = vst [vmem:[%s2721_s18 + $0x108] sm:$0xff] %v1113_v15  ;;  %1396 = vst [vmem:[%s2829_s29 + $0x120] sm:$0xff] (%p1918_p6), %v1395_v8  ;;  %v1411_v15 = vld [vmem:[%s2721_s18 + $0xd0] sm:$0xff] (%p1918_p6)  ;;  %v1413_v61 = vld [vmem:[%s2721_s18 + $0xd8] sm:$0xff] (%p1918_p6) }
 0x28a   : > { %1320 = vst [vmem:[%s2721_s18 + $0x110] sm:$0xff] %v1115_v31  ;;  %v1263_v60 = vadd.f32 %v1629_v49, %v2717_v9  ;;  %v1118_v11 = vpop.f32.mrb[24].mxu0  ;;  %v1630_v40 = vpop.f32.mrb[24].mxu1  ;;  %1398 = vst [vmem:[%s2829_s29 + $0x128] sm:$0xff] (%p1918_p6), %v1397_v46  ;;  %v1415_v37 = vld [vmem:[%s2721_s18 + $0xe0] sm:$0xff] (%p1918_p6) }
 0x28b   : > { %v1119_v20 = vadd.f32 %v1118_v11, %v2712_v13  ;;  %v1120_v57 = vpop.f32.mrb[25].mxu0  ;;  %v1631_v48 = vpop.f32.mrb[25].mxu1  ;;  %1400 = vst [vmem:[%s2829_s29 + $0x130] sm:$0xff] (%p1918_p6), %v1399_v0  ;;  %1402 = vst [vmem:[%s2829_s29 + $0x150] sm:$0xff] (%p1918_p6), %v1401_v36  ;;  %v1417_v31 = vld [vmem:[%s2721_s18 + $0xe8] sm:$0xff] (%p1918_p6) }
 0x28c   : > { %1321 = vst [vmem:[%s2721_s18 + $0x118] sm:$0xff] %v1263_v60  ;;  %v1121_v12 = vadd.f32 %v1120_v57, %v2715_v47  ;;  %v1632_v56 = vadd.f32 %v1631_v48, %v1630_v40  ;;  %1404 = vst [vmem:[%s2829_s29 + $0x158] sm:$0xff] (%p1918_p6), %v1403_v3  ;;  %v1419_v49 = vld [vmem:[%s2721_s18 + $0xf0] sm:$0xff] (%p1918_p6) }
 0x28d   : > { %1322 = vst [vmem:[%s2721_s18 + $0x120] sm:$0xff] %v1119_v20  ;;  %1406 = vst [vmem:[%s2829_s29 + $0x160] sm:$0xff] (%p1918_p6), %v1405_v1  ;;  %v1421_v60 = vld [vmem:[%s2721_s18 + $0xf8] sm:$0xff] (%p1918_p6) }
 0x28e   : > { %1323 = vst [vmem:[%s2721_s18 + $0x128] sm:$0xff] %v1121_v12  ;;  %v1268_v30 = vadd.f32 %v1632_v56, %v2717_v9  ;;  %v1124_v58 = vpop.f32.mrb[26].mxu0  ;;  %v1633_v25 = vpop.f32.mrb[26].mxu1  ;;  %1408 = vst [vmem:[%s2829_s29 + $0x180] sm:$0xff] (%p1918_p6), %v1407_v29 }
 0x28f   : > { %v1125_v26 = vadd.f32 %v1124_v58, %v2712_v13  ;;  %v1126_v54 = vpop.f32.mrb[27].mxu0  ;;  %v1634_v27 = vpop.f32.mrb[27].mxu1  ;;  %1410 = vst [vmem:[%s2829_s29 + $0x188] sm:$0xff] (%p1918_p6), %v1409_v23  ;;  %1412 = vst [vmem:[%s2829_s29 + $0x190] sm:$0xff] (%p1918_p6), %v1411_v15  ;;  %v1423_v11 = vld [vmem:[%s2721_s18 + $0x100] sm:$0xff] (%p1918_p6) }
 0x290   : > { %1324 = vst [vmem:[%s2721_s18 + $0x130] sm:$0xff] %v1268_v30  ;;  %v1127_v59 = vadd.f32 %v1126_v54, %v2715_v47  ;;  %v1635_v4 = vadd.f32 %v1634_v27, %v1633_v25  ;;  %1414 = vst [vmem:[%s2829_s29 + $0x1b0] sm:$0xff] (%p1918_p6), %v1413_v61  ;;  %v1425_v40 = vld [vmem:[%s2721_s18 + $0x108] sm:$0xff] (%p1918_p6) }
 0x291   : > { %1325 = vst [vmem:[%s2721_s18 + $0x138] sm:$0xff] %v1125_v26  ;;  %1416 = vst [vmem:[%s2829_s29 + $0x1b8] sm:$0xff] (%p1918_p6), %v1415_v37  ;;  %v1427_v20 = vld [vmem:[%s2721_s18 + $0x110] sm:$0xff] (%p1918_p6) }
 0x292   : > { %1326 = vst [vmem:[%s2721_s18 + $0x140] sm:$0xff] %v1127_v59  ;;  %v1273_v32 = vadd.f32 %v1635_v4, %v2717_v9  ;;  %v1130_v14 = vpop.f32.mrb[28].mxu0  ;;  %v1636_v28 = vpop.f32.mrb[28].mxu1  ;;  %1418 = vst [vmem:[%s2829_s29 + $0x1c0] sm:$0xff] (%p1918_p6), %v1417_v31 }
 0x293   : > { %v1131_v5 = vadd.f32 %v1130_v14, %v2712_v13  ;;  %v1132_v53 = vpop.f32.mrb[29].mxu0  ;;  %v1637_v17 = vpop.f32.mrb[29].mxu1  ;;  %1420 = vst [vmem:[%s2829_s29 + $0x1e0] sm:$0xff] (%p1918_p6), %v1419_v49  ;;  %1422 = vst [vmem:[%s2829_s29 + $0x1e8] sm:$0xff] (%p1918_p6), %v1421_v60  ;;  %v1429_v57 = vld [vmem:[%s2721_s18 + $0x118] sm:$0xff] (%p1918_p6) }
 0x294   : > { %1327 = vst [vmem:[%s2721_s18 + $0x148] sm:$0xff] %v1273_v32  ;;  %v1133_v39 = vadd.f32 %v1132_v53, %v2715_v47  ;;  %v1638_v44 = vadd.f32 %v1637_v17, %v1636_v28  ;;  %1424 = vst [vmem:[%s2829_s29 + $0x1f0] sm:$0xff] (%p1918_p6), %v1423_v11  ;;  %v1431_v48 = vld [vmem:[%s2721_s18 + $0x120] sm:$0xff] (%p1918_p6) }
 0x295   : > { %1328 = vst [vmem:[%s2721_s18 + $0x150] sm:$0xff] %v1131_v5  ;;  %1426 = vst [vmem:[%s2829_s29 + $0x210] sm:$0xff] (%p1918_p6), %v1425_v40  ;;  %v1433_v12 = vld [vmem:[%s2721_s18 + $0x128] sm:$0xff] (%p1918_p6) }
 0x296   : > { %1329 = vst [vmem:[%s2721_s18 + $0x158] sm:$0xff] %v1133_v39  ;;  %v1278_v16 = vadd.f32 %v1638_v44, %v2717_v9  ;;  %v1136_v38 = vpop.f32.mrb[30].mxu0  ;;  %v1639_v10 = vpop.f32.mrb[30].mxu1  ;;  %1340 = sbr.rel (!%p1918_p6) target bundleno = 677 (0x2a5), region = 67  ;;  %1428 = vst [vmem:[%s2829_s29 + $0x218] sm:$0xff] (%p1918_p6), %v1427_v20 }
 0x297   : > { %v1137_v22 = vadd.f32 %v1136_v38, %v2712_v13  ;;  %v1138_v43 = vpop.f32.mrb[31].mxu0  ;;  %v1640_v34 = vpop.f32.mrb[31].mxu1  ;;  %v1359_v13 = vld [vmem:[%s2721_s18] sm:$0xff] (%p1918_p6)  ;;  %1430 = vst [vmem:[%s2829_s29 + $0x220] sm:$0xff] (%p1918_p6), %v1429_v57  ;;  %v1435_v56 = vld [vmem:[%s2721_s18 + $0x130] sm:$0xff] (%p1918_p6)  ;;  %1432 = vst [vmem:[%s2829_s29 + $0x240] sm:$0xff] (%p1918_p6), %v1431_v48 }
 0x298   : > { %1330 = vst [vmem:[%s2721_s18 + $0x160] sm:$0xff] %v1278_v16  ;;  %v1139_v6 = vadd.f32 %v1138_v43, %v2715_v47  ;;  %v1641_v7 = vadd.f32 %v1640_v34, %v1639_v10  ;;  %v1361_v47 = vld [vmem:[%s2721_s18 + $0x8] sm:$0xff] (%p1918_p6)  ;;  %1360 = vst [vmem:[%s2829_s29] sm:$0xff] (%p1918_p6), %v1359_v13  ;;  %v1437_v30 = vld [vmem:[%s2721_s18 + $0x138] sm:$0xff] (%p1918_p6) }
 0x299   : > { %1331 = vst [vmem:[%s2721_s18 + $0x168] sm:$0xff] %v1137_v22  ;;  %1362 = vst [vmem:[%s2829_s29 + $0x8] sm:$0xff] (%p1918_p6), %v1361_v47  ;;  %v1439_v58 = vld [vmem:[%s2721_s18 + $0x140] sm:$0xff] (%p1918_p6) }
 0x29a   : > { %1332 = vst [vmem:[%s2721_s18 + $0x170] sm:$0xff] %v1139_v6  ;;  %v1283_v21 = vadd.f32 %v1641_v7, %v2717_v9  ;;  %v1367_v9 = vld [vmem:[%s2721_s18 + $0x20] sm:$0xff] (%p1918_p6)  ;;  %1434 = vst [vmem:[%s2829_s29 + $0x248] sm:$0xff] (%p1918_p6), %v1433_v12 }
 0x29b   : > { %1368 = vst [vmem:[%s2829_s29 + $0x38] sm:$0xff] (%p1918_p6), %v1367_v9  ;;  %1436 = vst [vmem:[%s2829_s29 + $0x250] sm:$0xff] (%p1918_p6), %v1435_v56  ;;  %v1441_v25 = vld [vmem:[%s2721_s18 + $0x148] sm:$0xff] (%p1918_p6) }
 0x29c   : > { %1333 = vst [vmem:[%s2721_s18 + $0x178] sm:$0xff] %v1283_v21  ;;  %1438 = vst [vmem:[%s2829_s29 + $0x270] sm:$0xff] (%p1918_p6), %v1437_v30  ;;  %v1443_v26 = vld [vmem:[%s2721_s18 + $0x150] sm:$0xff] (%p1918_p6) }
 0x29d   : > { %1440 = vst [vmem:[%s2829_s29 + $0x278] sm:$0xff] %v1439_v58  ;;  %1442 = vst [vmem:[%s2829_s29 + $0x280] sm:$0xff] %v1441_v25  ;;  %v1445_v54 = vld [vmem:[%s2721_s18 + $0x158] sm:$0xff] }
 0x29e   : > { %1444 = vst [vmem:[%s2829_s29 + $0x2a0] sm:$0xff] %v1443_v26  ;;  %1446 = vst [vmem:[%s2829_s29 + $0x2a8] sm:$0xff] %v1445_v54 }
 0x29f   : > { %v1447_v27 = vld [vmem:[%s2721_s18 + $0x160] sm:$0xff] }
 0x2a0   : > { %1448 = vst [vmem:[%s2829_s29 + $0x2b0] sm:$0xff] %v1447_v27  ;;  %v1449_v59 = vld [vmem:[%s2721_s18 + $0x168] sm:$0xff] }
 0x2a1   : > { %v1451_v4 = vld [vmem:[%s2721_s18 + $0x170] sm:$0xff]  ;;  %1450 = vst [vmem:[%s2829_s29 + $0x2d0] sm:$0xff] %v1449_v59 }
 0x2a2   : > { %1452 = vst [vmem:[%s2829_s29 + $0x2d8] sm:$0xff] %v1451_v4 }
 0x2a3   : > { %v1453_v32 = vld [vmem:[%s2721_s18 + $0x178] sm:$0xff] }
 0x2a4   : > { %1454 = vst [vmem:[%s2829_s29 + $0x2e0] sm:$0xff] %v1453_v32 }
 0x2a5 PF: > { %s15_s22 = sadd.s32 1, %s1851_s22   ;;  %s2943_s18 = smov %s1839_s19 }
 0x2a6   : > { %p12_p12 = scmp.ge.s32.totalorder %s15_s22, 4   ;;  %s2944_s19 = smov %s1923_s28 }
 0x2a7   : > { %s2945_s20 = smov %s1847_s21  ;;  %s2946_s21 = smov %s2948_s23 }
 0x2a8   :  { %14 = sbr.rel (!%p12_p12) target bundleno = 3 (0x3), region = 127 }

// kernel: reactive_transformer_layer.11
= control target key start
LH: loop header
LB: loop body
LE: loop exit
PB: predicated region body
PF: predicated region fallthrough
CT: control target
= control target key end

     0   :  { %s1627_s0 = inlined_call_operand.vmem [shape: f32[128,256], index: 0, kind: input, shape index: {}]   ;;  %s1628_s3 = inlined_call_operand.vmem [shape: f32[256,256], index: 3, kind: input, shape index: {}]   ;;  %s1629_s1 = inlined_call_operand.vmem [shape: f32[1,256], index: 1, kind: input, shape index: {}]   ;;  %s1630_s2 = inlined_call_operand.vmem [shape: f32[1,256], index: 2, kind: input, shape index: {}]   ;;  %s1631_s4 = inlined_call_operand.vmem [shape: f32[1,256], index: 4, kind: input, shape index: {}]   ;;  %s1632_s5 = inlined_call_operand.vmem [shape: f32[128,256], index: 5, kind: output, shape index: {}]  }
   0x1   :  { %v831_v0 = vld [vmem:[%s1627_s0] sm:$0xff]  ;;  %v836_v1 = vld [vmem:[%s1627_s0 + $0x8] sm:$0xff]  ;;  %v841_v2 = vld [vmem:[%s1627_s0 + $0x10] sm:$0xff] }
   0x2   :  { %v54_v3 = vadd.f32 %v836_v1, %v831_v0  ;;  %v848_v4 = vld [vmem:[%s1627_s0 + $0x18] sm:$0xff]  ;;  %v853_v5 = vld [vmem:[%s1627_s0 + $0x80] sm:$0xff]  ;;  %v858_v6 = vld [vmem:[%s1627_s0 + $0x88] sm:$0xff] }
   0x3   :  { %v57_v7 = vadd.f32 %v848_v4, %v841_v2  ;;  %v865_v8 = vld [vmem:[%s1627_s0 + $0x90] sm:$0xff]  ;;  %v870_v9 = vld [vmem:[%s1627_s0 + $0x98] sm:$0xff]  ;;  %v78_v10 = vadd.f32 %v858_v6, %v853_v5  ;;  %v879_v12 = vld [vmem:[%s1627_s0 + $0x20] sm:$0xff] }
   0x4   :  { %55 = vadd.xlane.f32.xlu0 %v54_v3  ;;  %v81_v11 = vadd.f32 %v870_v9, %v865_v8  ;;  %v884_v13 = vld [vmem:[%s1627_s0 + $0x28] sm:$0xff]  ;;  %v889_v14 = vld [vmem:[%s1627_s0 + $0xa0] sm:$0xff]  ;;  %v903_v18 = vld [vmem:[%s1627_s0 + $0x30] sm:$0xff] }
   0x5   :  { %58 = vadd.xlane.f32.xlu1 %v57_v7  ;;  %v894_v15 = vld [vmem:[%s1627_s0 + $0xa8] sm:$0xff]  ;;  %v60_v16 = vadd.f32 %v884_v13, %v879_v12  ;;  %v908_v19 = vld [vmem:[%s1627_s0 + $0x38] sm:$0xff]  ;;  %v913_v20 = vld [vmem:[%s1627_s0 + $0xb0] sm:$0xff] }
   0x6   :  { %v84_v17 = vadd.f32 %v894_v15, %v889_v14  ;;  %v918_v21 = vld [vmem:[%s1627_s0 + $0xb8] sm:$0xff]  ;;  %v63_v22 = vadd.f32 %v908_v19, %v903_v18  ;;  %v927_v24 = vld [vmem:[%s1627_s0 + $0x40] sm:$0xff]  ;;  %v932_v25 = vld [vmem:[%s1627_s0 + $0x48] sm:$0xff] }
   0x7   :  { %v87_v23 = vadd.f32 %v918_v21, %v913_v20  ;;  %v937_v26 = vld [vmem:[%s1627_s0 + $0xc0] sm:$0xff]  ;;  %v942_v27 = vld [vmem:[%s1627_s0 + $0xc8] sm:$0xff]  ;;  %v66_v28 = vadd.f32 %v932_v25, %v927_v24  ;;  %v951_v30 = vld [vmem:[%s1627_s0 + $0x50] sm:$0xff] }
   0x8   :  { %79 = vadd.xlane.f32.xlu0 %v78_v10  ;;  %v90_v29 = vadd.f32 %v942_v27, %v937_v26  ;;  %v956_v31 = vld [vmem:[%s1627_s0 + $0x58] sm:$0xff]  ;;  %v961_v32 = vld [vmem:[%s1627_s0 + $0xd0] sm:$0xff]  ;;  %v975_v36 = vld [vmem:[%s1627_s0 + $0x60] sm:$0xff] }
   0x9   :  { %82 = vadd.xlane.f32.xlu1 %v81_v11  ;;  %v966_v33 = vld [vmem:[%s1627_s0 + $0xd8] sm:$0xff]  ;;  %v69_v34 = vadd.f32 %v956_v31, %v951_v30  ;;  %v980_v37 = vld [vmem:[%s1627_s0 + $0x68] sm:$0xff]  ;;  %v985_v38 = vld [vmem:[%s1627_s0 + $0xe0] sm:$0xff] }
   0xa   :  { %v93_v35 = vadd.f32 %v966_v33, %v961_v32  ;;  %v990_v39 = vld [vmem:[%s1627_s0 + $0xe8] sm:$0xff]  ;;  %v72_v40 = vadd.f32 %v980_v37, %v975_v36  ;;  %v999_v42 = vld [vmem:[%s1627_s0 + $0x70] sm:$0xff]  ;;  %v1004_v43 = vld [vmem:[%s1627_s0 + $0x78] sm:$0xff] }
   0xb   :  { %v96_v41 = vadd.f32 %v990_v39, %v985_v38  ;;  %v1009_v44 = vld [vmem:[%s1627_s0 + $0xf0] sm:$0xff]  ;;  %v1014_v45 = vld [vmem:[%s1627_s0 + $0xf8] sm:$0xff]  ;;  %v75_v46 = vadd.f32 %v1004_v43, %v999_v42  ;;  %v398_v48 = vld [vmem:[%s1628_s3 + $0x8] sm:$0xff] }
   0xc   :  { %61 = vadd.xlane.f32.xlu0 %v60_v16  ;;  %v99_v47 = vadd.f32 %v1014_v45, %v1009_v44  ;;  %v400_v49 = vld [vmem:[%s1628_s3 + $0x18] sm:$0xff]  ;;  %v397_v50 = vld [vmem:[%s1628_s3] sm:$0xff]  ;;  %v399_v52 = vld [vmem:[%s1628_s3 + $0x10] sm:$0xff] }
   0xd   :  { %85 = vadd.xlane.f32.xlu1 %v84_v17  ;;  %v670_v51 = vpack.c.bf16 %v400_v49, %v398_v48  ;;  %v402_v53 = vld [vmem:[%s1628_s3 + $0x28] sm:$0xff]  ;;  %v404_v54 = vld [vmem:[%s1628_s3 + $0x38] sm:$0xff]  ;;  %v672_v55 = vpack.c.bf16 %v399_v52, %v397_v50  ;;  %v401_v57 = vld [vmem:[%s1628_s3 + $0x20] sm:$0xff] }
   0xe   :  { %v674_v56 = vpack.c.bf16 %v404_v54, %v402_v53  ;;  %v403_v58 = vld [vmem:[%s1628_s3 + $0x30] sm:$0xff]  ;;  %v406_v59 = vld [vmem:[%s1628_s3 + $0x48] sm:$0xff]  ;;  %v408_v60 = vld [vmem:[%s1628_s3 + $0x58] sm:$0xff] }
   0xf   :  { %671 = vmatprep.subr.bf16.mxu0 %v670_v51  ;;  %734 = vmatprep.subr.bf16.mxu1 %v670_v51  ;;  %v676_v61 = vpack.c.bf16 %v403_v58, %v401_v57  ;;  %v678_v62 = vpack.c.bf16 %v408_v60, %v406_v59  ;;  %v405_v63 = vld [vmem:[%s1628_s3 + $0x40] sm:$0xff]  ;;  %v407_v3 = vld [vmem:[%s1628_s3 + $0x50] sm:$0xff]  ;;  %v410_v7 = vld [vmem:[%s1628_s3 + $0x68] sm:$0xff] }
  0x10   :  { %64 = vadd.xlane.f32.xlu0 %v63_v22  ;;  %673 = vmatpush1.bf16.msra.mxu0 %v672_v55  ;;  %v412_v10 = vld [vmem:[%s1628_s3 + $0x78] sm:$0xff]  ;;  %v680_v11 = vpack.c.bf16 %v407_v3, %v405_v63  ;;  %v409_v17 = vld [vmem:[%s1628_s3 + $0x60] sm:$0xff]  ;;  %v411_v22 = vld [vmem:[%s1628_s3 + $0x70] sm:$0xff] }
  0x11   :  { %88 = vadd.xlane.f32.xlu1 %v87_v23  ;;  %750 = vmatpush1.bf16.msra.mxu1 %v672_v55  ;;  %v682_v16 = vpack.c.bf16 %v412_v10, %v410_v7  ;;  %v414_v23 = vld [vmem:[%s1628_s3 + $0x88] sm:$0xff]  ;;  %v417_v49 = vld [vmem:[%s1628_s3 + $0xa0] sm:$0xff]  ;;  %v419_v50 = vld [vmem:[%s1628_s3 + $0xb0] sm:$0xff] }
  0x12   :  { %675 = vmatprep.subr.bf16.mxu0 %v674_v56  ;;  %735 = vmatprep.subr.bf16.mxu1 %v674_v56  ;;  %v422_v51 = vld [vmem:[%s1628_s3 + $0xc8] sm:$0xff]  ;;  %v424_v52 = vld [vmem:[%s1628_s3 + $0xd8] sm:$0xff]  ;;  %v692_v53 = vpack.c.bf16 %v419_v50, %v417_v49  ;;  %v421_v55 = vld [vmem:[%s1628_s3 + $0xc0] sm:$0xff] }
  0x13   :  { %v694_v54 = vpack.c.bf16 %v424_v52, %v422_v51  ;;  %v423_v56 = vld [vmem:[%s1628_s3 + $0xd0] sm:$0xff]  ;;  %v426_v57 = vld [vmem:[%s1628_s3 + $0xe8] sm:$0xff]  ;;  %v428_v58 = vld [vmem:[%s1628_s3 + $0xf8] sm:$0xff] }
  0x14   :  { %67 = vadd.xlane.f32.xlu0 %v66_v28  ;;  %677 = vmatpush1.bf16.msra.mxu0 %v676_v61  ;;  %v416_v28 = vld [vmem:[%s1628_s3 + $0x98] sm:$0xff]  ;;  %v696_v59 = vpack.c.bf16 %v423_v56, %v421_v55  ;;  %v698_v60 = vpack.c.bf16 %v428_v58, %v426_v57  ;;  %v430_v63 = vld [vmem:[%s1628_s3 + $0x108] sm:$0xff] }
  0x15   :  { %91 = vadd.xlane.f32.xlu1 %v90_v29  ;;  %751 = vmatpush1.bf16.msra.mxu1 %v676_v61  ;;  %v684_v29 = vpack.c.bf16 %v411_v22, %v409_v17  ;;  %v425_v61 = vld [vmem:[%s1628_s3 + $0xe0] sm:$0xff]  ;;  %v432_v3 = vld [vmem:[%s1628_s3 + $0x118] sm:$0xff]  ;;  %v434_v17 = vld [vmem:[%s1628_s3 + $0x128] sm:$0xff] }
  0x16   :  { %679 = vmatprep.subr.bf16.mxu0 %v678_v62  ;;  %736 = vmatprep.subr.bf16.mxu1 %v678_v62  ;;  %v427_v62 = vld [vmem:[%s1628_s3 + $0xf0] sm:$0xff]  ;;  %v702_v10 = vpack.c.bf16 %v432_v3, %v430_v63  ;;  %v436_v22 = vld [vmem:[%s1628_s3 + $0x138] sm:$0xff] }
  0x17   :  { %v700_v7 = vpack.c.bf16 %v427_v62, %v425_v61 }
  0x18   :  { %70 = vadd.xlane.f32.xlu0 %v69_v34  ;;  %681 = vmatpush1.bf16.msra.mxu0 %v680_v11  ;;  %v686_v34 = vpack.c.bf16 %v416_v28, %v414_v23  ;;  %v706_v28 = vpack.c.bf16 %v436_v22, %v434_v17 }
  0x19   :  { %94 = vadd.xlane.f32.xlu1 %v93_v35  ;;  %752 = vmatpush1.bf16.msra.mxu1 %v680_v11  ;;  %v413_v35 = vld [vmem:[%s1628_s3 + $0x80] sm:$0xff] }
  0x1a   :  { %683 = vmatprep.subr.bf16.mxu0 %v682_v16  ;;  %737 = vmatprep.subr.bf16.mxu1 %v682_v16  ;;  %v429_v11 = vld [vmem:[%s1628_s3 + $0x100] sm:$0xff]  ;;  %v431_v16 = vld [vmem:[%s1628_s3 + $0x110] sm:$0xff] }
  0x1b   :  { %v704_v23 = vpack.c.bf16 %v431_v16, %v429_v11 }
  0x1c   :  { %73 = vadd.xlane.f32.xlu0 %v72_v40  ;;  %v415_v40 = vld [vmem:[%s1628_s3 + $0x90] sm:$0xff]  ;;  %685 = vmatpush1.bf16.msra.mxu0 %v684_v29 }
  0x1d   :  { %97 = vadd.xlane.f32.xlu1 %v96_v41  ;;  %v418_v41 = vld [vmem:[%s1628_s3 + $0xa8] sm:$0xff]  ;;  %753 = vmatpush1.bf16.msra.mxu1 %v684_v29  ;;  %v433_v29 = vld [vmem:[%s1628_s3 + $0x120] sm:$0xff] }
  0x1e   :  { %687 = vmatprep.subr.bf16.mxu0 %v686_v34  ;;  %738 = vmatprep.subr.bf16.mxu1 %v686_v34  ;;  %v435_v34 = vld [vmem:[%s1628_s3 + $0x130] sm:$0xff] }
  0x20   :  { %76 = vadd.xlane.f32.xlu0 %v75_v46  ;;  %v420_v46 = vld [vmem:[%s1628_s3 + $0xb8] sm:$0xff] }
  0x21   :  { %100 = vadd.xlane.f32.xlu1 %v99_v47  ;;  %v688_v47 = vpack.c.bf16 %v415_v40, %v413_v35  ;;  %v690_v48 = vpack.c.bf16 %v420_v46, %v418_v41  ;;  %v438_v35 = vld [vmem:[%s1628_s3 + $0x148] sm:$0xff]  ;;  %v440_v40 = vld [vmem:[%s1628_s3 + $0x158] sm:$0xff]  ;;  %v708_v41 = vpack.c.bf16 %v435_v34, %v433_v29 }
  0x22   :  { %v710_v46 = vpack.c.bf16 %v440_v40, %v438_v35 }
  0x23   :  { %689 = vmatpush1.bf16.msra.mxu0 %v688_v47  ;;  %754 = vmatpush1.bf16.msra.mxu1 %v688_v47  ;;  %v437_v47 = vld [vmem:[%s1628_s3 + $0x140] sm:$0xff] }
  0x24   :  { %691 = vmatprep.subr.bf16.mxu0 %v690_v48  ;;  %739 = vmatprep.subr.bf16.mxu1 %v690_v48  ;;  %v439_v48 = vld [vmem:[%s1628_s3 + $0x150] sm:$0xff] }
  0x25   :  { %v712_v49 = vpack.c.bf16 %v439_v48, %v437_v47 }
  0x27   :  { %693 = vmatpush1.bf16.msra.mxu0 %v692_v53  ;;  %755 = vmatpush1.bf16.msra.mxu1 %v692_v53 }
  0x28   :  { %695 = vmatprep.subr.bf16.mxu0 %v694_v54  ;;  %740 = vmatprep.subr.bf16.mxu1 %v694_v54 }
  0x2b   :  { %697 = vmatpush1.bf16.msra.mxu0 %v696_v59  ;;  %756 = vmatpush1.bf16.msra.mxu1 %v696_v59 }
  0x2c   :  { %699 = vmatprep.subr.bf16.mxu0 %v698_v60  ;;  %741 = vmatprep.subr.bf16.mxu1 %v698_v60 }
  0x2f   :  { %701 = vmatpush1.bf16.msra.mxu0 %v700_v7  ;;  %757 = vmatpush1.bf16.msra.mxu1 %v700_v7 }
  0x30   :  { %703 = vmatprep.subr.bf16.mxu0 %v702_v10  ;;  %742 = vmatprep.subr.bf16.mxu1 %v702_v10 }
  0x33   :  { %705 = vmatpush1.bf16.msra.mxu0 %v704_v23  ;;  %758 = vmatpush1.bf16.msra.mxu1 %v704_v23 }
  0x34   :  { %707 = vmatprep.subr.bf16.mxu0 %v706_v28  ;;  %743 = vmatprep.subr.bf16.mxu1 %v706_v28 }
  0x37   :  { %709 = vmatpush1.bf16.msra.mxu0 %v708_v41  ;;  %759 = vmatpush1.bf16.msra.mxu1 %v708_v41 }
  0x38   :  { %711 = vmatprep.subr.bf16.mxu0 %v710_v46  ;;  %744 = vmatprep.subr.bf16.mxu1 %v710_v46 }
  0x3b   :  { %713 = vmatpush1.bf16.msra.mxu0 %v712_v49  ;;  %760 = vmatpush1.bf16.msra.mxu1 %v712_v49 }
  0x91   :  { %v56_v50 = vpop.xlane.xlu0 %55 }
  0x92   :  { %v103_v51 = vmul.f32 0.00390625, %v56_v50  ;;  %v59_v52 = vpop.xlane.xlu1 %58 }
  0x93   :  { %v104_v53 = vmul.f32 0.00390625, %v59_v52 }
  0x94   :  { %v1153_v54 = vsub.f32 %v831_v0, %v103_v51  ;;  %v1156_v55 = vsub.f32 %v836_v1, %v103_v51 }
  0x95   :  { %v1159_v56 = vsub.f32 %v841_v2, %v104_v53  ;;  %v1162_v57 = vsub.f32 %v848_v4, %v104_v53  ;;  %v80_v58 = vpop.xlane.xlu0 %79 }
  0x96   :  { %v111_v59 = vmul.f32 0.00390625, %v80_v58  ;;  %v83_v60 = vpop.xlane.xlu1 %82  ;;  %v151_v61 = vmul.f32 %v1153_v54, %v1153_v54  ;;  %v152_v62 = vmul.f32 %v1156_v55, %v1156_v55 }
  0x97   :  { %v112_v0 = vmul.f32 0.00390625, %v83_v60  ;;  %v153_v1 = vmul.f32 %v1159_v56, %v1159_v56  ;;  %v154_v2 = vmul.f32 %v1162_v57, %v1162_v57 }
  0x98   :  { %v1173_v63 = vsub.f32 %v853_v5, %v111_v59  ;;  %v1176_v4 = vsub.f32 %v858_v6, %v111_v59  ;;  %v183_v3 = vadd.f32 %v152_v62, %v151_v61 }
  0x99   :  { %v1179_v7 = vsub.f32 %v865_v8, %v112_v0  ;;  %v1182_v10 = vsub.f32 %v870_v9, %v112_v0  ;;  %v62_v11 = vpop.xlane.xlu0 %61  ;;  %v186_v22 = vadd.f32 %v154_v2, %v153_v1 }
  0x9a   :  { %v105_v16 = vmul.f32 0.00390625, %v62_v11  ;;  %184 = vadd.xlane.f32.xlu0 %v183_v3  ;;  %v86_v17 = vpop.xlane.xlu1 %85  ;;  %v167_v23 = vmul.f32 %v1173_v63, %v1173_v63  ;;  %v168_v5 = vmul.f32 %v1176_v4, %v1176_v4 }
  0x9b   :  { %v113_v6 = vmul.f32 0.00390625, %v86_v17  ;;  %v169_v28 = vmul.f32 %v1179_v7, %v1179_v7  ;;  %v170_v8 = vmul.f32 %v1182_v10, %v1182_v10 }
  0x9c   :  { %v1193_v9 = vsub.f32 %v879_v12, %v105_v16  ;;  %v1196_v29 = vsub.f32 %v884_v13, %v105_v16  ;;  %v207_v34 = vadd.f32 %v168_v5, %v167_v23 }
  0x9d   :  { %v1199_v35 = vsub.f32 %v889_v14, %v113_v6  ;;  %v1202_v40 = vsub.f32 %v894_v15, %v113_v6  ;;  %v65_v41 = vpop.xlane.xlu0 %64  ;;  %v210_v48 = vadd.f32 %v170_v8, %v169_v28  ;;  %v442_v28 = vld [vmem:[%s1628_s3 + $0x168] sm:$0xff]  ;;  %v444_v8 = vld [vmem:[%s1628_s3 + $0x178] sm:$0xff] }
  0x9e   :  { %v106_v46 = vmul.f32 0.00390625, %v65_v41  ;;  %187 = vadd.xlane.f32.xlu0 %v186_v22  ;;  %208 = vadd.xlane.f32.xlu1 %v207_v34  ;;  %v89_v47 = vpop.xlane.xlu1 %88  ;;  %v155_v12 = vmul.f32 %v1193_v9, %v1193_v9  ;;  %v156_v13 = vmul.f32 %v1196_v29, %v1196_v29 }
  0x9f   :  { %v114_v49 = vmul.f32 0.00390625, %v89_v47  ;;  %v171_v14 = vmul.f32 %v1199_v35, %v1199_v35  ;;  %v172_v15 = vmul.f32 %v1202_v40, %v1202_v40  ;;  %v714_v47 = vpack.c.bf16 %v444_v8, %v442_v28 }
  0xa0   :  { %v1213_v50 = vsub.f32 %v903_v18, %v106_v46  ;;  %v1216_v51 = vsub.f32 %v908_v19, %v106_v46  ;;  %v189_v52 = vadd.f32 %v156_v13, %v155_v12  ;;  %v443_v12 = vld [vmem:[%s1628_s3 + $0x170] sm:$0xff] }
  0xa1   :  { %v1219_v53 = vsub.f32 %v913_v20, %v114_v49  ;;  %v1222_v58 = vsub.f32 %v918_v21, %v114_v49  ;;  %v68_v59 = vpop.xlane.xlu0 %67  ;;  %v213_v62 = vadd.f32 %v172_v15, %v171_v14  ;;  %715 = vmatprep.subr.bf16.mxu0 %v714_v47  ;;  %745 = vmatprep.subr.bf16.mxu1 %v714_v47  ;;  %v450_v47 = vld [vmem:[%s1628_s3 + $0x1a8] sm:$0xff] }
  0xa2   :  { %v107_v60 = vmul.f32 0.00390625, %v68_v59  ;;  %211 = vadd.xlane.f32.xlu1 %v210_v48  ;;  %190 = vadd.xlane.f32.xlu0 %v189_v52  ;;  %v92_v61 = vpop.xlane.xlu1 %91  ;;  %v157_v18 = vmul.f32 %v1213_v50, %v1213_v50  ;;  %v158_v19 = vmul.f32 %v1216_v51, %v1216_v51  ;;  %v441_v48 = vld [vmem:[%s1628_s3 + $0x160] sm:$0xff] }
  0xa3   :  { %v115_v0 = vmul.f32 0.00390625, %v92_v61  ;;  %v173_v20 = vmul.f32 %v1219_v53, %v1219_v53  ;;  %v174_v21 = vmul.f32 %v1222_v58, %v1222_v58  ;;  %v716_v14 = vpack.c.bf16 %v443_v12, %v441_v48  ;;  %v452_v48 = vld [vmem:[%s1628_s3 + $0x1b8] sm:$0xff] }
  0xa4   :  { %v1233_v1 = vsub.f32 %v927_v24, %v107_v60  ;;  %v1236_v2 = vsub.f32 %v932_v25, %v107_v60  ;;  %v192_v3 = vadd.f32 %v158_v19, %v157_v18 }
  0xa5   :  { %v1239_v11 = vsub.f32 %v937_v26, %v115_v0  ;;  %v1242_v16 = vsub.f32 %v942_v27, %v115_v0  ;;  %v71_v17 = vpop.xlane.xlu0 %70  ;;  %v216_v5 = vadd.f32 %v174_v21, %v173_v20  ;;  %717 = vmatpush1.bf16.msra.mxu0 %v716_v14  ;;  %v446_v0 = vld [vmem:[%s1628_s3 + $0x188] sm:$0xff]  ;;  %v448_v20 = vld [vmem:[%s1628_s3 + $0x198] sm:$0xff]  ;;  %761 = vmatpush1.bf16.msra.mxu1 %v716_v14  ;;  %v449_v14 = vld [vmem:[%s1628_s3 + $0x1a0] sm:$0xff] }
  0xa6   :  { %v108_v22 = vmul.f32 0.00390625, %v71_v17  ;;  %214 = vadd.xlane.f32.xlu1 %v213_v62  ;;  %193 = vadd.xlane.f32.xlu0 %v192_v3  ;;  %v95_v23 = vpop.xlane.xlu1 %94  ;;  %v159_v24 = vmul.f32 %v1233_v1, %v1233_v1  ;;  %v160_v25 = vmul.f32 %v1236_v2, %v1236_v2  ;;  %v718_v17 = vpack.c.bf16 %v448_v20, %v446_v0  ;;  %v455_v0 = vld [vmem:[%s1628_s3 + $0x1d0] sm:$0xff] }
  0xa7   :  { %v116_v6 = vmul.f32 0.00390625, %v95_v23  ;;  %v175_v26 = vmul.f32 %v1239_v11, %v1239_v11  ;;  %v176_v27 = vmul.f32 %v1242_v16, %v1242_v16  ;;  %v447_v23 = vld [vmem:[%s1628_s3 + $0x190] sm:$0xff] }
  0xa8   :  { %v1259_v34 = vsub.f32 %v951_v30, %v108_v22  ;;  %v1262_v41 = vsub.f32 %v956_v31, %v108_v22  ;;  %v195_v46 = vadd.f32 %v160_v25, %v159_v24  ;;  %v445_v22 = vld [vmem:[%s1628_s3 + $0x180] sm:$0xff]  ;;  %719 = vmatprep.subr.bf16.mxu0 %v718_v17  ;;  %746 = vmatprep.subr.bf16.mxu1 %v718_v17  ;;  %v460_v17 = vld [vmem:[%s1628_s3 + $0x1f8] sm:$0xff] }
  0xa9   :  { %v1271_v13 = vsub.f32 %v961_v32, %v116_v6  ;;  %v1274_v49 = vsub.f32 %v966_v33, %v116_v6  ;;  %v74_v30 = vpop.xlane.xlu0 %73  ;;  %v219_v52 = vadd.f32 %v176_v27, %v175_v26  ;;  %v720_v25 = vpack.c.bf16 %v447_v23, %v445_v22  ;;  %v457_v23 = vld [vmem:[%s1628_s3 + $0x1e0] sm:$0xff] }
  0xaa   :  { %v109_v31 = vmul.f32 0.00390625, %v74_v30  ;;  %217 = vadd.xlane.f32.xlu1 %v216_v5  ;;  %196 = vadd.xlane.f32.xlu0 %v195_v46  ;;  %v98_v15 = vpop.xlane.xlu1 %97  ;;  %v161_v59 = vmul.f32 %v1259_v34, %v1259_v34  ;;  %v162_v60 = vmul.f32 %v1262_v41, %v1262_v41 }
  0xab   :  { %v117_v61 = vmul.f32 0.00390625, %v98_v15  ;;  %v177_v32 = vmul.f32 %v1271_v13, %v1271_v13  ;;  %v178_v33 = vmul.f32 %v1274_v49, %v1274_v49  ;;  %721 = vmatpush1.bf16.msra.mxu0 %v720_v25  ;;  %762 = vmatpush1.bf16.msra.mxu1 %v720_v25  ;;  %v312_v25 = vlaneseq }
  0xac   :  { %v1285_v62 = vsub.f32 %v975_v36, %v109_v31  ;;  %v1288_v18 = vsub.f32 %v980_v37, %v109_v31  ;;  %v198_v19 = vadd.f32 %v162_v60, %v161_v59  ;;  %v451_v31 = vld [vmem:[%s1628_s3 + $0x1b0] sm:$0xff] }
  0xad   :  { %v1297_v21 = vsub.f32 %v985_v38, %v117_v61  ;;  %v1300_v36 = vsub.f32 %v990_v39, %v117_v61  ;;  %v77_v3 = vpop.xlane.xlu0 %76  ;;  %v222_v37 = vadd.f32 %v178_v33, %v177_v32  ;;  %v454_v61 = vld [vmem:[%s1628_s3 + $0x1c8] sm:$0xff]  ;;  %v456_v32 = vld [vmem:[%s1628_s3 + $0x1d8] sm:$0xff] }
  0xae   :  { %v110_v5 = vmul.f32 0.00390625, %v77_v3  ;;  %220 = vadd.xlane.f32.xlu1 %v219_v52  ;;  %199 = vadd.xlane.f32.xlu0 %v198_v19  ;;  %v101_v24 = vpop.xlane.xlu1 %100  ;;  %v163_v38 = vmul.f32 %v1285_v62, %v1285_v62  ;;  %v164_v39 = vmul.f32 %v1288_v18, %v1288_v18  ;;  %v726_v33 = vpack.c.bf16 %v456_v32, %v454_v61  ;;  %v453_v19 = vld [vmem:[%s1628_s3 + $0x1c0] sm:$0xff] }
  0xaf   :  { %v118_v6 = vmul.f32 0.00390625, %v101_v24  ;;  %v179_v26 = vmul.f32 %v1297_v21, %v1297_v21  ;;  %v180_v27 = vmul.f32 %v1300_v36, %v1300_v36  ;;  %v728_v3 = vpack.c.bf16 %v455_v0, %v453_v19  ;;  %v52_v61 = vld [vmem:[%s1629_s1] sm:$0x3] }
  0xb0   :  { %v1317_v28 = vsub.f32 %v999_v42, %v110_v5  ;;  %v1320_v8 = vsub.f32 %v1004_v43, %v110_v5  ;;  %v201_v46 = vadd.f32 %v164_v39, %v163_v38  ;;  %v722_v43 = vpack.c.bf16 %v452_v48, %v450_v47  ;;  %v459_v5 = vld [vmem:[%s1628_s3 + $0x1f0] sm:$0xff] }
  0xb1   :  { %v1329_v12 = vsub.f32 %v1009_v44, %v118_v6  ;;  %v1332_v42 = vsub.f32 %v1014_v45, %v118_v6  ;;  %v225_v30 = vadd.f32 %v180_v27, %v179_v26  ;;  %v724_v45 = vpack.c.bf16 %v451_v31, %v449_v14 }
  0xb2   :  { %223 = vadd.xlane.f32.xlu1 %v222_v37  ;;  %202 = vadd.xlane.f32.xlu0 %v201_v46  ;;  %v165_v15 = vmul.f32 %v1317_v28, %v1317_v28  ;;  %v166_v44 = vmul.f32 %v1320_v8, %v1320_v8  ;;  %v458_v37 = vld [vmem:[%s1628_s3 + $0x1e8] sm:$0xff]  ;;  %v732_v24 = vpack.c.bf16 %v459_v5, %v457_v23  ;;  %v313_v48 = vshrl.u32 %v312_v25, 7 }
  0xb3   :  { %v181_v52 = vmul.f32 %v1329_v12, %v1329_v12  ;;  %v182_v59 = vmul.f32 %v1332_v42, %v1332_v42  ;;  %723 = vmatprep.subr.bf16.mxu0 %v722_v43  ;;  %747 = vmatprep.subr.bf16.mxu1 %v722_v43  ;;  %v730_v22 = vpack.c.bf16 %v460_v17, %v458_v37 }
  0xb4   :  { %v204_v60 = vadd.f32 %v166_v44, %v165_v15  ;;  %725 = vmatpush1.bf16.msra.mxu0 %v724_v45  ;;  %763 = vmatpush1.bf16.msra.mxu1 %v724_v45  ;;  %v1372_v45 = vsub.s32 0, %v313_v48 }
  0xb5   :  { %v228_v20 = vadd.f32 %v182_v59, %v181_v52  ;;  %727 = vmatprep.subr.bf16.mxu0 %v726_v33  ;;  %748 = vmatprep.subr.bf16.mxu1 %v726_v33  ;;  %v1374_v52 = vsub.s32 1, %v313_v48 }
  0xb6   :  { %226 = vadd.xlane.f32.xlu1 %v225_v30  ;;  %205 = vadd.xlane.f32.xlu0 %v204_v60 }
  0xb7   :  { %v1386_v37 = vrot.slane %v52_v61, %v1374_v52 }
  0xb8   :  { %729 = vmatpush1.bf16.msra.mxu0 %v728_v3  ;;  %764 = vmatpush1.bf16.msra.mxu1 %v728_v3  ;;  %v1383_v3 = vrot.slane %v52_v61, %v1372_v45 }
  0xb9   :  { %731 = vmatprep.subr.bf16.mxu0 %v730_v22  ;;  %749 = vmatprep.subr.bf16.mxu1 %v730_v22 }
  0xba   :  { %229 = vadd.xlane.f32.xlu1 %v228_v20  ;;  %v53_v20 = vld [vmem:[%s1630_s2] sm:$0x3] }
  0xbb   :  { %v1393_v25 = vrot.slane %v53_v20, %v1374_v52 }
  0xbc   :  { %733 = vmatpush1.bf16.msra.mxu0 %v732_v24  ;;  %765 = vmatpush1.bf16.msra.mxu1 %v732_v24 }
 0x127   :  { %v185_v38 = vpop.xlane.xlu0 %184 }
 0x128   :  { %v231_v39 = vmul.f32 0.00390625, %v185_v38 }
 0x12a   :  { %v247_v6 = vadd.f32 1e-05, %v231_v39  ;;  %v1390_v39 = vrot.slane %v53_v20, %v1372_v45 }
 0x12b   :  { %v209_v26 = vpop.xlane.xlu1 %208  ;;  %v188_v27 = vpop.xlane.xlu0 %187 }
 0x12c   :  { %766 = vrsqrt.f32 %v247_v6  ;;  %v239_v46 = vmul.f32 0.00390625, %v209_v26  ;;  %v232_v47 = vmul.f32 0.00390625, %v188_v27 }
 0x12e   :  { %v255_v30 = vadd.f32 1e-05, %v239_v46  ;;  %v248_v43 = vadd.f32 1e-05, %v232_v47 }
 0x12f   :  { %v212_v14 = vpop.xlane.xlu1 %211  ;;  %v191_v31 = vpop.xlane.xlu0 %190 }
 0x130   :  { %768 = vrsqrt.f32 %v255_v30  ;;  %v240_v15 = vmul.f32 0.00390625, %v212_v14  ;;  %v233_v44 = vmul.f32 0.00390625, %v191_v31 }
 0x131   :  { %770 = vrsqrt.f32 %v248_v43 }
 0x132   :  { %v256_v59 = vadd.f32 1e-05, %v240_v15  ;;  %v249_v60 = vadd.f32 1e-05, %v233_v44 }
 0x133   :  { %v215_v32 = vpop.xlane.xlu1 %214  ;;  %v194_v33 = vpop.xlane.xlu0 %193 }
 0x134   :  { %772 = vrsqrt.f32 %v256_v59  ;;  %v241_v19 = vmul.f32 0.00390625, %v215_v32  ;;  %v234_v0 = vmul.f32 0.00390625, %v194_v33 }
 0x135   :  { %774 = vrsqrt.f32 %v249_v60 }
 0x136   :  { %v767_v17 = vpop.eup %766  ;;  %v257_v22 = vadd.f32 1e-05, %v241_v19  ;;  %v250_v23 = vadd.f32 1e-05, %v234_v0 }
 0x137   :  { %v218_v5 = vpop.xlane.xlu1 %217  ;;  %v197_v24 = vpop.xlane.xlu0 %196  ;;  %v280_v38 = vmul.f32 %v767_v17, %v1156_v55  ;;  %v279_v6 = vmul.f32 %v767_v17, %v1153_v54 }
 0x138   :  { %776 = vrsqrt.f32 %v257_v22  ;;  %v242_v26 = vmul.f32 0.00390625, %v218_v5  ;;  %v235_v27 = vmul.f32 0.00390625, %v197_v24 }
 0x139   :  { %778 = vrsqrt.f32 %v250_v23  ;;  %v323_v46 = vmul.f32 %v1386_v37, %v280_v38  ;;  %v322_v47 = vmul.f32 %v1383_v3, %v279_v6 }
 0x13a   :  { %v769_v48 = vpop.eup %768  ;;  %v258_v30 = vadd.f32 1e-05, %v242_v26  ;;  %v251_v43 = vadd.f32 1e-05, %v235_v27 }
 0x13b   :  { %v771_v55 = vpop.eup %770  ;;  %v221_v14 = vpop.xlane.xlu1 %220  ;;  %v366_v15 = vadd.f32 %v1393_v25, %v323_v46  ;;  %v365_v44 = vadd.f32 %v1390_v39, %v322_v47  ;;  %v296_v54 = vmul.f32 %v769_v48, %v1176_v4  ;;  %v295_v59 = vmul.f32 %v769_v48, %v1173_v63 }
 0x13c   :  { %v200_v31 = vpop.xlane.xlu0 %199  ;;  %780 = vrsqrt.f32 %v258_v30  ;;  %v243_v60 = vmul.f32 0.00390625, %v221_v14  ;;  %v282_v32 = vmul.f32 %v771_v55, %v1162_v57  ;;  %v281_v19 = vmul.f32 %v771_v55, %v1159_v56 }
 0x13d   :  { %v236_v61 = vmul.f32 0.00390625, %v200_v31  ;;  %782 = vrsqrt.f32 %v251_v43  ;;  %537 = vmatprep.mubr.f32.mxu0 %v366_v15  ;;  %v339_v33 = vmul.f32 %v1386_v37, %v296_v54  ;;  %v338_v0 = vmul.f32 %v1383_v3, %v295_v59 }
 0x13e   :  { %v773_v20 = vpop.eup %772  ;;  %v259_v17 = vadd.f32 1e-05, %v243_v60  ;;  %538 = vmatmul.mubr.f32.vlgmr.msra.gmra.mrb[0].mxu0 %v365_v44  ;;  %v325_v4 = vmul.f32 %v1386_v37, %v282_v32  ;;  %v324_v57 = vmul.f32 %v1383_v3, %v281_v19 }
 0x13f   :  { %v252_v22 = vadd.f32 1e-05, %v236_v61  ;;  %v775_v63 = vpop.eup %774  ;;  %v224_v23 = vpop.xlane.xlu1 %223  ;;  %v382_v24 = vadd.f32 %v1393_v25, %v339_v33  ;;  %v381_v38 = vadd.f32 %v1390_v39, %v338_v0  ;;  %v298_v6 = vmul.f32 %v773_v20, %v1182_v10 }
 0x140   :  { %v203_v5 = vpop.xlane.xlu0 %202  ;;  %784 = vrsqrt.f32 %v259_v17  ;;  %v244_v56 = vmul.f32 0.00390625, %v224_v23  ;;  %v368_v27 = vadd.f32 %v1393_v25, %v325_v4  ;;  %v367_v46 = vadd.f32 %v1390_v39, %v324_v57 }
 0x141   :  { %v237_v26 = vmul.f32 0.00390625, %v203_v5  ;;  %786 = vrsqrt.f32 %v252_v22  ;;  %585 = vmatprep.mubr.f32.mxu1 %v382_v24  ;;  %v284_v47 = vmul.f32 %v775_v63, %v1196_v29  ;;  %v341_v48 = vmul.f32 %v1386_v37, %v298_v6 }
 0x142   :  { %v777_v30 = vpop.eup %776  ;;  %v260_v43 = vadd.f32 1e-05, %v244_v56  ;;  %543 = vmatprep.mubr.f32.mxu0 %v368_v27  ;;  %586 = vmatmul.mubr.f32.vlgmr.msra.gmra.mrb[0].mxu1 %v381_v38  ;;  %v283_v10 = vmul.f32 %v775_v63, %v1193_v9  ;;  %v297_v14 = vmul.f32 %v773_v20, %v1179_v7 }
 0x143   :  { %v253_v55 = vadd.f32 1e-05, %v237_v26  ;;  %v779_v31 = vpop.eup %778  ;;  %544 = vmatmul.mubr.f32.gmra.mrb[2].mxu0 %v367_v46  ;;  %v227_v15 = vpop.xlane.xlu1 %226  ;;  %v327_v54 = vmul.f32 %v1386_v37, %v284_v47  ;;  %v384_v59 = vadd.f32 %v1393_v25, %v341_v48  ;;  %v300_v29 = vmul.f32 %v777_v30, %v1202_v40 }
 0x144   :  { %v206_v44 = vpop.xlane.xlu0 %205  ;;  %v299_v60 = vmul.f32 %v777_v30, %v1199_v35  ;;  %788 = vrsqrt.f32 %v260_v43  ;;  %v245_v61 = vmul.f32 0.00390625, %v227_v15  ;;  %v326_v33 = vmul.f32 %v1383_v3, %v283_v10 }
 0x145   :  { %v238_v32 = vmul.f32 0.00390625, %v206_v44  ;;  %790 = vrsqrt.f32 %v253_v55  ;;  %v370_v7 = vadd.f32 %v1393_v25, %v327_v54  ;;  %591 = vmatprep.mubr.f32.mxu1 %v384_v59  ;;  %v340_v9 = vmul.f32 %v1383_v3, %v297_v14 }
 0x146   :  { %v286_v19 = vmul.f32 %v779_v31, %v1216_v51  ;;  %v781_v0 = vpop.eup %780  ;;  %v261_v20 = vadd.f32 1e-05, %v245_v61  ;;  %v369_v40 = vadd.f32 %v1390_v39, %v326_v33  ;;  %v343_v35 = vmul.f32 %v1386_v37, %v300_v29 }
 0x147   :  { %v254_v17 = vadd.f32 1e-05, %v238_v32  ;;  %v783_v22 = vpop.eup %782  ;;  %549 = vmatprep.mubr.f32.mxu0 %v370_v7  ;;  %v383_v4 = vadd.f32 %v1390_v39, %v340_v9  ;;  %v230_v63 = vpop.xlane.xlu1 %229  ;;  %v285_v5 = vmul.f32 %v779_v31, %v1213_v50  ;;  %v342_v24 = vmul.f32 %v1383_v3, %v299_v60 }
 0x148   :  { %v329_v23 = vmul.f32 %v1386_v37, %v286_v19  ;;  %792 = vrsqrt.f32 %v261_v20  ;;  %550 = vmatmul.mubr.f32.gmra.mrb[4].mxu0 %v369_v40  ;;  %v246_v51 = vmul.f32 0.00390625, %v230_v63  ;;  %v386_v57 = vadd.f32 %v1393_v25, %v343_v35 }
 0x149   :  { %v288_v38 = vmul.f32 %v783_v22, %v1236_v2  ;;  %794 = vrsqrt.f32 %v254_v17  ;;  %592 = vmatmul.mubr.f32.gmra.mrb[2].mxu1 %v383_v4  ;;  %v328_v56 = vmul.f32 %v1383_v3, %v285_v5  ;;  %v385_v26 = vadd.f32 %v1390_v39, %v342_v24 }
 0x14a   :  { %v372_v6 = vadd.f32 %v1393_v25, %v329_v23  ;;  %v785_v27 = vpop.eup %784  ;;  %v262_v46 = vadd.f32 1e-05, %v246_v51  ;;  %597 = vmatprep.mubr.f32.mxu1 %v386_v57  ;;  %v302_v47 = vmul.f32 %v781_v0, %v1222_v58  ;;  %v287_v48 = vmul.f32 %v783_v22, %v1233_v1 }
 0x14b   :  { %v331_v50 = vmul.f32 %v1386_v37, %v288_v38  ;;  %v787_v30 = vpop.eup %786  ;;  %v371_v2 = vadd.f32 %v1390_v39, %v328_v56  ;;  %v301_v43 = vmul.f32 %v781_v0, %v1219_v53  ;;  %v304_v55 = vmul.f32 %v785_v27, %v1242_v16 }
 0x14c   :  { %555 = vmatprep.mubr.f32.mxu0 %v372_v6  ;;  %v303_v10 = vmul.f32 %v785_v27, %v1239_v11  ;;  %796 = vrsqrt.f32 %v262_v46  ;;  %v345_v31 = vmul.f32 %v1386_v37, %v302_v47  ;;  %v330_v15 = vmul.f32 %v1383_v3, %v287_v48 }
 0x14d   :  { %v374_v14 = vadd.f32 %v1393_v25, %v331_v50  ;;  %556 = vmatmul.mubr.f32.gmra.mrb[6].mxu0 %v371_v2  ;;  %598 = vmatmul.mubr.f32.gmra.mrb[4].mxu1 %v385_v26  ;;  %v344_v58 = vmul.f32 %v1383_v3, %v301_v43  ;;  %v290_v1 = vmul.f32 %v787_v30, %v1262_v41 }
 0x14e   :  { %v347_v44 = vmul.f32 %v1386_v37, %v304_v55  ;;  %v789_v53 = vpop.eup %788  ;;  %v388_v16 = vadd.f32 %v1393_v25, %v345_v31  ;;  %v373_v11 = vadd.f32 %v1390_v39, %v330_v15  ;;  %v289_v54 = vmul.f32 %v787_v30, %v1259_v34 }
 0x14f   :  { %561 = vmatprep.mubr.f32.mxu0 %v374_v14  ;;  %v346_v59 = vmul.f32 %v1383_v3, %v303_v10  ;;  %v791_v29 = vpop.eup %790  ;;  %v387_v60 = vadd.f32 %v1390_v39, %v344_v58  ;;  %v333_v61 = vmul.f32 %v1386_v37, %v290_v1  ;;  %v306_v41 = vmul.f32 %v789_v53, %v1274_v49 }
 0x150   :  { %v390_v32 = vadd.f32 %v1393_v25, %v347_v44  ;;  %603 = vmatprep.mubr.f32.mxu1 %v388_v16  ;;  %v332_v33 = vmul.f32 %v1383_v3, %v289_v54  ;;  %v292_v9 = vmul.f32 %v791_v29, %v1288_v18  ;;  %v291_v34 = vmul.f32 %v791_v29, %v1285_v62 }
 0x151   :  { %v389_v7 = vadd.f32 %v1390_v39, %v346_v59  ;;  %562 = vmatmul.mubr.f32.gmra.mrb[8].mxu0 %v373_v11  ;;  %604 = vmatmul.mubr.f32.gmra.mrb[6].mxu1 %v387_v60  ;;  %v376_v19 = vadd.f32 %v1393_v25, %v333_v61  ;;  %v349_v0 = vmul.f32 %v1386_v37, %v306_v41 }
 0x152   :  { %v305_v20 = vmul.f32 %v789_v53, %v1271_v13  ;;  %v793_v17 = vpop.eup %792  ;;  %609 = vmatprep.mubr.f32.mxu1 %v390_v32  ;;  %v375_v49 = vadd.f32 %v1390_v39, %v332_v33  ;;  %v335_v40 = vmul.f32 %v1386_v37, %v292_v9  ;;  %v334_v35 = vmul.f32 %v1383_v3, %v291_v34 }
 0x153   :  { %v795_v22 = vpop.eup %794  ;;  %567 = vmatprep.mubr.f32.mxu0 %v376_v19  ;;  %v392_v62 = vadd.f32 %v1393_v25, %v349_v0  ;;  %v308_v4 = vmul.f32 %v793_v17, %v1300_v36  ;;  %v307_v63 = vmul.f32 %v793_v17, %v1297_v21 }
 0x154   :  { %v348_v18 = vmul.f32 %v1383_v3, %v305_v20  ;;  %v378_v13 = vadd.f32 %v1393_v25, %v335_v40  ;;  %v377_v23 = vadd.f32 %v1390_v39, %v334_v35  ;;  %v294_v5 = vmul.f32 %v795_v22, %v1320_v8 }
 0x155   :  { %v293_v24 = vmul.f32 %v795_v22, %v1317_v28  ;;  %568 = vmatmul.mubr.f32.gmra.mrb[10].mxu0 %v375_v49  ;;  %610 = vmatmul.mubr.f32.gmra.mrb[8].mxu1 %v389_v7  ;;  %v351_v57 = vmul.f32 %v1386_v37, %v308_v4  ;;  %v350_v38 = vmul.f32 %v1383_v3, %v307_v63 }
 0x156   :  { %v391_v51 = vadd.f32 %v1390_v39, %v348_v18  ;;  %v797_v6 = vpop.eup %796  ;;  %573 = vmatprep.mubr.f32.mxu0 %v378_v13  ;;  %615 = vmatprep.mubr.f32.mxu1 %v392_v62  ;;  %v337_v21 = vmul.f32 %v1386_v37, %v294_v5 }
 0x157   :  { %v336_v36 = vmul.f32 %v1383_v3, %v293_v24  ;;  %v394_v56 = vadd.f32 %v1393_v25, %v351_v57  ;;  %v310_v8 = vmul.f32 %v797_v6, %v1332_v42  ;;  %v309_v28 = vmul.f32 %v797_v6, %v1329_v12  ;;  %v461_v42 = vld [vmem:[%s1631_s4] sm:$0x3] }
 0x158   :  { %v380_v26 = vadd.f32 %v1393_v25, %v337_v21  ;;  %v393_v27 = vadd.f32 %v1390_v39, %v350_v38  ;;  %v1494_v30 = vrot.slane %v461_v42, %v1372_v45 }
 0x159   :  { %574 = vmatmul.mubr.f32.gmra.mrb[12].mxu0 %v377_v23  ;;  %616 = vmatmul.mubr.f32.gmra.mrb[10].mxu1 %v391_v51  ;;  %v379_v46 = vadd.f32 %v1390_v39, %v336_v36  ;;  %v353_v50 = vmul.f32 %v1386_v37, %v310_v8  ;;  %v352_v47 = vmul.f32 %v1383_v3, %v309_v28 }
 0x15a   :  { %579 = vmatprep.mubr.f32.mxu0 %v380_v26  ;;  %621 = vmatprep.mubr.f32.mxu1 %v394_v56  ;;  %v1497_v37 = vrot.slane %v461_v42, %v1374_v52 }
 0x15b   :  { %v396_v48 = vadd.f32 %v1393_v25, %v353_v50  ;;  %v395_v12 = vadd.f32 %v1390_v39, %v352_v47 }
 0x15d   :  { %580 = vmatmul.mubr.f32.gmra.mrb[14].mxu0 %v379_v46  ;;  %622 = vmatmul.mubr.f32.gmra.mrb[12].mxu1 %v393_v27 }
 0x15e   :  { %627 = vmatprep.mubr.f32.mxu1 %v396_v48 }
 0x161   :  { %628 = vmatmul.mubr.f32.gmra.mrb[14].mxu1 %v395_v12 }
 0x211   :  { %v539_v3 = vpop.f32.mrb[0].mxu0 }
 0x212   :  { %v540_v2 = vadd.f32 %v539_v3, %v1494_v30  ;;  %v541_v25 = vpop.f32.mrb[1].mxu0 }
 0x213   :  { %v542_v43 = vadd.f32 %v541_v25, %v1497_v37 }
 0x214   :  { %634 = vst [vmem:[%s1632_s5] sm:$0xff] %v540_v2 }
 0x215   :  { %635 = vst [vmem:[%s1632_s5 + $0x8] sm:$0xff] %v542_v43  ;;  %v587_v39 = vpop.f32.mrb[0].mxu1 }
 0x216   :  { %v545_v45 = vpop.f32.mrb[2].mxu0  ;;  %v588_v55 = vadd.f32 %v587_v39, %v1494_v30  ;;  %v589_v52 = vpop.f32.mrb[1].mxu1 }
 0x217   :  { %v546_v10 = vadd.f32 %v545_v45, %v1494_v30  ;;  %v547_v14 = vpop.f32.mrb[3].mxu0  ;;  %v590_v31 = vadd.f32 %v589_v52, %v1497_v37 }
 0x218   :  { %650 = vst [vmem:[%s1632_s5 + $0x80] sm:$0xff] %v588_v55  ;;  %v548_v15 = vadd.f32 %v547_v14, %v1497_v37 }
 0x219   :  { %636 = vst [vmem:[%s1632_s5 + $0x10] sm:$0xff] %v546_v10  ;;  %651 = vst [vmem:[%s1632_s5 + $0x88] sm:$0xff] %v590_v31 }
 0x21a   :  { %637 = vst [vmem:[%s1632_s5 + $0x18] sm:$0xff] %v548_v15 }
 0x21b   :  { %v551_v58 = vpop.f32.mrb[4].mxu0 }
 0x21c   :  { %v552_v1 = vadd.f32 %v551_v58, %v1494_v30  ;;  %v593_v44 = vpop.f32.mrb[2].mxu1  ;;  %v553_v53 = vpop.f32.mrb[5].mxu0 }
 0x21d   :  { %v594_v16 = vadd.f32 %v593_v44, %v1494_v30  ;;  %v554_v11 = vadd.f32 %v553_v53, %v1497_v37  ;;  %v595_v54 = vpop.f32.mrb[3].mxu1 }
 0x21e   :  { %638 = vst [vmem:[%s1632_s5 + $0x20] sm:$0xff] %v552_v1  ;;  %v596_v59 = vadd.f32 %v595_v54, %v1497_v37 }
 0x21f   :  { %652 = vst [vmem:[%s1632_s5 + $0x90] sm:$0xff] %v594_v16  ;;  %639 = vst [vmem:[%s1632_s5 + $0x28] sm:$0xff] %v554_v11 }
 0x220   :  { %653 = vst [vmem:[%s1632_s5 + $0x98] sm:$0xff] %v596_v59  ;;  %v557_v29 = vpop.f32.mrb[6].mxu0  ;;  %v599_v60 = vpop.f32.mrb[4].mxu1 }
 0x221   :  { %v558_v61 = vadd.f32 %v557_v29, %v1494_v30  ;;  %v600_v32 = vadd.f32 %v599_v60, %v1494_v30  ;;  %v559_v41 = vpop.f32.mrb[7].mxu0  ;;  %v601_v33 = vpop.f32.mrb[5].mxu1 }
 0x222   :  { %v560_v7 = vadd.f32 %v559_v41, %v1497_v37  ;;  %v602_v9 = vadd.f32 %v601_v33, %v1497_v37 }
 0x223   :  { %640 = vst [vmem:[%s1632_s5 + $0x30] sm:$0xff] %v558_v61  ;;  %654 = vst [vmem:[%s1632_s5 + $0xa0] sm:$0xff] %v600_v32 }
 0x224   :  { %641 = vst [vmem:[%s1632_s5 + $0x38] sm:$0xff] %v560_v7  ;;  %655 = vst [vmem:[%s1632_s5 + $0xa8] sm:$0xff] %v602_v9  ;;  %v563_v34 = vpop.f32.mrb[8].mxu0  ;;  %v605_v19 = vpop.f32.mrb[6].mxu1 }
 0x225   :  { %v564_v0 = vadd.f32 %v563_v34, %v1494_v30  ;;  %v606_v20 = vadd.f32 %v605_v19, %v1494_v30  ;;  %v565_v17 = vpop.f32.mrb[9].mxu0  ;;  %v607_v49 = vpop.f32.mrb[7].mxu1 }
 0x226   :  { %v566_v40 = vadd.f32 %v565_v17, %v1497_v37  ;;  %v608_v35 = vadd.f32 %v607_v49, %v1497_v37 }
 0x227   :  { %642 = vst [vmem:[%s1632_s5 + $0x40] sm:$0xff] %v564_v0  ;;  %656 = vst [vmem:[%s1632_s5 + $0xb0] sm:$0xff] %v606_v20 }
 0x228   :  { %643 = vst [vmem:[%s1632_s5 + $0x48] sm:$0xff] %v566_v40  ;;  %657 = vst [vmem:[%s1632_s5 + $0xb8] sm:$0xff] %v608_v35  ;;  %v569_v22 = vpop.f32.mrb[10].mxu0  ;;  %v611_v62 = vpop.f32.mrb[8].mxu1 }
 0x229   :  { %v570_v18 = vadd.f32 %v569_v22, %v1494_v30  ;;  %v612_v4 = vadd.f32 %v611_v62, %v1494_v30  ;;  %v571_v63 = vpop.f32.mrb[11].mxu0  ;;  %v613_v13 = vpop.f32.mrb[9].mxu1 }
 0x22a   :  { %v572_v23 = vadd.f32 %v571_v63, %v1497_v37  ;;  %v614_v5 = vadd.f32 %v613_v13, %v1497_v37 }
 0x22b   :  { %644 = vst [vmem:[%s1632_s5 + $0x50] sm:$0xff] %v570_v18  ;;  %658 = vst [vmem:[%s1632_s5 + $0xc0] sm:$0xff] %v612_v4 }
 0x22c   :  { %645 = vst [vmem:[%s1632_s5 + $0x58] sm:$0xff] %v572_v23  ;;  %659 = vst [vmem:[%s1632_s5 + $0xc8] sm:$0xff] %v614_v5  ;;  %v575_v24 = vpop.f32.mrb[12].mxu0  ;;  %v617_v51 = vpop.f32.mrb[10].mxu1 }
 0x22d   :  { %v576_v57 = vadd.f32 %v575_v24, %v1494_v30  ;;  %v618_v38 = vadd.f32 %v617_v51, %v1494_v30  ;;  %v577_v6 = vpop.f32.mrb[13].mxu0  ;;  %v619_v21 = vpop.f32.mrb[11].mxu1 }
 0x22e   :  { %v578_v36 = vadd.f32 %v577_v6, %v1497_v37  ;;  %v620_v56 = vadd.f32 %v619_v21, %v1497_v37 }
 0x22f   :  { %646 = vst [vmem:[%s1632_s5 + $0x60] sm:$0xff] %v576_v57  ;;  %660 = vst [vmem:[%s1632_s5 + $0xd0] sm:$0xff] %v618_v38 }
 0x230   :  { %647 = vst [vmem:[%s1632_s5 + $0x68] sm:$0xff] %v578_v36  ;;  %661 = vst [vmem:[%s1632_s5 + $0xd8] sm:$0xff] %v620_v56  ;;  %v581_v8 = vpop.f32.mrb[14].mxu0  ;;  %v623_v28 = vpop.f32.mrb[12].mxu1 }
 0x231   :  { %v582_v26 = vadd.f32 %v581_v8, %v1494_v30  ;;  %v624_v27 = vadd.f32 %v623_v28, %v1494_v30  ;;  %v583_v46 = vpop.f32.mrb[15].mxu0  ;;  %v625_v50 = vpop.f32.mrb[13].mxu1 }
 0x232   :  { %v584_v47 = vadd.f32 %v583_v46, %v1497_v37  ;;  %v626_v48 = vadd.f32 %v625_v50, %v1497_v37 }
 0x233   :  { %648 = vst [vmem:[%s1632_s5 + $0x70] sm:$0xff] %v582_v26  ;;  %662 = vst [vmem:[%s1632_s5 + $0xe0] sm:$0xff] %v624_v27 }
 0x234   :  { %649 = vst [vmem:[%s1632_s5 + $0x78] sm:$0xff] %v584_v47  ;;  %663 = vst [vmem:[%s1632_s5 + $0xe8] sm:$0xff] %v626_v48  ;;  %v629_v12 = vpop.f32.mrb[14].mxu1 }
 0x235   :  { %v630_v42 = vadd.f32 %v629_v12, %v1494_v30  ;;  %v631_v3 = vpop.f32.mrb[15].mxu1 }
 0x236   :  { %v632_v2 = vadd.f32 %v631_v3, %v1497_v37 }
 0x237   :  { %664 = vst [vmem:[%s1632_s5 + $0xf0] sm:$0xff] %v630_v42 }
 0x238   :  { %665 = vst [vmem:[%s1632_s5 + $0xf8] sm:$0xff] %v632_v2 }

// kernel: reactive_transformer_layer.13
= control target key start
LH: loop header
LB: loop body
LE: loop exit
PB: predicated region body
PF: predicated region fallthrough
CT: control target
= control target key end

     0   :  { %s1197_s12 = smov 0   ;;  %s1199_s13 = smov 0   ;;  %s1382_s0 = inlined_call_operand.vmem [shape: f32[2,64,256], index: 0, kind: input, shape index: {}]   ;;  %s1383_s1 = inlined_call_operand.vmem [shape: f32[2,16,512], index: 1, kind: input, shape index: {}, may-alias: {1,2}]   ;;  %s1384_s2 = inlined_call_operand.vmem [shape: f32[2,16,512], index: 2, kind: input, shape index: {}, may-alias: {1,2}]   ;;  %s1385_s3 = inlined_call_operand.vmem [shape: f32[2,64,256], index: 3, kind: output, shape index: {}]  }
   0x1   :  { %s1201_s14 = smov 0   ;;  %s1203_s15 = smov 0  }
   0x2   :  { %s1205_s16 = smov 0   ;;  %s1207_s17 = smov 0  }
   0x3   :  { %s1209_s18 = smov 0   ;;  %s1211_s19 = smov 0  }
   0x4   :  { %s1213_s20 = smov 0  }
   0x5 LB: > { %s908_s21 = sadd.s32 4294967295, %s1175_s20   ;;  %s22_s22 = sadd.s32 1, %s1167_s18  ;;  %s1175_s20 = sphi %s1213_s20, %s13_s20   ;;  %s1171_s19 = sphi %s1211_s19, %s1396_s19   ;;  %s1167_s18 = sphi %s1209_s18, %s1395_s18   ;;  %s1163_s17 = sphi %s1207_s17, %s1394_s17   ;;  %s1159_s16 = sphi %s1205_s16, %s1393_s16   ;;  %s1155_s15 = sphi %s1203_s15, %s1392_s15   ;;  %s1151_s14 = sphi %s1201_s14, %s1391_s14   ;;  %s1147_s13 = sphi %s1199_s13, %s1390_s13   ;;  %s1143_s12 = sphi %s1197_s12, %s1389_s12  }
   0x6   : > { %p23_p0 = scmp.ge.s32.totalorder %s22_s22, 2  ;;  %s25_s23 = sadd.s32 1, %s1171_s19 }
   0x7   : > { %s34_s24 = sadd.s32 1, %s1155_s15  ;;  %p41_p1 = scmp.ne.s32.totalorder %s1155_s15, %s1151_s14 }
   0x8   : > { %s1398_s22 = smov (%p23_p0, %s22_s22), 0  ;;  %s1400_s23 = smov (!%p23_p0, %s25_s23), %s1171_s19 }
   0x9   : > { %s30_s25 = ssub.s32 %s1167_s18, %s1398_s22  ;;  %p42_p2 = scmp.eq.s32.totalorder %s1175_s20, 0 }
   0xa   : > { %p27_p3 = scmp.ge.s32.totalorder %s1400_s23, 2  ;;  %s85_s26 = sadd.s32 2, %s1167_s18 }
   0xb   : > { %p1260_p4 = por %p42_p2, %p41_p1  ;;  %s86_s28 = sadd.s32 2, %s1398_s22 }
   0xc   : > { %s1402_s23 = smov (%p27_p3, %s1400_s23), 0  ;;  %s88_s29 = ssub.s32 %s85_s26, %s86_s28 }
   0xd   : > { %s92_s30 = sadd.s32 1, %s1147_s13  ;;  %s29_s4 = ssub.s32 %s1171_s19, %s1402_s23 }
   0xe   : > { %p99_p5 = scmp.ne.s32.totalorder %s1147_s13, %s1143_s12  ;;  %s31_s5 = sor.u32 %s30_s25, %s29_s4 }
   0xf   : > { %s89_s6 = sor.u32 %s88_s29, %s29_s4  ;;  %p32_p6 = scmp.eq.s32.totalorder %s31_s5, 0 }
  0x10   : > { %p90_p7 = scmp.eq.s32.totalorder %s89_s6, 0  ;;  %p1274_p8 = por %p99_p5, %p42_p2 }
  0x11   : > { %p131_p9 = scmp.eq.s32.totalorder %s908_s21, 3  ;;  %p911_p11 = scmp.ge.s32.totalorder %s1175_s20, 4 }
  0x12   : > { %s1279_s8 = scalar_select %p32_p6, %s1155_s15, %s34_s24  }
  0x13   : > { %s1282_s9 = scalar_select %p90_p7, %s1147_s13, %s92_s30  }
  0x14   : > { %p1287_p10 = por %p131_p9, %p41_p1  ;;  %153 = sbr.rel (%p911_p11) target bundleno = 53 (0x35), region = 16 }
  0x1b   : > { %156 = sbr.rel (!%p1260_p4) target bundleno = 37 (0x25), region = 20  ;;  %s158_s11 = sand.u32 (%p1260_p4), 1, %s1155_s15  }
  0x1c   : > { %s913_s21 = sshll.u32 (%p1260_p4), %s1171_s19, 4  ;;  %s912_s24 = sshll.u32 (%p1260_p4), %s158_s11, 6 }
  0x1d   : > { %s162_s25 = sadd.s32 (%p1260_p4), %s1167_s18, %s913_s21  ;;  %s160_s4 = scalar_lea.vmem (%p1260_p4), [#allocation2], %s912_s24 }
  0x1e   : > { %s914_s26 = sshll.u32 (%p1260_p4), %s162_s25, 3 }
  0x1f   : > { %s164_s30 = scalar_lea.vmem (%p1260_p4), %s1382_s0, %s914_s26 }
  0x20   : > { %v206_v0 = vld [vmem:[%s164_s30] sm:$0xff] (%p1260_p4)  ;;  %v208_v1 = vld [vmem:[%s164_s30 + $0x10] sm:$0xff] (%p1260_p4) }
  0x21   : > { %v210_v2 = vld [vmem:[%s164_s30 + $0x20] sm:$0xff] (%p1260_p4)  ;;  %207 = vst [vmem:[%s160_s4] sm:$0xff] (%p1260_p4), %v206_v0  ;;  %209 = vst [vmem:[%s160_s4 + $0x8] sm:$0xff] (%p1260_p4), %v208_v1  ;;  %v212_v3 = vld [vmem:[%s164_s30 + $0x30] sm:$0xff] (%p1260_p4) }
  0x22   : > { %211 = vst [vmem:[%s160_s4 + $0x10] sm:$0xff] %v210_v2  ;;  %v214_v4 = vld [vmem:[%s164_s30 + $0x40] sm:$0xff]  ;;  %v216_v5 = vld [vmem:[%s164_s30 + $0x50] sm:$0xff]  ;;  %213 = vst [vmem:[%s160_s4 + $0x18] sm:$0xff] %v212_v3 }
  0x23   : > { %215 = vst [vmem:[%s160_s4 + $0x20] sm:$0xff] %v214_v4  ;;  %217 = vst [vmem:[%s160_s4 + $0x28] sm:$0xff] %v216_v5  ;;  %v218_v6 = vld [vmem:[%s164_s30 + $0x60] sm:$0xff]  ;;  %v220_v7 = vld [vmem:[%s164_s30 + $0x70] sm:$0xff] }
  0x24   : > { %219 = vst [vmem:[%s160_s4 + $0x30] sm:$0xff] %v218_v6  ;;  %221 = vst [vmem:[%s160_s4 + $0x38] sm:$0xff] %v220_v7 }
  0x25 PF: > { %227 = sbr.rel (!%p1260_p4) target bundleno = 45 (0x2d), region = 58  ;;  %s229_s5 = sand.u32 (%p1260_p4), 1, %s1155_s15  }
  0x26   : > { %s916_s6 = sshll.u32 (%p1260_p4), %s1171_s19, 3  ;;  %s915_s11 = sshll.u32 (%p1260_p4), %s229_s5, 4 }
  0x27   : > { %s233_s21 = sadd.s32 (%p1260_p4), %s1167_s18, %s916_s6  ;;  %s231_s29 = scalar_lea.vmem (%p1260_p4), [#allocation3], %s915_s11 }
  0x28   : > { %s917_s24 = sshll.u32 (%p1260_p4), %s233_s21, 3 }
  0x29   : > { %s235_s28 = scalar_lea.vmem (%p1260_p4), %s1383_s1, %s917_s24 }
  0x2a   : > { %v265_v8 = vld [vmem:[%s235_s28] sm:$0xff] (%p1260_p4) }
  0x2b   : > { %v267_v9 = vld [vmem:[%s235_s28 + $0x20] sm:$0xff] (%p1260_p4)  ;;  %266 = vst [vmem:[%s231_s29] sm:$0xff] (%p1260_p4), %v265_v8 }
  0x2c   : > { %268 = vst [vmem:[%s231_s29 + $0x8] sm:$0xff] %v267_v9 }
  0x2d PF: > { %274 = sbr.rel (!%p1274_p8) target bundleno = 53 (0x35), region = 96  ;;  %s276_s27 = sand.u32 (%p1274_p8), 1, %s1147_s13  }
  0x2e   : > { %s919_s30 = sshll.u32 (%p1274_p8), %s1171_s19, 3  ;;  %s918_s4 = sshll.u32 (%p1274_p8), %s276_s27, 4 }
  0x2f   : > { %s822_s5 = sadd.s32 (%p1274_p8), %s1167_s18, %s919_s30  ;;  %s278_s11 = scalar_lea.vmem (%p1274_p8), [#allocation4], %s918_s4 }
  0x30   : > { %s920_s6 = sshll.u32 (%p1274_p8), %s822_s5, 3 }
  0x31   : > { %s824_s24 = scalar_lea.vmem (%p1274_p8), %s1384_s2, %s920_s6 }
  0x32   : > { %v921_v10 = vld [vmem:[%s824_s24 + $0x10] sm:$0xff] (%p1274_p8) }
  0x33   : > { %v922_v11 = vld [vmem:[%s824_s24 + $0x30] sm:$0xff] (%p1274_p8)  ;;  %314 = vst [vmem:[%s278_s11] sm:$0xff] (%p1274_p8), %v921_v10 }
  0x34   : > { %316 = vst [vmem:[%s278_s11 + $0x8] sm:$0xff] %v922_v11 }
  0x35 PF: > { %p923_p12 = scmp.ge.s32.totalorder %s1175_s20, 1  ;;  %p321_p13 = scmp.lt.s32.totalorder %s1175_s20, 5 }
  0x37   : > { %p322_p0 = pnand %p923_p12, %p321_p13 }
  0x38   : > { %s328_s7 = sand.u32 (!%p322_p0), 1, %s1151_s14   ;;  %vm498_vm0 = vcmask (!%p322_p0), 130048   ;;  %s342_s14 = sand.u32 (!%p322_p0), 1, %s1143_s12  }
  0x39   : > { %325 = sbr.rel (%p322_p0) target bundleno = 838 (0x346), region = 134  ;;  %s1319_s26 = sshll.u32 (!%p322_p0), %s328_s7, 6 }
  0x3a   : > { %s925_s28 = sshll.u32 (!%p322_p0), %s328_s7, 4  ;;  %s330_s27 = scalar_lea.vmem (!%p322_p0), [#allocation2], %s1319_s26 }
  0x3b   : > { %s337_s29 = scalar_lea.vmem (!%p322_p0), [#allocation3], %s925_s28  ;;  %v373_v14 = vld [vmem:[%s330_s27] sm:$0xff] (!%p322_p0)  ;;  %v374_v16 = vld [vmem:[%s330_s27 + $0x8] sm:$0xff] (!%p322_p0)  ;;  %v375_v17 = vld [vmem:[%s330_s27 + $0x10] sm:$0xff] (!%p322_p0)  ;;  %s926_s30 = sshll.u32 (!%p322_p0), %s342_s14, 4 }
  0x3c   : > { %v381_v12 = vld [vmem:[%s337_s29] sm:$0xff] (!%p322_p0)  ;;  %v382_v13 = vld [vmem:[%s337_s29 + $0x8] sm:$0xff] (!%p322_p0)  ;;  %965 = vmatprep.mubr.f32.mxu0 (!%p322_p0), %v373_v14  ;;  %s344_s4 = scalar_lea.vmem (!%p322_p0), [#allocation4], %s926_s30  ;;  %s371_s12 = scalar_lea.vmem (!%p322_p0), [#allocation5], %s1319_s26 }
  0x3d   : > { %v993_v15 = vpack.c.bf16 (!%p322_p0), %v382_v13, %v381_v12  ;;  %v376_v18 = vld [vmem:[%s330_s27 + $0x18] sm:$0xff] (!%p322_p0)  ;;  %v377_v19 = vld [vmem:[%s330_s27 + $0x20] sm:$0xff] (!%p322_p0)  ;;  %v378_v20 = vld [vmem:[%s330_s27 + $0x28] sm:$0xff] (!%p322_p0) }
  0x3e   : > { %v379_v21 = vld [vmem:[%s330_s27 + $0x30] sm:$0xff] (!%p322_p0)  ;;  %v380_v22 = vld [vmem:[%s330_s27 + $0x38] sm:$0xff] (!%p322_p0) }
  0x3f   : > { %994 = vmatprep.subr.bf16.mxu0 (!%p322_p0), %v993_v15 }
  0x40   : > { %996 = vmatpush3.bf16.xpose.msra.mxu0 %v993_v15  ;;  %s937_s5 = sshll.u32 (%p1287_p10), %s1163_s17, 4 }
  0x41   : > { %s732_s6 = sadd.s32 (%p1287_p10), %s1159_s16, %s937_s5 }
  0x42   : > { %s938_s21 = sshll.u32 (%p1287_p10), %s732_s6, 3 }
  0x43   : > { %s734_s11 = scalar_lea.vmem (%p1287_p10), %s1385_s3, %s938_s21 }
  0x47   : > { %966 = vmatmul.mubr.f32.vlgmr.msra.gmra.mrb[0].mxu0 %v374_v16 }
  0x48   : > { %968 = vmatprep.mubr.f32.mxu0 %v375_v17 }
  0x4b   : > { %969 = vmatmul.mubr.f32.gmra.mrb[2].mxu0 %v376_v18 }
  0x4c   : > { %971 = vmatprep.mubr.f32.mxu0 %v377_v19 }
  0x4f   : > { %972 = vmatmul.mubr.f32.gmra.mrb[4].mxu0 %v378_v20 }
  0x50   : > { %974 = vmatprep.mubr.f32.mxu0 %v379_v21 }
  0x53   : > { %975 = vmatmul.mubr.f32.gmra.mrb[6].mxu0 %v380_v22 }
 0x11a   : > { %v967_v23 = vpop.f32.mrb[0].mxu0 }
 0x11b   : > { %v451_v24 = vpop.f32.mrb[1].mxu0  ;;  %v491_v26 = vmul.f32 0.088388346, %v967_v23  ;;  %v383_v23 = vld [vmem:[%s344_s4] sm:$0xff] }
 0x11c   : > { %v490_v25 = vmul.f32 0.088388346, %v451_v24  ;;  %v384_v24 = vld [vmem:[%s344_s4 + $0x8] sm:$0xff] }
 0x11d   : > { %v502_v33 = vsel %vm498_vm0, %v491_v26, -inf }
 0x11e   : > { %v970_v27 = vpop.f32.mrb[2].mxu0  ;;  %v499_v28 = vsel %vm498_vm0, %v490_v25, -inf }
 0x11f   : > { %500 = vmax.xlane.f32.xlu0 %v499_v28  ;;  %v461_v29 = vpop.f32.mrb[3].mxu0  ;;  %v493_v31 = vmul.f32 0.088388346, %v970_v27 }
 0x120   : > { %v492_v30 = vmul.f32 0.088388346, %v461_v29 }
 0x121   : > { %v508_v39 = vsel %vm498_vm0, %v493_v31, -inf }
 0x122   : > { %v973_v32 = vpop.f32.mrb[4].mxu0  ;;  %v505_v34 = vsel %vm498_vm0, %v492_v30, -inf }
 0x123   : > { %503 = vmax.xlane.f32.xlu0 %v502_v33  ;;  %506 = vmax.xlane.f32.xlu1 %v505_v34  ;;  %v471_v35 = vpop.f32.mrb[5].mxu0  ;;  %v495_v37 = vmul.f32 0.088388346, %v973_v32 }
 0x124   : > { %v494_v36 = vmul.f32 0.088388346, %v471_v35 }
 0x125   : > { %v514_v44 = vsel %vm498_vm0, %v495_v37, -inf }
 0x126   : > { %v976_v38 = vpop.f32.mrb[6].mxu0  ;;  %v511_v40 = vsel %vm498_vm0, %v494_v36, -inf }
 0x127   : > { %509 = vmax.xlane.f32.xlu1 %v508_v39  ;;  %512 = vmax.xlane.f32.xlu0 %v511_v40  ;;  %v481_v41 = vpop.f32.mrb[7].mxu0  ;;  %v497_v43 = vmul.f32 0.088388346, %v976_v38 }
 0x128   : > { %v496_v42 = vmul.f32 0.088388346, %v481_v41 }
 0x129   : > { %v520_v46 = vsel %vm498_vm0, %v497_v43, -inf }
 0x12a   : > { %v517_v45 = vsel %vm498_vm0, %v496_v42, -inf }
 0x12b   : > { %515 = vmax.xlane.f32.xlu1 %v514_v44  ;;  %518 = vmax.xlane.f32.xlu0 %v517_v45 }
 0x12f   : > { %521 = vmax.xlane.f32.xlu1 %v520_v46 }
 0x1ac   : > { %v501_v47 = vpop.xlane.xlu0 %500 }
 0x1ad   : > { %v523_v48 = vsub.f32 %v490_v25, %v501_v47  ;;  %v997_v25 = vpack.c.bf16 %v384_v24, %v383_v23 }
 0x1af   : > { %v531_v49 = vmul.f32 1.442695, %v523_v48  ;;  %998 = vmatprep.subr.bf16.mxu1 %v997_v25 }
 0x1b0   : > { %v504_v50 = vpop.xlane.xlu0 %503  ;;  %v507_v51 = vpop.xlane.xlu1 %506  ;;  %1000 = vmatpush3.bf16.msra.mxu1 %v997_v25 }
 0x1b1   : > { %1073 = vpow2.f32 %v531_v49  ;;  %v524_v52 = vsub.f32 %v491_v26, %v504_v50  ;;  %v525_v53 = vsub.f32 %v492_v30, %v507_v51 }
 0x1b3   : > { %v533_v54 = vmul.f32 1.442695, %v524_v52  ;;  %v535_v55 = vmul.f32 1.442695, %v525_v53 }
 0x1b4   : > { %v510_v56 = vpop.xlane.xlu1 %509  ;;  %v513_v57 = vpop.xlane.xlu0 %512 }
 0x1b5   : > { %1075 = vpow2.f32 %v533_v54  ;;  %v526_v58 = vsub.f32 %v493_v31, %v510_v56  ;;  %v527_v59 = vsub.f32 %v494_v36, %v513_v57 }
 0x1b6   : > { %1077 = vpow2.f32 %v535_v55 }
 0x1b7   : > { %v537_v60 = vmul.f32 1.442695, %v526_v58  ;;  %v539_v61 = vmul.f32 1.442695, %v527_v59 }
 0x1b8   : > { %v516_v62 = vpop.xlane.xlu1 %515  ;;  %v519_v63 = vpop.xlane.xlu0 %518 }
 0x1b9   : > { %1079 = vpow2.f32 %v537_v60  ;;  %v528_v0 = vsub.f32 %v495_v37, %v516_v62  ;;  %v529_v1 = vsub.f32 %v496_v42, %v519_v63 }
 0x1ba   : > { %1081 = vpow2.f32 %v539_v61 }
 0x1bb   : > { %v1074_v2 = vpop.eup %1073  ;;  %v541_v3 = vmul.f32 1.442695, %v528_v0  ;;  %v543_v4 = vmul.f32 1.442695, %v529_v1 }
 0x1bc   : > { %v522_v5 = vpop.xlane.xlu1 %521  ;;  %v547_v6 = vsel %vm498_vm0, %v1074_v2, 0.0 }
 0x1bd   : > { %1083 = vpow2.f32 %v541_v3  ;;  %v530_v7 = vsub.f32 %v497_v43, %v522_v5  ;;  %548 = vadd.xlane.f32.xlu0 %v547_v6 }
 0x1be   : > { %1085 = vpow2.f32 %v543_v4 }
 0x1bf   : > { %v1076_v8 = vpop.eup %1075  ;;  %v545_v9 = vmul.f32 1.442695, %v530_v7 }
 0x1c0   : > { %v1078_v10 = vpop.eup %1077  ;;  %v550_v11 = vsel %vm498_vm0, %v1076_v8, 0.0 }
 0x1c1   : > { %1087 = vpow2.f32 %v545_v9  ;;  %551 = vadd.xlane.f32.xlu1 %v550_v11  ;;  %v553_v12 = vsel %vm498_vm0, %v1078_v10, 0.0 }
 0x1c2   : > { %554 = vadd.xlane.f32.xlu0 %v553_v12 }
 0x1c3   : > { %v1080_v13 = vpop.eup %1079 }
 0x1c4   : > { %v1082_v14 = vpop.eup %1081  ;;  %v556_v15 = vsel %vm498_vm0, %v1080_v13, 0.0 }
 0x1c5   : > { %557 = vadd.xlane.f32.xlu1 %v556_v15  ;;  %v559_v16 = vsel %vm498_vm0, %v1082_v14, 0.0 }
 0x1c6   : > { %560 = vadd.xlane.f32.xlu0 %v559_v16 }
 0x1c7   : > { %v1084_v17 = vpop.eup %1083 }
 0x1c8   : > { %v1086_v18 = vpop.eup %1085  ;;  %v562_v19 = vsel %vm498_vm0, %v1084_v17, 0.0 }
 0x1c9   : > { %563 = vadd.xlane.f32.xlu1 %v562_v19  ;;  %v565_v20 = vsel %vm498_vm0, %v1086_v18, 0.0 }
 0x1ca   : > { %566 = vadd.xlane.f32.xlu0 %v565_v20 }
 0x1cb   : > { %v1088_v21 = vpop.eup %1087 }
 0x1cc   : > { %v568_v22 = vsel %vm498_vm0, %v1088_v21, 0.0 }
 0x1cd   : > { %569 = vadd.xlane.f32.xlu1 %v568_v22 }
 0x24a   : > { %v549_v26 = vpop.xlane.xlu0 %548 }
 0x24b   : > { %1089 = vrcp.f32 %v549_v26 }
 0x24e   : > { %v552_v27 = vpop.xlane.xlu1 %551 }
 0x24f   : > { %1091 = vrcp.f32 %v552_v27  ;;  %v555_v28 = vpop.xlane.xlu0 %554 }
 0x250   : > { %1093 = vrcp.f32 %v555_v28 }
 0x252   : > { %v558_v29 = vpop.xlane.xlu1 %557 }
 0x253   : > { %1095 = vrcp.f32 %v558_v29  ;;  %v561_v30 = vpop.xlane.xlu0 %560 }
 0x254   : > { %1097 = vrcp.f32 %v561_v30 }
 0x255   : > { %v1090_v31 = vpop.eup %1089 }
 0x256   : > { %v564_v32 = vpop.xlane.xlu1 %563  ;;  %v579_v33 = vmul.f32 %v1090_v31, %v1074_v2 }
 0x257   : > { %1099 = vrcp.f32 %v564_v32  ;;  %v567_v34 = vpop.xlane.xlu0 %566 }
 0x258   : > { %1101 = vrcp.f32 %v567_v34  ;;  %981 = vmatprep.mubr.msk.f32.mxu1 %vm498_vm0, %v579_v33 }
 0x259   : > { %v1092_v35 = vpop.eup %1091 }
 0x25a   : > { %v1094_v36 = vpop.eup %1093  ;;  %v570_v37 = vpop.xlane.xlu1 %569  ;;  %v580_v38 = vmul.f32 %v1092_v35, %v1076_v8 }
 0x25b   : > { %1103 = vrcp.f32 %v570_v37  ;;  %v581_v39 = vmul.f32 %v1094_v36, %v1078_v10 }
 0x25c   : > { %982 = vmatmul.mubr.msk.f32.vlgmr.msra.gmra.mrb[0].mxu1 %vm498_vm0, %v580_v38 }
 0x25d   : > { %v1096_v40 = vpop.eup %1095  ;;  %984 = vmatprep.mubr.msk.f32.mxu1 %vm498_vm0, %v581_v39 }
 0x25e   : > { %v1098_v41 = vpop.eup %1097  ;;  %v582_v42 = vmul.f32 %v1096_v40, %v1080_v13 }
 0x25f   : > { %v583_v43 = vmul.f32 %v1098_v41, %v1082_v14 }
 0x260   : > { %985 = vmatmul.mubr.msk.f32.gmra.mrb[2].mxu1 %vm498_vm0, %v582_v42 }
 0x261   : > { %v1100_v44 = vpop.eup %1099  ;;  %987 = vmatprep.mubr.msk.f32.mxu1 %vm498_vm0, %v583_v43 }
 0x262   : > { %v1102_v45 = vpop.eup %1101  ;;  %v584_v46 = vmul.f32 %v1100_v44, %v1084_v17 }
 0x263   : > { %v585_v47 = vmul.f32 %v1102_v45, %v1086_v18 }
 0x264   : > { %988 = vmatmul.mubr.msk.f32.gmra.mrb[4].mxu1 %vm498_vm0, %v584_v46 }
 0x265   : > { %v1104_v48 = vpop.eup %1103  ;;  %990 = vmatprep.mubr.msk.f32.mxu1 %vm498_vm0, %v585_v47 }
 0x266   : > { %v586_v49 = vmul.f32 %v1104_v48, %v1088_v21 }
 0x268   : > { %991 = vmatmul.mubr.msk.f32.gmra.mrb[6].mxu1 %vm498_vm0, %v586_v49 }
 0x32f   : > { %v983_v50 = vpop.f32.mrb[0].mxu1 }
 0x330   : > { %717 = vst [vmem:[%s371_s12 + $0x8] sm:$0xff] %v983_v50  ;;  %v677_v51 = vpop.f32.mrb[1].mxu1 }
 0x331   : > { %716 = vst [vmem:[%s371_s12] sm:$0xff] %v677_v51 }
 0x333   : > { %v986_v52 = vpop.f32.mrb[2].mxu1 }
 0x334   : > { %719 = vst [vmem:[%s371_s12 + $0x18] sm:$0xff] %v986_v52  ;;  %v687_v53 = vpop.f32.mrb[3].mxu1 }
 0x335   : > { %718 = vst [vmem:[%s371_s12 + $0x10] sm:$0xff] %v687_v53 }
 0x337   : > { %v989_v54 = vpop.f32.mrb[4].mxu1  ;;  %730 = sbr.rel (!%p1287_p10) target bundleno = 838 (0x346), region = 150  ;;  %v778_v59 = vld [vmem:[%s371_s12 + $0x8] sm:$0xff] (%p1287_p10) }
 0x338   : > { %721 = vst [vmem:[%s371_s12 + $0x28] sm:$0xff] %v989_v54  ;;  %v697_v55 = vpop.f32.mrb[5].mxu1  ;;  %v776_v58 = vld [vmem:[%s371_s12] sm:$0xff] (%p1287_p10)  ;;  %779 = vst [vmem:[%s734_s11 + $0x10] sm:$0xff] (%p1287_p10), %v778_v59 }
 0x339   : > { %720 = vst [vmem:[%s371_s12 + $0x20] sm:$0xff] %v697_v55  ;;  %777 = vst [vmem:[%s734_s11] sm:$0xff] (%p1287_p10), %v776_v58 }
 0x33b   : > { %v992_v56 = vpop.f32.mrb[6].mxu1  ;;  %v782_v61 = vld [vmem:[%s371_s12 + $0x18] sm:$0xff] (%p1287_p10) }
 0x33c   : > { %723 = vst [vmem:[%s371_s12 + $0x38] sm:$0xff] %v992_v56  ;;  %v707_v57 = vpop.f32.mrb[7].mxu1  ;;  %v780_v60 = vld [vmem:[%s371_s12 + $0x10] sm:$0xff] (%p1287_p10)  ;;  %783 = vst [vmem:[%s734_s11 + $0x30] sm:$0xff] (%p1287_p10), %v782_v61 }
 0x33d   : > { %722 = vst [vmem:[%s371_s12 + $0x30] sm:$0xff] %v707_v57  ;;  %781 = vst [vmem:[%s734_s11 + $0x20] sm:$0xff] (%p1287_p10), %v780_v60 }
 0x33f   : > { %v786_v63 = vld [vmem:[%s371_s12 + $0x28] sm:$0xff] }
 0x340   : > { %v784_v62 = vld [vmem:[%s371_s12 + $0x20] sm:$0xff]  ;;  %787 = vst [vmem:[%s734_s11 + $0x50] sm:$0xff] %v786_v63 }
 0x341   : > { %785 = vst [vmem:[%s734_s11 + $0x40] sm:$0xff] %v784_v62 }
 0x343   : > { %v790_v1 = vld [vmem:[%s371_s12 + $0x38] sm:$0xff] }
 0x344   : > { %v788_v0 = vld [vmem:[%s371_s12 + $0x30] sm:$0xff]  ;;  %791 = vst [vmem:[%s734_s11 + $0x70] sm:$0xff] %v790_v1 }
 0x345   : > { %789 = vst [vmem:[%s734_s11 + $0x60] sm:$0xff] %v788_v0 }
 0x346 PF: > { %s13_s20 = sadd.s32 1, %s1175_s20   ;;  %s1389_s12 = smov %s1147_s13 }
 0x347   : > { %p10_p1 = scmp.ge.s32.totalorder %s13_s20, 6   ;;  %s1390_s13 = smov %s1282_s9 }
 0x348   : > { %s1391_s14 = smov %s1155_s15  ;;  %s1392_s15 = smov %s1279_s8 }
 0x349   : > { %s1393_s16 = smov %s1167_s18  ;;  %s1394_s17 = smov %s1171_s19 }
 0x34a   : > { %s1395_s18 = smov %s1398_s22  ;;  %s1396_s19 = smov %s1402_s23 }
 0x34b   :  { %12 = sbr.rel (!%p10_p1) target bundleno = 5 (0x5), region = 235 }

// kernel: reactive_transformer_layer.12
= control target key start
LH: loop header
LB: loop body
LE: loop exit
PB: predicated region body
PF: predicated region fallthrough
CT: control target
= control target key end

     0   :  { %s1190_s0 = inlined_call_operand.vmem [shape: f32[32,256], index: 0, kind: input, shape index: {}]   ;;  %s1191_s3 = inlined_call_operand.vmem [shape: f32[256,512], index: 3, kind: input, shape index: {}]   ;;  %s1192_s1 = inlined_call_operand.vmem [shape: f32[1,256], index: 1, kind: input, shape index: {}]   ;;  %s1193_s2 = inlined_call_operand.vmem [shape: f32[1,256], index: 2, kind: input, shape index: {}]   ;;  %s1194_s4 = inlined_call_operand.vmem [shape: f32[1,512], index: 4, kind: input, shape index: {}]   ;;  %s1195_s5 = inlined_call_operand.vmem [shape: f32[32,512], index: 5, kind: output, shape index: {}]  }
   0x1   :  { %v650_v0 = vld [vmem:[%s1190_s0] sm:$0xff]  ;;  %v655_v1 = vld [vmem:[%s1190_s0 + $0x8] sm:$0xff]  ;;  %v672_v5 = vld [vmem:[%s1190_s0 + $0x10] sm:$0xff] }
   0x2   :  { %v660_v2 = vld [vmem:[%s1190_s0 + $0x20] sm:$0xff]  ;;  %v30_v3 = vadd.f32 %v655_v1, %v650_v0  ;;  %v667_v4 = vld [vmem:[%s1190_s0 + $0x28] sm:$0xff]  ;;  %v677_v6 = vld [vmem:[%s1190_s0 + $0x18] sm:$0xff] }
   0x3   :  { %v36_v7 = vadd.f32 %v667_v4, %v660_v2  ;;  %v684_v8 = vld [vmem:[%s1190_s0 + $0x30] sm:$0xff]  ;;  %v689_v9 = vld [vmem:[%s1190_s0 + $0x38] sm:$0xff]  ;;  %v33_v10 = vadd.f32 %v677_v6, %v672_v5  ;;  %v134_v12 = vld [vmem:[%s1191_s3 + $0x8] sm:$0xff] }
   0x4   :  { %31 = vadd.xlane.f32.xlu0 %v30_v3  ;;  %v39_v11 = vadd.f32 %v689_v9, %v684_v8  ;;  %v138_v13 = vld [vmem:[%s1191_s3 + $0x28] sm:$0xff]  ;;  %v136_v14 = vld [vmem:[%s1191_s3 + $0x18] sm:$0xff]  ;;  %v133_v17 = vld [vmem:[%s1191_s3] sm:$0xff] }
   0x5   :  { %37 = vadd.xlane.f32.xlu1 %v36_v7  ;;  %v481_v15 = vpack.c.bf16 %v138_v13, %v134_v12  ;;  %v140_v16 = vld [vmem:[%s1191_s3 + $0x38] sm:$0xff]  ;;  %v137_v18 = vld [vmem:[%s1191_s3 + $0x20] sm:$0xff]  ;;  %v135_v21 = vld [vmem:[%s1191_s3 + $0x10] sm:$0xff] }
   0x6   :  { %v545_v19 = vpack.c.bf16 %v140_v16, %v136_v14  ;;  %v483_v20 = vpack.c.bf16 %v137_v18, %v133_v17  ;;  %v139_v22 = vld [vmem:[%s1191_s3 + $0x30] sm:$0xff]  ;;  %v142_v23 = vld [vmem:[%s1191_s3 + $0x48] sm:$0xff]  ;;  %v144_v26 = vld [vmem:[%s1191_s3 + $0x58] sm:$0xff] }
   0x7   :  { %482 = vmatprep.subr.bf16.mxu0 %v481_v15  ;;  %v547_v24 = vpack.c.bf16 %v139_v22, %v135_v21  ;;  %v146_v25 = vld [vmem:[%s1191_s3 + $0x68] sm:$0xff]  ;;  %v148_v27 = vld [vmem:[%s1191_s3 + $0x78] sm:$0xff]  ;;  %v141_v30 = vld [vmem:[%s1191_s3 + $0x40] sm:$0xff] }
   0x8   :  { %34 = vadd.xlane.f32.xlu0 %v33_v10  ;;  %546 = vmatprep.subr.bf16.mxu1 %v545_v19  ;;  %v485_v28 = vpack.c.bf16 %v146_v25, %v142_v23  ;;  %v549_v29 = vpack.c.bf16 %v148_v27, %v144_v26  ;;  %v145_v31 = vld [vmem:[%s1191_s3 + $0x60] sm:$0xff]  ;;  %v143_v32 = vld [vmem:[%s1191_s3 + $0x50] sm:$0xff]  ;;  %v150_v35 = vld [vmem:[%s1191_s3 + $0x88] sm:$0xff] }
   0x9   :  { %40 = vadd.xlane.f32.xlu1 %v39_v11  ;;  %484 = vmatpush1.bf16.msra.mxu0 %v483_v20  ;;  %v487_v33 = vpack.c.bf16 %v145_v31, %v141_v30  ;;  %v147_v34 = vld [vmem:[%s1191_s3 + $0x70] sm:$0xff]  ;;  %v154_v36 = vld [vmem:[%s1191_s3 + $0xa8] sm:$0xff]  ;;  %v152_v39 = vld [vmem:[%s1191_s3 + $0x98] sm:$0xff] }
   0xa   :  { %548 = vmatpush1.bf16.msra.mxu1 %v547_v24  ;;  %486 = vmatprep.subr.bf16.mxu0 %v485_v28  ;;  %v551_v37 = vpack.c.bf16 %v147_v34, %v143_v32  ;;  %v489_v38 = vpack.c.bf16 %v154_v36, %v150_v35  ;;  %v156_v40 = vld [vmem:[%s1191_s3 + $0xb8] sm:$0xff]  ;;  %v149_v41 = vld [vmem:[%s1191_s3 + $0x80] sm:$0xff]  ;;  %v151_v44 = vld [vmem:[%s1191_s3 + $0x90] sm:$0xff] }
   0xb   :  { %550 = vmatprep.subr.bf16.mxu1 %v549_v29  ;;  %v553_v42 = vpack.c.bf16 %v156_v40, %v152_v39  ;;  %v153_v43 = vld [vmem:[%s1191_s3 + $0xa0] sm:$0xff]  ;;  %v155_v45 = vld [vmem:[%s1191_s3 + $0xb0] sm:$0xff]  ;;  %v158_v47 = vld [vmem:[%s1191_s3 + $0xc8] sm:$0xff] }
   0xc   :  { %v491_v46 = vpack.c.bf16 %v153_v43, %v149_v41  ;;  %v162_v48 = vld [vmem:[%s1191_s3 + $0xe8] sm:$0xff]  ;;  %v160_v49 = vld [vmem:[%s1191_s3 + $0xd8] sm:$0xff]  ;;  %v555_v50 = vpack.c.bf16 %v155_v45, %v151_v44  ;;  %v157_v53 = vld [vmem:[%s1191_s3 + $0xc0] sm:$0xff] }
   0xd   :  { %488 = vmatpush1.bf16.msra.mxu0 %v487_v33  ;;  %v493_v51 = vpack.c.bf16 %v162_v48, %v158_v47  ;;  %v164_v52 = vld [vmem:[%s1191_s3 + $0xf8] sm:$0xff]  ;;  %v161_v54 = vld [vmem:[%s1191_s3 + $0xe0] sm:$0xff]  ;;  %v159_v56 = vld [vmem:[%s1191_s3 + $0xd0] sm:$0xff] }
   0xe   :  { %552 = vmatpush1.bf16.msra.mxu1 %v551_v37  ;;  %490 = vmatprep.subr.bf16.mxu0 %v489_v38  ;;  %v557_v55 = vpack.c.bf16 %v164_v52, %v160_v49  ;;  %v163_v57 = vld [vmem:[%s1191_s3 + $0xf0] sm:$0xff]  ;;  %v166_v58 = vld [vmem:[%s1191_s3 + $0x108] sm:$0xff]  ;;  %v168_v60 = vld [vmem:[%s1191_s3 + $0x118] sm:$0xff]  ;;  %v495_v62 = vpack.c.bf16 %v161_v54, %v157_v53 }
   0xf   :  { %554 = vmatprep.subr.bf16.mxu1 %v553_v42  ;;  %v170_v59 = vld [vmem:[%s1191_s3 + $0x128] sm:$0xff]  ;;  %v172_v61 = vld [vmem:[%s1191_s3 + $0x138] sm:$0xff]  ;;  %v559_v63 = vpack.c.bf16 %v163_v57, %v159_v56  ;;  %v165_v7 = vld [vmem:[%s1191_s3 + $0x100] sm:$0xff] }
  0x10   :  { %v497_v3 = vpack.c.bf16 %v170_v59, %v166_v58  ;;  %v169_v10 = vld [vmem:[%s1191_s3 + $0x120] sm:$0xff]  ;;  %v167_v11 = vld [vmem:[%s1191_s3 + $0x110] sm:$0xff]  ;;  %v561_v12 = vpack.c.bf16 %v172_v61, %v168_v60  ;;  %v174_v14 = vld [vmem:[%s1191_s3 + $0x148] sm:$0xff] }
  0x11   :  { %492 = vmatpush1.bf16.msra.mxu0 %v491_v46  ;;  %v171_v13 = vld [vmem:[%s1191_s3 + $0x130] sm:$0xff]  ;;  %v178_v15 = vld [vmem:[%s1191_s3 + $0x168] sm:$0xff]  ;;  %v176_v16 = vld [vmem:[%s1191_s3 + $0x158] sm:$0xff]  ;;  %v499_v18 = vpack.c.bf16 %v169_v10, %v165_v7 }
  0x12   :  { %556 = vmatpush1.bf16.msra.mxu1 %v555_v50  ;;  %494 = vmatprep.subr.bf16.mxu0 %v493_v51  ;;  %v180_v17 = vld [vmem:[%s1191_s3 + $0x178] sm:$0xff]  ;;  %v563_v19 = vpack.c.bf16 %v171_v13, %v167_v11  ;;  %v501_v20 = vpack.c.bf16 %v178_v15, %v174_v14  ;;  %v173_v21 = vld [vmem:[%s1191_s3 + $0x140] sm:$0xff]  ;;  %v175_v23 = vld [vmem:[%s1191_s3 + $0x150] sm:$0xff] }
  0x13   :  { %558 = vmatprep.subr.bf16.mxu1 %v557_v55  ;;  %v177_v22 = vld [vmem:[%s1191_s3 + $0x160] sm:$0xff]  ;;  %v565_v24 = vpack.c.bf16 %v180_v17, %v176_v16  ;;  %v179_v25 = vld [vmem:[%s1191_s3 + $0x170] sm:$0xff]  ;;  %v182_v26 = vld [vmem:[%s1191_s3 + $0x188] sm:$0xff] }
  0x14   :  { %v186_v27 = vld [vmem:[%s1191_s3 + $0x1a8] sm:$0xff]  ;;  %v184_v28 = vld [vmem:[%s1191_s3 + $0x198] sm:$0xff]  ;;  %v503_v30 = vpack.c.bf16 %v177_v22, %v173_v21  ;;  %v567_v31 = vpack.c.bf16 %v179_v25, %v175_v23  ;;  %v181_v33 = vld [vmem:[%s1191_s3 + $0x180] sm:$0xff] }
  0x15   :  { %496 = vmatpush1.bf16.msra.mxu0 %v495_v62  ;;  %v188_v29 = vld [vmem:[%s1191_s3 + $0x1b8] sm:$0xff]  ;;  %v505_v32 = vpack.c.bf16 %v186_v27, %v182_v26  ;;  %v185_v34 = vld [vmem:[%s1191_s3 + $0x1a0] sm:$0xff]  ;;  %v183_v35 = vld [vmem:[%s1191_s3 + $0x190] sm:$0xff] }
  0x16   :  { %560 = vmatpush1.bf16.msra.mxu1 %v559_v63  ;;  %498 = vmatprep.subr.bf16.mxu0 %v497_v3  ;;  %v569_v36 = vpack.c.bf16 %v188_v29, %v184_v28  ;;  %v187_v37 = vld [vmem:[%s1191_s3 + $0x1b0] sm:$0xff]  ;;  %v190_v38 = vld [vmem:[%s1191_s3 + $0x1c8] sm:$0xff]  ;;  %v192_v40 = vld [vmem:[%s1191_s3 + $0x1d8] sm:$0xff]  ;;  %v507_v42 = vpack.c.bf16 %v185_v34, %v181_v33 }
  0x17   :  { %562 = vmatprep.subr.bf16.mxu1 %v561_v12  ;;  %v194_v39 = vld [vmem:[%s1191_s3 + $0x1e8] sm:$0xff]  ;;  %v196_v41 = vld [vmem:[%s1191_s3 + $0x1f8] sm:$0xff]  ;;  %v571_v43 = vpack.c.bf16 %v187_v37, %v183_v35  ;;  %v189_v45 = vld [vmem:[%s1191_s3 + $0x1c0] sm:$0xff] }
  0x18   :  { %v509_v44 = vpack.c.bf16 %v194_v39, %v190_v38  ;;  %v193_v46 = vld [vmem:[%s1191_s3 + $0x1e0] sm:$0xff]  ;;  %v191_v47 = vld [vmem:[%s1191_s3 + $0x1d0] sm:$0xff]  ;;  %v573_v48 = vpack.c.bf16 %v196_v41, %v192_v40  ;;  %v198_v50 = vld [vmem:[%s1191_s3 + $0x208] sm:$0xff] }
  0x19   :  { %500 = vmatpush1.bf16.msra.mxu0 %v499_v18  ;;  %v195_v49 = vld [vmem:[%s1191_s3 + $0x1f0] sm:$0xff]  ;;  %v202_v51 = vld [vmem:[%s1191_s3 + $0x228] sm:$0xff]  ;;  %v200_v52 = vld [vmem:[%s1191_s3 + $0x218] sm:$0xff]  ;;  %v511_v54 = vpack.c.bf16 %v193_v46, %v189_v45 }
  0x1a   :  { %564 = vmatpush1.bf16.msra.mxu1 %v563_v19  ;;  %502 = vmatprep.subr.bf16.mxu0 %v501_v20  ;;  %v204_v53 = vld [vmem:[%s1191_s3 + $0x238] sm:$0xff]  ;;  %v575_v55 = vpack.c.bf16 %v195_v49, %v191_v47  ;;  %v513_v56 = vpack.c.bf16 %v202_v51, %v198_v50  ;;  %v197_v57 = vld [vmem:[%s1191_s3 + $0x200] sm:$0xff]  ;;  %v199_v59 = vld [vmem:[%s1191_s3 + $0x210] sm:$0xff] }
  0x1b   :  { %566 = vmatprep.subr.bf16.mxu1 %v565_v24  ;;  %v201_v58 = vld [vmem:[%s1191_s3 + $0x220] sm:$0xff]  ;;  %v577_v60 = vpack.c.bf16 %v204_v53, %v200_v52  ;;  %v203_v61 = vld [vmem:[%s1191_s3 + $0x230] sm:$0xff]  ;;  %v206_v62 = vld [vmem:[%s1191_s3 + $0x248] sm:$0xff] }
  0x1c   :  { %v210_v63 = vld [vmem:[%s1191_s3 + $0x268] sm:$0xff]  ;;  %v208_v3 = vld [vmem:[%s1191_s3 + $0x258] sm:$0xff]  ;;  %v515_v10 = vpack.c.bf16 %v201_v58, %v197_v57  ;;  %v579_v11 = vpack.c.bf16 %v203_v61, %v199_v59  ;;  %v205_v13 = vld [vmem:[%s1191_s3 + $0x240] sm:$0xff] }
  0x1d   :  { %504 = vmatpush1.bf16.msra.mxu0 %v503_v30  ;;  %v212_v7 = vld [vmem:[%s1191_s3 + $0x278] sm:$0xff]  ;;  %v517_v12 = vpack.c.bf16 %v210_v63, %v206_v62  ;;  %v209_v14 = vld [vmem:[%s1191_s3 + $0x260] sm:$0xff]  ;;  %v207_v15 = vld [vmem:[%s1191_s3 + $0x250] sm:$0xff] }
  0x1e   :  { %568 = vmatpush1.bf16.msra.mxu1 %v567_v31  ;;  %506 = vmatprep.subr.bf16.mxu0 %v505_v32  ;;  %v581_v16 = vpack.c.bf16 %v212_v7, %v208_v3  ;;  %v211_v17 = vld [vmem:[%s1191_s3 + $0x270] sm:$0xff]  ;;  %v214_v18 = vld [vmem:[%s1191_s3 + $0x288] sm:$0xff]  ;;  %v216_v20 = vld [vmem:[%s1191_s3 + $0x298] sm:$0xff]  ;;  %v519_v22 = vpack.c.bf16 %v209_v14, %v205_v13 }
  0x1f   :  { %570 = vmatprep.subr.bf16.mxu1 %v569_v36  ;;  %v218_v19 = vld [vmem:[%s1191_s3 + $0x2a8] sm:$0xff]  ;;  %v220_v21 = vld [vmem:[%s1191_s3 + $0x2b8] sm:$0xff]  ;;  %v583_v23 = vpack.c.bf16 %v211_v17, %v207_v15  ;;  %v213_v25 = vld [vmem:[%s1191_s3 + $0x280] sm:$0xff] }
  0x20   :  { %v521_v24 = vpack.c.bf16 %v218_v19, %v214_v18  ;;  %v217_v26 = vld [vmem:[%s1191_s3 + $0x2a0] sm:$0xff]  ;;  %v585_v27 = vpack.c.bf16 %v220_v21, %v216_v20  ;;  %v215_v28 = vld [vmem:[%s1191_s3 + $0x290] sm:$0xff]  ;;  %v226_v53 = vld [vmem:[%s1191_s3 + $0x2e8] sm:$0xff] }
  0x21   :  { %508 = vmatpush1.bf16.msra.mxu0 %v507_v42  ;;  %v219_v29 = vld [vmem:[%s1191_s3 + $0x2b0] sm:$0xff]  ;;  %v523_v30 = vpack.c.bf16 %v217_v26, %v213_v25  ;;  %v221_v57 = vld [vmem:[%s1191_s3 + $0x2c0] sm:$0xff]  ;;  %v230_v3 = vld [vmem:[%s1191_s3 + $0x308] sm:$0xff] }
  0x22   :  { %572 = vmatpush1.bf16.msra.mxu1 %v571_v43  ;;  %510 = vmatprep.subr.bf16.mxu0 %v509_v44  ;;  %v587_v31 = vpack.c.bf16 %v219_v29, %v215_v28  ;;  %v225_v58 = vld [vmem:[%s1191_s3 + $0x2e0] sm:$0xff]  ;;  %v223_v61 = vld [vmem:[%s1191_s3 + $0x2d0] sm:$0xff]  ;;  %v234_v7 = vld [vmem:[%s1191_s3 + $0x328] sm:$0xff] }
  0x23   :  { %574 = vmatprep.subr.bf16.mxu1 %v573_v48  ;;  %v227_v62 = vld [vmem:[%s1191_s3 + $0x2f0] sm:$0xff]  ;;  %v229_v13 = vld [vmem:[%s1191_s3 + $0x300] sm:$0xff]  ;;  %v238_v20 = vld [vmem:[%s1191_s3 + $0x348] sm:$0xff] }
  0x24   :  { %v591_v63 = vpack.c.bf16 %v227_v62, %v223_v61  ;;  %v233_v14 = vld [vmem:[%s1191_s3 + $0x320] sm:$0xff]  ;;  %v231_v17 = vld [vmem:[%s1191_s3 + $0x310] sm:$0xff]  ;;  %v242_v21 = vld [vmem:[%s1191_s3 + $0x368] sm:$0xff] }
  0x25   :  { %512 = vmatpush1.bf16.msra.mxu0 %v511_v54  ;;  %v224_v54 = vld [vmem:[%s1191_s3 + $0x2d8] sm:$0xff]  ;;  %v235_v18 = vld [vmem:[%s1191_s3 + $0x330] sm:$0xff]  ;;  %v237_v25 = vld [vmem:[%s1191_s3 + $0x340] sm:$0xff] }
  0x26   :  { %576 = vmatpush1.bf16.msra.mxu1 %v575_v55  ;;  %514 = vmatprep.subr.bf16.mxu0 %v513_v56  ;;  %v228_v56 = vld [vmem:[%s1191_s3 + $0x2f8] sm:$0xff]  ;;  %v595_v19 = vpack.c.bf16 %v235_v18, %v231_v17  ;;  %v241_v26 = vld [vmem:[%s1191_s3 + $0x360] sm:$0xff]  ;;  %v239_v29 = vld [vmem:[%s1191_s3 + $0x350] sm:$0xff] }
  0x27   :  { %578 = vmatprep.subr.bf16.mxu1 %v577_v60  ;;  %v589_v59 = vpack.c.bf16 %v228_v56, %v224_v54  ;;  %v527_v60 = vpack.c.bf16 %v225_v58, %v221_v57  ;;  %v535_v28 = vpack.c.bf16 %v241_v26, %v237_v25  ;;  %v259_v54 = vld [vmem:[%s1191_s3 + $0x3f0] sm:$0xff]  ;;  %v96_v58 = vlaneseq  ;;  %v29_v17 = vld [vmem:[%s1193_s2] sm:$0x3] }
  0x29   :  { %516 = vmatpush1.bf16.msra.mxu0 %v515_v10  ;;  %v232_v10 = vld [vmem:[%s1191_s3 + $0x318] sm:$0xff] }
  0x2a   :  { %580 = vmatpush1.bf16.msra.mxu1 %v579_v11  ;;  %518 = vmatprep.subr.bf16.mxu0 %v517_v12  ;;  %v529_v11 = vpack.c.bf16 %v234_v7, %v230_v3  ;;  %v236_v12 = vld [vmem:[%s1191_s3 + $0x338] sm:$0xff]  ;;  %v1119_v3 = vshrl.u32 %v96_v58, 7 }
  0x2b   :  { %582 = vmatprep.subr.bf16.mxu1 %v581_v16  ;;  %v593_v15 = vpack.c.bf16 %v236_v12, %v232_v10  ;;  %v531_v16 = vpack.c.bf16 %v233_v14, %v229_v13 }
  0x2c   :  { %v98_v13 = vsub.s32 0, %v1119_v3  ;;  %v102_v14 = vsub.s32 1, %v1119_v3 }
  0x2d   :  { %520 = vmatpush1.bf16.msra.mxu0 %v519_v22  ;;  %v240_v22 = vld [vmem:[%s1191_s3 + $0x358] sm:$0xff] }
  0x2e   :  { %584 = vmatpush1.bf16.msra.mxu1 %v583_v23  ;;  %522 = vmatprep.subr.bf16.mxu0 %v521_v24  ;;  %v533_v23 = vpack.c.bf16 %v242_v21, %v238_v20  ;;  %v244_v24 = vld [vmem:[%s1191_s3 + $0x378] sm:$0xff] }
  0x2f   :  { %586 = vmatprep.subr.bf16.mxu1 %v585_v27  ;;  %v597_v27 = vpack.c.bf16 %v244_v24, %v240_v22  ;;  %v118_v22 = vrot.slane %v29_v17, %v98_v13 }
  0x31   :  { %524 = vmatpush1.bf16.msra.mxu0 %v523_v30  ;;  %v243_v30 = vld [vmem:[%s1191_s3 + $0x370] sm:$0xff] }
  0x32   :  { %588 = vmatpush1.bf16.msra.mxu1 %v587_v31  ;;  %v599_v31 = vpack.c.bf16 %v243_v30, %v239_v29 }
  0x33   :  { %590 = vmatprep.subr.bf16.mxu1 %v589_v59 }
  0x36   :  { %592 = vmatpush1.bf16.msra.mxu1 %v591_v63 }
  0x37   :  { %594 = vmatprep.subr.bf16.mxu1 %v593_v15 }
  0x3a   :  { %596 = vmatpush1.bf16.msra.mxu1 %v595_v19 }
  0x3b   :  { %598 = vmatprep.subr.bf16.mxu1 %v597_v27 }
  0x3e   :  { %600 = vmatpush1.bf16.msra.mxu1 %v599_v31 }
  0x91   :  { %v32_v32 = vpop.xlane.xlu0 %31 }
  0x92   :  { %v43_v33 = vmul.f32 0.00390625, %v32_v32  ;;  %v38_v34 = vpop.xlane.xlu1 %37  ;;  %v246_v32 = vld [vmem:[%s1191_s3 + $0x388] sm:$0xff] }
  0x93   :  { %v45_v35 = vmul.f32 0.00390625, %v38_v34  ;;  %v248_v34 = vld [vmem:[%s1191_s3 + $0x398] sm:$0xff] }
  0x94   :  { %v960_v36 = vsub.f32 %v650_v0, %v43_v33  ;;  %v963_v37 = vsub.f32 %v655_v1, %v43_v33  ;;  %v250_v33 = vld [vmem:[%s1191_s3 + $0x3a8] sm:$0xff] }
  0x95   :  { %v966_v38 = vsub.f32 %v660_v2, %v45_v35  ;;  %v969_v39 = vsub.f32 %v667_v4, %v45_v35  ;;  %v35_v40 = vpop.xlane.xlu0 %34  ;;  %v537_v35 = vpack.c.bf16 %v250_v33, %v246_v32 }
  0x96   :  { %v44_v41 = vmul.f32 0.00390625, %v35_v40  ;;  %v41_v42 = vpop.xlane.xlu1 %40  ;;  %v55_v43 = vmul.f32 %v960_v36, %v960_v36  ;;  %v56_v44 = vmul.f32 %v963_v37, %v963_v37  ;;  %v252_v40 = vld [vmem:[%s1191_s3 + $0x3b8] sm:$0xff] }
  0x97   :  { %v46_v0 = vmul.f32 0.00390625, %v41_v42  ;;  %v59_v1 = vmul.f32 %v966_v38, %v966_v38  ;;  %v60_v2 = vmul.f32 %v969_v39, %v969_v39  ;;  %v249_v42 = vld [vmem:[%s1191_s3 + $0x3a0] sm:$0xff] }
  0x98   :  { %v980_v45 = vsub.f32 %v672_v5, %v44_v41  ;;  %v983_v4 = vsub.f32 %v677_v6, %v44_v41  ;;  %v63_v46 = vadd.f32 %v56_v44, %v55_v43  ;;  %v245_v41 = vld [vmem:[%s1191_s3 + $0x380] sm:$0xff]  ;;  %v601_v43 = vpack.c.bf16 %v252_v40, %v248_v34 }
  0x99   :  { %v986_v47 = vsub.f32 %v684_v8, %v46_v0  ;;  %v989_v48 = vsub.f32 %v689_v9, %v46_v0  ;;  %v69_v49 = vadd.f32 %v60_v2, %v59_v1  ;;  %v222_v9 = vld [vmem:[%s1191_s3 + $0x2c8] sm:$0xff]  ;;  %v539_v44 = vpack.c.bf16 %v249_v42, %v245_v41  ;;  %v247_v0 = vld [vmem:[%s1191_s3 + $0x390] sm:$0xff] }
  0x9a   :  { %64 = vadd.xlane.f32.xlu0 %v63_v46  ;;  %v57_v50 = vmul.f32 %v980_v45, %v980_v45  ;;  %v58_v51 = vmul.f32 %v983_v4, %v983_v4  ;;  %v525_v55 = vpack.c.bf16 %v226_v53, %v222_v9  ;;  %v251_v1 = vld [vmem:[%s1191_s3 + $0x3b0] sm:$0xff]  ;;  %v254_v2 = vld [vmem:[%s1191_s3 + $0x3c8] sm:$0xff]  ;;  %602 = vmatprep.subr.bf16.mxu1 %v601_v43 }
  0x9b   :  { %v61_v5 = vmul.f32 %v986_v47, %v986_v47  ;;  %v62_v6 = vmul.f32 %v989_v48, %v989_v48  ;;  %v603_v46 = vpack.c.bf16 %v251_v1, %v247_v0  ;;  %v255_v9 = vld [vmem:[%s1191_s3 + $0x3d0] sm:$0xff] }
  0x9c   :  { %v66_v52 = vadd.f32 %v58_v51, %v57_v50  ;;  %526 = vmatprep.subr.bf16.mxu0 %v525_v55  ;;  %v256_v50 = vld [vmem:[%s1191_s3 + $0x3d8] sm:$0xff]  ;;  %v607_v55 = vpack.c.bf16 %v259_v54, %v255_v9 }
  0x9d   :  { %v72_v8 = vadd.f32 %v62_v6, %v61_v5  ;;  %528 = vmatpush1.bf16.msra.mxu0 %v527_v60  ;;  %v260_v51 = vld [vmem:[%s1191_s3 + $0x3f8] sm:$0xff]  ;;  %604 = vmatpush1.bf16.msra.mxu1 %v603_v46  ;;  %v277_v46 = vsub.s32 3, %v1119_v3 }
  0x9e   :  { %70 = vadd.xlane.f32.xlu0 %v69_v49  ;;  %67 = vadd.xlane.f32.xlu1 %v66_v52  ;;  %v258_v49 = vld [vmem:[%s1191_s3 + $0x3e8] sm:$0xff]  ;;  %v605_v6 = vpack.c.bf16 %v260_v51, %v256_v50  ;;  %v253_v52 = vld [vmem:[%s1191_s3 + $0x3c0] sm:$0xff] }
  0x9f   :  { %530 = vmatprep.subr.bf16.mxu0 %v529_v11  ;;  %v541_v5 = vpack.c.bf16 %v258_v49, %v254_v2 }
  0xa0   :  { %606 = vmatprep.subr.bf16.mxu1 %v605_v6 }
  0xa1   :  { %532 = vmatpush1.bf16.msra.mxu0 %v531_v16  ;;  %608 = vmatpush1.bf16.msra.mxu1 %v607_v55  ;;  %v28_v16 = vld [vmem:[%s1192_s1] sm:$0x3] }
  0xa2   :  { %73 = vadd.xlane.f32.xlu1 %v72_v8  ;;  %534 = vmatprep.subr.bf16.mxu0 %v533_v23  ;;  %v257_v8 = vld [vmem:[%s1191_s3 + $0x3e0] sm:$0xff]  ;;  %v99_v18 = vrot.slane %v28_v16, %v98_v13  ;;  %v103_v19 = vrot.slane %v28_v16, %v102_v14  ;;  %v122_v23 = vrot.slane %v29_v17, %v102_v14 }
  0xa3   :  { %v543_v53 = vpack.c.bf16 %v257_v8, %v253_v52 }
  0xa5   :  { %536 = vmatpush1.bf16.msra.mxu0 %v535_v28 }
  0xa6   :  { %538 = vmatprep.subr.bf16.mxu0 %v537_v35 }
  0xa9   :  { %540 = vmatpush1.bf16.msra.mxu0 %v539_v44 }
  0xaa   :  { %542 = vmatprep.subr.bf16.mxu0 %v541_v5 }
  0xad   :  { %544 = vmatpush1.bf16.msra.mxu0 %v543_v53 }
 0x127   :  { %v65_v56 = vpop.xlane.xlu0 %64 }
 0x128   :  { %v75_v57 = vmul.f32 0.00390625, %v65_v56 }
 0x12a   :  { %v79_v59 = vadd.f32 1e-05, %v75_v57 }
 0x12b   :  { %v68_v60 = vpop.xlane.xlu1 %67  ;;  %v71_v61 = vpop.xlane.xlu0 %70 }
 0x12c   :  { %609 = vrsqrt.f32 %v79_v59  ;;  %v76_v62 = vmul.f32 0.00390625, %v68_v60  ;;  %v77_v63 = vmul.f32 0.00390625, %v71_v61 }
 0x12e   :  { %v80_v7 = vadd.f32 1e-05, %v76_v62  ;;  %v81_v10 = vadd.f32 1e-05, %v77_v63 }
 0x12f   :  { %v74_v11 = vpop.xlane.xlu1 %73 }
 0x130   :  { %611 = vrsqrt.f32 %v80_v7  ;;  %v78_v12 = vmul.f32 0.00390625, %v74_v11 }
 0x131   :  { %613 = vrsqrt.f32 %v81_v10 }
 0x132   :  { %v82_v15 = vadd.f32 1e-05, %v78_v12 }
 0x134   :  { %615 = vrsqrt.f32 %v82_v15 }
 0x136   :  { %v610_v20 = vpop.eup %609 }
 0x137   :  { %v88_v21 = vmul.f32 %v610_v20, %v963_v37  ;;  %v87_v24 = vmul.f32 %v610_v20, %v960_v36 }
 0x139   :  { %v107_v25 = vmul.f32 %v103_v19, %v88_v21  ;;  %v106_v26 = vmul.f32 %v99_v18, %v87_v24 }
 0x13a   :  { %v612_v27 = vpop.eup %611 }
 0x13b   :  { %v614_v28 = vpop.eup %613  ;;  %v126_v29 = vadd.f32 %v122_v23, %v107_v25  ;;  %v125_v30 = vadd.f32 %v118_v22, %v106_v26  ;;  %v90_v31 = vmul.f32 %v612_v27, %v983_v4  ;;  %v89_v32 = vmul.f32 %v612_v27, %v980_v45 }
 0x13c   :  { %v92_v33 = vmul.f32 %v614_v28, %v969_v39  ;;  %v91_v34 = vmul.f32 %v614_v28, %v966_v38 }
 0x13d   :  { %347 = vmatprep.mubr.f32.mxu0 %v126_v29  ;;  %436 = vmatprep.mubr.f32.mxu1 %v126_v29  ;;  %v109_v37 = vmul.f32 %v103_v19, %v90_v31  ;;  %v108_v35 = vmul.f32 %v99_v18, %v89_v32 }
 0x13e   :  { %v616_v40 = vpop.eup %615  ;;  %348 = vmatmul.mubr.f32.vlgmr.msra.gmra.mrb[0].mxu0 %v125_v30  ;;  %437 = vmatmul.mubr.f32.vlgmr.msra.gmra.mrb[0].mxu1 %v125_v30  ;;  %v111_v36 = vmul.f32 %v103_v19, %v92_v33  ;;  %v110_v44 = vmul.f32 %v99_v18, %v91_v34 }
 0x13f   :  { %v128_v41 = vadd.f32 %v122_v23, %v109_v37  ;;  %v127_v42 = vadd.f32 %v118_v22, %v108_v35  ;;  %v94_v43 = vmul.f32 %v616_v40, %v989_v48  ;;  %v93_v4 = vmul.f32 %v616_v40, %v986_v47  ;;  %v261_v48 = vld [vmem:[%s1194_s4] sm:$0xf] }
 0x140   :  { %v130_v39 = vadd.f32 %v122_v23, %v111_v36  ;;  %v129_v38 = vadd.f32 %v118_v22, %v110_v44  ;;  %v273_v47 = vsub.s32 2, %v1119_v3  ;;  %v266_v49 = vrot.slane %v261_v48, %v98_v13 }
 0x141   :  { %353 = vmatprep.mubr.f32.mxu0 %v128_v41  ;;  %442 = vmatprep.mubr.f32.mxu1 %v128_v41  ;;  %v113_v45 = vmul.f32 %v103_v19, %v94_v43  ;;  %v112_v0 = vmul.f32 %v99_v18, %v93_v4  ;;  %v270_v51 = vrot.slane %v261_v48, %v102_v14 }
 0x142   :  { %354 = vmatmul.mubr.f32.gmra.mrb[2].mxu0 %v127_v42  ;;  %443 = vmatmul.mubr.f32.gmra.mrb[2].mxu1 %v127_v42  ;;  %v274_v50 = vrot.slane %v261_v48, %v273_v47  ;;  %v278_v5 = vrot.slane %v261_v48, %v277_v46 }
 0x143   :  { %359 = vmatprep.mubr.f32.mxu0 %v130_v39  ;;  %448 = vmatprep.mubr.f32.mxu1 %v130_v39  ;;  %v132_v1 = vadd.f32 %v122_v23, %v113_v45  ;;  %v131_v2 = vadd.f32 %v118_v22, %v112_v0 }
 0x146   :  { %360 = vmatmul.mubr.f32.gmra.mrb[4].mxu0 %v129_v38  ;;  %449 = vmatmul.mubr.f32.gmra.mrb[4].mxu1 %v129_v38 }
 0x147   :  { %365 = vmatprep.mubr.f32.mxu0 %v132_v1  ;;  %454 = vmatprep.mubr.f32.mxu1 %v132_v1 }
 0x14a   :  { %366 = vmatmul.mubr.f32.gmra.mrb[6].mxu0 %v131_v2  ;;  %455 = vmatmul.mubr.f32.gmra.mrb[6].mxu1 %v131_v2 }
 0x211   :  { %v349_v6 = vpop.f32.mrb[0].mxu0  ;;  %v438_v52 = vpop.f32.mrb[0].mxu1 }
 0x212   :  { %v350_v8 = vadd.f32 %v349_v6, %v266_v49  ;;  %v439_v9 = vadd.f32 %v438_v52, %v274_v50  ;;  %v351_v53 = vpop.f32.mrb[1].mxu0  ;;  %v440_v54 = vpop.f32.mrb[1].mxu1 }
 0x213   :  { %v352_v55 = vadd.f32 %v351_v53, %v270_v51  ;;  %v441_v56 = vadd.f32 %v440_v54, %v278_v5 }
 0x214   :  { %461 = vst [vmem:[%s1195_s5] sm:$0xff] %v350_v8  ;;  %463 = vst [vmem:[%s1195_s5 + $0x10] sm:$0xff] %v439_v9 }
 0x215   :  { %462 = vst [vmem:[%s1195_s5 + $0x8] sm:$0xff] %v352_v55  ;;  %464 = vst [vmem:[%s1195_s5 + $0x18] sm:$0xff] %v441_v56  ;;  %v355_v57 = vpop.f32.mrb[2].mxu0  ;;  %v444_v58 = vpop.f32.mrb[2].mxu1 }
 0x216   :  { %v356_v59 = vadd.f32 %v355_v57, %v266_v49  ;;  %v445_v60 = vadd.f32 %v444_v58, %v274_v50  ;;  %v357_v61 = vpop.f32.mrb[3].mxu0  ;;  %v446_v62 = vpop.f32.mrb[3].mxu1 }
 0x217   :  { %v358_v63 = vadd.f32 %v357_v61, %v270_v51  ;;  %v447_v3 = vadd.f32 %v446_v62, %v278_v5 }
 0x218   :  { %465 = vst [vmem:[%s1195_s5 + $0x20] sm:$0xff] %v356_v59  ;;  %467 = vst [vmem:[%s1195_s5 + $0x30] sm:$0xff] %v445_v60 }
 0x219   :  { %466 = vst [vmem:[%s1195_s5 + $0x28] sm:$0xff] %v358_v63  ;;  %468 = vst [vmem:[%s1195_s5 + $0x38] sm:$0xff] %v447_v3  ;;  %v361_v7 = vpop.f32.mrb[4].mxu0  ;;  %v450_v10 = vpop.f32.mrb[4].mxu1 }
 0x21a   :  { %v362_v11 = vadd.f32 %v361_v7, %v266_v49  ;;  %v451_v12 = vadd.f32 %v450_v10, %v274_v50  ;;  %v363_v13 = vpop.f32.mrb[5].mxu0  ;;  %v452_v14 = vpop.f32.mrb[5].mxu1 }
 0x21b   :  { %v364_v15 = vadd.f32 %v363_v13, %v270_v51  ;;  %v453_v16 = vadd.f32 %v452_v14, %v278_v5 }
 0x21c   :  { %469 = vst [vmem:[%s1195_s5 + $0x40] sm:$0xff] %v362_v11  ;;  %471 = vst [vmem:[%s1195_s5 + $0x50] sm:$0xff] %v451_v12 }
 0x21d   :  { %470 = vst [vmem:[%s1195_s5 + $0x48] sm:$0xff] %v364_v15  ;;  %472 = vst [vmem:[%s1195_s5 + $0x58] sm:$0xff] %v453_v16  ;;  %v367_v17 = vpop.f32.mrb[6].mxu0  ;;  %v456_v18 = vpop.f32.mrb[6].mxu1 }
 0x21e   :  { %v368_v19 = vadd.f32 %v367_v17, %v266_v49  ;;  %v457_v20 = vadd.f32 %v456_v18, %v274_v50  ;;  %v369_v21 = vpop.f32.mrb[7].mxu0  ;;  %v458_v22 = vpop.f32.mrb[7].mxu1 }
 0x21f   :  { %v370_v23 = vadd.f32 %v369_v21, %v270_v51  ;;  %v459_v24 = vadd.f32 %v458_v22, %v278_v5 }
 0x220   :  { %473 = vst [vmem:[%s1195_s5 + $0x60] sm:$0xff] %v368_v19  ;;  %475 = vst [vmem:[%s1195_s5 + $0x70] sm:$0xff] %v457_v20 }
 0x221   :  { %474 = vst [vmem:[%s1195_s5 + $0x68] sm:$0xff] %v370_v23  ;;  %476 = vst [vmem:[%s1195_s5 + $0x78] sm:$0xff] %v459_v24 }

// kernel: reactive_transformer_layer.15
= control target key start
LH: loop header
LB: loop body
LE: loop exit
PB: predicated region body
PF: predicated region fallthrough
CT: control target
= control target key end

     0   :  { %s7074_s0 = inlined_call_operand.vmem [shape: f32[128,256], index: 0, kind: input, shape index: {}]   ;;  %s7075_s1 = inlined_call_operand.vmem [shape: f32[1,256], index: 1, kind: input, shape index: {}]   ;;  %s7076_s2 = inlined_call_operand.vmem [shape: f32[1,256], index: 2, kind: input, shape index: {}]   ;;  %s7077_s3 = inlined_call_operand.vmem [shape: f32[256,512], index: 3, kind: input, shape index: {}]   ;;  %s7078_s4 = inlined_call_operand.vmem [shape: f32[1,512], index: 4, kind: input, shape index: {}]   ;;  %s7079_s5 = inlined_call_operand.vmem [shape: f32[512,256], index: 5, kind: input, shape index: {}]   ;;  %s7080_s6 = inlined_call_operand.vmem [shape: f32[1,256], index: 6, kind: input, shape index: {}]   ;;  %s7081_s7 = inlined_call_operand.hbm [shape: f32[128,256], index: 7, kind: output, shape index: {}]  }
   0x1   :  { %v3860_v0 = vld [vmem:[%s7074_s0] sm:$0xff]  ;;  %v3865_v1 = vld [vmem:[%s7074_s0 + $0x8] sm:$0xff]  ;;  %v3882_v5 = vld [vmem:[%s7074_s0 + $0x10] sm:$0xff] }
   0x2   :  { %v3870_v2 = vld [vmem:[%s7074_s0 + $0x20] sm:$0xff]  ;;  %v61_v3 = vadd.f32 %v3865_v1, %v3860_v0  ;;  %v3877_v4 = vld [vmem:[%s7074_s0 + $0x28] sm:$0xff]  ;;  %v3887_v6 = vld [vmem:[%s7074_s0 + $0x18] sm:$0xff] }
   0x3   :  { %v67_v7 = vadd.f32 %v3877_v4, %v3870_v2  ;;  %v3894_v8 = vld [vmem:[%s7074_s0 + $0x30] sm:$0xff]  ;;  %v3899_v9 = vld [vmem:[%s7074_s0 + $0x38] sm:$0xff]  ;;  %v64_v10 = vadd.f32 %v3887_v6, %v3882_v5  ;;  %v3908_v12 = vld [vmem:[%s7074_s0 + $0x40] sm:$0xff] }
   0x4   :  { %62 = vadd.xlane.f32.xlu0 %v61_v3  ;;  %v70_v11 = vadd.f32 %v3899_v9, %v3894_v8  ;;  %v3913_v13 = vld [vmem:[%s7074_s0 + $0x48] sm:$0xff]  ;;  %v3918_v14 = vld [vmem:[%s7074_s0 + $0x50] sm:$0xff]  ;;  %v3923_v15 = vld [vmem:[%s7074_s0 + $0x58] sm:$0xff] }
   0x5   :  { %68 = vadd.xlane.f32.xlu1 %v67_v7  ;;  %v73_v16 = vadd.f32 %v3913_v13, %v3908_v12  ;;  %v76_v17 = vadd.f32 %v3923_v15, %v3918_v14  ;;  %v3932_v18 = vld [vmem:[%s7074_s0 + $0x60] sm:$0xff]  ;;  %v3937_v19 = vld [vmem:[%s7074_s0 + $0x68] sm:$0xff]  ;;  %v3942_v20 = vld [vmem:[%s7074_s0 + $0x70] sm:$0xff] }
   0x6   :  { %v3947_v21 = vld [vmem:[%s7074_s0 + $0x78] sm:$0xff] }
   0x8   :  { %65 = vadd.xlane.f32.xlu0 %v64_v10 }
   0x9   :  { %71 = vadd.xlane.f32.xlu1 %v70_v11 }
   0xa   :  { %12 = vsyncpa [#allocation3], 0  ;;  %v79_v22 = vadd.f32 %v3937_v19, %v3932_v18  ;;  %v82_v23 = vadd.f32 %v3947_v21, %v3942_v20  ;;  %v3956_v24 = vld [vmem:[%s7074_s0 + $0x80] sm:$0xff]  ;;  %v3961_v25 = vld [vmem:[%s7074_s0 + $0x88] sm:$0xff]  ;;  %s3814_s15 = smov [#allocation2]  }
   0xb   :  { %v3966_v26 = vld [vmem:[%s7074_s0 + $0x90] sm:$0xff]  ;;  %v3971_v27 = vld [vmem:[%s7074_s0 + $0x98] sm:$0xff]  ;;  %v85_v28 = vadd.f32 %v3961_v25, %v3956_v24  ;;  %v3980_v30 = vld [vmem:[%s7074_s0 + $0xa0] sm:$0xff]  ;;  %s3135_s16 = sshll.u32 %s3814_s15, 4  ;;  %s3136_s16 = int_to_ptr.vmem [resolvable:$true] %s3135_s16 }
   0xc   :  { %74 = vadd.xlane.f32.xlu0 %v73_v16  ;;  %v88_v29 = vadd.f32 %v3971_v27, %v3966_v26  ;;  %v3985_v31 = vld [vmem:[%s7074_s0 + $0xa8] sm:$0xff]  ;;  %v3990_v32 = vld [vmem:[%s7074_s0 + $0xb0] sm:$0xff]  ;;  %v3995_v33 = vld [vmem:[%s7074_s0 + $0xb8] sm:$0xff]  ;;  %s3790_s18 = scalar_lea.vmem %s3136_s16, 4096  ;;  %p3795_p1 = scmp.lt.s32.totalorder %s3136_s16, %s3136_s16 }
   0xd   :  { %77 = vadd.xlane.f32.xlu1 %v76_v17  ;;  %v91_v34 = vadd.f32 %v3985_v31, %v3980_v30  ;;  %v94_v35 = vadd.f32 %v3995_v33, %v3990_v32  ;;  %v4004_v36 = vld [vmem:[%s7074_s0 + $0xc0] sm:$0xff]  ;;  %v4009_v37 = vld [vmem:[%s7074_s0 + $0xc8] sm:$0xff]  ;;  %v4014_v38 = vld [vmem:[%s7074_s0 + $0xd0] sm:$0xff]  ;;  %p3791_p0 = scmp.ne.s32.totalorder %s3136_s16, %s3790_s18  ;;  %p3796_p2 = scmp.lt.s32.totalorder %s3790_s18, %s3790_s18 }
   0xe   :  { %v4019_v39 = vld [vmem:[%s7074_s0 + $0xd8] sm:$0xff]  ;;  %v97_v40 = vadd.f32 %v4009_v37, %v4004_v36  ;;  %v4028_v42 = vld [vmem:[%s7074_s0 + $0xe0] sm:$0xff]  ;;  %v4033_v43 = vld [vmem:[%s7074_s0 + $0xe8] sm:$0xff] }
   0xf   :  { %v100_v41 = vadd.f32 %v4019_v39, %v4014_v38  ;;  %v4038_v44 = vld [vmem:[%s7074_s0 + $0xf0] sm:$0xff]  ;;  %v4043_v45 = vld [vmem:[%s7074_s0 + $0xf8] sm:$0xff]  ;;  %v103_v46 = vadd.f32 %v4033_v43, %v4028_v42  ;;  %v405_v48 = vld [vmem:[%s7077_s3 + $0x8] sm:$0xff]  ;;  %p3797_p3 = por %p3796_p2, %p3795_p1 }
  0x10   :  { %80 = vadd.xlane.f32.xlu0 %v79_v22  ;;  %v106_v47 = vadd.f32 %v4043_v45, %v4038_v44  ;;  %v409_v49 = vld [vmem:[%s7077_s3 + $0x28] sm:$0xff]  ;;  %v404_v50 = vld [vmem:[%s7077_s3] sm:$0xff] }
  0x11   :  { %83 = vadd.xlane.f32.xlu1 %v82_v23  ;;  %v3146_v51 = vpack.c.bf16 %v409_v49, %v405_v48  ;;  %v408_v52 = vld [vmem:[%s7077_s3 + $0x20] sm:$0xff]  ;;  %v413_v53 = vld [vmem:[%s7077_s3 + $0x48] sm:$0xff]  ;;  %p3798_p4 = pnand %p3797_p3, %p3791_p0 }
  0x12   :  { %v417_v54 = vld [vmem:[%s7077_s3 + $0x68] sm:$0xff]  ;;  %v3148_v55 = vpack.c.bf16 %v408_v52, %v404_v50  ;;  %v412_v57 = vld [vmem:[%s7077_s3 + $0x40] sm:$0xff] }
  0x13   :  { %v3150_v56 = vpack.c.bf16 %v417_v54, %v413_v53  ;;  %v416_v58 = vld [vmem:[%s7077_s3 + $0x60] sm:$0xff]  ;;  %v421_v59 = vld [vmem:[%s7077_s3 + $0x88] sm:$0xff]  ;;  %3147 = vmatprep.subr.bf16.mxu1 %v3146_v51 }
  0x14   :  { %86 = vadd.xlane.f32.xlu0 %v85_v28  ;;  %v425_v60 = vld [vmem:[%s7077_s3 + $0xa8] sm:$0xff]  ;;  %3149 = vmatpush1.bf16.msra.mxu1 %v3148_v55  ;;  %v3152_v61 = vpack.c.bf16 %v416_v58, %v412_v57  ;;  %v420_v63 = vld [vmem:[%s7077_s3 + $0x80] sm:$0xff] }
  0x15   :  { %89 = vadd.xlane.f32.xlu1 %v88_v29  ;;  %3151 = vmatprep.subr.bf16.mxu1 %v3150_v56  ;;  %v3154_v62 = vpack.c.bf16 %v425_v60, %v421_v59  ;;  %v424_v3 = vld [vmem:[%s7077_s3 + $0xa0] sm:$0xff]  ;;  %v429_v7 = vld [vmem:[%s7077_s3 + $0xc8] sm:$0xff] }
  0x16   :  { %v433_v10 = vld [vmem:[%s7077_s3 + $0xe8] sm:$0xff]  ;;  %v3156_v11 = vpack.c.bf16 %v424_v3, %v420_v63  ;;  %v428_v17 = vld [vmem:[%s7077_s3 + $0xc0] sm:$0xff] }
  0x17   :  { %v3158_v16 = vpack.c.bf16 %v433_v10, %v429_v7  ;;  %v432_v22 = vld [vmem:[%s7077_s3 + $0xe0] sm:$0xff]  ;;  %v437_v23 = vld [vmem:[%s7077_s3 + $0x108] sm:$0xff] }
  0x18   :  { %92 = vadd.xlane.f32.xlu0 %v91_v34  ;;  %3153 = vmatpush1.bf16.msra.mxu1 %v3152_v61  ;;  %v441_v28 = vld [vmem:[%s7077_s3 + $0x128] sm:$0xff]  ;;  %v3160_v29 = vpack.c.bf16 %v432_v22, %v428_v17  ;;  %v444_v49 = vld [vmem:[%s7077_s3 + $0x140] sm:$0xff] }
  0x19   :  { %95 = vadd.xlane.f32.xlu1 %v94_v35  ;;  %3155 = vmatprep.subr.bf16.mxu1 %v3154_v62  ;;  %v3162_v34 = vpack.c.bf16 %v441_v28, %v437_v23  ;;  %v436_v35 = vld [vmem:[%s7077_s3 + $0x100] sm:$0xff]  ;;  %v453_v51 = vld [vmem:[%s7077_s3 + $0x188] sm:$0xff] }
  0x1a   :  { %v448_v50 = vld [vmem:[%s7077_s3 + $0x160] sm:$0xff]  ;;  %v457_v52 = vld [vmem:[%s7077_s3 + $0x1a8] sm:$0xff] }
  0x1b   :  { %v3168_v53 = vpack.c.bf16 %v448_v50, %v444_v49  ;;  %v3170_v54 = vpack.c.bf16 %v457_v52, %v453_v51  ;;  %v452_v55 = vld [vmem:[%s7077_s3 + $0x180] sm:$0xff]  ;;  %v461_v57 = vld [vmem:[%s7077_s3 + $0x1c8] sm:$0xff] }
  0x1c   :  { %98 = vadd.xlane.f32.xlu0 %v97_v40  ;;  %3157 = vmatpush1.bf16.msra.mxu1 %v3156_v11  ;;  %v440_v40 = vld [vmem:[%s7077_s3 + $0x120] sm:$0xff]  ;;  %v465_v58 = vld [vmem:[%s7077_s3 + $0x1e8] sm:$0xff] }
  0x1d   :  { %101 = vadd.xlane.f32.xlu1 %v100_v41  ;;  %3159 = vmatprep.subr.bf16.mxu1 %v3158_v16  ;;  %v445_v41 = vld [vmem:[%s7077_s3 + $0x148] sm:$0xff]  ;;  %v456_v56 = vld [vmem:[%s7077_s3 + $0x1a0] sm:$0xff]  ;;  %v3174_v60 = vpack.c.bf16 %v465_v58, %v461_v57 }
  0x1e   :  { %v3172_v59 = vpack.c.bf16 %v456_v56, %v452_v55  ;;  %v460_v61 = vld [vmem:[%s7077_s3 + $0x1c0] sm:$0xff]  ;;  %v469_v63 = vld [vmem:[%s7077_s3 + $0x208] sm:$0xff] }
  0x1f   :  { %v464_v62 = vld [vmem:[%s7077_s3 + $0x1e0] sm:$0xff]  ;;  %v473_v3 = vld [vmem:[%s7077_s3 + $0x228] sm:$0xff] }
  0x20   :  { %104 = vadd.xlane.f32.xlu0 %v103_v46  ;;  %v449_v46 = vld [vmem:[%s7077_s3 + $0x168] sm:$0xff]  ;;  %3161 = vmatpush1.bf16.msra.mxu1 %v3160_v29  ;;  %v3176_v7 = vpack.c.bf16 %v464_v62, %v460_v61  ;;  %v3178_v10 = vpack.c.bf16 %v473_v3, %v469_v63  ;;  %v468_v11 = vld [vmem:[%s7077_s3 + $0x200] sm:$0xff] }
  0x21   :  { %107 = vadd.xlane.f32.xlu1 %v106_v47  ;;  %v3164_v47 = vpack.c.bf16 %v440_v40, %v436_v35  ;;  %3163 = vmatprep.subr.bf16.mxu1 %v3162_v34  ;;  %v3166_v48 = vpack.c.bf16 %v449_v46, %v445_v41  ;;  %v472_v16 = vld [vmem:[%s7077_s3 + $0x220] sm:$0xff]  ;;  %v477_v17 = vld [vmem:[%s7077_s3 + $0x248] sm:$0xff] }
  0x22   :  { %v481_v22 = vld [vmem:[%s7077_s3 + $0x268] sm:$0xff]  ;;  %v3180_v23 = vpack.c.bf16 %v472_v16, %v468_v11  ;;  %v476_v29 = vld [vmem:[%s7077_s3 + $0x240] sm:$0xff] }
  0x23   :  { %v3182_v28 = vpack.c.bf16 %v481_v22, %v477_v17  ;;  %v480_v34 = vld [vmem:[%s7077_s3 + $0x260] sm:$0xff]  ;;  %v485_v35 = vld [vmem:[%s7077_s3 + $0x288] sm:$0xff] }
  0x24   :  { %3165 = vmatpush1.bf16.msra.mxu1 %v3164_v47  ;;  %v489_v40 = vld [vmem:[%s7077_s3 + $0x2a8] sm:$0xff]  ;;  %v3184_v41 = vpack.c.bf16 %v480_v34, %v476_v29  ;;  %v484_v47 = vld [vmem:[%s7077_s3 + $0x280] sm:$0xff] }
  0x25   :  { %3167 = vmatprep.subr.bf16.mxu1 %v3166_v48  ;;  %v3186_v46 = vpack.c.bf16 %v489_v40, %v485_v35  ;;  %v488_v48 = vld [vmem:[%s7077_s3 + $0x2a0] sm:$0xff] }
  0x26   :  { %v3188_v49 = vpack.c.bf16 %v488_v48, %v484_v47 }
  0x28   :  { %3169 = vmatpush1.bf16.msra.mxu1 %v3168_v53 }
  0x29   :  { %3171 = vmatprep.subr.bf16.mxu1 %v3170_v54 }
  0x2c   :  { %3173 = vmatpush1.bf16.msra.mxu1 %v3172_v59 }
  0x2d   :  { %3175 = vmatprep.subr.bf16.mxu1 %v3174_v60 }
  0x30   :  { %3177 = vmatpush1.bf16.msra.mxu1 %v3176_v7 }
  0x31   :  { %3179 = vmatprep.subr.bf16.mxu1 %v3178_v10 }
  0x34   :  { %3181 = vmatpush1.bf16.msra.mxu1 %v3180_v23 }
  0x35   :  { %3183 = vmatprep.subr.bf16.mxu1 %v3182_v28 }
  0x38   :  { %3185 = vmatpush1.bf16.msra.mxu1 %v3184_v41 }
  0x39   :  { %3187 = vmatprep.subr.bf16.mxu1 %v3186_v46 }
  0x3c   :  { %3189 = vmatpush1.bf16.msra.mxu1 %v3188_v49 }
  0x91   :  { %v63_v50 = vpop.xlane.xlu0 %62 }
  0x92   :  { %v110_v51 = vmul.f32 0.00390625, %v63_v50  ;;  %v69_v52 = vpop.xlane.xlu1 %68 }
  0x93   :  { %v112_v53 = vmul.f32 0.00390625, %v69_v52 }
  0x94   :  { %v4182_v54 = vsub.f32 %v3860_v0, %v110_v51  ;;  %v4185_v55 = vsub.f32 %v3865_v1, %v110_v51 }
  0x95   :  { %v4188_v56 = vsub.f32 %v3870_v2, %v112_v53  ;;  %v4191_v57 = vsub.f32 %v3877_v4, %v112_v53  ;;  %v66_v58 = vpop.xlane.xlu0 %65 }
  0x96   :  { %v111_v59 = vmul.f32 0.00390625, %v66_v58  ;;  %v72_v60 = vpop.xlane.xlu1 %71  ;;  %v158_v61 = vmul.f32 %v4182_v54, %v4182_v54  ;;  %v159_v62 = vmul.f32 %v4185_v55, %v4185_v55 }
  0x97   :  { %v113_v0 = vmul.f32 0.00390625, %v72_v60  ;;  %v162_v1 = vmul.f32 %v4188_v56, %v4188_v56  ;;  %v163_v2 = vmul.f32 %v4191_v57, %v4191_v57 }
  0x98   :  { %v4202_v63 = vsub.f32 %v3882_v5, %v111_v59  ;;  %v4205_v4 = vsub.f32 %v3887_v6, %v111_v59  ;;  %v190_v3 = vadd.f32 %v159_v62, %v158_v61 }
  0x99   :  { %v4208_v7 = vsub.f32 %v3894_v8, %v113_v0  ;;  %v4211_v10 = vsub.f32 %v3899_v9, %v113_v0  ;;  %v75_v11 = vpop.xlane.xlu0 %74  ;;  %v196_v22 = vadd.f32 %v163_v2, %v162_v1 }
  0x9a   :  { %v114_v16 = vmul.f32 0.00390625, %v75_v11  ;;  %191 = vadd.xlane.f32.xlu0 %v190_v3  ;;  %v78_v17 = vpop.xlane.xlu1 %77  ;;  %v160_v23 = vmul.f32 %v4202_v63, %v4202_v63  ;;  %v161_v5 = vmul.f32 %v4205_v4, %v4205_v4 }
  0x9b   :  { %v115_v6 = vmul.f32 0.00390625, %v78_v17  ;;  %v164_v28 = vmul.f32 %v4208_v7, %v4208_v7  ;;  %v165_v8 = vmul.f32 %v4211_v10, %v4211_v10 }
  0x9c   :  { %v4222_v9 = vsub.f32 %v3908_v12, %v114_v16  ;;  %v4225_v29 = vsub.f32 %v3913_v13, %v114_v16  ;;  %v193_v34 = vadd.f32 %v161_v5, %v160_v23 }
  0x9d   :  { %v4228_v35 = vsub.f32 %v3918_v14, %v115_v6  ;;  %v4231_v40 = vsub.f32 %v3923_v15, %v115_v6  ;;  %v81_v41 = vpop.xlane.xlu0 %80  ;;  %v199_v48 = vadd.f32 %v165_v8, %v164_v28  ;;  %v493_v28 = vld [vmem:[%s7077_s3 + $0x2c8] sm:$0xff] }
  0x9e   :  { %v116_v46 = vmul.f32 0.00390625, %v81_v41  ;;  %197 = vadd.xlane.f32.xlu0 %v196_v22  ;;  %194 = vadd.xlane.f32.xlu1 %v193_v34  ;;  %v84_v47 = vpop.xlane.xlu1 %83  ;;  %v166_v12 = vmul.f32 %v4222_v9, %v4222_v9  ;;  %v167_v13 = vmul.f32 %v4225_v29, %v4225_v29  ;;  %v497_v8 = vld [vmem:[%s7077_s3 + $0x2e8] sm:$0xff] }
  0x9f   :  { %v117_v49 = vmul.f32 0.00390625, %v84_v47  ;;  %v168_v14 = vmul.f32 %v4228_v35, %v4228_v35  ;;  %v169_v15 = vmul.f32 %v4231_v40, %v4231_v40  ;;  %v3190_v47 = vpack.c.bf16 %v497_v8, %v493_v28 }
  0xa0   :  { %v4242_v50 = vsub.f32 %v3932_v18, %v116_v46  ;;  %v4245_v51 = vsub.f32 %v3937_v19, %v116_v46  ;;  %v202_v52 = vadd.f32 %v167_v13, %v166_v12  ;;  %v496_v12 = vld [vmem:[%s7077_s3 + $0x2e0] sm:$0xff] }
  0xa1   :  { %v4248_v53 = vsub.f32 %v3942_v20, %v117_v49  ;;  %v4251_v58 = vsub.f32 %v3947_v21, %v117_v49  ;;  %v87_v59 = vpop.xlane.xlu0 %86  ;;  %v205_v62 = vadd.f32 %v169_v15, %v168_v14  ;;  %3191 = vmatprep.subr.bf16.mxu1 %v3190_v47  ;;  %v509_v47 = vld [vmem:[%s7077_s3 + $0x348] sm:$0xff] }
  0xa2   :  { %v118_v60 = vmul.f32 0.00390625, %v87_v59  ;;  %200 = vadd.xlane.f32.xlu1 %v199_v48  ;;  %203 = vadd.xlane.f32.xlu0 %v202_v52  ;;  %v90_v61 = vpop.xlane.xlu1 %89  ;;  %v170_v18 = vmul.f32 %v4242_v50, %v4242_v50  ;;  %v171_v19 = vmul.f32 %v4245_v51, %v4245_v51  ;;  %v492_v48 = vld [vmem:[%s7077_s3 + $0x2c0] sm:$0xff] }
  0xa3   :  { %v119_v0 = vmul.f32 0.00390625, %v90_v61  ;;  %v172_v20 = vmul.f32 %v4248_v53, %v4248_v53  ;;  %v173_v21 = vmul.f32 %v4251_v58, %v4251_v58  ;;  %v3192_v14 = vpack.c.bf16 %v496_v12, %v492_v48  ;;  %v513_v48 = vld [vmem:[%s7077_s3 + $0x368] sm:$0xff] }
  0xa4   :  { %v4262_v1 = vsub.f32 %v3956_v24, %v118_v60  ;;  %v4265_v2 = vsub.f32 %v3961_v25, %v118_v60  ;;  %v208_v3 = vadd.f32 %v171_v19, %v170_v18 }
  0xa5   :  { %v4268_v11 = vsub.f32 %v3966_v26, %v119_v0  ;;  %v4271_v16 = vsub.f32 %v3971_v27, %v119_v0  ;;  %v93_v17 = vpop.xlane.xlu0 %92  ;;  %v211_v5 = vadd.f32 %v173_v21, %v172_v20  ;;  %3193 = vmatpush1.bf16.msra.mxu1 %v3192_v14  ;;  %v501_v0 = vld [vmem:[%s7077_s3 + $0x308] sm:$0xff]  ;;  %v3198_v14 = vpack.c.bf16 %v513_v48, %v509_v47 }
  0xa6   :  { %v120_v22 = vmul.f32 0.00390625, %v93_v17  ;;  %206 = vadd.xlane.f32.xlu1 %v205_v62  ;;  %209 = vadd.xlane.f32.xlu0 %v208_v3  ;;  %v96_v23 = vpop.xlane.xlu1 %95  ;;  %v174_v24 = vmul.f32 %v4262_v1, %v4262_v1  ;;  %v175_v25 = vmul.f32 %v4265_v2, %v4265_v2  ;;  %v505_v20 = vld [vmem:[%s7077_s3 + $0x328] sm:$0xff] }
  0xa7   :  { %v121_v6 = vmul.f32 0.00390625, %v96_v23  ;;  %v176_v26 = vmul.f32 %v4268_v11, %v4268_v11  ;;  %v177_v27 = vmul.f32 %v4271_v16, %v4271_v16  ;;  %v504_v23 = vld [vmem:[%s7077_s3 + $0x320] sm:$0xff] }
  0xa8   :  { %v4288_v34 = vsub.f32 %v3980_v30, %v120_v22  ;;  %v4291_v41 = vsub.f32 %v3985_v31, %v120_v22  ;;  %v214_v46 = vadd.f32 %v175_v25, %v174_v24  ;;  %v500_v22 = vld [vmem:[%s7077_s3 + $0x300] sm:$0xff] }
  0xa9   :  { %v4300_v13 = vsub.f32 %v3990_v32, %v121_v6  ;;  %v4303_v49 = vsub.f32 %v3995_v33, %v121_v6  ;;  %v99_v30 = vpop.xlane.xlu0 %98  ;;  %v217_v52 = vadd.f32 %v177_v27, %v176_v26  ;;  %v3196_v25 = vpack.c.bf16 %v504_v23, %v500_v22  ;;  %v524_v23 = vld [vmem:[%s7077_s3 + $0x3c0] sm:$0xff] }
  0xaa   :  { %v122_v31 = vmul.f32 0.00390625, %v99_v30  ;;  %212 = vadd.xlane.f32.xlu1 %v211_v5  ;;  %215 = vadd.xlane.f32.xlu0 %v214_v46  ;;  %v102_v15 = vpop.xlane.xlu1 %101  ;;  %v178_v59 = vmul.f32 %v4288_v34, %v4288_v34  ;;  %v179_v60 = vmul.f32 %v4291_v41, %v4291_v41 }
  0xab   :  { %v123_v61 = vmul.f32 0.00390625, %v102_v15  ;;  %v180_v32 = vmul.f32 %v4300_v13, %v4300_v13  ;;  %v181_v33 = vmul.f32 %v4303_v49, %v4303_v49 }
  0xac   :  { %v4314_v62 = vsub.f32 %v4004_v36, %v122_v31  ;;  %v4317_v18 = vsub.f32 %v4009_v37, %v122_v31  ;;  %v220_v19 = vadd.f32 %v179_v60, %v178_v59  ;;  %v3194_v37 = vpack.c.bf16 %v505_v20, %v501_v0  ;;  %v512_v31 = vld [vmem:[%s7077_s3 + $0x360] sm:$0xff] }
  0xad   :  { %v4326_v21 = vsub.f32 %v4014_v38, %v123_v61  ;;  %v4329_v3 = vsub.f32 %v4019_v39, %v123_v61  ;;  %v105_v36 = vpop.xlane.xlu0 %104  ;;  %v223_v17 = vadd.f32 %v181_v33, %v180_v32  ;;  %v517_v61 = vld [vmem:[%s7077_s3 + $0x388] sm:$0xff]  ;;  %v520_v0 = vld [vmem:[%s7077_s3 + $0x3a0] sm:$0xff] }
  0xae   :  { %v124_v5 = vmul.f32 0.00390625, %v105_v36  ;;  %218 = vadd.xlane.f32.xlu1 %v217_v52  ;;  %221 = vadd.xlane.f32.xlu0 %v220_v19  ;;  %v108_v24 = vpop.xlane.xlu1 %107  ;;  %v182_v38 = vmul.f32 %v4314_v62, %v4314_v62  ;;  %v183_v39 = vmul.f32 %v4317_v18, %v4317_v18  ;;  %v521_v32 = vld [vmem:[%s7077_s3 + $0x3a8] sm:$0xff]  ;;  %v516_v19 = vld [vmem:[%s7077_s3 + $0x380] sm:$0xff] }
  0xaf   :  { %v125_v6 = vmul.f32 0.00390625, %v108_v24  ;;  %v184_v26 = vmul.f32 %v4326_v21, %v4326_v21  ;;  %v185_v27 = vmul.f32 %v4329_v3, %v4329_v3  ;;  %3195 = vmatprep.subr.bf16.mxu1 %v3194_v37  ;;  %v3202_v33 = vpack.c.bf16 %v521_v32, %v517_v61  ;;  %v529_v37 = vld [vmem:[%s7077_s3 + $0x3e8] sm:$0xff] }
  0xb0   :  { %v4346_v28 = vsub.f32 %v4028_v42, %v124_v5  ;;  %v4349_v8 = vsub.f32 %v4033_v43, %v124_v5  ;;  %v226_v46 = vadd.f32 %v183_v39, %v182_v38  ;;  %3197 = vmatpush1.bf16.msra.mxu1 %v3196_v25  ;;  %v508_v43 = vld [vmem:[%s7077_s3 + $0x340] sm:$0xff]  ;;  %v3204_v36 = vpack.c.bf16 %v520_v0, %v516_v19  ;;  %v407_v38 = vld [vmem:[%s7077_s3 + $0x18] sm:$0xff] }
  0xb1   :  { %v4358_v12 = vsub.f32 %v4038_v44, %v125_v6  ;;  %v4361_v30 = vsub.f32 %v4043_v45, %v125_v6  ;;  %v229_v42 = vadd.f32 %v185_v27, %v184_v26  ;;  %v3200_v45 = vpack.c.bf16 %v512_v31, %v508_v43  ;;  %3199 = vmatprep.subr.bf16.mxu1 %v3198_v14  ;;  %v528_v5 = vld [vmem:[%s7077_s3 + $0x3e0] sm:$0xff]  ;;  %v411_v39 = vld [vmem:[%s7077_s3 + $0x38] sm:$0xff] }
  0xb2   :  { %224 = vadd.xlane.f32.xlu1 %v223_v17  ;;  %227 = vadd.xlane.f32.xlu0 %v226_v46  ;;  %v186_v15 = vmul.f32 %v4346_v28, %v4346_v28  ;;  %v187_v44 = vmul.f32 %v4349_v8, %v4349_v8  ;;  %v525_v17 = vld [vmem:[%s7077_s3 + $0x3c8] sm:$0xff]  ;;  %v3208_v24 = vpack.c.bf16 %v528_v5, %v524_v23  ;;  %v319_v27 = vlaneseq  ;;  %v59_v19 = vld [vmem:[%s7075_s1] sm:$0x3] }
  0xb3   :  { %v188_v52 = vmul.f32 %v4358_v12, %v4358_v12  ;;  %v189_v59 = vmul.f32 %v4361_v30, %v4361_v30  ;;  %v3206_v22 = vpack.c.bf16 %v529_v37, %v525_v17  ;;  %v3210_v25 = vpack.c.bf16 %v411_v39, %v407_v38  ;;  %v60_v37 = vld [vmem:[%s7076_s2] sm:$0x3] }
  0xb4   :  { %v232_v60 = vadd.f32 %v187_v44, %v186_v15  ;;  %3201 = vmatpush1.bf16.msra.mxu1 %v3200_v45  ;;  %v4407_v43 = vshrl.u32 %v319_v27, 7 }
  0xb5   :  { %v235_v20 = vadd.f32 %v189_v59, %v188_v52  ;;  %3203 = vmatprep.subr.bf16.mxu1 %v3202_v33 }
  0xb6   :  { %230 = vadd.xlane.f32.xlu1 %v229_v42  ;;  %233 = vadd.xlane.f32.xlu0 %v232_v60  ;;  %v4410_v60 = vsub.s32 0, %v4407_v43  ;;  %v4413_v61 = vsub.s32 1, %v4407_v43 }
  0xb8   :  { %3205 = vmatpush1.bf16.msra.mxu1 %v3204_v36  ;;  %7222 = vst [vmem:[#allocation5_spill] sm:$0xff] %v4410_v60  ;;  %7223 = vst [vmem:[#allocation6_spill] sm:$0xff] %v4413_v61  ;;  %v4425_v23 = vrot.slane %v59_v19, %v4413_v61 }
  0xb9   :  { %3207 = vmatprep.subr.bf16.mxu1 %v3206_v22  ;;  %v4422_v22 = vrot.slane %v59_v19, %v4410_v60 }
  0xba   :  { %236 = vadd.xlane.f32.xlu1 %v235_v20 }
  0xbc   :  { %3209 = vmatpush1.bf16.msra.mxu1 %v3208_v24 }
  0xbd   :  { %3211 = vmatprep.subr.bf16.mxu1 %v3210_v25 }
 0x127   :  { %v192_v6 = vpop.xlane.xlu0 %191 }
 0x128   :  { %v238_v26 = vmul.f32 0.00390625, %v192_v6  ;;  %v4429_v6 = vrot.slane %v60_v37, %v4410_v60 }
 0x12a   :  { %v254_v46 = vadd.f32 1e-05, %v238_v26  ;;  %v4432_v26 = vrot.slane %v60_v37, %v4413_v61 }
 0x12b   :  { %v195_v47 = vpop.xlane.xlu1 %194  ;;  %v198_v48 = vpop.xlane.xlu0 %197 }
 0x12c   :  { %3469 = vrsqrt.f32 %v254_v46  ;;  %v239_v42 = vmul.f32 0.00390625, %v195_v47  ;;  %v240_v14 = vmul.f32 0.00390625, %v198_v48  ;;  %v406_v46 = vld [vmem:[%s7077_s3 + $0x10] sm:$0xff] }
 0x12d   :  { %v410_v47 = vld [vmem:[%s7077_s3 + $0x30] sm:$0xff] }
 0x12e   :  { %v255_v31 = vadd.f32 1e-05, %v239_v42  ;;  %v256_v15 = vadd.f32 1e-05, %v240_v14 }
 0x12f   :  { %v201_v44 = vpop.xlane.xlu1 %200  ;;  %v204_v45 = vpop.xlane.xlu0 %203 }
 0x130   :  { %3471 = vrsqrt.f32 %v255_v31  ;;  %v241_v52 = vmul.f32 0.00390625, %v201_v44  ;;  %v242_v59 = vmul.f32 0.00390625, %v204_v45  ;;  %v415_v31 = vld [vmem:[%s7077_s3 + $0x58] sm:$0xff]  ;;  %v3212_v45 = vpack.c.bf16 %v410_v47, %v406_v46 }
 0x131   :  { %3473 = vrsqrt.f32 %v256_v15 }
 0x132   :  { %v257_v32 = vadd.f32 1e-05, %v241_v52  ;;  %v258_v33 = vadd.f32 1e-05, %v242_v59  ;;  %v414_v52 = vld [vmem:[%s7077_s3 + $0x50] sm:$0xff] }
 0x133   :  { %v207_v0 = vpop.xlane.xlu1 %206  ;;  %v210_v20 = vpop.xlane.xlu0 %209 }
 0x134   :  { %3475 = vrsqrt.f32 %v257_v32  ;;  %v243_v36 = vmul.f32 0.00390625, %v207_v0  ;;  %v244_v17 = vmul.f32 0.00390625, %v210_v20  ;;  %v418_v20 = vld [vmem:[%s7077_s3 + $0x70] sm:$0xff] }
 0x135   :  { %3477 = vrsqrt.f32 %v258_v33 }
 0x136   :  { %v3470_v5 = vpop.eup %3469  ;;  %v259_v24 = vadd.f32 1e-05, %v243_v36  ;;  %v260_v48 = vadd.f32 1e-05, %v244_v17  ;;  %v2605_v36 = vld [vmem:[%s7079_s5 + $0x8] sm:$0xff]  ;;  %v2607_v17 = vld [vmem:[%s7079_s5 + $0x18] sm:$0xff] }
 0x137   :  { %v213_v38 = vpop.xlane.xlu1 %212  ;;  %v216_v39 = vpop.xlane.xlu0 %215  ;;  %v287_v25 = vmul.f32 %v3470_v5, %v4185_v55  ;;  %v286_v27 = vmul.f32 %v3470_v5, %v4182_v54  ;;  %v419_v54 = vld [vmem:[%s7077_s3 + $0x78] sm:$0xff] }
 0x138   :  { %3479 = vrsqrt.f32 %v259_v24  ;;  %v245_v42 = vmul.f32 0.00390625, %v213_v38  ;;  %v246_v44 = vmul.f32 0.00390625, %v216_v39  ;;  %v3214_v24 = vpack.c.bf16 %v419_v54, %v415_v31  ;;  %v423_v39 = vld [vmem:[%s7077_s3 + $0x98] sm:$0xff] }
 0x139   :  { %v330_v55 = vmul.f32 %v4425_v23, %v287_v25  ;;  %v329_v14 = vmul.f32 %v4422_v22, %v286_v27  ;;  %3481 = vrsqrt.f32 %v260_v48  ;;  %v427_v25 = vld [vmem:[%s7077_s3 + $0xb8] sm:$0xff] }
 0x13a   :  { %v3472_v15 = vpop.eup %3471  ;;  %v261_v37 = vadd.f32 1e-05, %v245_v42  ;;  %v262_v47 = vadd.f32 1e-05, %v246_v44  ;;  %v3274_v42 = vpack.c.bf16 %v2607_v17, %v2605_v36  ;;  %v3218_v44 = vpack.c.bf16 %v427_v25, %v423_v39  ;;  %v439_v25 = vld [vmem:[%s7077_s3 + $0x118] sm:$0xff] }
 0x13b   :  { %v3474_v59 = vpop.eup %3473  ;;  %v4453_v32 = vadd.f32 %v4432_v26, %v330_v55  ;;  %v4456_v33 = vadd.f32 %v4429_v6, %v329_v14  ;;  %v289_v19 = vmul.f32 %v3472_v15, %v4205_v4  ;;  %v288_v0 = vmul.f32 %v3472_v15, %v4202_v63  ;;  %v219_v5 = vpop.xlane.xlu1 %218 }
 0x13c   :  { %v291_v4 = vmul.f32 %v3474_v59, %v4191_v57  ;;  %v290_v27 = vmul.f32 %v3474_v59, %v4188_v56  ;;  %v3216_v57 = vpack.c.bf16 %v418_v20, %v414_v52  ;;  %v247_v14 = vmul.f32 0.00390625, %v219_v5  ;;  %v222_v56 = vpop.xlane.xlu0 %221  ;;  %v422_v59 = vld [vmem:[%s7077_s3 + $0x90] sm:$0xff]  ;;  %3275 = vmatprep.subr.bf16.mxu0 %v3274_v42  ;;  %v435_v20 = vld [vmem:[%s7077_s3 + $0xf8] sm:$0xff] }
 0x13d   :  { %618 = vmatprep.mubr.f32.mxu1 %v4453_v32  ;;  %v332_v63 = vmul.f32 %v4425_v23, %v289_v19  ;;  %v331_v38 = vmul.f32 %v4422_v22, %v288_v0  ;;  %3483 = vrsqrt.f32 %v261_v37  ;;  %v431_v0 = vld [vmem:[%s7077_s3 + $0xd8] sm:$0xff] }
 0x13e   :  { %v3476_v46 = vpop.eup %3475  ;;  %619 = vmatmul.mubr.f32.vlgmr.msra.gmra.mrb[0].mxu1 %v4456_v33  ;;  %v334_v48 = vmul.f32 %v4425_v23, %v291_v4  ;;  %v333_v52 = vmul.f32 %v4422_v22, %v290_v27  ;;  %3485 = vrsqrt.f32 %v262_v47  ;;  %v263_v5 = vadd.f32 1e-05, %v247_v14  ;;  %v443_v27 = vld [vmem:[%s7077_s3 + $0x138] sm:$0xff] }
 0x13f   :  { %v3478_v55 = vpop.eup %3477  ;;  %3213 = vmatpush1.bf16.msra.mxu1 %v3212_v45  ;;  %v4483_v31 = vadd.f32 %v4432_v26, %v332_v63  ;;  %v4486_v54 = vadd.f32 %v4429_v6, %v331_v38  ;;  %v293_v15 = vmul.f32 %v3476_v46, %v4211_v10  ;;  %v426_v45 = vld [vmem:[%s7077_s3 + $0xb0] sm:$0xff]  ;;  %v292_v36 = vmul.f32 %v3476_v46, %v4208_v7  ;;  %v225_v47 = vpop.xlane.xlu1 %224 }
 0x140   :  { %3215 = vmatprep.subr.bf16.mxu1 %v3214_v24  ;;  %v4498_v19 = vadd.f32 %v4432_v26, %v334_v48  ;;  %v295_v37 = vmul.f32 %v3478_v55, %v4225_v29  ;;  %v248_v24 = vmul.f32 0.00390625, %v222_v56  ;;  %v3220_v4 = vpack.c.bf16 %v426_v45, %v422_v59  ;;  %v430_v63 = vld [vmem:[%s7077_s3 + $0xd0] sm:$0xff] }
 0x141   :  { %624 = vmatprep.mubr.f32.mxu1 %v4483_v31  ;;  %v336_v10 = vmul.f32 %v4425_v23, %v293_v15  ;;  %v4515_v38 = vadd.f32 %v4429_v6, %v333_v52  ;;  %v3222_v7 = vpack.c.bf16 %v435_v20, %v431_v0  ;;  %v335_v39 = vmul.f32 %v4422_v22, %v292_v36  ;;  %v434_v29 = vld [vmem:[%s7077_s3 + $0xf0] sm:$0xff]  ;;  %v228_v52 = vpop.xlane.xlu0 %227  ;;  %v451_v0 = vld [vmem:[%s7077_s3 + $0x178] sm:$0xff] }
 0x142   :  { %v3480_v17 = vpop.eup %3479  ;;  %625 = vmatmul.mubr.f32.gmra.mrb[2].mxu1 %v4486_v54  ;;  %v294_v46 = vmul.f32 %v3478_v55, %v4222_v9  ;;  %v338_v48 = vmul.f32 %v4425_v23, %v295_v37  ;;  %3487 = vrsqrt.f32 %v263_v5  ;;  %v264_v15 = vadd.f32 1e-05, %v248_v24  ;;  %v438_v9 = vld [vmem:[%s7077_s3 + $0x110] sm:$0xff] }
 0x143   :  { %3217 = vmatpush1.bf16.msra.mxu1 %v3216_v57  ;;  %630 = vmatprep.mubr.f32.mxu1 %v4498_v19  ;;  %v4529_v57 = vadd.f32 %v4432_v26, %v336_v10  ;;  %v297_v42 = vmul.f32 %v3480_v17, %v4231_v40  ;;  %v3482_v14 = vpop.eup %3481  ;;  %v3224_v56 = vpack.c.bf16 %v434_v29, %v430_v63  ;;  %v249_v55 = vmul.f32 0.00390625, %v225_v47  ;;  %v442_v45 = vld [vmem:[%s7077_s3 + $0x130] sm:$0xff]  ;;  %v447_v10 = vld [vmem:[%s7077_s3 + $0x158] sm:$0xff] }
 0x144   :  { %3219 = vmatprep.subr.bf16.mxu1 %v3218_v44  ;;  %v3226_v44 = vpack.c.bf16 %v443_v27, %v439_v25  ;;  %v4539_v59 = vadd.f32 %v4429_v6, %v335_v39  ;;  %v337_v40 = vmul.f32 %v4422_v22, %v294_v46  ;;  %v296_v20 = vmul.f32 %v3480_v17, %v4228_v35  ;;  %v446_v35 = vld [vmem:[%s7077_s3 + $0x150] sm:$0xff]  ;;  %v455_v27 = vld [vmem:[%s7077_s3 + $0x198] sm:$0xff] }
 0x145   :  { %v4553_v36 = vadd.f32 %v4432_v26, %v338_v48  ;;  %v340_v37 = vmul.f32 %v4425_v23, %v297_v42  ;;  %v299_v5 = vmul.f32 %v3482_v14, %v4245_v51  ;;  %3489 = vrsqrt.f32 %v264_v15  ;;  %v450_v17 = vld [vmem:[%s7077_s3 + $0x170] sm:$0xff]  ;;  %v231_v51 = vpop.xlane.xlu1 %230  ;;  %v459_v46 = vld [vmem:[%s7077_s3 + $0x1b8] sm:$0xff] }
 0x146   :  { %631 = vmatmul.mubr.f32.gmra.mrb[4].mxu1 %v4515_v38  ;;  %v3228_v63 = vpack.c.bf16 %v442_v45, %v438_v9  ;;  %v265_v39 = vadd.f32 1e-05, %v249_v55  ;;  %v4566_v29 = vadd.f32 %v4429_v6, %v337_v40  ;;  %v339_v25 = vmul.f32 %v4422_v22, %v296_v20  ;;  %v467_v20 = vld [vmem:[%s7077_s3 + $0x1f8] sm:$0xff] }
 0x147   :  { %3221 = vmatpush1.bf16.msra.mxu1 %v3220_v4  ;;  %636 = vmatprep.mubr.f32.mxu1 %v4529_v57  ;;  %v3484_v24 = vpop.eup %3483  ;;  %v250_v4 = vmul.f32 0.00390625, %v228_v52  ;;  %v298_v47 = vmul.f32 %v3482_v14, %v4242_v50  ;;  %v4577_v42 = vadd.f32 %v4432_v26, %v340_v37  ;;  %v342_v15 = vmul.f32 %v4425_v23, %v299_v5  ;;  %v454_v50 = vld [vmem:[%s7077_s3 + $0x190] sm:$0xff] }
 0x148   :  { %3223 = vmatprep.subr.bf16.mxu1 %v3222_v7  ;;  %v3230_v7 = vpack.c.bf16 %v451_v0, %v447_v10  ;;  %v3486_v48 = vpop.eup %3485  ;;  %v251_v55 = vmul.f32 0.00390625, %v231_v51  ;;  %v3234_v52 = vpack.c.bf16 %v459_v46, %v455_v27  ;;  %v458_v14 = vld [vmem:[%s7077_s3 + $0x1b0] sm:$0xff]  ;;  %v300_v40 = vmul.f32 %v3484_v24, %v4248_v53  ;;  %v463_v0 = vld [vmem:[%s7077_s3 + $0x1d8] sm:$0xff]  ;;  %v2609_v27 = vld [vmem:[%s7079_s5 + $0x28] sm:$0xff] }
 0x149   :  { %v266_v9 = vadd.f32 1e-05, %v250_v4  ;;  %3491 = vrsqrt.f32 %v265_v39  ;;  %v4591_v45 = vadd.f32 %v4429_v6, %v339_v25  ;;  %v341_v10 = vmul.f32 %v4422_v22, %v298_v47  ;;  %v466_v25 = vld [vmem:[%s7077_s3 + $0x1f0] sm:$0xff]  ;;  %v2611_v46 = vld [vmem:[%s7079_s5 + $0x38] sm:$0xff] }
 0x14a   :  { %637 = vmatmul.mubr.f32.gmra.mrb[6].mxu1 %v4539_v59  ;;  %v303_v37 = vmul.f32 %v3486_v48, %v4265_v2  ;;  %v4602_v53 = vadd.f32 %v4432_v26, %v342_v15  ;;  %v3236_v4 = vpack.c.bf16 %v458_v14, %v454_v50  ;;  %v2606_v2 = vld [vmem:[%s7079_s5 + $0x10] sm:$0xff]  ;;  %v3238_v39 = vpack.c.bf16 %v467_v20, %v463_v0  ;;  %v237_v14 = vpop.xlane.xlu1 %236 }
 0x14b   :  { %3225 = vmatpush1.bf16.msra.mxu1 %v3224_v56  ;;  %642 = vmatprep.mubr.f32.mxu1 %v4553_v36  ;;  %v301_v56 = vmul.f32 %v3484_v24, %v4251_v58  ;;  %v234_v58 = vpop.xlane.xlu0 %233  ;;  %v343_v51 = vmul.f32 %v4422_v22, %v300_v40  ;;  %3493 = vrsqrt.f32 %v266_v9  ;;  %v4627_v47 = vadd.f32 %v4429_v6, %v341_v10 }
 0x14c   :  { %3227 = vmatprep.subr.bf16.mxu1 %v3226_v44  ;;  %v3232_v44 = vpack.c.bf16 %v450_v17, %v446_v35  ;;  %v3488_v5 = vpop.eup %3487  ;;  %v267_v35 = vadd.f32 1e-05, %v251_v55  ;;  %v252_v17 = vmul.f32 0.00390625, %v234_v58  ;;  %v346_v15 = vmul.f32 %v4425_v23, %v303_v37  ;;  %v2608_v58 = vld [vmem:[%s7079_s5 + $0x20] sm:$0xff] }
 0x14d   :  { %v344_v24 = vmul.f32 %v4425_v23, %v301_v56  ;;  %v471_v56 = vld [vmem:[%s7077_s3 + $0x218] sm:$0xff]  ;;  %v302_v55 = vmul.f32 %v3486_v48, %v4262_v1  ;;  %v3278_v0 = vpack.c.bf16 %v2611_v46, %v2609_v27  ;;  %v2610_v1 = vld [vmem:[%s7079_s5 + $0x30] sm:$0xff]  ;;  %v2613_v48 = vld [vmem:[%s7079_s5 + $0x48] sm:$0xff]  ;;  %v4656_v37 = vadd.f32 %v4429_v6, %v343_v51 }
 0x14e   :  { %643 = vmatmul.mubr.f32.gmra.mrb[8].mxu1 %v4566_v29  ;;  %3495 = vrsqrt.f32 %v267_v35  ;;  %v268_v20 = vadd.f32 1e-05, %v252_v17  ;;  %v479_v35 = vld [vmem:[%s7077_s3 + $0x258] sm:$0xff]  ;;  %v304_v51 = vmul.f32 %v3488_v5, %v4268_v11  ;;  %v3280_v46 = vpack.c.bf16 %v2610_v1, %v2608_v58 }
 0x14f   :  { %3229 = vmatpush1.bf16.msra.mxu1 %v3228_v63  ;;  %648 = vmatprep.mubr.f32.mxu1 %v4577_v42  ;;  %v462_v63 = vld [vmem:[%s7077_s3 + $0x1d0] sm:$0xff]  ;;  %v3490_v50 = vpop.eup %3489  ;;  %v4638_v9 = vadd.f32 %v4432_v26, %v344_v24  ;;  %v483_v17 = vld [vmem:[%s7077_s3 + $0x278] sm:$0xff] }
 0x150   :  { %3231 = vmatprep.subr.bf16.mxu1 %v3230_v7  ;;  %v2604_v7 = vld [vmem:[%s7079_s5] sm:$0xff]  ;;  %v3240_v10 = vpack.c.bf16 %v466_v25, %v462_v63  ;;  %v470_v63 = vld [vmem:[%s7077_s3 + $0x210] sm:$0xff]  ;;  %v345_v25 = vmul.f32 %v4422_v22, %v302_v55  ;;  %v307_v27 = vmul.f32 %v3490_v50, %v4291_v41  ;;  %3497 = vrsqrt.f32 %v268_v20  ;;  %v491_v1 = vld [vmem:[%s7077_s3 + $0x2b8] sm:$0xff] }
 0x151   :  { %v3276_v40 = vpack.c.bf16 %v2606_v2, %v2604_v7  ;;  %v253_v7 = vmul.f32 0.00390625, %v237_v14  ;;  %v4662_v2 = vadd.f32 %v4432_v26, %v346_v15  ;;  %v3246_v41 = vpack.c.bf16 %v483_v17, %v479_v35 }
 0x152   :  { %649 = vmatmul.mubr.f32.gmra.mrb[10].mxu1 %v4591_v45  ;;  %v306_v14 = vmul.f32 %v3490_v50, %v4288_v34  ;;  %v347_v58 = vmul.f32 %v4422_v22, %v304_v51 }
 0x153   :  { %3233 = vmatpush1.bf16.msra.mxu1 %v3232_v44  ;;  %654 = vmatprep.mubr.f32.mxu1 %v4602_v53  ;;  %v475_v44 = vld [vmem:[%s7077_s3 + $0x238] sm:$0xff]  ;;  %v3492_v55 = vpop.eup %3491 }
 0x154   :  { %3235 = vmatprep.subr.bf16.mxu1 %v3234_v52  ;;  %v305_v52 = vmul.f32 %v3488_v5, %v4271_v16  ;;  %v2615_v16 = vld [vmem:[%s7079_s5 + $0x58] sm:$0xff]  ;;  %v3242_v24 = vpack.c.bf16 %v475_v44, %v471_v56  ;;  %3277 = vmatpush1.bf16.msra.mxu0 %v3276_v40  ;;  %v2612_v56 = vld [vmem:[%s7079_s5 + $0x40] sm:$0xff]  ;;  %v2614_v44 = vld [vmem:[%s7079_s5 + $0x50] sm:$0xff]  ;;  %v4690_v40 = vadd.f32 %v4429_v6, %v345_v25 }
 0x155   :  { %3279 = vmatprep.subr.bf16.mxu0 %v3278_v0  ;;  %v3282_v15 = vpack.c.bf16 %v2615_v16, %v2613_v48  ;;  %v478_v5 = vld [vmem:[%s7077_s3 + $0x250] sm:$0xff]  ;;  %v487_v0 = vld [vmem:[%s7077_s3 + $0x298] sm:$0xff]  ;;  %v3284_v34 = vpack.c.bf16 %v2614_v44, %v2612_v56  ;;  %v350_v48 = vmul.f32 %v4425_v23, %v307_v27  ;;  %v309_v16 = vmul.f32 %v3492_v55, %v4303_v49  ;;  %v3494_v20 = vpop.eup %3493 }
 0x156   :  { %655 = vmatmul.mubr.f32.gmra.mrb[12].mxu1 %v4627_v47  ;;  %v349_v25 = vmul.f32 %v4422_v22, %v306_v14  ;;  %v486_v49 = vld [vmem:[%s7077_s3 + $0x290] sm:$0xff]  ;;  %v308_v35 = vmul.f32 %v3492_v55, %v4300_v13  ;;  %v495_v27 = vld [vmem:[%s7077_s3 + $0x2d8] sm:$0xff] }
 0x157   :  { %3237 = vmatpush1.bf16.msra.mxu1 %v3236_v4  ;;  %660 = vmatprep.mubr.f32.mxu1 %v4638_v9  ;;  %v474_v4 = vld [vmem:[%s7077_s3 + $0x230] sm:$0xff]  ;;  %v4721_v51 = vadd.f32 %v4432_v26, %v350_v48 }
 0x158   :  { %3239 = vmatprep.subr.bf16.mxu1 %v3238_v39  ;;  %v348_v39 = vmul.f32 %v4425_v23, %v305_v52  ;;  %v3244_v11 = vpack.c.bf16 %v474_v4, %v470_v63  ;;  %v269_v52 = vadd.f32 1e-05, %v253_v7  ;;  %3281 = vmatpush1.bf16.msra.mxu0 %v3280_v46  ;;  %v3250_v63 = vpack.c.bf16 %v491_v1, %v487_v0  ;;  %v490_v4 = vld [vmem:[%s7077_s3 + $0x2b0] sm:$0xff]  ;;  %v3496_v17 = vpop.eup %3495  ;;  %v499_v46 = vld [vmem:[%s7077_s3 + $0x2f8] sm:$0xff] }
 0x159   :  { %3283 = vmatprep.subr.bf16.mxu0 %v3282_v15  ;;  %v4710_v7 = vadd.f32 %v4429_v6, %v347_v58  ;;  %v311_v15 = vmul.f32 %v3494_v20, %v4317_v18  ;;  %v3252_v13 = vpack.c.bf16 %v490_v4, %v486_v49  ;;  %v4734_v56 = vadd.f32 %v4429_v6, %v349_v25  ;;  %v498_v18 = vld [vmem:[%s7077_s3 + $0x2f0] sm:$0xff]  ;;  %v503_v58 = vld [vmem:[%s7077_s3 + $0x318] sm:$0xff] }
 0x15a   :  { %661 = vmatmul.mubr.f32.gmra.mrb[14].mxu1 %v4656_v37  ;;  %v4703_v50 = vadd.f32 %v4432_v26, %v348_v39  ;;  %3499 = vrsqrt.f32 %v269_v52  ;;  %v352_v39 = vmul.f32 %v4425_v23, %v309_v16  ;;  %v3254_v44 = vpack.c.bf16 %v499_v46, %v495_v27  ;;  %v502_v16 = vld [vmem:[%s7077_s3 + $0x310] sm:$0xff]  ;;  %v511_v25 = vld [vmem:[%s7077_s3 + $0x358] sm:$0xff] }
 0x15b   :  { %3241 = vmatpush1.bf16.msra.mxu1 %v3240_v10  ;;  %666 = vmatprep.mubr.f32.mxu1 %v4662_v2  ;;  %v482_v10 = vld [vmem:[%s7077_s3 + $0x270] sm:$0xff]  ;;  %v351_v55 = vmul.f32 %v4422_v22, %v308_v35  ;;  %v354_v52 = vmul.f32 %v4425_v23, %v311_v15  ;;  %v313_v0 = vmul.f32 %v3496_v17, %v4329_v3  ;;  %v515_v49 = vld [vmem:[%s7077_s3 + $0x378] sm:$0xff] }
 0x15c   :  { %3243 = vmatprep.subr.bf16.mxu1 %v3242_v24  ;;  %v3248_v24 = vpack.c.bf16 %v482_v10, %v478_v5  ;;  %3285 = vmatpush1.bf16.msra.mxu0 %v3284_v34  ;;  %v3498_v5 = vpop.eup %3497  ;;  %v4745_v14 = vadd.f32 %v4432_v26, %v352_v39  ;;  %v507_v10 = vld [vmem:[%s7077_s3 + $0x338] sm:$0xff]  ;;  %v506_v3 = vld [vmem:[%s7077_s3 + $0x330] sm:$0xff]  ;;  %v3262_v39 = vpack.c.bf16 %v515_v49, %v511_v25 }
 0x15d   :  { %v4758_v1 = vadd.f32 %v4429_v6, %v351_v55  ;;  %v3258_v34 = vpack.c.bf16 %v507_v10, %v503_v58  ;;  %v315_v4 = vmul.f32 %v3498_v5, %v4349_v8  ;;  %v510_v46 = vld [vmem:[%s7077_s3 + $0x350] sm:$0xff]  ;;  %v314_v15 = vmul.f32 %v3498_v5, %v4346_v28  ;;  %v519_v55 = vld [vmem:[%s7077_s3 + $0x398] sm:$0xff] }
 0x15e   :  { %667 = vmatmul.mubr.f32.gmra.mrb[16].mxu1 %v4690_v40  ;;  %v514_v8 = vld [vmem:[%s7077_s3 + $0x370] sm:$0xff] }
 0x15f   :  { %3245 = vmatpush1.bf16.msra.mxu1 %v3244_v11  ;;  %672 = vmatprep.mubr.f32.mxu1 %v4703_v50  ;;  %v494_v11 = vld [vmem:[%s7077_s3 + $0x2d0] sm:$0xff]  ;;  %v3264_v28 = vpack.c.bf16 %v514_v8, %v510_v46  ;;  %v2639_v8 = vld [vmem:[%s7079_s5 + $0x118] sm:$0xff] }
 0x160   :  { %3247 = vmatprep.subr.bf16.mxu1 %v3246_v41  ;;  %v310_v41 = vmul.f32 %v3494_v20, %v4314_v62  ;;  %v3256_v62 = vpack.c.bf16 %v498_v18, %v494_v11  ;;  %v312_v20 = vmul.f32 %v3496_v17, %v4326_v21  ;;  %v3260_v21 = vpack.c.bf16 %v506_v3, %v502_v16  ;;  %v523_v11 = vld [vmem:[%s7077_s3 + $0x3b8] sm:$0xff]  ;;  %v518_v58 = vld [vmem:[%s7077_s3 + $0x390] sm:$0xff] }
 0x161   :  { %v3266_v5 = vpack.c.bf16 %v523_v11, %v519_v55  ;;  %v2643_v11 = vld [vmem:[%s7079_s5 + $0x138] sm:$0xff] }
 0x162   :  { %673 = vmatmul.mubr.f32.gmra.mrb[18].mxu1 %v4710_v7  ;;  %v353_v48 = vmul.f32 %v4422_v22, %v310_v41  ;;  %v355_v27 = vmul.f32 %v4422_v22, %v312_v20  ;;  %v526_v20 = vld [vmem:[%s7077_s3 + $0x3d0] sm:$0xff] }
 0x163   :  { %3249 = vmatpush1.bf16.msra.mxu1 %v3248_v24  ;;  %678 = vmatprep.mubr.f32.mxu1 %v4721_v51  ;;  %v4769_v24 = vadd.f32 %v4432_v26, %v354_v52  ;;  %v357_v52 = vmul.f32 %v4422_v22, %v314_v15 }
 0x164   :  { %3251 = vmatprep.subr.bf16.mxu1 %v3250_v63  ;;  %v356_v63 = vmul.f32 %v4425_v23, %v313_v0  ;;  %v3500_v35 = vpop.eup %3499  ;;  %v4782_v17 = vadd.f32 %v4429_v6, %v353_v48  ;;  %v4806_v41 = vadd.f32 %v4429_v6, %v355_v27  ;;  %v531_v48 = vld [vmem:[%s7077_s3 + $0x3f8] sm:$0xff] }
 0x165   :  { %v317_v18 = vmul.f32 %v3500_v35, %v4361_v30  ;;  %v522_v30 = vld [vmem:[%s7077_s3 + $0x3b0] sm:$0xff]  ;;  %v316_v10 = vmul.f32 %v3500_v35, %v4358_v12  ;;  %v4829_v12 = vadd.f32 %v4429_v6, %v357_v52  ;;  %v2635_v27 = vld [vmem:[%s7079_s5 + $0xf8] sm:$0xff] }
 0x166   :  { %679 = vmatmul.mubr.f32.gmra.mrb[20].mxu1 %v4734_v56  ;;  %v3268_v16 = vpack.c.bf16 %v522_v30, %v518_v58  ;;  %v2644_v58 = vld [vmem:[%s7079_s5 + $0x140] sm:$0xff]  ;;  %v2646_v30 = vld [vmem:[%s7079_s5 + $0x150] sm:$0xff] }
 0x167   :  { %3253 = vmatpush1.bf16.msra.mxu1 %v3252_v13  ;;  %684 = vmatprep.mubr.f32.mxu1 %v4745_v14  ;;  %v4793_v13 = vadd.f32 %v4432_v26, %v356_v63  ;;  %v530_v63 = vld [vmem:[%s7077_s3 + $0x3f0] sm:$0xff] }
 0x168   :  { %3255 = vmatprep.subr.bf16.mxu1 %v3254_v44  ;;  %v358_v44 = vmul.f32 %v4425_v23, %v315_v4  ;;  %v3272_v49 = vpack.c.bf16 %v530_v63, %v526_v20  ;;  %v2631_v4 = vld [vmem:[%s7079_s5 + $0xd8] sm:$0xff]  ;;  %v2652_v63 = vld [vmem:[%s7079_s5 + $0x180] sm:$0xff] }
 0x16a   :  { %685 = vmatmul.mubr.f32.gmra.mrb[22].mxu1 %v4758_v1  ;;  %v4817_v0 = vadd.f32 %v4432_v26, %v358_v44  ;;  %v2636_v44 = vld [vmem:[%s7079_s5 + $0x100] sm:$0xff] }
 0x16b   :  { %3257 = vmatpush1.bf16.msra.mxu1 %v3256_v62  ;;  %690 = vmatprep.mubr.f32.mxu1 %v4769_v24  ;;  %v360_v62 = vmul.f32 %v4425_v23, %v317_v18  ;;  %v359_v23 = vmul.f32 %v4422_v22, %v316_v10  ;;  %v3316_v10 = vpack.c.bf16 %v2646_v30, %v2644_v58 }
 0x16c   :  { %3259 = vmatprep.subr.bf16.mxu1 %v3258_v34  ;;  %v527_v34 = vld [vmem:[%s7077_s3 + $0x3d8] sm:$0xff] }
 0x16d   :  { %v3270_v3 = vpack.c.bf16 %v531_v48, %v527_v34  ;;  %v4839_v25 = vadd.f32 %v4432_v26, %v360_v62  ;;  %v4844_v22 = vadd.f32 %v4429_v6, %v359_v23  ;;  %v2617_v6 = vld [vmem:[%s7079_s5 + $0x68] sm:$0xff]  ;;  %v2619_v26 = vld [vmem:[%s7079_s5 + $0x78] sm:$0xff]  ;;  %v2648_v48 = vld [vmem:[%s7079_s5 + $0x160] sm:$0xff] }
 0x16e   :  { %691 = vmatmul.mubr.f32.gmra.mrb[24].mxu1 %v4782_v17  ;;  %v2651_v62 = vld [vmem:[%s7079_s5 + $0x178] sm:$0xff] }
 0x16f   :  { %3261 = vmatpush1.bf16.msra.mxu1 %v3260_v21  ;;  %696 = vmatprep.mubr.f32.mxu1 %v4793_v13  ;;  %v2628_v21 = vld [vmem:[%s7079_s5 + $0xc0] sm:$0xff]  ;;  %v2655_v23 = vld [vmem:[%s7079_s5 + $0x198] sm:$0xff] }
 0x170   :  { %3263 = vmatprep.subr.bf16.mxu1 %v3262_v39  ;;  %v2633_v39 = vld [vmem:[%s7079_s5 + $0xe8] sm:$0xff] }
 0x171   :  { %v3302_v46 = vpack.c.bf16 %v2635_v27, %v2633_v39 }
 0x172   :  { %697 = vmatmul.mubr.f32.gmra.mrb[26].mxu1 %v4806_v41 }
 0x173   :  { %3265 = vmatpush1.bf16.msra.mxu1 %v3264_v28  ;;  %702 = vmatprep.mubr.f32.mxu1 %v4817_v0 }
 0x174   :  { %3267 = vmatprep.subr.bf16.mxu1 %v3266_v5  ;;  %v2647_v5 = vld [vmem:[%s7079_s5 + $0x158] sm:$0xff] }
 0x176   :  { %703 = vmatmul.mubr.f32.gmra.mrb[28].mxu1 %v4829_v12 }
 0x177   :  { %3269 = vmatpush1.bf16.msra.mxu1 %v3268_v16  ;;  %708 = vmatprep.mubr.f32.mxu1 %v4839_v25  ;;  %v2650_v16 = vld [vmem:[%s7079_s5 + $0x170] sm:$0xff] }
 0x178   :  { %3271 = vmatprep.subr.bf16.mxu1 %v3270_v3  ;;  %v2653_v3 = vld [vmem:[%s7079_s5 + $0x188] sm:$0xff] }
 0x179   :  { %v3322_v20 = vpack.c.bf16 %v2655_v23, %v2653_v3  ;;  %v5100_v3 = vld [vmem:[%s7079_s5 + $0x238] sm:$0xff]  ;;  %v5105_v23 = vld [vmem:[%s7079_s5 + $0x220] sm:$0xff] }
 0x17a   :  { %709 = vmatmul.mubr.f32.gmra.mrb[30].mxu1 %v4844_v22  ;;  %7226 = vst [vmem:[#allocation9_spill] sm:$0xff] %v5105_v23 }
 0x17b   :  { %3273 = vmatpush1.bf16.msra.mxu1 %v3272_v49  ;;  %779 = vmatprep.mubr.f32.mxu1 %v4453_v32  ;;  %v3286_v32 = vpack.c.bf16 %v2619_v26, %v2617_v6  ;;  %v2659_v6 = vld [vmem:[%s7079_s5 + $0x1b8] sm:$0xff] }
 0x17d   :  { %3287 = vmatprep.subr.bf16.mxu0 %v3286_v32  ;;  %v2656_v32 = vld [vmem:[%s7079_s5 + $0x1a0] sm:$0xff] }
 0x17e   :  { %780 = vmatmul.mubr.f32.vlgmr.msra.gmra.mrb[32].mxu1 %v4456_v33  ;;  %v2616_v33 = vld [vmem:[%s7079_s5 + $0x60] sm:$0xff] }
 0x17f   :  { %785 = vmatprep.mubr.f32.mxu1 %v4483_v31  ;;  %v2618_v31 = vld [vmem:[%s7079_s5 + $0x70] sm:$0xff] }
 0x182   :  { %786 = vmatmul.mubr.f32.gmra.mrb[34].mxu1 %v4486_v54  ;;  %v3288_v54 = vpack.c.bf16 %v2618_v31, %v2616_v33  ;;  %v2658_v33 = vld [vmem:[%s7079_s5 + $0x1b0] sm:$0xff] }
 0x183   :  { %791 = vmatprep.mubr.f32.mxu1 %v4498_v19  ;;  %v2621_v19 = vld [vmem:[%s7079_s5 + $0x88] sm:$0xff]  ;;  %v3328_v31 = vpack.c.bf16 %v2658_v33, %v2656_v32 }
 0x184   :  { %3289 = vmatpush1.bf16.msra.mxu0 %v3288_v54  ;;  %v2661_v54 = vld [vmem:[%s7079_s5 + $0x1c8] sm:$0xff] }
 0x186   :  { %792 = vmatmul.mubr.f32.gmra.mrb[36].mxu1 %v4515_v38  ;;  %v2623_v38 = vld [vmem:[%s7079_s5 + $0x98] sm:$0xff] }
 0x187   :  { %797 = vmatprep.mubr.f32.mxu1 %v4529_v57  ;;  %v3290_v57 = vpack.c.bf16 %v2623_v38, %v2621_v19  ;;  %v2663_v19 = vld [vmem:[%s7079_s5 + $0x1d8] sm:$0xff] }
 0x188   :  { %v3330_v38 = vpack.c.bf16 %v2663_v19, %v2661_v54 }
 0x189   :  { %3291 = vmatprep.subr.bf16.mxu0 %v3290_v57  ;;  %v2660_v57 = vld [vmem:[%s7079_s5 + $0x1c0] sm:$0xff] }
 0x18a   :  { %798 = vmatmul.mubr.f32.gmra.mrb[38].mxu1 %v4539_v59  ;;  %v2620_v59 = vld [vmem:[%s7079_s5 + $0x80] sm:$0xff] }
 0x18b   :  { %803 = vmatprep.mubr.f32.mxu1 %v4553_v36  ;;  %v2622_v36 = vld [vmem:[%s7079_s5 + $0x90] sm:$0xff] }
 0x18e   :  { %804 = vmatmul.mubr.f32.gmra.mrb[40].mxu1 %v4566_v29  ;;  %v3292_v29 = vpack.c.bf16 %v2622_v36, %v2620_v59  ;;  %v2662_v59 = vld [vmem:[%s7079_s5 + $0x1d0] sm:$0xff] }
 0x18f   :  { %809 = vmatprep.mubr.f32.mxu1 %v4577_v42  ;;  %v2625_v42 = vld [vmem:[%s7079_s5 + $0xa8] sm:$0xff]  ;;  %v3332_v36 = vpack.c.bf16 %v2662_v59, %v2660_v57 }
 0x190   :  { %3293 = vmatpush1.bf16.msra.mxu0 %v3292_v29  ;;  %v2665_v29 = vld [vmem:[%s7079_s5 + $0x1e8] sm:$0xff] }
 0x192   :  { %810 = vmatmul.mubr.f32.gmra.mrb[42].mxu1 %v4591_v45  ;;  %v2627_v45 = vld [vmem:[%s7079_s5 + $0xb8] sm:$0xff] }
 0x193   :  { %815 = vmatprep.mubr.f32.mxu1 %v4602_v53  ;;  %v3294_v53 = vpack.c.bf16 %v2627_v45, %v2625_v42  ;;  %v2667_v42 = vld [vmem:[%s7079_s5 + $0x1f8] sm:$0xff] }
 0x194   :  { %v3334_v45 = vpack.c.bf16 %v2667_v42, %v2665_v29  ;;  %v5141_v29 = vld [vmem:[%s7079_s5 + $0x258] sm:$0xff] }
 0x195   :  { %3295 = vmatprep.subr.bf16.mxu0 %v3294_v53  ;;  %v2664_v53 = vld [vmem:[%s7079_s5 + $0x1e0] sm:$0xff]  ;;  %7231 = vst [vmem:[#allocation14_spill] sm:$0xff] %v5141_v29 }
 0x196   :  { %816 = vmatmul.mubr.f32.gmra.mrb[44].mxu1 %v4627_v47  ;;  %v2624_v47 = vld [vmem:[%s7079_s5 + $0xa0] sm:$0xff] }
 0x197   :  { %821 = vmatprep.mubr.f32.mxu1 %v4638_v9  ;;  %v2626_v9 = vld [vmem:[%s7079_s5 + $0xb0] sm:$0xff] }
 0x19a   :  { %822 = vmatmul.mubr.f32.gmra.mrb[46].mxu1 %v4656_v37  ;;  %v3296_v37 = vpack.c.bf16 %v2626_v9, %v2624_v47  ;;  %v2666_v47 = vld [vmem:[%s7079_s5 + $0x1f0] sm:$0xff] }
 0x19b   :  { %827 = vmatprep.mubr.f32.mxu1 %v4662_v2  ;;  %v2629_v2 = vld [vmem:[%s7079_s5 + $0xc8] sm:$0xff]  ;;  %v3336_v9 = vpack.c.bf16 %v2666_v47, %v2664_v53 }
 0x19c   :  { %3297 = vmatpush1.bf16.msra.mxu0 %v3296_v37  ;;  %v3298_v35 = vpack.c.bf16 %v2631_v4, %v2629_v2  ;;  %v2669_v37 = vld [vmem:[%s7079_s5 + $0x208] sm:$0xff]  ;;  %v2671_v2 = vld [vmem:[%s7079_s5 + $0x218] sm:$0xff] }
 0x19d   :  { %v3338_v4 = vpack.c.bf16 %v2671_v2, %v2669_v37 }
 0x19e   :  { %828 = vmatmul.mubr.f32.gmra.mrb[48].mxu1 %v4690_v40  ;;  %v2630_v40 = vld [vmem:[%s7079_s5 + $0xd0] sm:$0xff]  ;;  %3299 = vmatprep.subr.bf16.mxu0 %v3298_v35 }
 0x19f   :  { %833 = vmatprep.mubr.f32.mxu1 %v4703_v50  ;;  %v3300_v50 = vpack.c.bf16 %v2630_v40, %v2628_v21  ;;  %v5044_v40 = vld [vmem:[%s7078_s4] sm:$0xf] }
 0x1a0   :  { %7224 = vst [vmem:[#allocation7_spill] sm:$0xff] %v5044_v40  ;;  %v5048_v27 = vrot.slane %v5044_v40, %v4410_v60 }
 0x1a1   :  { %3301 = vmatpush1.bf16.msra.mxu0 %v3300_v50 }
 0x1a2   :  { %834 = vmatmul.mubr.f32.gmra.mrb[50].mxu1 %v4710_v7  ;;  %v2632_v7 = vld [vmem:[%s7079_s5 + $0xe0] sm:$0xff]  ;;  %3303 = vmatprep.subr.bf16.mxu0 %v3302_v46  ;;  %v5052_v46 = vrot.slane %v5044_v40, %v4413_v61 }
 0x1a3   :  { %839 = vmatprep.mubr.f32.mxu1 %v4721_v51  ;;  %v2634_v51 = vld [vmem:[%s7079_s5 + $0xf0] sm:$0xff] }
 0x1a6   :  { %840 = vmatmul.mubr.f32.gmra.mrb[52].mxu1 %v4734_v56  ;;  %v3304_v56 = vpack.c.bf16 %v2634_v51, %v2632_v7 }
 0x1a7   :  { %845 = vmatprep.mubr.f32.mxu1 %v4745_v14  ;;  %v2637_v14 = vld [vmem:[%s7079_s5 + $0x108] sm:$0xff] }
 0x1a8   :  { %3305 = vmatpush1.bf16.msra.mxu0 %v3304_v56  ;;  %v3306_v15 = vpack.c.bf16 %v2639_v8, %v2637_v14 }
 0x1aa   :  { %846 = vmatmul.mubr.f32.gmra.mrb[54].mxu1 %v4758_v1  ;;  %v2638_v1 = vld [vmem:[%s7079_s5 + $0x110] sm:$0xff]  ;;  %3307 = vmatprep.subr.bf16.mxu0 %v3306_v15 }
 0x1ab   :  { %851 = vmatprep.mubr.f32.mxu1 %v4769_v24  ;;  %v3308_v55 = vpack.c.bf16 %v2638_v1, %v2636_v44  ;;  %v2641_v24 = vld [vmem:[%s7079_s5 + $0x128] sm:$0xff] }
 0x1ac   :  { %v3310_v18 = vpack.c.bf16 %v2643_v11, %v2641_v24 }
 0x1ad   :  { %3309 = vmatpush1.bf16.msra.mxu0 %v3308_v55 }
 0x1ae   :  { %852 = vmatmul.mubr.f32.gmra.mrb[56].mxu1 %v4782_v17  ;;  %v2640_v17 = vld [vmem:[%s7079_s5 + $0x120] sm:$0xff]  ;;  %3311 = vmatprep.subr.bf16.mxu0 %v3310_v18 }
 0x1af   :  { %857 = vmatprep.mubr.f32.mxu1 %v4793_v13  ;;  %v2642_v13 = vld [vmem:[%s7079_s5 + $0x130] sm:$0xff] }
 0x1b0   :  { %v3312_v28 = vpack.c.bf16 %v2642_v13, %v2640_v17 }
 0x1b2   :  { %858 = vmatmul.mubr.f32.gmra.mrb[58].mxu1 %v4806_v41  ;;  %3313 = vmatpush1.bf16.msra.mxu0 %v3312_v28  ;;  %v2645_v41 = vld [vmem:[%s7079_s5 + $0x148] sm:$0xff] }
 0x1b3   :  { %863 = vmatprep.mubr.f32.mxu1 %v4817_v0  ;;  %v3314_v52 = vpack.c.bf16 %v2647_v5, %v2645_v41  ;;  %v2649_v0 = vld [vmem:[%s7079_s5 + $0x168] sm:$0xff] }
 0x1b4   :  { %v3318_v34 = vpack.c.bf16 %v2651_v62, %v2649_v0  ;;  %v5083_v0 = vld [vmem:[%s7079_s5 + $0x200] sm:$0xff]  ;;  %v5088_v62 = vld [vmem:[%s7079_s5 + $0x210] sm:$0xff] }
 0x1b5   :  { %3315 = vmatprep.subr.bf16.mxu0 %v3314_v52 }
 0x1b6   :  { %864 = vmatmul.mubr.f32.gmra.mrb[60].mxu1 %v4829_v12  ;;  %3317 = vmatpush1.bf16.msra.mxu0 %v3316_v10  ;;  %v3320_v12 = vpack.c.bf16 %v2650_v16, %v2648_v48 }
 0x1b7   :  { %869 = vmatprep.mubr.f32.mxu1 %v4839_v25  ;;  %3319 = vmatprep.subr.bf16.mxu0 %v3318_v34  ;;  %v2654_v25 = vld [vmem:[%s7079_s5 + $0x190] sm:$0xff]  ;;  %v5093_v34 = vld [vmem:[%s7079_s5 + $0x228] sm:$0xff] }
 0x1b8   :  { %v3324_v49 = vpack.c.bf16 %v2654_v25, %v2652_v63  ;;  %7225 = vst [vmem:[#allocation8_spill] sm:$0xff] %v5093_v34 }
 0x1ba   :  { %870 = vmatmul.mubr.f32.gmra.mrb[62].mxu1 %v4844_v22  ;;  %3321 = vmatpush1.bf16.msra.mxu0 %v3320_v12  ;;  %v2657_v22 = vld [vmem:[%s7079_s5 + $0x1a8] sm:$0xff] }
 0x1bb   :  { %3323 = vmatprep.subr.bf16.mxu0 %v3322_v20  ;;  %v3326_v26 = vpack.c.bf16 %v2659_v6, %v2657_v22 }
 0x1be   :  { %3325 = vmatpush1.bf16.msra.mxu0 %v3324_v49  ;;  %v5113_v49 = vld [vmem:[%s7079_s5 + $0x230] sm:$0xff] }
 0x1bf   :  { %3327 = vmatprep.subr.bf16.mxu0 %v3326_v26  ;;  %7227 = vst [vmem:[#allocation10_spill] sm:$0xff] %v5113_v49 }
 0x1c2   :  { %3329 = vmatpush1.bf16.msra.mxu0 %v3328_v31 }
 0x1c3   :  { %3331 = vmatprep.subr.bf16.mxu0 %v3330_v38 }
 0x1c6   :  { %3333 = vmatpush1.bf16.msra.mxu0 %v3332_v36  ;;  %v5136_v36 = vld [vmem:[%s7079_s5 + $0x248] sm:$0xff] }
 0x1c7   :  { %3335 = vmatprep.subr.bf16.mxu0 %v3334_v45  ;;  %7230 = vst [vmem:[#allocation13_spill] sm:$0xff] %v5136_v36 }
 0x1ca   :  { %3337 = vmatpush1.bf16.msra.mxu0 %v3336_v9 }
 0x1cb   :  { %3339 = vmatprep.subr.bf16.mxu0 %v3338_v4 }
 0x211   :  { %v620_v35 = vpop.f32.mrb[0].mxu1 }
 0x212   :  { %v622_v21 = vpop.f32.mrb[1].mxu1  ;;  %v621_v51 = vadd.f32 %v620_v35, %v5048_v27 }
 0x213   :  { %v623_v14 = vadd.f32 %v622_v21, %v5052_v46 }
 0x214   :  { %v5056_v44 = vmul.f32 0.70710677, %v621_v51  ;;  %v5143_v42 = vmul.f32 0.5, %v621_v51 }
 0x215   :  { %v626_v50 = vpop.f32.mrb[2].mxu1  ;;  %v5058_v1 = vmul.f32 0.70710677, %v623_v14  ;;  %v5151_v35 = vmul.f32 0.5, %v623_v14 }
 0x216   :  { %v628_v39 = vpop.f32.mrb[3].mxu1  ;;  %v627_v24 = vadd.f32 %v626_v50, %v5048_v27  ;;  %v1004_v18 = vand.u32 2147483647, %v5056_v44  ;;  %vm2284_vm1 = vcmp.lt.f32.partialorder %v5056_v44, 0.0 }
 0x217   :  { %v629_v17 = vadd.f32 %v628_v39, %v5052_v46  ;;  %v1005_v13 = vand.u32 2147483647, %v5058_v1  ;;  %vm2285_vm0 = vcmp.lt.f32.partialorder %v5058_v1, 0.0 }
 0x218   :  { %v5066_v28 = vmul.f32 0.70710677, %v627_v24  ;;  %v1900_v5 = vsub.f32 0.0, %v1004_v18  ;;  %v1068_v48 = vmul.f32 0.3275911, %v1004_v18 }
 0x219   :  { %v632_v7 = vpop.f32.mrb[4].mxu1  ;;  %v5075_v30 = vmul.f32 0.70710677, %v629_v17  ;;  %v1901_v16 = vsub.f32 0.0, %v1005_v13  ;;  %v1069_v20 = vmul.f32 0.3275911, %v1005_v13 }
 0x21a   :  { %v634_v56 = vpop.f32.mrb[5].mxu1  ;;  %v5071_v52 = vadd.f32 %v632_v7, %v5048_v27  ;;  %v1008_v63 = vand.u32 2147483647, %v5066_v28  ;;  %v1964_v22 = vmul.f32 %v1900_v5, %v1004_v18  ;;  %v1132_v54 = vadd.f32 1.0, %v1068_v48 }
 0x21b   :  { %v5078_v10 = vadd.f32 %v634_v56, %v5052_v46  ;;  %v1009_v26 = vand.u32 2147483647, %v5075_v30  ;;  %v1965_v19 = vmul.f32 %v1901_v16, %v1005_v13  ;;  %v1133_v45 = vadd.f32 1.0, %v1069_v20 }
 0x21c   :  { %v5116_v6 = vmul.f32 0.70710677, %v5071_v52  ;;  %v1072_v53 = vmul.f32 0.3275911, %v1008_v63  ;;  %v2028_v37 = vmul.f32 1.442695, %v1964_v22  ;;  %3501 = vrcp.f32 %v1132_v54 }
 0x21d   :  { %v638_v8 = vpop.f32.mrb[6].mxu1  ;;  %v5120_v32 = vmul.f32 0.70710677, %v5078_v10  ;;  %v1904_v2 = vsub.f32 0.0, %v1008_v63  ;;  %v1905_v21 = vsub.f32 0.0, %v1009_v26  ;;  %v5159_v56 = vmul.f32 0.5, %v627_v24 }
 0x21e   :  { %v640_v15 = vpop.f32.mrb[7].mxu1  ;;  %7228 = vst [vmem:[#allocation11_spill] sm:$0xff] %v5116_v6  ;;  %v5123_v33 = vadd.f32 %v638_v8, %v5048_v27  ;;  %v1012_v4 = vand.u32 2147483647, %v5116_v6  ;;  %v2030_v51 = vmul.f32 1.442695, %v1965_v19  ;;  %3503 = vrcp.f32 %v1133_v45 }
 0x21f   :  { %7229 = vst [vmem:[#allocation12_spill] sm:$0xff] %v5120_v32  ;;  %v5146_v47 = vadd.f32 %v640_v15, %v5052_v46  ;;  %v1013_v50 = vand.u32 2147483647, %v5120_v32  ;;  %7233 = vst [vmem:[#allocation16_spill] sm:$0xff] %v5159_v56  ;;  %v1073_v8 = vmul.f32 0.3275911, %v1009_v26  ;;  %3505 = vpow2.f32 %v2028_v37 }
 0x220   :  { %v5155_v39 = vmul.f32 0.70710677, %v5123_v33  ;;  %v1136_v15 = vadd.f32 1.0, %v1072_v53  ;;  %v1968_v5 = vmul.f32 %v1904_v2, %v1008_v63  ;;  %v5169_v48 = vmul.f32 0.5, %v629_v17 }
 0x221   :  { %v644_v55 = vpop.f32.mrb[8].mxu1  ;;  %v5162_v18 = vmul.f32 0.70710677, %v5146_v47  ;;  %v1908_v16 = vsub.f32 0.0, %v1012_v4  ;;  %v1969_v24 = vmul.f32 %v1905_v21, %v1009_v26  ;;  %v1909_v22 = vsub.f32 0.0, %v1013_v50 }
 0x222   :  { %v5061_v11 = vpop.f32.mrb[9].mxu1  ;;  %7232 = vst [vmem:[#allocation15_spill] sm:$0xff] %v5155_v39  ;;  %v5165_v14 = vadd.f32 %v644_v55, %v5048_v27  ;;  %7235 = vst [vmem:[#allocation18_spill] sm:$0xff] %v5169_v48  ;;  %v1016_v54 = vand.u32 2147483647, %v5155_v39  ;;  %3507 = vpow2.f32 %v2030_v51  ;;  %v1137_v55 = vadd.f32 1.0, %v1073_v8 }
 0x223   :  { %7234 = vst [vmem:[#allocation17_spill] sm:$0xff] %v5162_v18  ;;  %v5176_v19 = vadd.f32 %v5061_v11, %v5052_v46  ;;  %v1076_v45 = vmul.f32 0.3275911, %v1012_v4  ;;  %v1077_v53 = vmul.f32 0.3275911, %v1013_v50  ;;  %3509 = vrcp.f32 %v1136_v15 }
 0x224   :  { %v1017_v17 = vand.u32 2147483647, %v5162_v18  ;;  %v5182_v63 = vmul.f32 0.70710677, %v5165_v14  ;;  %v2036_v11 = vmul.f32 1.442695, %v1968_v5  ;;  %v1972_v21 = vmul.f32 %v1908_v16, %v1012_v4 }
 0x225   :  { %v5068_v41 = vpop.f32.mrb[10].mxu1  ;;  %v5191_v2 = vmul.f32 0.5, %v5071_v52  ;;  %v2038_v8 = vmul.f32 1.442695, %v1969_v24  ;;  %v1973_v15 = vmul.f32 %v1909_v22, %v1013_v50  ;;  %v1912_v59 = vsub.f32 0.0, %v1016_v54 }
 0x226   :  { %v5073_v58 = vpop.f32.mrb[11].mxu1  ;;  %7236 = vst [vmem:[#allocation19_spill] sm:$0xff] %v5182_v63  ;;  %v5186_v26 = vadd.f32 %v5068_v41, %v5048_v27  ;;  %v5198_v57 = vmul.f32 0.70710677, %v5176_v19  ;;  %v1140_v31 = vadd.f32 1.0, %v1076_v45  ;;  %v5201_v41 = vmul.f32 0.5, %v5078_v10  ;;  %v5211_v16 = vpop.eup %3501 }
 0x227   :  { %7237 = vst [vmem:[#allocation20_spill] sm:$0xff] %v5191_v2  ;;  %v5195_v51 = vadd.f32 %v5073_v58, %v5052_v46  ;;  %v1141_v61 = vadd.f32 1.0, %v1077_v53  ;;  %v1080_v5 = vmul.f32 0.3275911, %v1016_v54  ;;  %3511 = vrcp.f32 %v1137_v55 }
 0x228   :  { %7238 = vst [vmem:[#allocation21_spill] sm:$0xff] %v5198_v57  ;;  %7239 = vst [vmem:[#allocation22_spill] sm:$0xff] %v5201_v41  ;;  %v1913_v52 = vsub.f32 0.0, %v1017_v17  ;;  %v1020_v4 = vand.u32 2147483647, %v5182_v63  ;;  %3513 = vpow2.f32 %v2036_v11  ;;  %v5216_v45 = vpop.eup %3503  ;;  %v1976_v53 = vmul.f32 %v1912_v59, %v1016_v54 }
 0x229   :  { %v5095_v12 = vpop.f32.mrb[12].mxu1  ;;  %v5207_v58 = vmul.f32 0.70710677, %v5186_v26  ;;  %v2044_v24 = vmul.f32 1.442695, %v1972_v21  ;;  %3515 = vpow2.f32 %v2038_v8  ;;  %v5219_v39 = vpop.eup %3505  ;;  %v5222_v2 = vmul.f32 0.5, %v5123_v33 }
 0x22a   :  { %v5108_v25 = vpop.f32.mrb[13].mxu1  ;;  %v1081_v22 = vmul.f32 0.3275911, %v1017_v17  ;;  %v5214_v10 = vmul.f32 0.70710677, %v5195_v51  ;;  %3517 = vrcp.f32 %v1140_v31  ;;  %v1144_v41 = vadd.f32 1.0, %v1080_v5 }
 0x22b   :  { %7240 = vst [vmem:[#allocation23_spill] sm:$0xff] %v5207_v58  ;;  %v2046_v55 = vmul.f32 1.442695, %v1973_v15  ;;  %v1021_v63 = vand.u32 2147483647, %v5198_v57  ;;  %7242 = vst [vmem:[#allocation25_spill] sm:$0xff] %v5222_v2  ;;  %v5226_v11 = vadd.f32 %v5095_v12, %v5048_v27  ;;  %3519 = vrcp.f32 %v1141_v61 }
 0x22c   :  { %7241 = vst [vmem:[#allocation24_spill] sm:$0xff] %v5214_v10  ;;  %v1977_v21 = vmul.f32 %v1913_v52, %v1017_v17  ;;  %v1916_v18 = vsub.f32 0.0, %v1020_v4  ;;  %v1024_v8 = vand.u32 2147483647, %v5207_v58  ;;  %v5231_v59 = vpop.eup %3507  ;;  %3521 = vpow2.f32 %v2044_v24 }
 0x22d   :  { %v5127_v38 = vpop.f32.mrb[14].mxu1  ;;  %v1145_v54 = vadd.f32 1.0, %v1081_v22  ;;  %v1025_v31 = vand.u32 2147483647, %v5214_v10  ;;  %v5236_v33 = vadd.f32 %v5108_v25, %v5052_v46  ;;  %v5240_v12 = vpop.eup %3509  ;;  %3523 = vpow2.f32 %v2046_v55 }
 0x22e   :  { %v5148_v9 = vpop.f32.mrb[15].mxu1  ;;  %v2052_v61 = vmul.f32 1.442695, %v1976_v53  ;;  %v1084_v17 = vmul.f32 0.3275911, %v1020_v4  ;;  %v1917_v52 = vsub.f32 0.0, %v1021_v63  ;;  %3525 = vrcp.f32 %v1144_v41 }
 0x22f   :  { %v5243_v58 = vmul.f32 0.5, %v5146_v47  ;;  %v1085_v24 = vmul.f32 0.3275911, %v1021_v63  ;;  %v5246_v22 = vmul.f32 0.70710677, %v5226_v11  ;;  %v5251_v2 = vmul.f32 0.5, %v5165_v14 }
 0x230   :  { %v2054_v25 = vmul.f32 1.442695, %v1977_v21  ;;  %v1980_v57 = vmul.f32 %v1916_v18, %v1020_v4  ;;  %v1920_v6 = vsub.f32 0.0, %v1024_v8  ;;  %3527 = vrcp.f32 %v1145_v54 }
 0x231   :  { %v5167_v13 = vpop.f32.mrb[16].mxu1  ;;  %7243 = vst [vmem:[#allocation26_spill] sm:$0xff] %v5243_v58  ;;  %7244 = vst [vmem:[#allocation27_spill] sm:$0xff] %v5246_v22  ;;  %v1921_v53 = vsub.f32 0.0, %v1025_v31  ;;  %v5256_v41 = vmul.f32 0.70710677, %v5236_v33  ;;  %v5260_v47 = vadd.f32 %v5127_v38, %v5048_v27  ;;  %v5262_v58 = vpop.eup %3511  ;;  %v1981_v14 = vmul.f32 %v1917_v52, %v1021_v63 }
 0x232   :  { %v5171_v20 = vpop.f32.mrb[17].mxu1  ;;  %7245 = vst [vmem:[#allocation28_spill] sm:$0xff] %v5251_v2  ;;  %v1148_v56 = vadd.f32 1.0, %v1084_v17  ;;  %v5265_v21 = vmul.f32 0.5, %v5176_v19  ;;  %v5269_v18 = vadd.f32 %v5148_v9, %v5052_v46  ;;  %v5271_v4 = vpop.eup %3513  ;;  %3529 = vpow2.f32 %v2052_v61 }
 0x233   :  { %7246 = vst [vmem:[#allocation29_spill] sm:$0xff] %v5256_v41  ;;  %v1149_v54 = vadd.f32 1.0, %v1085_v24  ;;  %v1088_v2 = vmul.f32 0.3275911, %v1024_v8  ;;  %v1028_v36 = vand.u32 2147483647, %v5246_v22  ;;  %v5276_v29 = vpop.eup %3515  ;;  %3531 = vpow2.f32 %v2054_v25 }
 0x234   :  { %7247 = vst [vmem:[#allocation30_spill] sm:$0xff] %v5265_v21  ;;  %v2060_v17 = vmul.f32 1.442695, %v1980_v57  ;;  %v1984_v19 = vmul.f32 %v1920_v6, %v1024_v8  ;;  %v1089_v21 = vmul.f32 0.3275911, %v1025_v31  ;;  %v5280_v52 = vpop.eup %3517  ;;  %v5283_v9 = vmul.f32 0.5, %v5186_v26 }
 0x235   :  { %v5178_v7 = vpop.f32.mrb[18].mxu1  ;;  %v1985_v61 = vmul.f32 %v1921_v53, %v1025_v31  ;;  %v1029_v24 = vand.u32 2147483647, %v5256_v41  ;;  %v5287_v22 = vmul.f32 0.70710677, %v5260_v47  ;;  %v5289_v23 = vpop.eup %3519  ;;  %3533 = vrcp.f32 %v1148_v56 }
 0x236   :  { %v5188_v37 = vpop.f32.mrb[19].mxu1  ;;  %7248 = vst [vmem:[#allocation31_spill] sm:$0xff] %v5283_v9  ;;  %v2062_v25 = vmul.f32 1.442695, %v1981_v14  ;;  %v5292_v6 = vmul.f32 0.70710677, %v5269_v18  ;;  %v5296_v57 = vadd.f32 %v5167_v13, %v5048_v27  ;;  %v5298_v8 = vpop.eup %3521  ;;  %3535 = vrcp.f32 %v1149_v54 }
 0x237   :  { %7249 = vst [vmem:[#allocation32_spill] sm:$0xff] %v5287_v22  ;;  %7251 = vst [vmem:[#allocation34_spill] sm:$0xff] %v5298_v8  ;;  %v1152_v26 = vadd.f32 1.0, %v1088_v2  ;;  %v1924_v31 = vsub.f32 0.0, %v1028_v36  ;;  %v5302_v53 = vadd.f32 %v5171_v20, %v5052_v46  ;;  %v5304_v9 = vpop.eup %3523  ;;  %3537 = vpow2.f32 %v2060_v17 }
 0x238   :  { %7250 = vst [vmem:[#allocation33_spill] sm:$0xff] %v5292_v6  ;;  %7252 = vst [vmem:[#allocation35_spill] sm:$0xff] %v5304_v9  ;;  %v2068_v56 = vmul.f32 1.442695, %v1984_v19  ;;  %v5307_v14 = vmul.f32 0.5, %v5195_v51  ;;  %v1153_v41 = vadd.f32 1.0, %v1089_v21  ;;  %v5311_v13 = vpop.eup %3525  ;;  %v5316_v20 = vadd.f32 %v5178_v7, %v5048_v27 }
 0x239   :  { %v5203_v60 = vpop.f32.mrb[20].mxu1  ;;  %7254 = vst [vmem:[#allocation37_spill] sm:$0xff] %v5311_v13  ;;  %v2070_v8 = vmul.f32 1.442695, %v1985_v61  ;;  %v1925_v54 = vsub.f32 0.0, %v1029_v24  ;;  %3539 = vpow2.f32 %v2062_v25  ;;  %v1988_v61 = vmul.f32 %v1924_v31, %v1028_v36 }
 0x23a   :  { %v5209_v50 = vpop.f32.mrb[21].mxu1  ;;  %7253 = vst [vmem:[#allocation36_spill] sm:$0xff] %v5307_v14  ;;  %v1032_v2 = vand.u32 2147483647, %v5287_v22  ;;  %v1092_v17 = vmul.f32 0.3275911, %v1028_v36  ;;  %v5324_v19 = vpop.eup %3527  ;;  %3541 = vrcp.f32 %v1152_v26 }
 0x23b   :  { %v1033_v51 = vand.u32 2147483647, %v5292_v6  ;;  %v5322_v21 = vmul.f32 0.70710677, %v5296_v57  ;;  %7256 = vst [vmem:[#allocation39_spill] sm:$0xff] %v5324_v19  ;;  %3543 = vrcp.f32 %v1153_v41  ;;  %v5332_v7 = vmul.f32 0.5, %v5226_v11 }
 0x23c   :  { %v1093_v14 = vmul.f32 0.3275911, %v1029_v24  ;;  %v5327_v22 = vmul.f32 0.70710677, %v5302_v53  ;;  %v5335_v25 = vmul.f32 0.5, %v5236_v33  ;;  %v5339_v6 = vadd.f32 %v5188_v37, %v5052_v46  ;;  %v5343_v36 = vpop.eup %3529 }
 0x23d   :  { %v5229_v15 = vpop.f32.mrb[22].mxu1  ;;  %7255 = vst [vmem:[#allocation38_spill] sm:$0xff] %v5322_v21  ;;  %7259 = vst [vmem:[#allocation42_spill] sm:$0xff] %v5332_v7  ;;  %3545 = vpow2.f32 %v2068_v56  ;;  %v1989_v26 = vmul.f32 %v1925_v54, %v1029_v24  ;;  %v1928_v31 = vsub.f32 0.0, %v1032_v2  ;;  %v5348_v41 = vpop.eup %3531  ;;  %v1156_v11 = vadd.f32 1.0, %v1092_v17 }
 0x23e   :  { %v5238_v5 = vpop.f32.mrb[23].mxu1  ;;  %7257 = vst [vmem:[#allocation40_spill] sm:$0xff] %v5327_v22  ;;  %7260 = vst [vmem:[#allocation43_spill] sm:$0xff] %v5335_v25  ;;  %v1096_v7 = vmul.f32 0.3275911, %v1032_v2  ;;  %v1929_v33 = vsub.f32 0.0, %v1033_v51  ;;  %3547 = vpow2.f32 %v2070_v8  ;;  %v5364_v17 = vadd.f32 %v5203_v60, %v5048_v27 }
 0x23f   :  { %7262 = vst [vmem:[#allocation45_spill] sm:$0xff] %v5343_v36  ;;  %7264 = vst [vmem:[#allocation47_spill] sm:$0xff] %v5348_v41  ;;  %v1036_v25 = vand.u32 2147483647, %v5322_v21  ;;  %v2076_v37 = vmul.f32 1.442695, %v1988_v61  ;;  %v5354_v56 = vpop.eup %3533  ;;  %v1992_v21 = vmul.f32 %v1928_v31, %v1032_v2  ;;  %3549 = vrcp.f32 %v1156_v11 }
 0x240   :  { %v1157_v48 = vadd.f32 1.0, %v1093_v14  ;;  %7266 = vst [vmem:[#allocation49_spill] sm:$0xff] %v5354_v56  ;;  %v5357_v24 = vmul.f32 0.5, %v5260_v47  ;;  %v1097_v54 = vmul.f32 0.3275911, %v1033_v51  ;;  %v5368_v14 = vpop.eup %3535  ;;  %v5373_v47 = vadd.f32 %v5209_v50, %v5052_v46 }
 0x241   :  { %v5248_v10 = vpop.f32.mrb[24].mxu1  ;;  %v5360_v36 = vmul.f32 0.70710677, %v5339_v6  ;;  %v2078_v61 = vmul.f32 1.442695, %v1989_v26  ;;  %v1160_v56 = vadd.f32 1.0, %v1096_v7  ;;  %v1993_v41 = vmul.f32 %v1929_v33, %v1033_v51 }
 0x242   :  { %v5253_v55 = vpop.f32.mrb[25].mxu1  ;;  %7267 = vst [vmem:[#allocation50_spill] sm:$0xff] %v5357_v24  ;;  %v5375_v24 = vpop.eup %3537  ;;  %3551 = vrcp.f32 %v1157_v48  ;;  %v1100_v60 = vmul.f32 0.3275911, %v1036_v25  ;;  %v1161_v2 = vadd.f32 1.0, %v1097_v54  ;;  %vm2289_vm2 = vcmp.lt.f32.partialorder %v5075_v30, 0.0 }
 0x243   :  { %7268 = vst [vmem:[#allocation51_spill] sm:$0xff] %v5360_v36  ;;  %7270 = vst [vmem:[#allocation53_spill] sm:$0xff] %v5375_v24  ;;  %v5377_v34 = vpop.eup %3539  ;;  %3553 = vpow2.f32 %v2076_v37  ;;  %v1041_v26 = vand.u32 2147483647, %v5360_v36  ;;  %v5381_v31 = vmul.f32 0.70710677, %v5364_v17 }
 0x244   :  { %7271 = vst [vmem:[#allocation54_spill] sm:$0xff] %v5377_v34  ;;  %3555 = vpow2.f32 %v2078_v61  ;;  %v2084_v51 = vmul.f32 1.442695, %v1992_v21  ;;  %v5388_v48 = vmul.f32 0.70710677, %v5373_v47  ;;  %v5395_v37 = vmul.f32 0.5, %v5269_v18 }
 0x245   :  { %v5274_v38 = vpop.f32.mrb[26].mxu1  ;;  %7272 = vst [vmem:[#allocation55_spill] sm:$0xff] %v5381_v31  ;;  %3557 = vrcp.f32 %v1160_v56  ;;  %v2086_v54 = vmul.f32 1.442695, %v1993_v41  ;;  %v1164_v34 = vadd.f32 1.0, %v1100_v60  ;;  %v5401_v21 = vadd.f32 %v5229_v15, %v5048_v27 }
 0x246   :  { %v5278_v63 = vpop.f32.mrb[27].mxu1  ;;  %7275 = vst [vmem:[#allocation58_spill] sm:$0xff] %v5388_v48  ;;  %7278 = vst [vmem:[#allocation61_spill] sm:$0xff] %v5395_v37  ;;  %3559 = vrcp.f32 %v1161_v2  ;;  %v1044_v56 = vand.u32 2147483647, %v5381_v31  ;;  %v5412_v15 = vmul.f32 0.5, %v5296_v57 }
 0x247   :  { %3561 = vpow2.f32 %v2084_v51  ;;  %v5419_v60 = vmul.f32 0.5, %v5302_v53  ;;  %v5422_v51 = vmul.f32 0.70710677, %v5401_v21  ;;  %vm2288_vm3 = vcmp.lt.f32.partialorder %v5066_v28, 0.0 }
 0x248   :  { %3563 = vpow2.f32 %v2086_v54  ;;  %7279 = vst [vmem:[#allocation62_spill] sm:$0xff] %v5412_v15 }
 0x249   :  { %v5309_v49 = vpop.f32.mrb[28].mxu1  ;;  %3565 = vrcp.f32 %v1164_v34  ;;  %7280 = vst [vmem:[#allocation63_spill] sm:$0xff] %v5419_v60  ;;  %7281 = vst [vmem:[#allocation64_spill] sm:$0xff] %v5422_v51  ;;  %v1108_v60 = vmul.f32 0.3275911, %v1044_v56 }
 0x24a   :  { %v5318_v32 = vpop.f32.mrb[29].mxu1 }
 0x24d   :  { %v5329_v9 = vpop.f32.mrb[30].mxu1 }
 0x24e   :  { %7258 = vst [vmem:[#allocation41_spill] sm:$0xff] %v5329_v9  ;;  %v5341_v13 = vpop.f32.mrb[31].mxu1  ;;  %v5346_v9 = vmul.f32 0.70710677, %v5316_v20 }
 0x24f   :  { %7261 = vst [vmem:[#allocation44_spill] sm:$0xff] %v5341_v13  ;;  %v1037_v13 = vand.u32 2147483647, %v5327_v22 }
 0x250   :  { %7263 = vst [vmem:[#allocation46_spill] sm:$0xff] %v5346_v9  ;;  %v1040_v22 = vand.u32 2147483647, %v5346_v9  ;;  %v5385_v9 = vpop.eup %3541 }
 0x251   :  { %v5352_v19 = vpop.f32.mrb[32].mxu1  ;;  %v1101_v40 = vmul.f32 0.3275911, %v1037_v13  ;;  %7274 = vst [vmem:[#allocation57_spill] sm:$0xff] %v5385_v9  ;;  %v5392_v33 = vpop.eup %3543 }
 0x252   :  { %7265 = vst [vmem:[#allocation48_spill] sm:$0xff] %v5352_v19  ;;  %v5366_v8 = vpop.f32.mrb[33].mxu1  ;;  %v1932_v19 = vsub.f32 0.0, %v1036_v25  ;;  %v1936_v7 = vsub.f32 0.0, %v1040_v22  ;;  %7277 = vst [vmem:[#allocation60_spill] sm:$0xff] %v5392_v33  ;;  %v5397_v24 = vpop.eup %3545 }
 0x253   :  { %7269 = vst [vmem:[#allocation52_spill] sm:$0xff] %v5366_v8  ;;  %v1933_v8 = vsub.f32 0.0, %v1037_v13  ;;  %v1104_v61 = vmul.f32 0.3275911, %v1040_v22  ;;  %v1105_v33 = vmul.f32 0.3275911, %v1041_v26  ;;  %v5408_v41 = vpop.eup %3547 }
 0x254   :  { %v1996_v36 = vmul.f32 %v1932_v19, %v1036_v25  ;;  %v2000_v19 = vmul.f32 %v1936_v7, %v1040_v22  ;;  %v1937_v25 = vsub.f32 0.0, %v1041_v26  ;;  %v5426_v7 = vpop.eup %3549 }
 0x255   :  { %v5383_v50 = vpop.f32.mrb[34].mxu1  ;;  %v1997_v9 = vmul.f32 %v1933_v8, %v1037_v13  ;;  %v1045_v13 = vand.u32 2147483647, %v5388_v48  ;;  %v1168_v57 = vadd.f32 1.0, %v1104_v61  ;;  %v1169_v54 = vadd.f32 1.0, %v1105_v33 }
 0x256   :  { %7273 = vst [vmem:[#allocation56_spill] sm:$0xff] %v5383_v50  ;;  %v5390_v11 = vpop.f32.mrb[35].mxu1  ;;  %v2092_v8 = vmul.f32 1.442695, %v1996_v36  ;;  %v1940_v36 = vsub.f32 0.0, %v1044_v56  ;;  %v2001_v48 = vmul.f32 %v1937_v25, %v1041_v26  ;;  %v5441_v33 = vmul.f32 0.5, %v5316_v20 }
 0x257   :  { %7276 = vst [vmem:[#allocation59_spill] sm:$0xff] %v5390_v11  ;;  %v1165_v11 = vadd.f32 1.0, %v1101_v40  ;;  %v5416_v40 = vadd.f32 %v5238_v5, %v5052_v46  ;;  %v2094_v2 = vmul.f32 1.442695, %v1997_v9  ;;  %v5430_v5 = vpop.eup %3551  ;;  %v2100_v34 = vmul.f32 1.442695, %v2000_v19 }
 0x258   :  { %v1941_v53 = vsub.f32 0.0, %v1045_v13  ;;  %v1325_v9 = vmul.f32 1.0614054, %v5216_v45  ;;  %v5433_v15 = vpop.eup %3553  ;;  %v1109_v37 = vmul.f32 0.3275911, %v1045_v13  ;;  %7287 = vst [vmem:[#allocation70_spill] sm:$0xff] %v5441_v33 }
 0x259   :  { %v5403_v50 = vpop.f32.mrb[36].mxu1  ;;  %3567 = vrcp.f32 %v1165_v11  ;;  %7284 = vst [vmem:[#allocation67_spill] sm:$0xff] %v5433_v15  ;;  %v5438_v11 = vpop.eup %3555  ;;  %v1048_v61 = vand.u32 2147483647, %v5422_v51  ;;  %v5452_v15 = vmul.f32 0.5, %v5364_v17  ;;  %v693_v51 = vadd.f32 %v5248_v10, %v5048_v27 }
 0x25a   :  { %v5406_v18 = vpop.f32.mrb[37].mxu1  ;;  %3569 = vpow2.f32 %v2092_v8  ;;  %7286 = vst [vmem:[#allocation69_spill] sm:$0xff] %v5438_v11  ;;  %v1389_v26 = vadd.f32 -1.4531521, %v1325_v9  ;;  %v5446_v25 = vpop.eup %3557  ;;  %v5449_v8 = vmul.f32 0.5, %v5339_v6  ;;  %v2005_v20 = vmul.f32 %v1941_v53, %v1045_v13 }
 0x25b   :  { %3571 = vpow2.f32 %v2094_v2  ;;  %7289 = vst [vmem:[#allocation72_spill] sm:$0xff] %v5452_v15  ;;  %v2102_v2 = vmul.f32 1.442695, %v2001_v48  ;;  %v5459_v33 = vpop.eup %3559  ;;  %v5462_v6 = vmul.f32 0.5, %v5373_v47  ;;  %v1112_v48 = vmul.f32 0.3275911, %v1048_v61 }
 0x25c   :  { %3573 = vrcp.f32 %v1168_v57  ;;  %7288 = vst [vmem:[#allocation71_spill] sm:$0xff] %v5449_v8  ;;  %v1453_v9 = vmul.f32 %v5216_v45, %v1389_v26  ;;  %v1172_v57 = vadd.f32 1.0, %v1108_v60  ;;  %v5465_v15 = vpop.eup %3561  ;;  %v1944_v53 = vsub.f32 0.0, %v1048_v61 }
 0x25d   :  { %v5424_v22 = vpop.f32.mrb[38].mxu1  ;;  %3575 = vrcp.f32 %v1169_v54  ;;  %7290 = vst [vmem:[#allocation73_spill] sm:$0xff] %v5462_v6  ;;  %7291 = vst [vmem:[#allocation74_spill] sm:$0xff] %v5465_v15  ;;  %v695_v26 = vadd.f32 %v5253_v55, %v5052_v46  ;;  %v1324_v60 = vmul.f32 1.0614054, %v5211_v16  ;;  %v5482_v55 = vmul.f32 0.5, %v5401_v21 }
 0x25e   :  { %7282 = vst [vmem:[#allocation65_spill] sm:$0xff] %v5424_v22  ;;  %v5428_v31 = vpop.f32.mrb[39].mxu1  ;;  %v5436_v22 = vmul.f32 0.70710677, %v5416_v40  ;;  %3577 = vpow2.f32 %v2100_v34  ;;  %v1517_v13 = vadd.f32 1.4214138, %v1453_v9 }
 0x25f   :  { %7283 = vst [vmem:[#allocation66_spill] sm:$0xff] %v5428_v31  ;;  %v2004_v31 = vmul.f32 %v1940_v36, %v1044_v56  ;;  %v1173_v56 = vadd.f32 1.0, %v1109_v37  ;;  %v5467_v36 = vpop.eup %3563  ;;  %3579 = vpow2.f32 %v2102_v2  ;;  %v5476_v6 = vmul.f32 0.70710677, %v693_v51  ;;  %7296 = vst [vmem:[#allocation79_spill] sm:$0xff] %v5482_v55 }
 0x260   :  { %7285 = vst [vmem:[#allocation68_spill] sm:$0xff] %v5436_v22  ;;  %v1049_v17 = vand.u32 2147483647, %v5436_v22  ;;  %7292 = vst [vmem:[#allocation75_spill] sm:$0xff] %v5467_v36  ;;  %v5474_v47 = vpop.eup %3565  ;;  %v2110_v22 = vmul.f32 1.442695, %v2005_v20  ;;  %v1581_v37 = vmul.f32 %v5216_v45, %v1517_v13  ;;  %3581 = vrcp.f32 %v1172_v57 }
 0x261   :  { %v5444_v19 = vpop.f32.mrb[40].mxu1  ;;  %v2108_v10 = vmul.f32 1.442695, %v2004_v31  ;;  %7294 = vst [vmem:[#allocation77_spill] sm:$0xff] %v5474_v47  ;;  %7295 = vst [vmem:[#allocation78_spill] sm:$0xff] %v5476_v6  ;;  %3583 = vrcp.f32 %v1173_v56  ;;  %v1176_v15 = vadd.f32 1.0, %v1112_v48  ;;  %v2008_v2 = vmul.f32 %v1944_v53, %v1048_v61 }
 0x262   :  { %v5454_v11 = vpop.f32.mrb[41].mxu1  ;;  %v1113_v31 = vmul.f32 0.3275911, %v1049_v17  ;;  %v1945_v9 = vsub.f32 0.0, %v1049_v17  ;;  %v1388_v8 = vadd.f32 -1.4531521, %v1324_v60  ;;  %v699_v61 = vadd.f32 %v5274_v38, %v5048_v27 }
 0x263   :  { %v5479_v34 = vpop.eup %3567  ;;  %3585 = vpow2.f32 %v2108_v10  ;;  %v5486_v20 = vmul.f32 0.70710677, %v695_v26  ;;  %v1052_v57 = vand.u32 2147483647, %v5476_v6  ;;  %v1329_v21 = vmul.f32 1.0614054, %v5262_v58 }
 0x264   :  { %v5484_v36 = vpop.eup %3569  ;;  %v1452_v13 = vmul.f32 %v5211_v16, %v1388_v8  ;;  %3587 = vpow2.f32 %v2110_v22  ;;  %v1177_v48 = vadd.f32 1.0, %v1113_v31  ;;  %v5499_v8 = vmul.f32 0.5, %v5416_v40 }
 0x265   :  { %v5472_v54 = vpop.f32.mrb[42].mxu1  ;;  %7297 = vst [vmem:[#allocation80_spill] sm:$0xff] %v5484_v36  ;;  %7298 = vst [vmem:[#allocation81_spill] sm:$0xff] %v5486_v20  ;;  %v5489_v47 = vpop.eup %3571  ;;  %3589 = vrcp.f32 %v1176_v15  ;;  %v1393_v22 = vadd.f32 -1.4531521, %v1329_v21  ;;  %v1948_v15 = vsub.f32 0.0, %v1052_v57 }
 0x266   :  { %7293 = vst [vmem:[#allocation76_spill] sm:$0xff] %v5472_v54  ;;  %v1645_v54 = vadd.f32 -0.28449672, %v1581_v37  ;;  %7299 = vst [vmem:[#allocation82_spill] sm:$0xff] %v5489_v47  ;;  %v5494_v60 = vpop.eup %3573  ;;  %v2009_v37 = vmul.f32 %v1945_v9, %v1049_v17  ;;  %v1516_v10 = vadd.f32 1.4214138, %v1452_v13  ;;  %3591 = vrcp.f32 %v1177_v48 }
 0x267   :  { %7300 = vst [vmem:[#allocation83_spill] sm:$0xff] %v5494_v60  ;;  %7301 = vst [vmem:[#allocation84_spill] sm:$0xff] %v5499_v8  ;;  %v5501_v55 = vpop.eup %3575  ;;  %v2116_v6 = vmul.f32 1.442695, %v2008_v2  ;;  %v1053_v36 = vand.u32 2147483647, %v5486_v20  ;;  %v1457_v9 = vmul.f32 %v5262_v58, %v1393_v22 }
 0x268   :  { %v1709_v56 = vmul.f32 %v5216_v45, %v1645_v54  ;;  %v5503_v54 = vmul.f32 0.5, %v693_v51  ;;  %v1580_v17 = vmul.f32 %v5211_v16, %v1516_v10  ;;  %v5508_v31 = vpop.f32.mrb[43].mxu1  ;;  %v5510_v38 = vpop.eup %3577  ;;  %v1328_v13 = vmul.f32 1.0614054, %v5240_v12 }
 0x269   :  { %7303 = vst [vmem:[#allocation86_spill] sm:$0xff] %v5510_v38  ;;  %v2118_v51 = vmul.f32 1.442695, %v2009_v37  ;;  %v5515_v2 = vmul.f32 0.70710677, %v699_v61  ;;  %v5517_v21 = vpop.eup %3579  ;;  %v1949_v22 = vsub.f32 0.0, %v1053_v36  ;;  %v2012_v37 = vmul.f32 %v1948_v15, %v1052_v57 }
 0x26a   :  { %v1773_v53 = vadd.f32 0.2548296, %v1709_v56  ;;  %7302 = vst [vmem:[#allocation85_spill] sm:$0xff] %v5503_v54  ;;  %v1644_v56 = vadd.f32 -0.28449672, %v1580_v17  ;;  %7305 = vst [vmem:[#allocation88_spill] sm:$0xff] %v5517_v21  ;;  %v5522_v38 = vpop.eup %3581  ;;  %3593 = vpow2.f32 %v2116_v6 }
 0x26b   :  { %7304 = vst [vmem:[#allocation87_spill] sm:$0xff] %v5515_v2  ;;  %v5519_v54 = vmul.f32 0.5, %v695_v26  ;;  %v1521_v8 = vadd.f32 1.4214138, %v1457_v9  ;;  %v1392_v20 = vadd.f32 -1.4531521, %v1328_v13  ;;  %v5525_v48 = vpop.eup %3583  ;;  %v2013_v21 = vmul.f32 %v1949_v22, %v1053_v36 }
 0x26c   :  { %v1837_v40 = vmul.f32 %v5216_v45, %v1773_v53  ;;  %v1116_v45 = vmul.f32 0.3275911, %v1052_v57  ;;  %v1117_v53 = vmul.f32 0.3275911, %v1053_v36  ;;  %v1708_v60 = vmul.f32 %v5211_v16, %v1644_v56 }
 0x26d   :  { %7306 = vst [vmem:[#allocation89_spill] sm:$0xff] %v5519_v54  ;;  %v1585_v17 = vmul.f32 %v5262_v58, %v1521_v8  ;;  %v1456_v26 = vmul.f32 %v5240_v12, %v1392_v20  ;;  %v5529_v54 = vpop.eup %3585  ;;  %v701_v57 = vadd.f32 %v5278_v63, %v5052_v46  ;;  %3595 = vpow2.f32 %v2118_v51 }
 0x26e   :  { %v2157_v10 = vmul.f32 %v5231_v59, %v1837_v40  ;;  %7307 = vst [vmem:[#allocation90_spill] sm:$0xff] %v5529_v54  ;;  %v5531_v59 = vmul.f32 0.5, %v699_v61  ;;  %v1056_v40 = vand.u32 2147483647, %v5515_v2  ;;  %v1772_v9 = vadd.f32 0.2548296, %v1708_v60  ;;  %v5534_v13 = vpop.eup %3587 }
 0x26f   :  { %7309 = vst [vmem:[#allocation92_spill] sm:$0xff] %v5534_v13  ;;  %v1649_v15 = vadd.f32 -0.28449672, %v1585_v17  ;;  %v1520_v8 = vadd.f32 1.4214138, %v1456_v26  ;;  %v1181_v20 = vadd.f32 1.0, %v1117_v53 }
 0x270   :  { %v2221_v47 = vsub.f32 1.0, %v2157_v10  ;;  %7308 = vst [vmem:[#allocation91_spill] sm:$0xff] %v5531_v59  ;;  %v1180_v10 = vadd.f32 1.0, %v1116_v45  ;;  %v1836_v6 = vmul.f32 %v5211_v16, %v1772_v9  ;;  %v5540_v61 = vpop.f32.mrb[44].mxu1  ;;  %v5542_v59 = vpop.eup %3589  ;;  %v2124_v60 = vmul.f32 1.442695, %v2012_v37 }
 0x271   :  { %v1713_v54 = vmul.f32 %v5262_v58, %v1649_v15  ;;  %v1584_v13 = vmul.f32 %v5240_v12, %v1520_v8  ;;  %v1120_v63 = vmul.f32 0.3275911, %v1056_v40  ;;  %v1952_v17 = vsub.f32 0.0, %v1056_v40  ;;  %v5550_v22 = vpop.eup %3591 }
 0x272   :  { %v2349_v56 = vsub.f32 0.0, %v2221_v47  ;;  %v2156_v45 = vmul.f32 %v5219_v39, %v1836_v6  ;;  %v1333_v53 = vmul.f32 1.0614054, %v5289_v23  ;;  %v2126_v1 = vmul.f32 1.442695, %v2013_v21  ;;  %v5567_v6 = vpop.f32.mrb[45].mxu1 }
 0x273   :  { %v1777_v36 = vadd.f32 0.2548296, %v1713_v54  ;;  %v1648_v16 = vadd.f32 -0.28449672, %v1584_v13  ;;  %v5554_v37 = vmul.f32 0.70710677, %v701_v57  ;;  %3597 = vrcp.f32 %v1180_v10 }
 0x274   :  { %v2413_v2 = vsel %vm2285_vm0, %v2349_v56, %v2221_v47  ;;  %v2220_v9 = vsub.f32 1.0, %v2156_v45  ;;  %v1397_v51 = vadd.f32 -1.4531521, %v1333_v53  ;;  %3599 = vrcp.f32 %v1181_v20  ;;  %v5561_v8 = vpop.eup %3593 }
 0x275   :  { %v2477_v26 = vadd.f32 1.0, %v2413_v2  ;;  %7310 = vst [vmem:[#allocation93_spill] sm:$0xff] %v5554_v37  ;;  %v1841_v2 = vmul.f32 %v5262_v58, %v1777_v36  ;;  %v1712_v39 = vmul.f32 %v5240_v12, %v1648_v16  ;;  %v1184_v54 = vadd.f32 1.0, %v1120_v63  ;;  %7311 = vst [vmem:[#allocation94_spill] sm:$0xff] %v5561_v8 }
 0x276   :  { %v2348_v13 = vsub.f32 0.0, %v2220_v9  ;;  %v1332_v56 = vmul.f32 1.0614054, %v5280_v52  ;;  %3601 = vpow2.f32 %v2124_v60  ;;  %v2016_v58 = vmul.f32 %v1952_v17, %v1056_v40 }
 0x277   :  { %v2541_v47 = vmul.f32 %v2477_v26, %v5151_v35  ;;  %v2161_v21 = vmul.f32 %v5276_v29, %v1841_v2  ;;  %v1776_v15 = vadd.f32 0.2548296, %v1712_v39  ;;  %v1461_v35 = vmul.f32 %v5289_v23, %v1397_v51  ;;  %v5580_v2 = vpop.eup %3595 }
 0x278   :  { %3603 = vpow2.f32 %v2126_v1  ;;  %v1057_v10 = vand.u32 2147483647, %v5554_v37  ;;  %v2412_v20 = vsel %vm2284_vm1, %v2348_v13, %v2220_v9  ;;  %v5570_v45 = vmul.f32 0.5, %v701_v57 }
 0x279   :  { %2808 = vmatprep.mubr.f32.mxu0 %v2541_v47  ;;  %v2476_v63 = vadd.f32 1.0, %v2412_v20  ;;  %v2225_v60 = vsub.f32 1.0, %v2161_v21  ;;  %v1840_v29 = vmul.f32 %v5240_v12, %v1776_v15  ;;  %v1525_v26 = vadd.f32 1.4214138, %v1461_v35  ;;  %v5595_v21 = vpop.f32.mrb[46].mxu1  ;;  %v7315_v15 = vld [vmem:[#allocation8_spill] sm:$0xff] }
 0x27a   :  { %3605 = vrcp.f32 %v1184_v54  ;;  %7312 = vst [vmem:[#allocation95_spill] sm:$0xff] %v5570_v45  ;;  %v5574_v36 = vadd.f32 %v5309_v49, %v5048_v27  ;;  %v1396_v40 = vadd.f32 -1.4531521, %v1332_v56  ;;  %v2132_v1 = vmul.f32 1.442695, %v2016_v58 }
 0x27b   :  { %v2540_v17 = vmul.f32 %v2476_v63, %v5143_v42  ;;  %v2353_v16 = vsub.f32 0.0, %v2225_v60  ;;  %v2160_v44 = vmul.f32 %v5271_v4, %v1840_v29  ;;  %v1589_v53 = vmul.f32 %v5289_v23, %v1525_v26  ;;  %v7318_v63 = vld [vmem:[#allocation39_spill] sm:$0xff]  ;;  %v7319_v26 = vld [vmem:[#allocation18_spill] sm:$0xff] }
 0x27c   :  { %v1121_v47 = vmul.f32 0.3275911, %v1057_v10  ;;  %v1953_v9 = vsub.f32 0.0, %v1057_v10  ;;  %v1460_v12 = vmul.f32 %v5280_v52, %v1396_v40  ;;  %v544_v42 = vsub.s32 2, %v4407_v43 }
 0x27d   :  { %2809 = vmatmul.mubr.f32.vlgmr.msra.gmra.mrb[0].mxu0 %v2540_v17  ;;  %v2417_v49 = vsel %vm2289_vm2, %v2353_v16, %v2225_v60  ;;  %v2224_v57 = vsub.f32 1.0, %v2160_v44  ;;  %v1653_v39 = vadd.f32 -0.28449672, %v1589_v53  ;;  %v7313_v4 = vpack.c.bf16 %v5088_v62, %v5083_v0  ;;  %v5597_v30 = vpop.eup %3597  ;;  %v7317_v62 = vld [vmem:[#allocation7_spill] sm:$0xff] }
 0x27e   :  { %v5589_v51 = vmul.f32 0.70710677, %v5574_v36  ;;  %v2481_v54 = vadd.f32 1.0, %v2417_v49  ;;  %v5593_v13 = vadd.f32 %v5318_v32, %v5052_v46  ;;  %v1524_v56 = vadd.f32 1.4214138, %v1460_v12  ;;  %v5607_v29 = vpop.eup %3599  ;;  %v2678_v16 = vld [vmem:[%s7079_s5 + $0x250] sm:$0xff] }
 0x27f   :  { %3341 = vmatpush1.bf16.msra.mxu0 %v7313_v4  ;;  %v7316_v35 = vpack.c.bf16 %v5100_v3, %v7315_v15  ;;  %v2352_v58 = vsub.f32 0.0, %v2224_v57  ;;  %v1717_v0 = vmul.f32 %v5289_v23, %v1653_v39  ;;  %v5604_v20 = vrot.slane %v7317_v62, %v544_v42  ;;  %v2676_v3 = vld [vmem:[%s7079_s5 + $0x240] sm:$0xff]  ;;  %v2681_v39 = vld [vmem:[%s7079_s5 + $0x268] sm:$0xff]  ;;  %v2683_v42 = vld [vmem:[%s7079_s5 + $0x278] sm:$0xff] }
 0x280   :  { %7314 = vst [vmem:[#allocation96_spill] sm:$0xff] %v5589_v51  ;;  %v1337_v60 = vmul.f32 1.0614054, %v7318_v63  ;;  %3607 = vpow2.f32 %v2132_v1  ;;  %v1185_v32 = vadd.f32 1.0, %v1121_v47  ;;  %v2545_v40 = vmul.f32 %v2481_v54, %v7319_v26  ;;  %v5617_v44 = vpop.eup %3601  ;;  %v7321_v1 = vld [vmem:[#allocation48_spill] sm:$0xff]  ;;  %v7324_v15 = vld [vmem:[#allocation10_spill] sm:$0xff] }
 0x281   :  { %3343 = vmatprep.subr.bf16.mxu0 %v7316_v35  ;;  %v1588_v17 = vmul.f32 %v5280_v52, %v1524_v56  ;;  %7320 = vst [vmem:[#allocation8_spill] sm:$0xff] %v5617_v44  ;;  %v2416_v53 = vsel %vm2288_vm3, %v2352_v58, %v2224_v57  ;;  %v1781_v12 = vadd.f32 0.2548296, %v1717_v0  ;;  %v5623_v47 = vadd.f32 %v7321_v1, %v5604_v20  ;;  %v7323_v54 = vld [vmem:[#allocation12_spill] sm:$0xff]  ;;  %v7325_v35 = vld [vmem:[#allocation9_spill] sm:$0xff] }
 0x282   :  { %v1401_v49 = vadd.f32 -1.4531521, %v1337_v60  ;;  %v5631_v4 = vpop.eup %3603  ;;  %vm2293_vm4 = vcmp.lt.f32.partialorder %v7323_v54, 0.0  ;;  %v2017_v28 = vmul.f32 %v1953_v9, %v1057_v10  ;;  %v1060_v57 = vand.u32 2147483647, %v5589_v51  ;;  %2814 = vmatprep.mubr.f32.mxu0 %v2545_v40  ;;  %v7327_v60 = vld [vmem:[#allocation14_spill] sm:$0xff] }
 0x283   :  { %7322 = vst [vmem:[#allocation7_spill] sm:$0xff] %v5631_v4  ;;  %v2480_v56 = vadd.f32 1.0, %v2416_v53  ;;  %v7326_v58 = vpack.c.bf16 %v7324_v15, %v7325_v35  ;;  %v1652_v0 = vadd.f32 -0.28449672, %v1588_v17  ;;  %v1845_v62 = vmul.f32 %v5289_v23, %v1781_v12  ;;  %v7328_v26 = vld [vmem:[#allocation13_spill] sm:$0xff]  ;;  %v7331_v40 = vld [vmem:[#allocation16_spill] sm:$0xff] }
 0x284   :  { %v7329_v1 = vpack.c.bf16 %v7327_v60, %v7328_v26  ;;  %v3348_v45 = vpack.c.bf16 %v2678_v16, %v2676_v3  ;;  %v5643_v37 = vmul.f32 0.70710677, %v5623_v47  ;;  %v1465_v10 = vmul.f32 %v7318_v63, %v1401_v49  ;;  %v5646_v9 = vpop.eup %3605  ;;  %v7332_v17 = vld [vmem:[#allocation37_spill] sm:$0xff]  ;;  %v2682_v3 = vld [vmem:[%s7079_s5 + $0x270] sm:$0xff]  ;;  %v5657_v16 = vpop.f32.mrb[47].mxu1  ;;  %v2687_v54 = vld [vmem:[%s7079_s5 + $0x298] sm:$0xff] }
 0x285   :  { %3345 = vmatpush1.bf16.msra.mxu0 %v7326_v58  ;;  %7330 = vst [vmem:[#allocation39_spill] sm:$0xff] %v5646_v9  ;;  %v2544_v53 = vmul.f32 %v2480_v56, %v7331_v40  ;;  %v1716_v15 = vmul.f32 %v5280_v52, %v1652_v0  ;;  %v3350_v35 = vpack.c.bf16 %v2683_v42, %v2681_v39  ;;  %v1336_v58 = vmul.f32 1.0614054, %v7332_v17  ;;  %v2680_v23 = vld [vmem:[%s7079_s5 + $0x260] sm:$0xff]  ;;  %v7333_v12 = vld [vmem:[#allocation35_spill] sm:$0xff] }
 0x286   :  { %3347 = vmatprep.subr.bf16.mxu0 %v7329_v1  ;;  %3609 = vrcp.f32 %v1185_v32  ;;  %v2165_v49 = vmul.f32 %v7333_v12, %v1845_v62  ;;  %v5661_v56 = vand.u32 2147483647, %v5643_v37  ;;  %v1529_v0 = vadd.f32 1.4214138, %v1465_v10  ;;  %v7335_v42 = vld [vmem:[#allocation41_spill] sm:$0xff]  ;;  %v7336_v40 = vld [vmem:[#allocation11_spill] sm:$0xff] }
 0x287   :  { %v5664_v39 = vmul.f32 0.70710677, %v5593_v13  ;;  %2815 = vmatmul.mubr.f32.gmra.mrb[2].mxu0 %v2544_v53  ;;  %v5668_v60 = vadd.f32 %v7335_v42, %v5048_v27  ;;  %v1780_v26 = vadd.f32 0.2548296, %v1716_v15  ;;  %v1400_v1 = vadd.f32 -1.4531521, %v1336_v58 }
 0x288   :  { %vm2292_vm5 = vcmp.lt.f32.partialorder %v7336_v40, 0.0  ;;  %v2229_v51 = vsub.f32 1.0, %v2165_v49  ;;  %v1070_v32 = vmul.f32 0.3275911, %v5661_v56  ;;  %v1593_v62 = vmul.f32 %v7318_v63, %v1529_v0  ;;  %v7339_v0 = vld [vmem:[#allocation34_spill] sm:$0xff] }
 0x289   :  { %7334 = vst [vmem:[#allocation18_spill] sm:$0xff] %v5664_v39  ;;  %3349 = vmatpush1.bf16.msra.mxu0 %v3348_v45  ;;  %v3352_v12 = vpack.c.bf16 %v2682_v3, %v2680_v23  ;;  %v2134_v10 = vmul.f32 1.442695, %v2017_v28  ;;  %v1956_v44 = vsub.f32 0.0, %v1060_v57  ;;  %v1844_v9 = vmul.f32 %v5280_v52, %v1780_v26  ;;  %v5688_v26 = vpop.f32.mrb[48].mxu1 }
 0x28a   :  { %3351 = vmatprep.subr.bf16.mxu0 %v3350_v35  ;;  %v1464_v53 = vmul.f32 %v7332_v17, %v1400_v1  ;;  %v1124_v27 = vmul.f32 0.3275911, %v1060_v57  ;;  %v2357_v42 = vsub.f32 0.0, %v2229_v51  ;;  %v1134_v15 = vadd.f32 1.0, %v1070_v32  ;;  %v5675_v4 = vpop.eup %3607  ;;  %v3757_v40 = vld [vmem:[%s7078_s4] sm:$0xf] }
 0x28b   :  { %v1657_v58 = vadd.f32 -0.28449672, %v1593_v62  ;;  %7337 = vst [vmem:[#allocation48_spill] sm:$0xff] %v5675_v4  ;;  %v1061_v45 = vand.u32 2147483647, %v5664_v39  ;;  %v2164_v23 = vmul.f32 %v7339_v0, %v1844_v9  ;;  %v5683_v3 = vmul.f32 0.5, %v5574_v36 }
 0x28c   :  { %v5679_v49 = vmul.f32 0.70710677, %v5668_v60  ;;  %v1528_v28 = vadd.f32 1.4214138, %v1464_v53  ;;  %v2421_v52 = vsel %vm2293_vm4, %v2357_v42, %v2229_v51  ;;  %3611 = vrcp.f32 %v1134_v15  ;;  %v7341_v9 = vld [vmem:[#allocation44_spill] sm:$0xff]  ;;  %v2685_v51 = vld [vmem:[%s7079_s5 + $0x288] sm:$0xff] }
 0x28d   :  { %7340 = vst [vmem:[#allocation10_spill] sm:$0xff] %v5683_v3  ;;  %v1721_v35 = vmul.f32 %v7318_v63, %v1657_v58  ;;  %3353 = vmatpush1.bf16.msra.mxu0 %v3352_v12  ;;  %3613 = vpow2.f32 %v2134_v10  ;;  %v2020_v1 = vmul.f32 %v1956_v44, %v1060_v57  ;;  %v2485_v32 = vadd.f32 1.0, %v2421_v52  ;;  %v7342_v12 = vld [vmem:[#allocation17_spill] sm:$0xff]  ;;  %v7343_v10 = vld [vmem:[#allocation22_spill] sm:$0xff] }
 0x28e   :  { %7338 = vst [vmem:[#allocation12_spill] sm:$0xff] %v5679_v49  ;;  %v2228_v62 = vsub.f32 1.0, %v2164_v23  ;;  %v1188_v39 = vadd.f32 1.0, %v1124_v27  ;;  %v5692_v53 = vadd.f32 %v7341_v9, %v5052_v46  ;;  %v1592_v0 = vmul.f32 %v7332_v17, %v1528_v28 }
 0x28f   :  { %v1785_v36 = vadd.f32 0.2548296, %v1721_v35  ;;  %vm2297_vm6 = vcmp.lt.f32.partialorder %v7342_v12, 0.0  ;;  %v1125_v44 = vmul.f32 0.3275911, %v1061_v45  ;;  %v2549_v27 = vmul.f32 %v2485_v32, %v7343_v10  ;;  %v7346_v10 = vld [vmem:[#allocation47_spill] sm:$0xff] }
 0x290   :  { %v1064_v57 = vand.u32 2147483647, %v5679_v49  ;;  %v2356_v46 = vsub.f32 0.0, %v2228_v62  ;;  %v5704_v42 = vpop.eup %3609  ;;  %v548_v58 = vsub.s32 3, %v4407_v43  ;;  %v1656_v23 = vadd.f32 -0.28449672, %v1592_v0 }
 0x291   :  { %7344 = vst [vmem:[#allocation9_spill] sm:$0xff] %v5704_v42  ;;  %v1849_v15 = vmul.f32 %v7318_v63, %v1785_v36  ;;  %v1341_v28 = vmul.f32 1.0614054, %v5368_v14  ;;  %v2140_v52 = vmul.f32 1.442695, %v2020_v1  ;;  %v1957_v35 = vsub.f32 0.0, %v1061_v45  ;;  %2820 = vmatprep.mubr.f32.mxu0 %v2549_v27 }
 0x292   :  { %v2420_v9 = vsel %vm2292_vm5, %v2356_v46, %v2228_v62  ;;  %v3354_v3 = vpack.c.bf16 %v2687_v54, %v2685_v51  ;;  %v5712_v49 = vmul.f32 0.70710677, %v5692_v53  ;;  %v1720_v63 = vmul.f32 %v7332_v17, %v1656_v23  ;;  %v7347_v1 = vld [vmem:[#allocation20_spill] sm:$0xff]  ;;  %v7348_v54 = vld [vmem:[#allocation15_spill] sm:$0xff] }
 0x293   :  { %v2484_v32 = vadd.f32 1.0, %v2420_v9  ;;  %v2169_v4 = vmul.f32 %v7346_v10, %v1849_v15  ;;  %3615 = vrcp.f32 %v1188_v39  ;;  %v1189_v43 = vadd.f32 1.0, %v1125_v44  ;;  %v5732_v9 = vpop.f32.mrb[49].mxu1  ;;  %v2686_v12 = vld [vmem:[%s7079_s5 + $0x290] sm:$0xff] }
 0x294   :  { %7345 = vst [vmem:[#allocation14_spill] sm:$0xff] %v5712_v49  ;;  %v1960_v36 = vsub.f32 0.0, %v1064_v57  ;;  %v1405_v0 = vadd.f32 -1.4531521, %v1341_v28  ;;  %3355 = vmatprep.subr.bf16.mxu0 %v3354_v3  ;;  %v5720_v62 = vrot.slane %v3757_v40, %v548_v58  ;;  %v1784_v51 = vadd.f32 0.2548296, %v1720_v63 }
 0x295   :  { %v2548_v42 = vmul.f32 %v2484_v32, %v7347_v1  ;;  %v2233_v27 = vsub.f32 1.0, %v2169_v4  ;;  %vm2296_vm7 = vcmp.lt.f32.partialorder %v7348_v54, 0.0  ;;  %3617 = vpow2.f32 %v2140_v52  ;;  %v7350_v58 = vld [vmem:[#allocation49_spill] sm:$0xff] }
 0x296   :  { %v5724_v46 = vmul.f32 0.5, %v5593_v13  ;;  %v2021_v39 = vmul.f32 %v1957_v35, %v1061_v45  ;;  %v1469_v44 = vmul.f32 %v5368_v14, %v1405_v0  ;;  %v5727_v3 = vpop.eup %3611  ;;  %v1065_v4 = vand.u32 2147483647, %v5712_v49  ;;  %v2684_v1 = vld [vmem:[%s7079_s5 + $0x280] sm:$0xff] }
 0x297   :  { %2821 = vmatmul.mubr.f32.gmra.mrb[4].mxu0 %v2548_v42  ;;  %v2361_v15 = vsub.f32 0.0, %v2233_v27  ;;  %v1848_v23 = vmul.f32 %v7332_v17, %v1784_v51  ;;  %v1340_v28 = vmul.f32 1.0614054, %v7350_v58  ;;  %v5734_v32 = vpop.eup %3613  ;;  %3619 = vrcp.f32 %v1189_v43  ;;  %v7352_v42 = vld [vmem:[#allocation52_spill] sm:$0xff]  ;;  %v7353_v17 = vld [vmem:[#allocation45_spill] sm:$0xff] }
 0x298   :  { %7349 = vst [vmem:[#allocation13_spill] sm:$0xff] %v5724_v46  ;;  %7351 = vst [vmem:[#allocation16_spill] sm:$0xff] %v5734_v32  ;;  %v1128_v13 = vmul.f32 0.3275911, %v1064_v57  ;;  %v1326_v45 = vmul.f32 1.0614054, %v5727_v3  ;;  %v2024_v35 = vmul.f32 %v1960_v36, %v1064_v57  ;;  %v5741_v63 = vadd.f32 %v7352_v42, %v5720_v62 }
 0x299   :  { %v1533_v52 = vadd.f32 1.4214138, %v1469_v44  ;;  %v2425_v10 = vsel %vm2297_vm6, %v2361_v15, %v2233_v27  ;;  %v2168_v0 = vmul.f32 %v7353_v17, %v1848_v23  ;;  %v2142_v40 = vmul.f32 1.442695, %v2021_v39  ;;  %v7355_v42 = vld [vmem:[#allocation26_spill] sm:$0xff]  ;;  %v5755_v39 = vpop.f32.mrb[50].mxu1 }
 0x29a   :  { %v1390_v43 = vadd.f32 -1.4531521, %v1326_v45  ;;  %v2489_v51 = vadd.f32 1.0, %v2425_v10  ;;  %v1129_v57 = vmul.f32 0.3275911, %v1065_v4  ;;  %v1961_v36 = vsub.f32 0.0, %v1065_v4 }
 0x29b   :  { %v1597_v49 = vmul.f32 %v5368_v14, %v1533_v52  ;;  %v2232_v27 = vsub.f32 1.0, %v2168_v0  ;;  %v1404_v44 = vadd.f32 -1.4531521, %v1340_v28  ;;  %v5752_v15 = vmul.f32 0.5, %v5668_v60 }
 0x29c   :  { %v1192_v23 = vadd.f32 1.0, %v1128_v13  ;;  %v2553_v17 = vmul.f32 %v2489_v51, %v7355_v42  ;;  %v2148_v45 = vmul.f32 1.442695, %v2024_v35  ;;  %v5758_v52 = vmul.f32 0.70710677, %v5741_v63 }
 0x29d   :  { %7354 = vst [vmem:[#allocation37_spill] sm:$0xff] %v5752_v15  ;;  %v1661_v46 = vadd.f32 -0.28449672, %v1597_v49  ;;  %v2360_v10 = vsub.f32 0.0, %v2232_v27  ;;  %v1468_v32 = vmul.f32 %v7350_v58, %v1404_v44  ;;  %v5761_v8 = vpop.eup %3615  ;;  %3621 = vpow2.f32 %v2142_v40  ;;  %v7359_v44 = vld [vmem:[#allocation56_spill] sm:$0xff] }
 0x29e   :  { %7356 = vst [vmem:[#allocation35_spill] sm:$0xff] %v5758_v52  ;;  %7357 = vst [vmem:[#allocation41_spill] sm:$0xff] %v5761_v8  ;;  %v1454_v28 = vmul.f32 %v5727_v3, %v1390_v43  ;;  %2826 = vmatprep.mubr.f32.mxu0 %v2553_v17  ;;  %v3356_v13 = vpack.c.bf16 %v2686_v12, %v2684_v1  ;;  %v1193_v0 = vadd.f32 1.0, %v1129_v57  ;;  %3623 = vrcp.f32 %v1192_v23  ;;  %v7360_v43 = vld [vmem:[#allocation21_spill] sm:$0xff]  ;;  %v2691_v1 = vld [vmem:[%s7079_s5 + $0x2b8] sm:$0xff] }
 0x29f   :  { %v1725_v60 = vmul.f32 %v5368_v14, %v1661_v46  ;;  %v2025_v49 = vmul.f32 %v1961_v36, %v1065_v4  ;;  %v2424_v35 = vsel %vm2296_vm7, %v2360_v10, %v2232_v27  ;;  %v1532_v51 = vadd.f32 1.4214138, %v1468_v32  ;;  %v5767_v42 = vpop.eup %3617  ;;  %v2689_v32 = vld [vmem:[%s7079_s5 + $0x2a8] sm:$0xff]  ;;  %v7362_v36 = vld [vmem:[#allocation25_spill] sm:$0xff]  ;;  %v7363_v17 = vld [vmem:[#allocation60_spill] sm:$0xff] }
 0x2a0   :  { %7358 = vst [vmem:[#allocation11_spill] sm:$0xff] %v5767_v42  ;;  %v2488_v15 = vadd.f32 1.0, %v2424_v35  ;;  %v788_v8 = vadd.f32 %v7359_v44, %v5604_v20  ;;  %3357 = vmatpush1.bf16.msra.mxu0 %v3356_v13  ;;  %vm2301_vm8 = vcmp.lt.f32.partialorder %v7360_v43, 0.0  ;;  %3625 = vpow2.f32 %v2148_v45  ;;  %v5789_v35 = vpop.f32.mrb[51].mxu1  ;;  %v7366_v44 = vld [vmem:[#allocation54_spill] sm:$0xff] }
 0x2a1   :  { %v1789_v40 = vadd.f32 0.2548296, %v1725_v60  ;;  %v1902_v46 = vsub.f32 0.0, %v5661_v56  ;;  %v1007_v4 = vand.u32 2147483647, %v5758_v52  ;;  %v1596_v54 = vmul.f32 %v7350_v58, %v1532_v51  ;;  %v5781_v12 = vpop.eup %3619 }
 0x2a2   :  { %7361 = vst [vmem:[#allocation34_spill] sm:$0xff] %v5781_v12  ;;  %v1518_v57 = vadd.f32 1.4214138, %v1454_v28  ;;  %v2552_v27 = vmul.f32 %v2488_v15, %v7362_v36  ;;  %v1345_v45 = vmul.f32 1.0614054, %v7363_v17  ;;  %v5787_v10 = vmul.f32 0.5, %v5692_v53 }
 0x2a3   :  { %v1853_v23 = vmul.f32 %v5368_v14, %v1789_v40  ;;  %3627 = vrcp.f32 %v1193_v0  ;;  %v2150_v60 = vmul.f32 1.442695, %v2025_v49  ;;  %v1660_v13 = vadd.f32 -0.28449672, %v1596_v54  ;;  %v7367_v40 = vld [vmem:[#allocation59_spill] sm:$0xff] }
 0x2a4   :  { %7364 = vst [vmem:[#allocation44_spill] sm:$0xff] %v5787_v10  ;;  %2827 = vmatmul.mubr.f32.gmra.mrb[6].mxu0 %v2552_v27  ;;  %v5791_v51 = vmul.f32 0.70710677, %v788_v8  ;;  %v1409_v28 = vadd.f32 -1.4531521, %v1345_v45  ;;  %v3358_v42 = vpack.c.bf16 %v2691_v1, %v2689_v32  ;;  %v1966_v15 = vmul.f32 %v1902_v46, %v5661_v56  ;;  %v7368_v27 = vld [vmem:[#allocation57_spill] sm:$0xff] }
 0x2a5   :  { %v2173_v52 = vmul.f32 %v7366_v44, %v1853_v23  ;;  %v1903_v14 = vsub.f32 0.0, %v1007_v4  ;;  %v5797_v36 = vadd.f32 %v7367_v40, %v5720_v62  ;;  %v1724_v53 = vmul.f32 %v7350_v58, %v1660_v13  ;;  %v7370_v23 = vld [vmem:[#allocation19_spill] sm:$0xff] }
 0x2a6   :  { %7365 = vst [vmem:[#allocation17_spill] sm:$0xff] %v5791_v51  ;;  %v1582_v0 = vmul.f32 %v5727_v3, %v1518_v57  ;;  %v1473_v54 = vmul.f32 %v7363_v17, %v1409_v28  ;;  %3359 = vmatprep.subr.bf16.mxu0 %v3358_v42  ;;  %v1344_v10 = vmul.f32 1.0614054, %v7368_v27  ;;  %3629 = vpow2.f32 %v2150_v60 }
 0x2a7   :  { %v2237_v49 = vsub.f32 1.0, %v2173_v52  ;;  %v5804_v32 = vmul.f32 0.5, %v5623_v47  ;;  %v1071_v56 = vmul.f32 0.3275911, %v1007_v4  ;;  %v1788_v46 = vadd.f32 0.2548296, %v1724_v53  ;;  %v5806_v1 = vpop.eup %3621 }
 0x2a8   :  { %7369 = vst [vmem:[#allocation22_spill] sm:$0xff] %v5806_v1  ;;  %vm2300_vm9 = vcmp.lt.f32.partialorder %v7370_v23, 0.0  ;;  %v5810_v45 = vmul.f32 0.5, %v5741_v63  ;;  %v1010_v52 = vand.u32 2147483647, %v5791_v51  ;;  %v1967_v44 = vmul.f32 %v1903_v14, %v1007_v4  ;;  %v5814_v47 = vpop.f32.mrb[52].mxu1  ;;  %v5816_v40 = vpop.eup %3623 }
 0x2a9   :  { %v2365_v57 = vsub.f32 0.0, %v2237_v49  ;;  %v1537_v13 = vadd.f32 1.4214138, %v1473_v54  ;;  %v2032_v42 = vmul.f32 1.442695, %v1966_v15  ;;  %v1852_v60 = vmul.f32 %v7350_v58, %v1788_v46  ;;  %7372 = vst [vmem:[#allocation20_spill] sm:$0xff] %v5814_v47 }
 0x2aa   :  { %7371 = vst [vmem:[#allocation47_spill] sm:$0xff] %v5810_v45  ;;  %v1408_v28 = vadd.f32 -1.4531521, %v1344_v10  ;;  %7373 = vst [vmem:[#allocation15_spill] sm:$0xff] %v5816_v40  ;;  %v1646_v53 = vadd.f32 -0.28449672, %v1582_v0  ;;  %v5830_v10 = vpop.eup %3625 }
 0x2ab   :  { %v2429_v1 = vsel %vm2301_vm8, %v2365_v57, %v2237_v49  ;;  %v5821_v63 = vmul.f32 0.70710677, %v5797_v36  ;;  %v1601_v51 = vmul.f32 %v7363_v17, %v1537_v13  ;;  %v2688_v4 = vld [vmem:[%s7079_s5 + $0x2a0] sm:$0xff]  ;;  %v2690_v58 = vld [vmem:[%s7079_s5 + $0x2b0] sm:$0xff]  ;;  %7375 = vst [vmem:[#allocation52_spill] sm:$0xff] %v5830_v10  ;;  %v1135_v15 = vadd.f32 1.0, %v1071_v56 }
 0x2ac   :  { %v5832_v14 = vmul.f32 0.5, %v788_v8  ;;  %v2493_v43 = vadd.f32 1.0, %v2429_v1  ;;  %v7377_v0 = vld [vmem:[#allocation53_spill] sm:$0xff]  ;;  %v1074_v54 = vmul.f32 0.3275911, %v1010_v52  ;;  %v1906_v46 = vsub.f32 0.0, %v1010_v52 }
 0x2ad   :  { %7374 = vst [vmem:[#allocation49_spill] sm:$0xff] %v5821_v63  ;;  %v2172_v49 = vmul.f32 %v7377_v0, %v1852_v60  ;;  %v5837_v57 = vadd.f32 %v5403_v50, %v5604_v20  ;;  %v1665_v13 = vadd.f32 -0.28449672, %v1601_v51  ;;  %v5839_v45 = vpop.eup %3627  ;;  %v7379_v40 = vld [vmem:[#allocation30_spill] sm:$0xff]  ;;  %v1472_v10 = vmul.f32 %v7368_v27, %v1408_v28  ;;  %v5850_v28 = vpop.f32.mrb[53].mxu1  ;;  %v2694_v23 = vld [vmem:[%s7079_s5 + $0x2d0] sm:$0xff] }
 0x2ae   :  { %7376 = vst [vmem:[#allocation45_spill] sm:$0xff] %v5832_v14  ;;  %7378 = vst [vmem:[#allocation26_spill] sm:$0xff] %v5839_v45  ;;  %v2557_v12 = vmul.f32 %v2493_v43, %v7379_v40  ;;  %v3360_v56 = vpack.c.bf16 %v2690_v58, %v2688_v4  ;;  %v1710_v8 = vmul.f32 %v5727_v3, %v1646_v53  ;;  %v2034_v1 = vmul.f32 1.442695, %v1967_v44  ;;  %v2693_v50 = vld [vmem:[%s7079_s5 + $0x2c8] sm:$0xff]  ;;  %v2695_v58 = vld [vmem:[%s7079_s5 + $0x2d8] sm:$0xff] }
 0x2af   :  { %v2236_v47 = vsub.f32 1.0, %v2172_v49  ;;  %v1011_v60 = vand.u32 2147483647, %v5821_v63  ;;  %v1729_v0 = vmul.f32 %v7363_v17, %v1665_v13  ;;  %3631 = vpow2.f32 %v2032_v42 }
 0x2b0   :  { %2832 = vmatprep.mubr.f32.mxu0 %v2557_v12  ;;  %v1536_v14 = vadd.f32 1.4214138, %v1472_v10  ;;  %3361 = vmatpush1.bf16.msra.mxu0 %v3360_v56  ;;  %v1349_v40 = vmul.f32 1.0614054, %v5430_v5  ;;  %3633 = vrcp.f32 %v1135_v15  ;;  %v1138_v53 = vadd.f32 1.0, %v1074_v54  ;;  %v5858_v43 = vpop.eup %3629  ;;  %v7382_v12 = vld [vmem:[#allocation24_spill] sm:$0xff] }
 0x2b1   :  { %v2364_v51 = vsub.f32 0.0, %v2236_v47  ;;  %v5853_v44 = vmul.f32 0.70710677, %v5837_v57  ;;  %v1793_v4 = vadd.f32 0.2548296, %v1729_v0  ;;  %7381 = vst [vmem:[#allocation21_spill] sm:$0xff] %v5858_v43  ;;  %v1970_v42 = vmul.f32 %v1906_v46, %v1010_v52 }
 0x2b2   :  { %vm2305_vm10 = vcmp.lt.f32.partialorder %v7382_v12, 0.0  ;;  %v5862_v10 = vmul.f32 0.5, %v5797_v36  ;;  %v1600_v49 = vmul.f32 %v7368_v27, %v1536_v14  ;;  %v1774_v54 = vadd.f32 0.2548296, %v1710_v8  ;;  %v2692_v36 = vld [vmem:[%s7079_s5 + $0x2c0] sm:$0xff]  ;;  %v7384_v14 = vld [vmem:[#allocation28_spill] sm:$0xff] }
 0x2b3   :  { %7380 = vst [vmem:[#allocation56_spill] sm:$0xff] %v5853_v44  ;;  %v2428_v15 = vsel %vm2300_vm9, %v2364_v51, %v2236_v47  ;;  %v1907_v13 = vsub.f32 0.0, %v1011_v60  ;;  %v1857_v0 = vmul.f32 %v7363_v17, %v1793_v4  ;;  %v5870_v63 = vadd.f32 %v5406_v18, %v5720_v62 }
 0x2b4   :  { %7383 = vst [vmem:[#allocation25_spill] sm:$0xff] %v5862_v10  ;;  %v2492_v56 = vadd.f32 1.0, %v2428_v15  ;;  %v1664_v43 = vadd.f32 -0.28449672, %v1600_v49  ;;  %v1413_v45 = vadd.f32 -1.4531521, %v1349_v40  ;;  %v3362_v52 = vpack.c.bf16 %v2695_v58, %v2693_v50 }
 0x2b5   :  { %v1075_v47 = vmul.f32 0.3275911, %v1011_v60  ;;  %v1014_v17 = vand.u32 2147483647, %v5853_v44  ;;  %v2177_v8 = vmul.f32 %v5408_v41, %v1857_v0  ;;  %v2040_v18 = vmul.f32 1.442695, %v1970_v42 }
 0x2b6   :  { %v2556_v46 = vmul.f32 %v2492_v56, %v7384_v14  ;;  %v1728_v51 = vmul.f32 %v7368_v27, %v1664_v43  ;;  %v1477_v50 = vmul.f32 %v5430_v5, %v1413_v45  ;;  %3363 = vmatprep.subr.bf16.mxu0 %v3362_v52  ;;  %v1348_v40 = vmul.f32 1.0614054, %v5426_v7  ;;  %v7386_v42 = vld [vmem:[#allocation23_spill] sm:$0xff]  ;;  %v5889_v52 = vpop.f32.mrb[54].mxu1 }
 0x2b7   :  { %v1838_v4 = vmul.f32 %v5727_v3, %v1774_v54  ;;  %v1971_v58 = vmul.f32 %v1907_v13, %v1011_v60  ;;  %v2241_v15 = vsub.f32 1.0, %v2177_v8  ;;  %v3364_v49 = vpack.c.bf16 %v2694_v23, %v2692_v36 }
 0x2b8   :  { %2833 = vmatmul.mubr.f32.gmra.mrb[8].mxu0 %v2556_v46  ;;  %3635 = vpow2.f32 %v2034_v1  ;;  %v5886_v56 = vmul.f32 0.70710677, %v5870_v63  ;;  %v1792_v14 = vadd.f32 0.2548296, %v1728_v51  ;;  %v1541_v41 = vadd.f32 1.4214138, %v1477_v50 }
 0x2b9   :  { %vm2304_vm11 = vcmp.lt.f32.partialorder %v7386_v42, 0.0  ;;  %3637 = vrcp.f32 %v1138_v53  ;;  %v1139_v43 = vadd.f32 1.0, %v1075_v47  ;;  %v1910_v45 = vsub.f32 0.0, %v1014_v17  ;;  %3365 = vmatpush1.bf16.msra.mxu0 %v3364_v49  ;;  %v3632_v3 = vpop.eup %3631  ;;  %v7389_v49 = vld [vmem:[#allocation65_spill] sm:$0xff] }
 0x2ba   :  { %7385 = vst [vmem:[#allocation60_spill] sm:$0xff] %v5886_v56  ;;  %v2369_v0 = vsub.f32 0.0, %v2241_v15  ;;  %3639 = vpow2.f32 %v2040_v18  ;;  %v1856_v60 = vmul.f32 %v7368_v27, %v1792_v14  ;;  %v1605_v1 = vmul.f32 %v5430_v5, %v1541_v41  ;;  %v5893_v13 = vpop.eup %3633 }
 0x2bb   :  { %v1412_v54 = vadd.f32 -1.4531521, %v1348_v40  ;;  %v5895_v36 = vmul.f32 %v3632_v3, %v1838_v4  ;;  %v2042_v23 = vmul.f32 1.442695, %v1971_v58  ;;  %v5898_v53 = vmul.f32 0.5, %v5837_v57  ;;  %v7388_v4 = vld [vmem:[#allocation36_spill] sm:$0xff] }
 0x2bc   :  { %v2433_v47 = vsel %vm2305_vm10, %v2369_v0, %v2241_v15  ;;  %v1015_v8 = vand.u32 2147483647, %v5886_v56  ;;  %v2176_v18 = vmul.f32 %v5397_v24, %v1856_v60  ;;  %v1669_v27 = vadd.f32 -0.28449672, %v1605_v1  ;;  %v7390_v60 = vld [vmem:[#allocation29_spill] sm:$0xff] }
 0x2bd   :  { %7387 = vst [vmem:[#allocation54_spill] sm:$0xff] %v5898_v53  ;;  %v2497_v46 = vadd.f32 1.0, %v2433_v47  ;;  %3641 = vrcp.f32 %v1139_v43  ;;  %v1078_v51 = vmul.f32 0.3275911, %v1014_v17  ;;  %v1974_v50 = vmul.f32 %v1910_v45, %v1014_v17  ;;  %v5914_v17 = vpop.f32.mrb[55].mxu1 }
 0x2be   :  { %v1476_v40 = vmul.f32 %v5426_v7, %v1412_v54  ;;  %vm2286_vm12 = vcmp.lt.f32.partialorder %v5643_v37, 0.0  ;;  %v2240_v57 = vsub.f32 1.0, %v2176_v18  ;;  %v5909_v12 = vadd.f32 %v7389_v49, %v5604_v20 }
 0x2bf   :  { %v2561_v58 = vmul.f32 %v2497_v46, %v7388_v4  ;;  %v1733_v15 = vmul.f32 %v5430_v5, %v1669_v27  ;;  %v2222_v14 = vsub.f32 1.0, %v5895_v36  ;;  %3643 = vpow2.f32 %v2042_v23  ;;  %v2697_v23 = vld [vmem:[%s7079_s5 + $0x2e8] sm:$0xff]  ;;  %v2699_v46 = vld [vmem:[%s7079_s5 + $0x2f8] sm:$0xff] }
 0x2c0   :  { %v1540_v24 = vadd.f32 1.4214138, %v1476_v40  ;;  %v1353_v41 = vmul.f32 1.0614054, %v5459_v33  ;;  %v1079_v43 = vmul.f32 0.3275911, %v1015_v8  ;;  %v3366_v42 = vpack.c.bf16 %v2699_v46, %v2697_v23 }
 0x2c1   :  { %2838 = vmatprep.mubr.f32.mxu0 %v2561_v58  ;;  %v1911_v45 = vsub.f32 0.0, %v1015_v8  ;;  %v2368_v0 = vsub.f32 0.0, %v2240_v57  ;;  %v1797_v3 = vadd.f32 0.2548296, %v1733_v15  ;;  %vm2309_vm13 = vcmp.lt.f32.partialorder %v7390_v60, 0.0 }
 0x2c2   :  { %v1142_v1 = vadd.f32 1.0, %v1078_v51  ;;  %v5918_v54 = vmul.f32 0.5, %v5870_v63  ;;  %v1604_v47 = vmul.f32 %v5426_v7, %v1540_v24  ;;  %v1417_v36 = vadd.f32 -1.4531521, %v1353_v41  ;;  %v5927_v18 = vpop.eup %3635  ;;  %3367 = vmatprep.subr.bf16.mxu0 %v3366_v42 }
 0x2c3   :  { %v2048_v27 = vmul.f32 1.442695, %v1974_v50  ;;  %v2432_v51 = vsel %vm2304_vm11, %v2368_v0, %v2240_v57  ;;  %v5932_v63 = vmul.f32 0.70710677, %v5909_v12  ;;  %v1861_v40 = vmul.f32 %v5430_v5, %v1797_v3  ;;  %v5935_v4 = vpop.eup %3637  ;;  %v7394_v50 = vld [vmem:[#allocation69_spill] sm:$0xff]  ;;  %v5941_v57 = vpop.f32.mrb[56].mxu1 }
 0x2c4   :  { %7391 = vst [vmem:[#allocation59_spill] sm:$0xff] %v5918_v54  ;;  %v2350_v58 = vsub.f32 0.0, %v2222_v14  ;;  %v2496_v49 = vadd.f32 1.0, %v2432_v51  ;;  %v1668_v15 = vadd.f32 -0.28449672, %v1604_v47  ;;  %v1481_v24 = vmul.f32 %v5459_v33, %v1417_v36  ;;  %v5938_v41 = vpop.eup %3639  ;;  %v7395_v0 = vld [vmem:[#allocation31_spill] sm:$0xff] }
 0x2c5   :  { %7392 = vst [vmem:[#allocation57_spill] sm:$0xff] %v5932_v63  ;;  %7393 = vst [vmem:[#allocation19_spill] sm:$0xff] %v5938_v41  ;;  %v1143_v53 = vadd.f32 1.0, %v1079_v43  ;;  %v1975_v54 = vmul.f32 %v1911_v45, %v1015_v8  ;;  %v2181_v44 = vmul.f32 %v7394_v50, %v1861_v40  ;;  %v7396_v5 = vld [vmem:[#allocation66_spill] sm:$0xff]  ;;  %v2696_v47 = vld [vmem:[%s7079_s5 + $0x2e0] sm:$0xff]  ;;  %3645 = vrcp.f32 %v1142_v1 }
 0x2c6   :  { %v2560_v56 = vmul.f32 %v2496_v49, %v7395_v0  ;;  %v802_v3 = vadd.f32 %v7396_v5, %v5720_v62  ;;  %v1732_v10 = vmul.f32 %v5426_v7, %v1668_v15  ;;  %v1545_v51 = vadd.f32 1.4214138, %v1481_v24  ;;  %v2698_v8 = vld [vmem:[%s7079_s5 + $0x2f0] sm:$0xff] }
 0x2c7   :  { %v1018_v43 = vand.u32 2147483647, %v5932_v63  ;;  %v2245_v45 = vsub.f32 1.0, %v2181_v44  ;;  %v1352_v36 = vmul.f32 1.0614054, %v5446_v25  ;;  %v5955_v23 = vpop.eup %3641  ;;  %v2414_v46 = vsel %vm2286_vm12, %v2350_v58, %v2222_v14  ;;  %v7397_v15 = vld [vmem:[#allocation27_spill] sm:$0xff] }
 0x2c8   :  { %3647 = vpow2.f32 %v2048_v27  ;;  %2839 = vmatmul.mubr.f32.gmra.mrb[10].mxu0 %v2560_v56  ;;  %v1796_v40 = vadd.f32 0.2548296, %v1732_v10  ;;  %v1609_v49 = vmul.f32 %v5459_v33, %v1545_v51  ;;  %vm2308_vm14 = vcmp.lt.f32.partialorder %v7397_v15, 0.0  ;;  %v7399_v58 = vld [vmem:[#allocation67_spill] sm:$0xff] }
 0x2c9   :  { %3649 = vrcp.f32 %v1143_v53  ;;  %v2373_v1 = vsub.f32 0.0, %v2245_v45  ;;  %v1416_v24 = vadd.f32 -1.4531521, %v1352_v36  ;;  %v3368_v50 = vpack.c.bf16 %v2698_v8, %v2696_v47  ;;  %v5961_v44 = vpop.eup %3643  ;;  %v7401_v36 = vld [vmem:[#allocation43_spill] sm:$0xff] }
 0x2ca   :  { %v2050_v42 = vmul.f32 1.442695, %v1975_v54  ;;  %v5963_v0 = vmul.f32 0.70710677, %v802_v3  ;;  %v1860_v5 = vmul.f32 %v5426_v7, %v1796_v40  ;;  %v1673_v37 = vadd.f32 -0.28449672, %v1609_v49 }
 0x2cb   :  { %v1914_v14 = vsub.f32 0.0, %v1018_v43  ;;  %v2437_v10 = vsel %vm2309_vm13, %v2373_v1, %v2245_v45  ;;  %v806_v56 = vadd.f32 %v5444_v19, %v5604_v20  ;;  %v1480_v53 = vmul.f32 %v5446_v25, %v1416_v24  ;;  %3369 = vmatpush1.bf16.msra.mxu0 %v3368_v50  ;;  %v2701_v7 = vld [vmem:[%s7079_s5 + $0x308] sm:$0xff]  ;;  %v2703_v50 = vld [vmem:[%s7079_s5 + $0x318] sm:$0xff]  ;;  %v2702_v15 = vld [vmem:[%s7079_s5 + $0x310] sm:$0xff] }
 0x2cc   :  { %7398 = vst [vmem:[#allocation53_spill] sm:$0xff] %v5963_v0  ;;  %v2501_v27 = vadd.f32 1.0, %v2437_v10  ;;  %v2180_v51 = vmul.f32 %v7399_v58, %v1860_v5  ;;  %v1737_v54 = vmul.f32 %v5459_v33, %v1673_v37  ;;  %v1357_v47 = vmul.f32 1.0614054, %v5479_v34  ;;  %v7402_v5 = vld [vmem:[#allocation33_spill] sm:$0xff]  ;;  %v5989_v10 = vpop.f32.mrb[57].mxu1 }
 0x2cd   :  { %v2478_v8 = vadd.f32 1.0, %v2414_v46  ;;  %v5978_v60 = vmul.f32 0.5, %v5909_v12  ;;  %v1082_v45 = vmul.f32 0.3275911, %v1018_v43  ;;  %v1544_v19 = vadd.f32 1.4214138, %v1480_v53 }
 0x2ce   :  { %v2565_v40 = vmul.f32 %v2501_v27, %v7401_v36  ;;  %v1019_v49 = vand.u32 2147483647, %v5963_v0  ;;  %v2244_v1 = vsub.f32 1.0, %v2180_v51  ;;  %v1801_v24 = vadd.f32 0.2548296, %v1737_v54 }
 0x2cf   :  { %7400 = vst [vmem:[#allocation30_spill] sm:$0xff] %v5978_v60  ;;  %vm2313_vm15 = vcmp.lt.f32.partialorder %v7402_v5, 0.0  ;;  %3651 = vpow2.f32 %v2050_v42  ;;  %v1978_v37 = vmul.f32 %v1914_v14, %v1018_v43  ;;  %v5986_v46 = vmul.f32 0.5, %v802_v3  ;;  %v5994_v54 = vpop.eup %3645  ;;  %v7407_v60 = vld [vmem:[#allocation75_spill] sm:$0xff] }
 0x2d0   :  { %v1608_v12 = vmul.f32 %v5446_v25, %v1544_v19  ;;  %2844 = vmatprep.mubr.f32.mxu0 %v2565_v40  ;;  %v2372_v53 = vsub.f32 0.0, %v2244_v1  ;;  %v5991_v27 = vmul.f32 0.70710677, %v806_v56  ;;  %v1865_v58 = vmul.f32 %v5459_v33, %v1801_v24  ;;  %7405 = vst [vmem:[#allocation23_spill] sm:$0xff] %v5994_v54 }
 0x2d1   :  { %7403 = vst [vmem:[#allocation24_spill] sm:$0xff] %v5986_v46  ;;  %v1421_v51 = vadd.f32 -1.4531521, %v1357_v47  ;;  %v1146_v36 = vadd.f32 1.0, %v1082_v45  ;;  %v5998_v42 = vadd.f32 %v5454_v11, %v5720_v62  ;;  %v3370_v43 = vpack.c.bf16 %v2703_v50, %v2701_v7  ;;  %v2700_v7 = vld [vmem:[%s7079_s5 + $0x300] sm:$0xff] }
 0x2d2   :  { %7404 = vst [vmem:[#allocation28_spill] sm:$0xff] %v5991_v27  ;;  %v1672_v3 = vadd.f32 -0.28449672, %v1608_v12  ;;  %v6000_v14 = vpop.eup %3647  ;;  %v1915_v19 = vsub.f32 0.0, %v1019_v49  ;;  %v2436_v40 = vsel %vm2308_vm14, %v2372_v53, %v2244_v1  ;;  %v2185_v46 = vmul.f32 %v7407_v60, %v1865_v58  ;;  %v7409_v12 = vld [vmem:[#allocation42_spill] sm:$0xff] }
 0x2d3   :  { %7406 = vst [vmem:[#allocation36_spill] sm:$0xff] %v6000_v14  ;;  %v1485_v33 = vmul.f32 %v5479_v34, %v1421_v51  ;;  %v6006_v47 = vpop.eup %3649  ;;  %v2056_v24 = vmul.f32 1.442695, %v1978_v37  ;;  %v2500_v45 = vadd.f32 1.0, %v2436_v40  ;;  %v6008_v63 = vmul.f32 0.5, %v806_v56  ;;  %3371 = vmatprep.subr.bf16.mxu0 %v3370_v43  ;;  %v6021_v56 = vpop.f32.mrb[58].mxu1 }
 0x2d4   :  { %v1736_v11 = vmul.f32 %v5446_v25, %v1672_v3  ;;  %v6018_v60 = vmul.f32 %v2478_v8, %v5804_v32  ;;  %v1022_v1 = vand.u32 2147483647, %v5991_v27  ;;  %v2249_v50 = vsub.f32 1.0, %v2185_v46  ;;  %v7411_v3 = vld [vmem:[#allocation77_spill] sm:$0xff]  ;;  %v7412_v40 = vld [vmem:[#allocation32_spill] sm:$0xff] }
 0x2d5   :  { %7408 = vst [vmem:[#allocation65_spill] sm:$0xff] %v6008_v63  ;;  %v1549_v37 = vadd.f32 1.4214138, %v1485_v33  ;;  %v2564_v53 = vmul.f32 %v2500_v45, %v7409_v12  ;;  %v6025_v58 = vmul.f32 0.70710677, %v5998_v42  ;;  %vm2312_vm0 = vcmp.lt.f32.partialorder %v7412_v40, 0.0 }
 0x2d6   :  { %v1800_v51 = vadd.f32 0.2548296, %v1736_v11  ;;  %v1356_v43 = vmul.f32 1.0614054, %v7411_v3  ;;  %v1083_v63 = vmul.f32 0.3275911, %v1019_v49  ;;  %v1979_v14 = vmul.f32 %v1915_v19, %v1019_v49 }
 0x2d7   :  { %7410 = vst [vmem:[#allocation29_spill] sm:$0xff] %v6025_v58  ;;  %v2377_v32 = vsub.f32 0.0, %v2249_v50  ;;  %v1613_v8 = vmul.f32 %v5479_v34, %v1549_v37  ;;  %2845 = vmatmul.mubr.f32.gmra.mrb[12].mxu0 %v2564_v53  ;;  %v7413_v33 = vld [vmem:[#allocation76_spill] sm:$0xff]  ;;  %v3372_v12 = vpack.c.bf16 %v2702_v15, %v2700_v7  ;;  %3653 = vrcp.f32 %v1146_v36  ;;  %v7415_v53 = vld [vmem:[#allocation74_spill] sm:$0xff]  ;;  %v2706_v40 = vld [vmem:[%s7079_s5 + $0x330] sm:$0xff] }
 0x2d8   :  { %v1864_v46 = vmul.f32 %v5446_v25, %v1800_v51  ;;  %v6033_v27 = vadd.f32 %v7413_v33, %v5604_v20  ;;  %v1420_v45 = vadd.f32 -1.4531521, %v1356_v43  ;;  %v1086_v11 = vmul.f32 0.3275911, %v1022_v1  ;;  %v2705_v51 = vld [vmem:[%s7079_s5 + $0x328] sm:$0xff]  ;;  %v2707_v36 = vld [vmem:[%s7079_s5 + $0x338] sm:$0xff] }
 0x2d9   :  { %v2441_v0 = vsel %vm2313_vm15, %v2377_v32, %v2249_v50  ;;  %v1677_v41 = vadd.f32 -0.28449672, %v1613_v8  ;;  %v6037_v54 = vpop.eup %3651  ;;  %v1918_v49 = vsub.f32 0.0, %v1022_v1  ;;  %v1023_v37 = vand.u32 2147483647, %v6025_v58  ;;  %3373 = vmatpush1.bf16.msra.mxu0 %v3372_v12  ;;  %v7416_v50 = vld [vmem:[#allocation61_spill] sm:$0xff] }
 0x2da   :  { %7414 = vst [vmem:[#allocation69_spill] sm:$0xff] %v6037_v54  ;;  %v2505_v19 = vadd.f32 1.0, %v2441_v0  ;;  %v2184_v25 = vmul.f32 %v7415_v53, %v1864_v46  ;;  %3655 = vpow2.f32 %v2056_v24  ;;  %v1147_v5 = vadd.f32 1.0, %v1083_v63  ;;  %v6053_v46 = vpop.f32.mrb[59].mxu1  ;;  %v7418_v54 = vld [vmem:[#allocation40_spill] sm:$0xff] }
 0x2db   :  { %v1741_v7 = vmul.f32 %v5479_v34, %v1677_v41  ;;  %v1484_v15 = vmul.f32 %v7411_v3, %v1420_v45  ;;  %v2058_v0 = vmul.f32 1.442695, %v1979_v14  ;;  %v6051_v8 = vmul.f32 0.70710677, %v6033_v27  ;;  %v6056_v14 = vpop.f32.mrb[60].mxu1 }
 0x2dc   :  { %v2569_v43 = vmul.f32 %v2505_v19, %v7416_v50  ;;  %v2248_v32 = vsub.f32 1.0, %v2184_v25  ;;  %v1150_v33 = vadd.f32 1.0, %v1086_v11  ;;  %v3374_v58 = vpack.c.bf16 %v2707_v36, %v2705_v51 }
 0x2dd   :  { %7417 = vst [vmem:[#allocation31_spill] sm:$0xff] %v6051_v8  ;;  %v1805_v12 = vadd.f32 0.2548296, %v1741_v7  ;;  %v1548_v53 = vadd.f32 1.4214138, %v1484_v15  ;;  %vm2317_vm1 = vcmp.lt.f32.partialorder %v7418_v54, 0.0  ;;  %v1982_v63 = vmul.f32 %v1918_v49, %v1022_v1 }
 0x2de   :  { %2850 = vmatprep.mubr.f32.mxu0 %v2569_v43  ;;  %v1087_v41 = vmul.f32 0.3275911, %v1023_v37  ;;  %v1919_v24 = vsub.f32 0.0, %v1023_v37  ;;  %v2376_v45 = vsub.f32 0.0, %v2248_v32  ;;  %3657 = vrcp.f32 %v1147_v5  ;;  %3375 = vmatprep.subr.bf16.mxu0 %v3374_v58  ;;  %v7419_v5 = vld [vmem:[#allocation82_spill] sm:$0xff] }
 0x2df   :  { %v1869_v19 = vmul.f32 %v5479_v34, %v1805_v12  ;;  %v6061_v25 = vadd.f32 %v5508_v31, %v5720_v62  ;;  %v1612_v11 = vmul.f32 %v7411_v3, %v1548_v53  ;;  %3659 = vpow2.f32 %v2058_v0  ;;  %v2704_v31 = vld [vmem:[%s7079_s5 + $0x320] sm:$0xff] }
 0x2e0   :  { %v2440_v1 = vsel %vm2312_vm0, %v2376_v45, %v2248_v32  ;;  %v1026_v49 = vand.u32 2147483647, %v6051_v8  ;;  %v1361_v51 = vmul.f32 1.0614054, %v5501_v55  ;;  %3661 = vrcp.f32 %v1150_v33  ;;  %v7421_v32 = vld [vmem:[#allocation50_spill] sm:$0xff] }
 0x2e1   :  { %v2504_v36 = vadd.f32 1.0, %v2440_v1  ;;  %v2189_v7 = vmul.f32 %v7419_v5, %v1869_v19  ;;  %v1676_v34 = vadd.f32 -0.28449672, %v1612_v11  ;;  %v2064_v15 = vmul.f32 1.442695, %v1982_v63  ;;  %v6075_v43 = vpop.eup %3653 }
 0x2e2   :  { %v1151_v50 = vadd.f32 1.0, %v1087_v41  ;;  %v1983_v58 = vmul.f32 %v1919_v24, %v1023_v37  ;;  %v1425_v0 = vadd.f32 -1.4531521, %v1361_v51  ;;  %7420 = vst [vmem:[#allocation66_spill] sm:$0xff] %v6075_v43  ;;  %v6079_v53 = vmul.f32 0.70710677, %v6061_v25 }
 0x2e3   :  { %v2568_v33 = vmul.f32 %v2504_v36, %v7421_v32  ;;  %v2253_v12 = vsub.f32 1.0, %v2189_v7  ;;  %v1740_v45 = vmul.f32 %v7411_v3, %v1676_v34  ;;  %v1090_v19 = vmul.f32 0.3275911, %v1026_v49  ;;  %v7424_v51 = vld [vmem:[#allocation83_spill] sm:$0xff]  ;;  %v7425_v7 = vld [vmem:[#allocation38_spill] sm:$0xff] }
 0x2e4   :  { %7422 = vst [vmem:[#allocation27_spill] sm:$0xff] %v6079_v53  ;;  %v1922_v11 = vsub.f32 0.0, %v1026_v49  ;;  %v6084_v37 = vadd.f32 %v5540_v61, %v5604_v20  ;;  %v1489_v63 = vmul.f32 %v5501_v55, %v1425_v0  ;;  %v6087_v41 = vpop.eup %3655  ;;  %v1360_v36 = vmul.f32 1.0614054, %v7424_v51  ;;  %v6094_v61 = vpop.f32.mrb[61].mxu1 }
 0x2e5   :  { %7423 = vst [vmem:[#allocation67_spill] sm:$0xff] %v6087_v41  ;;  %2851 = vmatmul.mubr.f32.gmra.mrb[14].mxu0 %v2568_v33  ;;  %v2381_v24 = vsub.f32 0.0, %v2253_v12  ;;  %v1804_v1 = vadd.f32 0.2548296, %v1740_v45  ;;  %v3376_v5 = vpack.c.bf16 %v2706_v40, %v2704_v31  ;;  %vm2316_vm2 = vcmp.lt.f32.partialorder %v7425_v7, 0.0 }
 0x2e6   :  { %3663 = vpow2.f32 %v2064_v15  ;;  %v6092_v34 = vmul.f32 0.5, %v5998_v42  ;;  %v2066_v32 = vmul.f32 1.442695, %v1983_v58  ;;  %v1553_v8 = vadd.f32 1.4214138, %v1489_v63  ;;  %v7428_v63 = vld [vmem:[#allocation80_spill] sm:$0xff] }
 0x2e7   :  { %v2445_v0 = vsel %vm2317_vm1, %v2381_v24, %v2253_v12  ;;  %v1027_v33 = vand.u32 2147483647, %v6079_v53  ;;  %v1868_v45 = vmul.f32 %v7411_v3, %v1804_v1  ;;  %v1424_v41 = vadd.f32 -1.4531521, %v1360_v36  ;;  %3377 = vmatpush1.bf16.msra.mxu0 %v3376_v5 }
 0x2e8   :  { %7426 = vst [vmem:[#allocation43_spill] sm:$0xff] %v6092_v34  ;;  %3665 = vrcp.f32 %v1151_v50  ;;  %v1154_v31 = vadd.f32 1.0, %v1090_v19  ;;  %v2509_v40 = vadd.f32 1.0, %v2445_v0  ;;  %v1617_v15 = vmul.f32 %v5501_v55, %v1553_v8  ;;  %v6101_v42 = vpop.eup %3657  ;;  %v7432_v50 = vld [vmem:[#allocation63_spill] sm:$0xff]  ;;  %v2709_v8 = vld [vmem:[%s7079_s5 + $0x348] sm:$0xff] }
 0x2e9   :  { %7427 = vst [vmem:[#allocation33_spill] sm:$0xff] %v6101_v42  ;;  %v1986_v58 = vmul.f32 %v1922_v11, %v1026_v49  ;;  %v2188_v34 = vmul.f32 %v7428_v63, %v1868_v45  ;;  %v6105_v43 = vmul.f32 0.70710677, %v6084_v37  ;;  %v1488_v54 = vmul.f32 %v7424_v51, %v1424_v41  ;;  %v6108_v12 = vpop.eup %3659  ;;  %v2711_v49 = vld [vmem:[%s7079_s5 + $0x358] sm:$0xff] }
 0x2ea   :  { %7430 = vst [vmem:[#allocation42_spill] sm:$0xff] %v6108_v12  ;;  %3667 = vpow2.f32 %v2066_v32  ;;  %v6111_v3 = vmul.f32 0.5, %v6033_v27  ;;  %v2573_v19 = vmul.f32 %v2509_v40, %v7432_v50  ;;  %v1681_v24 = vadd.f32 -0.28449672, %v1617_v15  ;;  %v6120_v11 = vpop.eup %3661  ;;  %v6130_v50 = vpop.f32.mrb[62].mxu1 }
 0x2eb   :  { %7429 = vst [vmem:[#allocation75_spill] sm:$0xff] %v6105_v43  ;;  %7433 = vst [vmem:[#allocation32_spill] sm:$0xff] %v6120_v11  ;;  %v1091_v41 = vmul.f32 0.3275911, %v1027_v33  ;;  %v1923_v1 = vsub.f32 0.0, %v1027_v33  ;;  %v2252_v36 = vsub.f32 1.0, %v2188_v34  ;;  %3669 = vrcp.f32 %v1154_v31 }
 0x2ec   :  { %7431 = vst [vmem:[#allocation77_spill] sm:$0xff] %v6111_v3  ;;  %v1552_v5 = vadd.f32 1.4214138, %v1488_v54  ;;  %2856 = vmatprep.mubr.f32.mxu0 %v2573_v19  ;;  %v1745_v27 = vmul.f32 %v5501_v55, %v1681_v24  ;;  %v6125_v32 = vadd.f32 %v5567_v6, %v5720_v62  ;;  %v1365_v0 = vmul.f32 1.0614054, %v5525_v48  ;;  %v7435_v24 = vld [vmem:[#allocation51_spill] sm:$0xff] }
 0x2ed   :  { %v2072_v45 = vmul.f32 1.442695, %v1986_v58  ;;  %v2380_v40 = vsub.f32 0.0, %v2252_v36  ;;  %v1030_v15 = vand.u32 2147483647, %v6105_v43  ;;  %v6133_v34 = vmul.f32 0.5, %v6061_v25 }
 0x2ee   :  { %v1616_v63 = vmul.f32 %v7424_v51, %v1552_v5  ;;  %v1809_v31 = vadd.f32 0.2548296, %v1745_v27  ;;  %v1429_v54 = vadd.f32 -1.4531521, %v1365_v0  ;;  %v3378_v19 = vpack.c.bf16 %v2711_v49, %v2709_v8 }
 0x2ef   :  { %7434 = vst [vmem:[#allocation76_spill] sm:$0xff] %v6133_v34  ;;  %vm2321_vm3 = vcmp.lt.f32.partialorder %v7435_v24, 0.0  ;;  %v1155_v6 = vadd.f32 1.0, %v1091_v41  ;;  %v1987_v3 = vmul.f32 %v1923_v1, %v1027_v33  ;;  %v2444_v58 = vsel %vm2316_vm2, %v2380_v40, %v2252_v36  ;;  %v2708_v41 = vld [vmem:[%s7079_s5 + $0x340] sm:$0xff]  ;;  %v7439_v36 = vld [vmem:[#allocation62_spill] sm:$0xff] }
 0x2f0   :  { %v1680_v53 = vadd.f32 -0.28449672, %v1616_v63  ;;  %v6138_v12 = vpop.eup %3663  ;;  %v2508_v43 = vadd.f32 1.0, %v2444_v58  ;;  %v1873_v5 = vmul.f32 %v5501_v55, %v1809_v31  ;;  %v6142_v11 = vmul.f32 0.70710677, %v6125_v32  ;;  %3379 = vmatprep.subr.bf16.mxu0 %v3378_v19  ;;  %v2710_v55 = vld [vmem:[%s7079_s5 + $0x350] sm:$0xff] }
 0x2f1   :  { %7436 = vst [vmem:[#allocation74_spill] sm:$0xff] %v6138_v12  ;;  %v1493_v25 = vmul.f32 %v5525_v48, %v1429_v54  ;;  %v1094_v8 = vmul.f32 0.3275911, %v1030_v15  ;;  %v6148_v33 = vadd.f32 %v5595_v21, %v5604_v20  ;;  %v1364_v7 = vmul.f32 1.0614054, %v5522_v38  ;;  %v7442_v58 = vld [vmem:[#allocation46_spill] sm:$0xff] }
 0x2f2   :  { %7437 = vst [vmem:[#allocation61_spill] sm:$0xff] %v6142_v11  ;;  %v1744_v49 = vmul.f32 %v7424_v51, %v1680_v53  ;;  %v6157_v1 = vpop.eup %3665  ;;  %v2572_v27 = vmul.f32 %v2508_v43, %v7439_v36  ;;  %v1926_v0 = vsub.f32 0.0, %v1030_v15  ;;  %v7440_v53 = vld [vmem:[#allocation88_spill] sm:$0xff]  ;;  %3671 = vpow2.f32 %v2072_v45 }
 0x2f3   :  { %7438 = vst [vmem:[#allocation40_spill] sm:$0xff] %v6157_v1  ;;  %v2193_v40 = vmul.f32 %v7440_v53, %v1873_v5  ;;  %v1557_v63 = vadd.f32 1.4214138, %v1493_v25  ;;  %v2074_v21 = vmul.f32 1.442695, %v1987_v3  ;;  %vm2320_vm4 = vcmp.lt.f32.partialorder %v7442_v58, 0.0 }
 0x2f4   :  { %v1808_v31 = vadd.f32 0.2548296, %v1744_v49  ;;  %v1428_v54 = vadd.f32 -1.4531521, %v1364_v7  ;;  %v6161_v19 = vpop.eup %3667  ;;  %2857 = vmatmul.mubr.f32.gmra.mrb[16].mxu0 %v2572_v27  ;;  %v1031_v12 = vand.u32 2147483647, %v6142_v11  ;;  %v3380_v42 = vpack.c.bf16 %v2710_v55, %v2708_v41 }
 0x2f5   :  { %7441 = vst [vmem:[#allocation82_spill] sm:$0xff] %v6161_v19  ;;  %v2257_v34 = vsub.f32 1.0, %v2193_v40  ;;  %v1621_v1 = vmul.f32 %v5525_v48, %v1557_v63  ;;  %v1158_v43 = vadd.f32 1.0, %v1094_v8  ;;  %v6168_v5 = vmul.f32 0.70710677, %v6148_v33  ;;  %v6171_v45 = vpop.eup %3669  ;;  %v6181_v53 = vpop.f32.mrb[63].mxu1 }
 0x2f6   :  { %v1872_v36 = vmul.f32 %v7424_v51, %v1808_v31  ;;  %v1492_v3 = vmul.f32 %v5522_v38, %v1428_v54  ;;  %v1990_v25 = vmul.f32 %v1926_v0, %v1030_v15  ;;  %v6175_v27 = vadd.f32 %v5657_v16, %v5720_v62  ;;  %3381 = vmatpush1.bf16.msra.mxu0 %v3380_v42  ;;  %v7445_v51 = vld [vmem:[#allocation86_spill] sm:$0xff]  ;;  %v7448_v54 = vld [vmem:[#allocation71_spill] sm:$0xff] }
 0x2f7   :  { %7443 = vst [vmem:[#allocation50_spill] sm:$0xff] %v6168_v5  ;;  %v2385_v49 = vsub.f32 0.0, %v2257_v34  ;;  %v1685_v7 = vadd.f32 -0.28449672, %v1621_v1  ;;  %3673 = vrcp.f32 %v1155_v6  ;;  %v6178_v8 = vmul.f32 0.5, %v6084_v37  ;;  %v2713_v37 = vld [vmem:[%s7079_s5 + $0x368] sm:$0xff] }
 0x2f8   :  { %v2192_v41 = vmul.f32 %v7445_v51, %v1872_v36  ;;  %v1556_v55 = vadd.f32 1.4214138, %v1492_v3  ;;  %3675 = vpow2.f32 %v2074_v21  ;;  %v1927_v0 = vsub.f32 0.0, %v1031_v12  ;;  %v2715_v6 = vld [vmem:[%s7079_s5 + $0x378] sm:$0xff]  ;;  %v7447_v31 = vld [vmem:[#allocation58_spill] sm:$0xff] }
 0x2f9   :  { %7444 = vst [vmem:[#allocation83_spill] sm:$0xff] %v6178_v8  ;;  %v2449_v15 = vsel %vm2321_vm3, %v2385_v49, %v2257_v34  ;;  %v1749_v1 = vmul.f32 %v5525_v48, %v1685_v7  ;;  %3677 = vrcp.f32 %v1158_v43  ;;  %v1034_v42 = vand.u32 2147483647, %v6168_v5 }
 0x2fa   :  { %v2513_v16 = vadd.f32 1.0, %v2449_v15  ;;  %v2256_v40 = vsub.f32 1.0, %v2192_v41  ;;  %v2080_v63 = vmul.f32 1.442695, %v1990_v25  ;;  %v6194_v34 = vmul.f32 0.70710677, %v6175_v27 }
 0x2fb   :  { %v1813_v21 = vadd.f32 0.2548296, %v1749_v1  ;;  %v1620_v24 = vmul.f32 %v5522_v38, %v1556_v55  ;;  %vm2325_vm5 = vcmp.lt.f32.partialorder %v7447_v31, 0.0  ;;  %v6200_v36 = vmul.f32 0.5, %v6125_v32 }
 0x2fc   :  { %7446 = vst [vmem:[#allocation38_spill] sm:$0xff] %v6194_v34  ;;  %v2577_v43 = vmul.f32 %v2513_v16, %v7448_v54  ;;  %v2384_v3 = vsub.f32 0.0, %v2256_v40  ;;  %v6204_v49 = vadd.f32 %v5688_v26, %v5604_v20  ;;  %v1095_v7 = vmul.f32 0.3275911, %v1031_v12  ;;  %v6207_v15 = vpop.eup %3671  ;;  %v2712_v26 = vld [vmem:[%s7079_s5 + $0x360] sm:$0xff]  ;;  %v7453_v54 = vld [vmem:[#allocation70_spill] sm:$0xff] }
 0x2fd   :  { %7449 = vst [vmem:[#allocation80_spill] sm:$0xff] %v6200_v36  ;;  %v1991_v25 = vmul.f32 %v1927_v0, %v1031_v12  ;;  %v1877_v51 = vmul.f32 %v5525_v48, %v1813_v21  ;;  %v1684_v41 = vadd.f32 -0.28449672, %v1620_v24  ;;  %7450 = vst [vmem:[#allocation63_spill] sm:$0xff] %v6207_v15  ;;  %v1930_v1 = vsub.f32 0.0, %v1034_v42  ;;  %v2714_v12 = vld [vmem:[%s7079_s5 + $0x370] sm:$0xff] }
 0x2fe   :  { %2862 = vmatprep.mubr.f32.mxu0 %v2577_v43  ;;  %v2448_v55 = vsel %vm2320_vm4, %v2384_v3, %v2256_v40  ;;  %v1369_v32 = vmul.f32 1.0614054, %v5550_v22  ;;  %v3382_v16 = vpack.c.bf16 %v2715_v6, %v2713_v37  ;;  %v7451_v0 = vld [vmem:[#allocation92_spill] sm:$0xff]  ;;  %v1035_v24 = vand.u32 2147483647, %v6194_v34 }
 0x2ff   :  { %v2512_v48 = vadd.f32 1.0, %v2448_v55  ;;  %v2197_v21 = vmul.f32 %v7451_v0, %v1877_v51  ;;  %v1748_v58 = vmul.f32 %v5522_v38, %v1684_v41  ;;  %3679 = vpow2.f32 %v2080_v63  ;;  %v2717_v51 = vld [vmem:[%s7079_s5 + $0x388] sm:$0xff]  ;;  %v2719_v63 = vld [vmem:[%s7079_s5 + $0x398] sm:$0xff]  ;;  %v7454_v55 = vld [vmem:[#allocation55_spill] sm:$0xff] }
 0x300   :  { %v6222_v40 = vmul.f32 0.70710677, %v6204_v49  ;;  %v1433_v37 = vadd.f32 -1.4531521, %v1369_v32  ;;  %3383 = vmatprep.subr.bf16.mxu0 %v3382_v16  ;;  %v1368_v6 = vmul.f32 1.0614054, %v5542_v59  ;;  %v3384_v36 = vpack.c.bf16 %v2714_v12, %v2712_v26 }
 0x301   :  { %v2576_v43 = vmul.f32 %v2512_v48, %v7453_v54  ;;  %v2261_v3 = vsub.f32 1.0, %v2197_v21  ;;  %v1812_v8 = vadd.f32 0.2548296, %v1748_v58  ;;  %v6232_v41 = vpop.eup %3673  ;;  %vm2324_vm6 = vcmp.lt.f32.partialorder %v7454_v55, 0.0 }
 0x302   :  { %7452 = vst [vmem:[#allocation51_spill] sm:$0xff] %v6222_v40  ;;  %v1159_v32 = vadd.f32 1.0, %v1095_v7  ;;  %v2082_v16 = vmul.f32 1.442695, %v1991_v25  ;;  %v6236_v0 = vmul.f32 0.5, %v6148_v33  ;;  %v1497_v48 = vmul.f32 %v5550_v22, %v1433_v37  ;;  %v6239_v26 = vpop.eup %3675  ;;  %3385 = vmatpush1.bf16.msra.mxu0 %v3384_v36  ;;  %v7457_v25 = vld [vmem:[#allocation90_spill] sm:$0xff] }
 0x303   :  { %7456 = vst [vmem:[#allocation88_spill] sm:$0xff] %v6239_v26  ;;  %2863 = vmatmul.mubr.f32.gmra.mrb[18].mxu0 %v2576_v43  ;;  %v2389_v12 = vsub.f32 0.0, %v2261_v3  ;;  %v1931_v21 = vsub.f32 0.0, %v1035_v24  ;;  %v1876_v58 = vmul.f32 %v5522_v38, %v1812_v8  ;;  %v1432_v54 = vadd.f32 -1.4531521, %v1368_v6  ;;  %v6242_v5 = vpop.eup %3677  ;;  %v7458_v6 = vld [vmem:[#allocation73_spill] sm:$0xff] }
 0x304   :  { %7455 = vst [vmem:[#allocation62_spill] sm:$0xff] %v6236_v0  ;;  %v1098_v34 = vmul.f32 0.3275911, %v1034_v42  ;;  %v1994_v11 = vmul.f32 %v1930_v1, %v1034_v42  ;;  %v1561_v15 = vadd.f32 1.4214138, %v1497_v48  ;;  %v3386_v7 = vpack.c.bf16 %v2719_v63, %v2717_v51 }
 0x305   :  { %v2453_v33 = vsel %vm2325_vm5, %v2389_v12, %v2261_v3  ;;  %v2196_v37 = vmul.f32 %v7457_v25, %v1876_v58  ;;  %v1038_v0 = vand.u32 2147483647, %v6222_v40  ;;  %v1496_v43 = vmul.f32 %v5542_v59, %v1432_v54  ;;  %v7459_v25 = vld [vmem:[#allocation68_spill] sm:$0xff] }
 0x306   :  { %v2517_v26 = vadd.f32 1.0, %v2453_v33  ;;  %v1099_v19 = vmul.f32 0.3275911, %v1035_v24  ;;  %v1625_v38 = vmul.f32 %v5550_v22, %v1561_v15  ;;  %v6252_v8 = vadd.f32 %v5732_v9, %v5720_v62  ;;  %3387 = vmatprep.subr.bf16.mxu0 %v3386_v7 }
 0x307   :  { %3681 = vrcp.f32 %v1159_v32  ;;  %v1995_v42 = vmul.f32 %v1931_v21, %v1035_v24  ;;  %v2260_v36 = vsub.f32 1.0, %v2196_v37  ;;  %v1560_v31 = vadd.f32 1.4214138, %v1496_v43 }
 0x308   :  { %3683 = vpow2.f32 %v2082_v16  ;;  %v1162_v1 = vadd.f32 1.0, %v1098_v34  ;;  %v2581_v3 = vmul.f32 %v2517_v26, %v7458_v6  ;;  %v1689_v51 = vadd.f32 -0.28449672, %v1625_v38  ;;  %v7460_v38 = vld [vmem:[#allocation72_spill] sm:$0xff] }
 0x309   :  { %v2088_v63 = vmul.f32 1.442695, %v1994_v11  ;;  %v2388_v48 = vsub.f32 0.0, %v2260_v36  ;;  %v1934_v12 = vsub.f32 0.0, %v1038_v0  ;;  %v1624_v58 = vmul.f32 %v5542_v59, %v1560_v31  ;;  %v6256_v15 = vpop.eup %3679 }
 0x30a   :  { %2868 = vmatprep.mubr.f32.mxu0 %v2581_v3  ;;  %v1163_v9 = vadd.f32 1.0, %v1099_v19  ;;  %v1753_v54 = vmul.f32 %v5550_v22, %v1689_v51  ;;  %v6260_v24 = vmul.f32 0.70710677, %v6252_v8  ;;  %v1373_v32 = vmul.f32 1.0614054, %v5607_v29 }
 0x30b   :  { %v2090_v34 = vmul.f32 1.442695, %v1995_v42  ;;  %v2452_v16 = vsel %vm2324_vm6, %v2388_v48, %v2260_v36  ;;  %v1102_v11 = vmul.f32 0.3275911, %v1038_v0  ;;  %v1688_v26 = vadd.f32 -0.28449672, %v1624_v58 }
 0x30c   :  { %3685 = vrcp.f32 %v1162_v1  ;;  %v2516_v21 = vadd.f32 1.0, %v2452_v16  ;;  %v1817_v7 = vadd.f32 0.2548296, %v1753_v54  ;;  %v1437_v33 = vadd.f32 -1.4531521, %v1373_v32  ;;  %v2716_v1 = vld [vmem:[%s7079_s5 + $0x380] sm:$0xff] }
 0x30d   :  { %vm2329_vm7 = vcmp.lt.f32.partialorder %v7459_v25, 0.0  ;;  %3687 = vpow2.f32 %v2088_v63  ;;  %v1998_v19 = vmul.f32 %v1934_v12, %v1038_v0  ;;  %v1752_v37 = vmul.f32 %v5542_v59, %v1688_v26  ;;  %v2718_v0 = vld [vmem:[%s7079_s5 + $0x390] sm:$0xff]  ;;  %v2723_v25 = vld [vmem:[%s7079_s5 + $0x3b8] sm:$0xff] }
 0x30e   :  { %v6269_v43 = vadd.f32 %v5755_v39, %v5604_v20  ;;  %v2580_v42 = vmul.f32 %v2516_v21, %v7460_v38  ;;  %v1881_v55 = vmul.f32 %v5550_v22, %v1817_v7  ;;  %v1039_v36 = vand.u32 2147483647, %v6260_v24  ;;  %v7462_v22 = vld [vmem:[#allocation64_spill] sm:$0xff]  ;;  %v7464_v7 = vld [vmem:[#allocation94_spill] sm:$0xff]  ;;  %v7465_v38 = vld [vmem:[#allocation9_spill] sm:$0xff] }
 0x30f   :  { %v1501_v31 = vmul.f32 %v5607_v29, %v1437_v33  ;;  %v6282_v6 = vmul.f32 0.5, %v6175_v27  ;;  %3689 = vrcp.f32 %v1163_v9  ;;  %v1816_v39 = vadd.f32 0.2548296, %v1752_v37 }
 0x310   :  { %v1372_v3 = vmul.f32 1.0614054, %v5597_v30  ;;  %vm2328_vm8 = vcmp.lt.f32.partialorder %v7462_v22, 0.0  ;;  %3691 = vpow2.f32 %v2090_v34  ;;  %2869 = vmatmul.mubr.f32.gmra.mrb[20].mxu0 %v2580_v42  ;;  %v1166_v51 = vadd.f32 1.0, %v1102_v11 }
 0x311   :  { %7461 = vst [vmem:[#allocation46_spill] sm:$0xff] %v6282_v6  ;;  %v2201_v63 = vmul.f32 %v5580_v2, %v1881_v55  ;;  %v1565_v48 = vadd.f32 1.4214138, %v1501_v31  ;;  %v6287_v12 = vpop.eup %3681  ;;  %v2096_v58 = vmul.f32 1.442695, %v1998_v19  ;;  %v1880_v54 = vmul.f32 %v5542_v59, %v1816_v39 }
 0x312   :  { %v1436_v32 = vadd.f32 -1.4531521, %v1372_v3  ;;  %v3388_v27 = vpack.c.bf16 %v2718_v0, %v2716_v1  ;;  %v6290_v16 = vpop.eup %3683  ;;  %v1935_v26 = vsub.f32 0.0, %v1039_v36  ;;  %v6293_v21 = vmul.f32 0.70710677, %v6269_v43 }
 0x313   :  { %v2265_v9 = vsub.f32 1.0, %v2201_v63  ;;  %v1629_v34 = vmul.f32 %v5607_v29, %v1565_v48  ;;  %v1103_v11 = vmul.f32 0.3275911, %v1039_v36  ;;  %v2200_v2 = vmul.f32 %v7464_v7, %v1880_v54  ;;  %v7469_v7 = vld [vmem:[#allocation81_spill] sm:$0xff] }
 0x314   :  { %7463 = vst [vmem:[#allocation86_spill] sm:$0xff] %v6293_v21  ;;  %v6299_v33 = vadd.f32 %v5789_v35, %v5720_v62  ;;  %v1500_v59 = vmul.f32 %v5597_v30, %v1436_v32  ;;  %3389 = vmatpush1.bf16.msra.mxu0 %v3388_v27  ;;  %3693 = vrcp.f32 %v1166_v51  ;;  %v1377_v42 = vmul.f32 1.0614054, %v7465_v38  ;;  %v2721_v32 = vld [vmem:[%s7079_s5 + $0x3a8] sm:$0xff] }
 0x315   :  { %v2393_v19 = vsub.f32 0.0, %v2265_v9  ;;  %v1693_v37 = vadd.f32 -0.28449672, %v1629_v34  ;;  %v6304_v55 = vmul.f32 0.5, %v6204_v49  ;;  %3695 = vpow2.f32 %v2096_v58 }
 0x316   :  { %v2264_v31 = vsub.f32 1.0, %v2200_v2  ;;  %v1564_v1 = vadd.f32 1.4214138, %v1500_v59  ;;  %v6306_v0 = vpop.eup %3685  ;;  %v1999_v39 = vmul.f32 %v1935_v26, %v1039_v36  ;;  %v1042_v3 = vand.u32 2147483647, %v6293_v21  ;;  %v7470_v2 = vld [vmem:[#allocation84_spill] sm:$0xff] }
 0x317   :  { %7466 = vst [vmem:[#allocation58_spill] sm:$0xff] %v6304_v55  ;;  %v2457_v35 = vsel %vm2329_vm7, %v2393_v19, %v2265_v9  ;;  %v1757_v51 = vmul.f32 %v5607_v29, %v1693_v37  ;;  %v6312_v63 = vpop.eup %3687  ;;  %v6315_v49 = vmul.f32 0.70710677, %v6299_v33  ;;  %v6325_v36 = vmul.f32 0.5, %v6252_v8 }
 0x318   :  { %v2521_v48 = vadd.f32 1.0, %v2457_v35  ;;  %v2392_v54 = vsub.f32 0.0, %v2264_v31  ;;  %v1628_v58 = vmul.f32 %v5597_v30, %v1564_v1  ;;  %v1167_v27 = vadd.f32 1.0, %v1103_v11  ;;  %v7471_v1 = vld [vmem:[#allocation20_spill] sm:$0xff] }
 0x319   :  { %7467 = vst [vmem:[#allocation71_spill] sm:$0xff] %v6315_v49  ;;  %7468 = vst [vmem:[#allocation92_spill] sm:$0xff] %v6325_v36  ;;  %v1821_v9 = vadd.f32 0.2548296, %v1757_v51  ;;  %v1441_v26 = vadd.f32 -1.4531521, %v1377_v42  ;;  %v6327_v34 = vpop.eup %3689  ;;  %v6335_v35 = vadd.f32 %v7471_v1, %v5604_v20 }
 0x31a   :  { %vm2333_vm9 = vcmp.lt.f32.partialorder %v7469_v7, 0.0  ;;  %v2585_v59 = vmul.f32 %v2521_v48, %v7470_v2  ;;  %v2456_v19 = vsel %vm2328_vm8, %v2392_v54, %v2264_v31  ;;  %v1692_v37 = vadd.f32 -0.28449672, %v1628_v58  ;;  %v6337_v55 = vpop.eup %3691  ;;  %v7472_v54 = vld [vmem:[#allocation79_spill] sm:$0xff] }
 0x31b   :  { %v2098_v8 = vmul.f32 1.442695, %v1999_v39  ;;  %v2520_v11 = vadd.f32 1.0, %v2456_v19  ;;  %v1885_v42 = vmul.f32 %v5607_v29, %v1821_v9  ;;  %v1505_v51 = vmul.f32 %v7465_v38, %v1441_v26  ;;  %v7473_v1 = vld [vmem:[#allocation7_spill] sm:$0xff]  ;;  %v2720_v39 = vld [vmem:[%s7079_s5 + $0x3a0] sm:$0xff] }
 0x31c   :  { %2874 = vmatprep.mubr.f32.mxu0 %v2585_v59  ;;  %v1106_v36 = vmul.f32 0.3275911, %v1042_v3  ;;  %v1043_v48 = vand.u32 2147483647, %v6315_v49  ;;  %v1756_v22 = vmul.f32 %v5597_v30, %v1692_v37  ;;  %v3390_v31 = vpack.c.bf16 %v2723_v25, %v2721_v32  ;;  %v2722_v29 = vld [vmem:[%s7079_s5 + $0x3b0] sm:$0xff]  ;;  %v7476_v59 = vld [vmem:[#allocation78_spill] sm:$0xff] }
 0x31d   :  { %v2584_v58 = vmul.f32 %v2520_v11, %v7472_v54  ;;  %v1938_v2 = vsub.f32 0.0, %v1042_v3  ;;  %v2205_v6 = vmul.f32 %v7473_v1, %v1885_v42  ;;  %v1569_v21 = vadd.f32 1.4214138, %v1505_v51  ;;  %v7477_v11 = vld [vmem:[#allocation39_spill] sm:$0xff] }
 0x31e   :  { %3697 = vrcp.f32 %v1167_v27  ;;  %v6352_v9 = vmul.f32 0.5, %v6269_v43  ;;  %v1820_v26 = vadd.f32 0.2548296, %v1756_v22  ;;  %v6355_v32 = vmul.f32 0.70710677, %v6335_v35  ;;  %3391 = vmatprep.subr.bf16.mxu0 %v3390_v31  ;;  %v6357_v25 = vpop.eup %3693 }
 0x31f   :  { %vm2332_vm10 = vcmp.lt.f32.partialorder %v7476_v59, 0.0  ;;  %3699 = vpow2.f32 %v2098_v8  ;;  %2875 = vmatmul.mubr.f32.gmra.mrb[22].mxu0 %v2584_v58  ;;  %v2269_v19 = vsub.f32 1.0, %v2205_v6  ;;  %v1633_v37 = vmul.f32 %v7465_v38, %v1569_v21  ;;  %v6362_v27 = vpop.eup %3695  ;;  %v7480_v8 = vld [vmem:[#allocation8_spill] sm:$0xff]  ;;  %v7488_v59 = vld [vmem:[#allocation85_spill] sm:$0xff] }
 0x320   :  { %7474 = vst [vmem:[#allocation70_spill] sm:$0xff] %v6352_v9  ;;  %7475 = vst [vmem:[#allocation55_spill] sm:$0xff] %v6355_v32  ;;  %v1376_v42 = vmul.f32 1.0614054, %v7477_v11  ;;  %v1170_v43 = vadd.f32 1.0, %v1106_v36  ;;  %v1939_v51 = vsub.f32 0.0, %v1043_v48  ;;  %v1884_v22 = vmul.f32 %v5597_v30, %v1820_v26 }
 0x321   :  { %7478 = vst [vmem:[#allocation90_spill] sm:$0xff] %v6362_v27  ;;  %v3392_v54 = vpack.c.bf16 %v2722_v29, %v2720_v39  ;;  %v2002_v1 = vmul.f32 %v1938_v2, %v1042_v3  ;;  %v2397_v31 = vsub.f32 0.0, %v2269_v19  ;;  %v1697_v9 = vadd.f32 -0.28449672, %v1633_v37  ;;  %v2725_v30 = vld [vmem:[%s7079_s5 + $0x3c8] sm:$0xff]  ;;  %v2727_v3 = vld [vmem:[%s7079_s5 + $0x3d8] sm:$0xff] }
 0x322   :  { %v1440_v49 = vadd.f32 -1.4531521, %v1376_v42  ;;  %v6366_v40 = vmul.f32 0.5, %v6299_v33  ;;  %v2204_v6 = vmul.f32 %v7480_v8, %v1884_v22  ;;  %v1046_v21 = vand.u32 2147483647, %v6355_v32  ;;  %v7481_v39 = vld [vmem:[#allocation34_spill] sm:$0xff] }
 0x323   :  { %v6372_v58 = vadd.f32 %v5850_v28, %v5720_v62  ;;  %3393 = vmatpush1.bf16.msra.mxu0 %v3392_v54  ;;  %v2461_v33 = vsel %vm2333_vm9, %v2397_v31, %v2269_v19  ;;  %v1761_v36 = vmul.f32 %v7465_v38, %v1697_v9  ;;  %v1381_v29 = vmul.f32 1.0614054, %v7481_v39  ;;  %v7482_v32 = vld [vmem:[#allocation93_spill] sm:$0xff] }
 0x324   :  { %7479 = vst [vmem:[#allocation73_spill] sm:$0xff] %v6366_v40  ;;  %v1504_v2 = vmul.f32 %v7477_v11, %v1440_v49  ;;  %v2525_v28 = vadd.f32 1.0, %v2461_v33  ;;  %v1107_v26 = vmul.f32 0.3275911, %v1043_v48  ;;  %v2003_v37 = vmul.f32 %v1939_v51, %v1043_v48  ;;  %v7483_v40 = vld [vmem:[#allocation89_spill] sm:$0xff] }
 0x325   :  { %v2268_v42 = vsub.f32 1.0, %v2204_v6  ;;  %3701 = vrcp.f32 %v1170_v43  ;;  %v1825_v22 = vadd.f32 0.2548296, %v1761_v36  ;;  %v3394_v8 = vpack.c.bf16 %v2727_v3, %v2725_v30 }
 0x326   :  { %v1568_v54 = vadd.f32 1.4214138, %v1504_v2  ;;  %vm2337_vm11 = vcmp.lt.f32.partialorder %v7482_v32, 0.0  ;;  %v2589_v27 = vmul.f32 %v2525_v28, %v7483_v40  ;;  %v1942_v19 = vsub.f32 0.0, %v1046_v21  ;;  %v7486_v2 = vld [vmem:[#allocation16_spill] sm:$0xff]  ;;  %v2729_v32 = vld [vmem:[%s7079_s5 + $0x3e8] sm:$0xff] }
 0x327   :  { %v2396_v7 = vsub.f32 0.0, %v2268_v42  ;;  %v6388_v9 = vmul.f32 0.70710677, %v6372_v58  ;;  %v2104_v49 = vmul.f32 1.442695, %v2002_v1  ;;  %v1889_v31 = vmul.f32 %v7465_v38, %v1825_v22  ;;  %3395 = vmatprep.subr.bf16.mxu0 %v3394_v8  ;;  %v7487_v38 = vld [vmem:[#allocation41_spill] sm:$0xff] }
 0x328   :  { %v1632_v33 = vmul.f32 %v7477_v11, %v1568_v54  ;;  %v1445_v48 = vadd.f32 -1.4531521, %v1381_v29  ;;  %v6392_v43 = vpop.eup %3697  ;;  %2880 = vmatprep.mubr.f32.mxu0 %v2589_v27  ;;  %v1171_v51 = vadd.f32 1.0, %v1107_v26  ;;  %v2106_v6 = vmul.f32 1.442695, %v2003_v37 }
 0x329   :  { %7484 = vst [vmem:[#allocation68_spill] sm:$0xff] %v6388_v9  ;;  %v2460_v40 = vsel %vm2332_vm10, %v2396_v7, %v2268_v42  ;;  %v1110_v30 = vmul.f32 0.3275911, %v1046_v21  ;;  %v6396_v3 = vpop.eup %3699  ;;  %v2209_v1 = vmul.f32 %v7486_v2, %v1889_v31  ;;  %v1380_v22 = vmul.f32 1.0614054, %v7487_v38 }
 0x32a   :  { %7485 = vst [vmem:[#allocation72_spill] sm:$0xff] %v6396_v3  ;;  %v2524_v36 = vadd.f32 1.0, %v2460_v40  ;;  %v1696_v28 = vadd.f32 -0.28449672, %v1632_v33  ;;  %v2006_v54 = vmul.f32 %v1942_v19, %v1046_v21  ;;  %v1047_v29 = vand.u32 2147483647, %v6388_v9 }
 0x32b   :  { %v848_v27 = vadd.f32 %v5889_v52, %v5604_v20  ;;  %v1509_v26 = vmul.f32 %v7481_v39, %v1445_v48  ;;  %3703 = vpow2.f32 %v2104_v49  ;;  %v2273_v42 = vsub.f32 1.0, %v2209_v1  ;;  %v2724_v52 = vld [vmem:[%s7079_s5 + $0x3c0] sm:$0xff]  ;;  %v7490_v49 = vld [vmem:[#allocation87_spill] sm:$0xff] }
 0x32c   :  { %v2588_v37 = vmul.f32 %v2524_v36, %v7488_v59  ;;  %v1760_v8 = vmul.f32 %v7477_v11, %v1696_v28  ;;  %3705 = vrcp.f32 %v1171_v51  ;;  %v6407_v7 = vmul.f32 0.5, %v6335_v35  ;;  %v2726_v51 = vld [vmem:[%s7079_s5 + $0x3d0] sm:$0xff] }
 0x32d   :  { %v1174_v31 = vadd.f32 1.0, %v1110_v30  ;;  %v1573_v33 = vadd.f32 1.4214138, %v1509_v26  ;;  %3707 = vpow2.f32 %v2106_v6  ;;  %v2401_v21 = vsub.f32 0.0, %v2273_v42 }
 0x32e   :  { %7489 = vst [vmem:[#allocation64_spill] sm:$0xff] %v6407_v7  ;;  %2881 = vmatmul.mubr.f32.gmra.mrb[24].mxu0 %v2588_v37  ;;  %v1824_v19 = vadd.f32 0.2548296, %v1760_v8  ;;  %v1444_v40 = vadd.f32 -1.4531521, %v1380_v22  ;;  %vm2336_vm12 = vcmp.lt.f32.partialorder %v7490_v49, 0.0  ;;  %v850_v28 = vadd.f32 %v5914_v17, %v5720_v62 }
 0x32f   :  { %v2112_v48 = vmul.f32 1.442695, %v2006_v54  ;;  %v1943_v36 = vsub.f32 0.0, %v1047_v29  ;;  %v6413_v2 = vmul.f32 0.70710677, %v848_v27  ;;  %v1637_v35 = vmul.f32 %v7481_v39, %v1573_v33  ;;  %v6419_v6 = vpop.eup %3701  ;;  %v7493_v8 = vld [vmem:[#allocation48_spill] sm:$0xff] }
 0x330   :  { %v2465_v30 = vsel %vm2337_vm11, %v2401_v21, %v2273_v42  ;;  %v1888_v1 = vmul.f32 %v7477_v11, %v1824_v19  ;;  %v1508_v22 = vmul.f32 %v7487_v38, %v1444_v40  ;;  %3709 = vrcp.f32 %v1174_v31  ;;  %v2731_v17 = vld [vmem:[%s7079_s5 + $0x3f8] sm:$0xff]  ;;  %v7494_v11 = vld [vmem:[#allocation95_spill] sm:$0xff] }
 0x331   :  { %7491 = vst [vmem:[#allocation94_spill] sm:$0xff] %v6413_v2  ;;  %v2529_v54 = vadd.f32 1.0, %v2465_v30  ;;  %v1111_v26 = vmul.f32 0.3275911, %v1047_v29  ;;  %v1701_v59 = vadd.f32 -0.28449672, %v1637_v35  ;;  %v3396_v9 = vpack.c.bf16 %v2726_v51, %v2724_v52 }
 0x332   :  { %v6428_v37 = vmul.f32 0.5, %v6372_v58  ;;  %v2208_v33 = vmul.f32 %v7493_v8, %v1888_v1  ;;  %v1572_v7 = vadd.f32 1.4214138, %v1508_v22  ;;  %v2007_v31 = vmul.f32 %v1943_v36, %v1047_v29  ;;  %v7498_v29 = vld [vmem:[#allocation18_spill] sm:$0xff] }
 0x333   :  { %v2593_v42 = vmul.f32 %v2529_v54, %v7494_v11  ;;  %v1050_v21 = vand.u32 2147483647, %v6413_v2  ;;  %v1765_v58 = vmul.f32 %v7481_v39, %v1701_v59  ;;  %3711 = vpow2.f32 %v2112_v48  ;;  %3397 = vmatpush1.bf16.msra.mxu0 %v3396_v9  ;;  %v7499_v59 = vld [vmem:[#allocation26_spill] sm:$0xff]  ;;  %v2728_v2 = vld [vmem:[%s7079_s5 + $0x3e0] sm:$0xff] }
 0x334   :  { %7492 = vst [vmem:[#allocation9_spill] sm:$0xff] %v6428_v37  ;;  %v2272_v19 = vsub.f32 1.0, %v2208_v33  ;;  %v6440_v40 = vmul.f32 0.70710677, %v850_v28  ;;  %v1636_v52 = vmul.f32 %v7487_v38, %v1572_v7  ;;  %v1175_v35 = vadd.f32 1.0, %v1111_v26  ;;  %v7502_v37 = vld [vmem:[#allocation15_spill] sm:$0xff] }
 0x335   :  { %2886 = vmatprep.mubr.f32.mxu0 %v2593_v42  ;;  %v6443_v51 = vmul.f32 0.5, %v848_v27  ;;  %v1829_v30 = vadd.f32 0.2548296, %v1765_v58  ;;  %v3398_v1 = vpack.c.bf16 %v2731_v17, %v2729_v32  ;;  %v6445_v22 = vpop.eup %3703  ;;  %vm2341_vm13 = vcmp.lt.f32.partialorder %v7498_v29, 0.0 }
 0x336   :  { %7495 = vst [vmem:[#allocation81_spill] sm:$0xff] %v6440_v40  ;;  %7497 = vst [vmem:[#allocation20_spill] sm:$0xff] %v6445_v22  ;;  %v2400_v36 = vsub.f32 0.0, %v2272_v19  ;;  %v1700_v54 = vadd.f32 -0.28449672, %v1636_v52  ;;  %v6450_v48 = vadd.f32 %v5941_v57, %v5604_v20  ;;  %v6453_v7 = vpop.eup %3705  ;;  %v1946_v27 = vsub.f32 0.0, %v1050_v21 }
 0x337   :  { %7496 = vst [vmem:[#allocation84_spill] sm:$0xff] %v6443_v51  ;;  %v1385_v8 = vmul.f32 1.0614054, %v7499_v59  ;;  %v2114_v9 = vmul.f32 1.442695, %v2007_v31  ;;  %v1893_v33 = vmul.f32 %v7481_v39, %v1829_v30  ;;  %3399 = vmatprep.subr.bf16.mxu0 %v3398_v1  ;;  %v6456_v32 = vpop.eup %3707  ;;  %v7501_v52 = vld [vmem:[#allocation22_spill] sm:$0xff]  ;;  %v6465_v31 = vadd.f32 %v5989_v10, %v5720_v62 }
 0x338   :  { %v1114_v26 = vmul.f32 0.3275911, %v1050_v21  ;;  %7500 = vst [vmem:[#allocation79_spill] sm:$0xff] %v6456_v32  ;;  %v2464_v17 = vsel %vm2336_vm12, %v2400_v36, %v2272_v19  ;;  %v1051_v11 = vand.u32 2147483647, %v6440_v40  ;;  %v1764_v57 = vmul.f32 %v7487_v38, %v1700_v54  ;;  %v7505_v36 = vld [vmem:[#allocation96_spill] sm:$0xff] }
 0x339   :  { %v1449_v42 = vadd.f32 -1.4531521, %v1385_v8  ;;  %v2528_v58 = vadd.f32 1.0, %v2464_v17  ;;  %v2213_v51 = vmul.f32 %v7501_v52, %v1893_v33  ;;  %v1384_v39 = vmul.f32 1.0614054, %v7502_v37  ;;  %v7506_v54 = vld [vmem:[#allocation91_spill] sm:$0xff] }
 0x33a   :  { %3713 = vrcp.f32 %v1175_v35  ;;  %v1828_v30 = vadd.f32 0.2548296, %v1764_v57  ;;  %v6469_v1 = vmul.f32 0.70710677, %v6450_v48  ;;  %v6472_v19 = vpop.eup %3709  ;;  %vm2340_vm14 = vcmp.lt.f32.partialorder %v7505_v36, 0.0  ;;  %v7513_v36 = vld [vmem:[#allocation10_spill] sm:$0xff] }
 0x33b   :  { %v1513_v49 = vmul.f32 %v7499_v59, %v1449_v42  ;;  %7504 = vst [vmem:[#allocation78_spill] sm:$0xff] %v6472_v19  ;;  %3715 = vpow2.f32 %v2114_v9  ;;  %v2592_v8 = vmul.f32 %v2528_v58, %v7506_v54  ;;  %v1178_v33 = vadd.f32 1.0, %v1114_v26  ;;  %v2730_v42 = vld [vmem:[%s7079_s5 + $0x3f0] sm:$0xff] }
 0x33c   :  { %7503 = vst [vmem:[#allocation7_spill] sm:$0xff] %v6469_v1  ;;  %v2277_v17 = vsub.f32 1.0, %v2213_v51  ;;  %v2010_v10 = vmul.f32 %v1946_v27, %v1050_v21  ;;  %v6476_v52 = vmul.f32 0.5, %v850_v28  ;;  %v1892_v35 = vmul.f32 %v7487_v38, %v1828_v30  ;;  %v7509_v38 = vld [vmem:[#allocation11_spill] sm:$0xff] }
 0x33d   :  { %v1577_v57 = vadd.f32 1.4214138, %v1513_v49  ;;  %2887 = vmatmul.mubr.f32.gmra.mrb[26].mxu0 %v2592_v8  ;;  %v1947_v40 = vsub.f32 0.0, %v1051_v11  ;;  %v6486_v26 = vmul.f32 0.70710677, %v6465_v31  ;;  %v6488_v28 = vpop.eup %3711  ;;  %3717 = vrcp.f32 %v1178_v33 }
 0x33e   :  { %7507 = vst [vmem:[#allocation39_spill] sm:$0xff] %v6476_v52  ;;  %v2405_v9 = vsub.f32 0.0, %v2277_v17  ;;  %v1448_v21 = vadd.f32 -1.4531521, %v1384_v39  ;;  %7508 = vst [vmem:[#allocation8_spill] sm:$0xff] %v6488_v28  ;;  %v2212_v27 = vmul.f32 %v7509_v38, %v1892_v35  ;;  %v3400_v8 = vpack.c.bf16 %v2730_v42, %v2728_v2  ;;  %v7510_v38 = vld [vmem:[#allocation13_spill] sm:$0xff] }
 0x33f   :  { %v1115_v51 = vmul.f32 0.3275911, %v1051_v11  ;;  %v1054_v58 = vand.u32 2147483647, %v6469_v1  ;;  %v1641_v30 = vmul.f32 %v7499_v59, %v1577_v57  ;;  %v2120_v52 = vmul.f32 1.442695, %v2010_v10 }
 0x340   :  { %v2469_v49 = vsel %vm2341_vm13, %v2405_v9, %v2277_v17  ;;  %v1512_v54 = vmul.f32 %v7502_v37, %v1448_v21  ;;  %v2276_v32 = vsub.f32 1.0, %v2212_v27  ;;  %v2011_v19 = vmul.f32 %v1947_v40, %v1051_v11  ;;  %3401 = vmatpush1.bf16.msra.mxu0 %v3400_v8  ;;  %v7512_v27 = vld [vmem:[#allocation14_spill] sm:$0xff] }
 0x341   :  { %v2533_v22 = vadd.f32 1.0, %v2469_v49  ;;  %v1705_v39 = vadd.f32 -0.28449672, %v1641_v30  ;;  %v1055_v28 = vand.u32 2147483647, %v6486_v26  ;;  %v1950_v1 = vsub.f32 0.0, %v1054_v58 }
 0x342   :  { %v1576_v3 = vadd.f32 1.4214138, %v1512_v54  ;;  %v1327_v35 = vmul.f32 1.0614054, %v5893_v13  ;;  %v2404_v33 = vsub.f32 0.0, %v2276_v32  ;;  %v1179_v17 = vadd.f32 1.0, %v1115_v51 }
 0x343   :  { %v2597_v57 = vmul.f32 %v2533_v22, %v7510_v38  ;;  %v1769_v29 = vmul.f32 %v7499_v59, %v1705_v39  ;;  %v1118_v9 = vmul.f32 0.3275911, %v1054_v58  ;;  %v6503_v10 = vadd.f32 %v6021_v56, %v5604_v20 }
 0x344   :  { %v1640_v2 = vmul.f32 %v7502_v37, %v1576_v3  ;;  %v6505_v40 = vpop.eup %3713  ;;  %3719 = vpow2.f32 %v2120_v52  ;;  %v2468_v11 = vsel %vm2340_vm14, %v2404_v33, %v2276_v32  ;;  %v1391_v42 = vadd.f32 -1.4531521, %v1327_v35 }
 0x345   :  { %7511 = vst [vmem:[#allocation34_spill] sm:$0xff] %v6503_v10  ;;  %2892 = vmatprep.mubr.f32.mxu0 %v2597_v57  ;;  %v1833_v22 = vadd.f32 0.2548296, %v1769_v29  ;;  %v6509_v21 = vpop.eup %3715  ;;  %vm2345_vm15 = vcmp.lt.f32.partialorder %v7512_v27, 0.0  ;;  %v2532_v51 = vadd.f32 1.0, %v2468_v11  ;;  %v1951_v30 = vsub.f32 0.0, %v1055_v28 }
 0x346   :  { %v1704_v3 = vadd.f32 -0.28449672, %v1640_v2  ;;  %v862_v56 = vadd.f32 %v6053_v46, %v5720_v62  ;;  %v2122_v49 = vmul.f32 1.442695, %v2011_v19  ;;  %v2014_v54 = vmul.f32 %v1950_v1, %v1054_v58  ;;  %v7514_v57 = vld [vmem:[#allocation21_spill] sm:$0xff]  ;;  %v7523_v27 = vld [vmem:[#allocation44_spill] sm:$0xff] }
 0x347   :  { %v1897_v52 = vmul.f32 %v7499_v59, %v1833_v22  ;;  %v1455_v8 = vmul.f32 %v5893_v13, %v1391_v42  ;;  %v2596_v32 = vmul.f32 %v2532_v51, %v7513_v36  ;;  %v1182_v39 = vadd.f32 1.0, %v1118_v9  ;;  %v6522_v46 = vpop.eup %3717  ;;  %v7516_v9 = vld [vmem:[#allocation12_spill] sm:$0xff] }
 0x348   :  { %v1768_v35 = vmul.f32 %v7502_v37, %v1704_v3  ;;  %v6519_v38 = vmul.f32 0.70710677, %v6503_v10  ;;  %3721 = vrcp.f32 %v1179_v17  ;;  %v1119_v29 = vmul.f32 0.3275911, %v1055_v28 }
 0x349   :  { %v2217_v33 = vmul.f32 %v7514_v57, %v1897_v52  ;;  %v1519_v2 = vadd.f32 1.4214138, %v1455_v8  ;;  %2893 = vmatmul.mubr.f32.gmra.mrb[28].mxu0 %v2596_v32  ;;  %v2015_v1 = vmul.f32 %v1951_v30, %v1055_v28  ;;  %v6524_v19 = vmul.f32 0.70710677, %v862_v56 }
 0x34a   :  { %v1832_v59 = vadd.f32 0.2548296, %v1768_v35  ;;  %v1331_v58 = vmul.f32 1.0614054, %v5955_v23  ;;  %vm2344_vm0 = vcmp.lt.f32.partialorder %v7516_v9, 0.0  ;;  %3723 = vpow2.f32 %v2122_v49 }
 0x34b   :  { %7515 = vst [vmem:[#allocation93_spill] sm:$0xff] %v6524_v19  ;;  %v2128_v11 = vmul.f32 1.442695, %v2014_v54  ;;  %v2281_v22 = vsub.f32 1.0, %v2217_v33  ;;  %v1583_v17 = vmul.f32 %v5893_v13, %v1519_v2  ;;  %v6530_v42 = vmul.f32 0.5, %v6450_v48  ;;  %v7519_v54 = vld [vmem:[#allocation52_spill] sm:$0xff] }
 0x34c   :  { %3725 = vrcp.f32 %v1182_v39  ;;  %v1896_v51 = vmul.f32 %v7502_v37, %v1832_v59  ;;  %v1058_v28 = vand.u32 2147483647, %v6519_v38  ;;  %v1183_v3 = vadd.f32 1.0, %v1119_v29 }
 0x34d   :  { %7517 = vst [vmem:[#allocation89_spill] sm:$0xff] %v6530_v42  ;;  %v2409_v30 = vsub.f32 0.0, %v2281_v22  ;;  %v1647_v52 = vadd.f32 -0.28449672, %v1583_v17  ;;  %v6536_v8 = vadd.f32 %v6056_v14, %v5604_v20  ;;  %v2130_v49 = vmul.f32 1.442695, %v2015_v1 }
 0x34e   :  { %v2216_v36 = vmul.f32 %v7519_v54, %v1896_v51  ;;  %v1059_v32 = vand.u32 2147483647, %v6524_v19  ;;  %v1395_v35 = vadd.f32 -1.4531521, %v1331_v58  ;;  %v6540_v48 = vpop.eup %3719  ;;  %3727 = vpow2.f32 %v2128_v11  ;;  %v7522_v11 = vld [vmem:[#allocation35_spill] sm:$0xff] }
 0x34f   :  { %7518 = vst [vmem:[#allocation16_spill] sm:$0xff] %v6536_v8  ;;  %v2473_v37 = vsel %vm2345_vm15, %v2409_v30, %v2281_v22  ;;  %v6545_v39 = vmul.f32 0.5, %v6465_v31  ;;  %v1711_v57 = vmul.f32 %v5893_v13, %v1647_v52  ;;  %v1122_v29 = vmul.f32 0.3275911, %v1058_v28 }
 0x350   :  { %v2537_v33 = vadd.f32 1.0, %v2473_v37  ;;  %v2280_v14 = vsub.f32 1.0, %v2216_v36  ;;  %v1954_v2 = vsub.f32 0.0, %v1058_v28  ;;  %3729 = vrcp.f32 %v1183_v3 }
 0x351   :  { %7520 = vst [vmem:[#allocation41_spill] sm:$0xff] %v6545_v39  ;;  %v1775_v1 = vadd.f32 0.2548296, %v1711_v57  ;;  %v6549_v59 = vmul.f32 0.70710677, %v6536_v8  ;;  %v1459_v58 = vmul.f32 %v5955_v23, %v1395_v35  ;;  %vm2287_vm1 = vcmp.lt.f32.partialorder %v7522_v11, 0.0 }
 0x352   :  { %v2601_v22 = vmul.f32 %v2537_v33, %v7523_v27  ;;  %3731 = vpow2.f32 %v2130_v49  ;;  %v2408_v31 = vsub.f32 0.0, %v2280_v14  ;;  %v1955_v17 = vsub.f32 0.0, %v1059_v32  ;;  %v6554_v51 = vpop.eup %3721 }
 0x353   :  { %7521 = vst [vmem:[#allocation85_spill] sm:$0xff] %v6549_v59  ;;  %v1839_v30 = vmul.f32 %v5893_v13, %v1775_v1  ;;  %v6557_v52 = vmul.f32 0.5, %v862_v56  ;;  %v1523_v3 = vadd.f32 1.4214138, %v1459_v58  ;;  %v6561_v54 = vadd.f32 %v6094_v61, %v5720_v62 }
 0x354   :  { %2898 = vmatprep.mubr.f32.mxu0 %v2601_v22  ;;  %v2472_v36 = vsel %vm2344_vm0, %v2408_v31, %v2280_v14  ;;  %v1186_v35 = vadd.f32 1.0, %v1122_v29  ;;  %v2018_v37 = vmul.f32 %v1954_v2, %v1058_v28  ;;  %v1330_v49 = vmul.f32 1.0614054, %v5935_v4  ;;  %v6566_v57 = vpop.eup %3723  ;;  %v7527_v28 = vld [vmem:[#allocation37_spill] sm:$0xff] }
 0x355   :  { %7524 = vst [vmem:[#allocation87_spill] sm:$0xff] %v6557_v52  ;;  %7525 = vst [vmem:[#allocation48_spill] sm:$0xff] %v6561_v54  ;;  %v2536_v33 = vadd.f32 1.0, %v2472_v36  ;;  %v2159_v13 = vmul.f32 %v5927_v18, %v1839_v30  ;;  %v1062_v56 = vand.u32 2147483647, %v6549_v59  ;;  %v1587_v1 = vmul.f32 %v5955_v23, %v1523_v3  ;;  %v7530_v59 = vld [vmem:[#allocation49_spill] sm:$0xff] }
 0x356   :  { %v6571_v58 = vpop.eup %3725  ;;  %v1123_v61 = vmul.f32 0.3275911, %v1059_v32  ;;  %v2019_v27 = vmul.f32 %v1955_v17, %v1059_v32  ;;  %v6574_v9 = vmul.f32 0.70710677, %v6561_v54  ;;  %v1394_v14 = vadd.f32 -1.4531521, %v1330_v49 }
 0x357   :  { %v2600_v29 = vmul.f32 %v2536_v33, %v7527_v28  ;;  %v2223_v2 = vsub.f32 1.0, %v2159_v13  ;;  %v1651_v22 = vadd.f32 -0.28449672, %v1587_v1  ;;  %v6579_v31 = vadd.f32 %v6130_v50, %v5604_v20 }
 0x358   :  { %7526 = vst [vmem:[#allocation95_spill] sm:$0xff] %v6574_v9  ;;  %3733 = vrcp.f32 %v1186_v35  ;;  %v2136_v18 = vmul.f32 1.442695, %v2018_v37  ;;  %v1063_v30 = vand.u32 2147483647, %v6574_v9  ;;  %v1458_v3 = vmul.f32 %v5935_v4, %v1394_v14  ;;  %v6583_v36 = vpop.eup %3727 }
 0x359   :  { %7528 = vst [vmem:[#allocation18_spill] sm:$0xff] %v6579_v31  ;;  %2899 = vmatmul.mubr.f32.gmra.mrb[30].mxu0 %v2600_v29  ;;  %v2351_v32 = vsub.f32 0.0, %v2223_v2  ;;  %v1958_v17 = vsub.f32 0.0, %v1062_v56  ;;  %v1715_v49 = vmul.f32 %v5955_v23, %v1651_v22  ;;  %v6587_v33 = vmul.f32 0.70710677, %v6579_v31 }
 0x35a   :  { %v1187_v13 = vadd.f32 1.0, %v1123_v61  ;;  %v1126_v1 = vmul.f32 0.3275911, %v1062_v56  ;;  %v1959_v20 = vsub.f32 0.0, %v1063_v30  ;;  %v1522_v50 = vadd.f32 1.4214138, %v1458_v3  ;;  %v6589_v35 = vpop.eup %3729 }
 0x35b   :  { %7529 = vst [vmem:[#allocation26_spill] sm:$0xff] %v6587_v33  ;;  %v2415_v37 = vsel %vm2287_vm1, %v2351_v32, %v2223_v2  ;;  %v2138_v14 = vmul.f32 1.442695, %v2019_v27  ;;  %v1779_v28 = vadd.f32 0.2548296, %v1715_v49  ;;  %vm2291_vm2 = vcmp.lt.f32.partialorder %v7530_v59, 0.0 }
 0x35c   :  { %v1127_v8 = vmul.f32 0.3275911, %v1063_v30  ;;  %v6593_v29 = vpop.eup %3731  ;;  %v2479_v22 = vadd.f32 1.0, %v2415_v37  ;;  %v1586_v31 = vmul.f32 %v5935_v4, %v1522_v50  ;;  %v1066_v61 = vand.u32 2147483647, %v6587_v33  ;;  %v7532_v2 = vld [vmem:[#allocation47_spill] sm:$0xff] }
 0x35d   :  { %v6600_v3 = vadd.f32 %v6181_v53, %v5720_v62  ;;  %3735 = vpow2.f32 %v2136_v18  ;;  %v2022_v54 = vmul.f32 %v1958_v17, %v1062_v56  ;;  %v1843_v11 = vmul.f32 %v5955_v23, %v1779_v28  ;;  %v7542_v59 = vld [vmem:[#allocation25_spill] sm:$0xff] }
 0x35e   :  { %v1335_v27 = vmul.f32 1.0614054, %v6006_v47  ;;  %v2543_v32 = vmul.f32 %v2479_v22, %v7532_v2  ;;  %v1190_v49 = vadd.f32 1.0, %v1126_v1  ;;  %v2023_v9 = vmul.f32 %v1959_v20, %v1063_v30 }
 0x35f   :  { %7531 = vst [vmem:[#allocation22_spill] sm:$0xff] %v6600_v3  ;;  %v1650_v52 = vadd.f32 -0.28449672, %v1586_v31  ;;  %3737 = vrcp.f32 %v1187_v13  ;;  %v2163_v50 = vmul.f32 %v5961_v44, %v1843_v11  ;;  %v1191_v37 = vadd.f32 1.0, %v1127_v8 }
 0x360   :  { %v1399_v33 = vadd.f32 -1.4531521, %v1335_v27  ;;  %2969 = vmatprep.mubr.f32.mxu0 %v2543_v32  ;;  %3739 = vpow2.f32 %v2138_v14  ;;  %v1130_v53 = vmul.f32 0.3275911, %v1066_v61  ;;  %v6608_v56 = vmul.f32 0.70710677, %v6600_v3 }
 0x361   :  { %v1714_v62 = vmul.f32 %v5935_v4, %v1650_v52  ;;  %2970 = vmatmul.mubr.f32.vlgmr.msra.gmra.mrb[0].mxu0 %v6018_v60  ;;  %v6611_v23 = vmul.f32 1.442695, %v2022_v54  ;;  %v2227_v18 = vsub.f32 1.0, %v2163_v50  ;;  %v1962_v30 = vsub.f32 0.0, %v1066_v61  ;;  %v7535_v52 = vld [vmem:[#allocation17_spill] sm:$0xff]  ;;  %v7536_v14 = vld [vmem:[#allocation23_spill] sm:$0xff] }
 0x362   :  { %7533 = vst [vmem:[#allocation15_spill] sm:$0xff] %v6608_v56  ;;  %v1463_v31 = vmul.f32 %v6006_v47, %v1399_v33  ;;  %v6614_v17 = vpop.eup %3733  ;;  %3741 = vrcp.f32 %v1190_v49  ;;  %v2146_v44 = vmul.f32 1.442695, %v2023_v9  ;;  %v1067_v13 = vand.u32 2147483647, %v6608_v56  ;;  %v7537_v33 = vld [vmem:[#allocation33_spill] sm:$0xff] }
 0x363   :  { %7534 = vst [vmem:[#allocation96_spill] sm:$0xff] %v6611_v23  ;;  %v1778_v8 = vadd.f32 0.2548296, %v1714_v62  ;;  %vm2290_vm3 = vcmp.lt.f32.partialorder %v7535_v52, 0.0  ;;  %v2355_v1 = vsub.f32 0.0, %v2227_v18  ;;  %3743 = vrcp.f32 %v1191_v37  ;;  %v7538_v32 = vld [vmem:[#allocation66_spill] sm:$0xff] }
 0x364   :  { %v1527_v20 = vadd.f32 1.4214138, %v1463_v31  ;;  %v1334_v60 = vmul.f32 1.0614054, %v7536_v14  ;;  %v6620_v28 = vadd.f32 1.0, %v1130_v53  ;;  %v1963_v22 = vsub.f32 0.0, %v1067_v13 }
 0x365   :  { %v1842_v54 = vmul.f32 %v5935_v4, %v1778_v8  ;;  %v1339_v11 = vmul.f32 1.0614054, %v7537_v33  ;;  %v2419_v9 = vsel %vm2291_vm2, %v2355_v1, %v2227_v18  ;;  %v1338_v49 = vmul.f32 1.0614054, %v7538_v32  ;;  %v7539_v37 = vld [vmem:[#allocation19_spill] sm:$0xff] }
 0x366   :  { %v1591_v27 = vmul.f32 %v6006_v47, %v1527_v20  ;;  %v1398_v2 = vadd.f32 -1.4531521, %v1334_v60  ;;  %v2483_v50 = vadd.f32 1.0, %v2419_v9  ;;  %v6628_v31 = vmul.f32 %v1962_v30, %v1066_v61 }
 0x367   :  { %v2162_v62 = vmul.f32 %v7539_v37, %v1842_v54  ;;  %v2027_v3 = vmul.f32 %v1963_v22, %v1067_v13  ;;  %v6630_v4 = vpop.eup %3735  ;;  %v1403_v56 = vadd.f32 -1.4531521, %v1339_v11  ;;  %v1402_v10 = vadd.f32 -1.4531521, %v1338_v49 }
 0x368   :  { %7540 = vst [vmem:[#allocation91_spill] sm:$0xff] %v6628_v31  ;;  %7541 = vst [vmem:[#allocation11_spill] sm:$0xff] %v6630_v4  ;;  %v1655_v53 = vadd.f32 -0.28449672, %v1591_v27  ;;  %v1462_v8 = vmul.f32 %v7536_v14, %v1398_v2  ;;  %v2547_v18 = vmul.f32 %v2483_v50, %v7542_v59  ;;  %v6634_v20 = vmul.f32 0.3275911, %v1067_v13 }
 0x369   :  { %v2226_v1 = vsub.f32 1.0, %v2162_v62  ;;  %v6636_v60 = vmul.f32 1.442695, %v2027_v3  ;;  %v6638_v9 = vpop.eup %3737  ;;  %v1467_v54 = vmul.f32 %v7537_v33, %v1403_v56  ;;  %v1466_v22 = vmul.f32 %v7538_v32, %v1402_v10  ;;  %v7545_v2 = vld [vmem:[#allocation40_spill] sm:$0xff] }
 0x36a   :  { %v1719_v61 = vmul.f32 %v6006_v47, %v1655_v53  ;;  %v1526_v30 = vadd.f32 1.4214138, %v1462_v8  ;;  %v6643_v27 = vpop.eup %3739  ;;  %2975 = vmatprep.mubr.f32.mxu0 %v2547_v18  ;;  %3745 = vpow2.f32 %v2146_v44  ;;  %v1343_v49 = vmul.f32 1.0614054, %v7545_v2  ;;  %v7546_v13 = vld [vmem:[#allocation32_spill] sm:$0xff] }
 0x36b   :  { %7543 = vst [vmem:[#allocation13_spill] sm:$0xff] %v6636_v60  ;;  %7544 = vst [vmem:[#allocation14_spill] sm:$0xff] %v6643_v27  ;;  %v2354_v11 = vsub.f32 0.0, %v2226_v1  ;;  %v1342_v50 = vmul.f32 1.0614054, %v7546_v13  ;;  %v7547_v8 = vld [vmem:[#allocation60_spill] sm:$0xff]  ;;  %3747 = vrcp.f32 %v6620_v28 }
 0x36c   :  { %v1783_v3 = vadd.f32 0.2548296, %v1719_v61  ;;  %v1590_v37 = vmul.f32 %v7536_v14, %v1526_v30  ;;  %v1531_v62 = vadd.f32 1.4214138, %v1467_v54  ;;  %v1530_v59 = vadd.f32 1.4214138, %v1466_v22  ;;  %v6648_v53 = vpop.eup %3741 }
 0x36d   :  { %vm2295_vm4 = vcmp.lt.f32.partialorder %v7547_v8, 0.0  ;;  %v2418_v10 = vsel %vm2290_vm3, %v2354_v11, %v2226_v1  ;;  %v1407_v56 = vadd.f32 -1.4531521, %v1343_v49  ;;  %v1406_v18 = vadd.f32 -1.4531521, %v1342_v50  ;;  %v6654_v60 = vpop.eup %3743  ;;  %v7548_v1 = vld [vmem:[#allocation45_spill] sm:$0xff] }
 0x36e   :  { %v1347_v44 = vmul.f32 1.0614054, %v6232_v41  ;;  %v2482_v31 = vadd.f32 1.0, %v2418_v10  ;;  %v1847_v61 = vmul.f32 %v6006_v47, %v1783_v3  ;;  %v1654_v23 = vadd.f32 -0.28449672, %v1590_v37  ;;  %v7549_v49 = vld [vmem:[#allocation69_spill] sm:$0xff] }
 0x36f   :  { %v1595_v30 = vmul.f32 %v7537_v33, %v1531_v62  ;;  %v1594_v54 = vmul.f32 %v7538_v32, %v1530_v59  ;;  %v1471_v22 = vmul.f32 %v7545_v2, %v1407_v56  ;;  %v1470_v42 = vmul.f32 %v7546_v13, %v1406_v18  ;;  %v7550_v18 = vld [vmem:[#allocation56_spill] sm:$0xff]  ;;  %v7556_v8 = vld [vmem:[#allocation59_spill] sm:$0xff] }
 0x370   :  { %v1411_v52 = vadd.f32 -1.4531521, %v1347_v44  ;;  %v2546_v11 = vmul.f32 %v2482_v31, %v7548_v1  ;;  %v2167_v50 = vmul.f32 %v7549_v49, %v1847_v61  ;;  %v1718_v19 = vmul.f32 %v7536_v14, %v1654_v23 }
 0x371   :  { %v1659_v4 = vadd.f32 -0.28449672, %v1595_v30  ;;  %v1658_v10 = vadd.f32 -0.28449672, %v1594_v54  ;;  %v1535_v27 = vadd.f32 1.4214138, %v1471_v22 }
 0x372   :  { %v1534_v47 = vadd.f32 1.4214138, %v1470_v42  ;;  %v1475_v3 = vmul.f32 %v6232_v41, %v1411_v52  ;;  %2976 = vmatmul.mubr.f32.gmra.mrb[2].mxu0 %v2546_v11  ;;  %v2231_v37 = vsub.f32 1.0, %v2167_v50  ;;  %v1782_v62 = vadd.f32 0.2548296, %v1718_v19  ;;  %v7552_v19 = vld [vmem:[#allocation53_spill] sm:$0xff] }
 0x373   :  { %v1723_v59 = vmul.f32 %v7537_v33, %v1659_v4  ;;  %v1346_v56 = vmul.f32 1.0614054, %v6171_v45  ;;  %vm2294_vm5 = vcmp.lt.f32.partialorder %v7550_v18, 0.0  ;;  %v1722_v31 = vmul.f32 %v7538_v32, %v1658_v10  ;;  %v7553_v50 = vld [vmem:[#allocation57_spill] sm:$0xff]  ;;  %v7554_v10 = vld [vmem:[#allocation36_spill] sm:$0xff] }
 0x374   :  { %v1599_v44 = vmul.f32 %v7545_v2, %v1535_v27  ;;  %v1598_v23 = vmul.f32 %v7546_v13, %v1534_v47  ;;  %v1539_v61 = vadd.f32 1.4214138, %v1475_v3  ;;  %v2359_v30 = vsub.f32 0.0, %v2231_v37  ;;  %v6672_v52 = vpop.eup %3745 }
 0x375   :  { %v1846_v42 = vmul.f32 %v7536_v14, %v1782_v62  ;;  %v1787_v54 = vadd.f32 0.2548296, %v1723_v59  ;;  %v1410_v22 = vadd.f32 -1.4531521, %v1346_v56  ;;  %7551 = vst [vmem:[#allocation10_spill] sm:$0xff] %v6672_v52  ;;  %vm2299_vm6 = vcmp.lt.f32.partialorder %v7552_v19, 0.0 }
 0x376   :  { %v1786_v4 = vadd.f32 0.2548296, %v1722_v31  ;;  %v1663_v1 = vadd.f32 -0.28449672, %v1599_v44  ;;  %v1662_v11 = vadd.f32 -0.28449672, %v1598_v23  ;;  %v1603_v49 = vmul.f32 %v6232_v41, %v1539_v61 }
 0x377   :  { %vm2298_vm7 = vcmp.lt.f32.partialorder %v7553_v50, 0.0  ;;  %v2423_v27 = vsel %vm2295_vm4, %v2359_v30, %v2231_v37  ;;  %v2166_v47 = vmul.f32 %v7554_v10, %v1846_v42  ;;  %v1851_v14 = vmul.f32 %v7537_v33, %v1787_v54  ;;  %v7555_v23 = vld [vmem:[#allocation42_spill] sm:$0xff]  ;;  %v7557_v30 = vld [vmem:[#allocation67_spill] sm:$0xff]  ;;  %v7558_v54 = vld [vmem:[#allocation29_spill] sm:$0xff] }
 0x378   :  { %v1474_v3 = vmul.f32 %v6171_v45, %v1410_v22  ;;  %v2487_v62 = vadd.f32 1.0, %v2423_v27  ;;  %v1850_v59 = vmul.f32 %v7538_v32, %v1786_v4  ;;  %v1727_v56 = vmul.f32 %v7545_v2, %v1663_v1  ;;  %v7559_v1 = vld [vmem:[#allocation28_spill] sm:$0xff] }
 0x379   :  { %v1726_v31 = vmul.f32 %v7546_v13, %v1662_v11  ;;  %v2230_v44 = vsub.f32 1.0, %v2166_v47  ;;  %v2171_v61 = vmul.f32 %v7555_v23, %v1851_v14  ;;  %v1667_v52 = vadd.f32 -0.28449672, %v1603_v49  ;;  %v7561_v23 = vld [vmem:[#allocation82_spill] sm:$0xff]  ;;  %v7566_v19 = vld [vmem:[#allocation24_spill] sm:$0xff] }
 0x37a   :  { %v1538_v39 = vadd.f32 1.4214138, %v1474_v3  ;;  %v2551_v37 = vmul.f32 %v2487_v62, %v7556_v8  ;;  %v2170_v42 = vmul.f32 %v7557_v30, %v1850_v59  ;;  %v1791_v10 = vadd.f32 0.2548296, %v1727_v56  ;;  %v7562_v8 = vld [vmem:[#allocation74_spill] sm:$0xff] }
 0x37b   :  { %v1790_v33 = vadd.f32 0.2548296, %v1726_v31  ;;  %vm2303_vm8 = vcmp.lt.f32.partialorder %v7558_v54, 0.0  ;;  %v2358_v22 = vsub.f32 0.0, %v2230_v44  ;;  %v2235_v27 = vsub.f32 1.0, %v2171_v61  ;;  %v7560_v31 = vld [vmem:[#allocation27_spill] sm:$0xff] }
 0x37c   :  { %v1731_v32 = vmul.f32 %v6232_v41, %v1667_v52  ;;  %v1602_v4 = vmul.f32 %v6171_v45, %v1538_v39  ;;  %vm2302_vm9 = vcmp.lt.f32.partialorder %v7559_v1, 0.0  ;;  %2981 = vmatprep.mubr.f32.mxu0 %v2551_v37  ;;  %v2234_v11 = vsub.f32 1.0, %v2170_v42  ;;  %v7569_v54 = vld [vmem:[#allocation43_spill] sm:$0xff]  ;;  %v7570_v1 = vld [vmem:[#allocation65_spill] sm:$0xff] }
 0x37d   :  { %v1855_v49 = vmul.f32 %v7545_v2, %v1791_v10  ;;  %v1854_v47 = vmul.f32 %v7546_v13, %v1790_v33  ;;  %v1351_v14 = vmul.f32 1.0614054, %v6287_v12  ;;  %v2422_v3 = vsel %vm2294_vm5, %v2358_v22, %v2230_v44  ;;  %v7563_v44 = vld [vmem:[#allocation54_spill] sm:$0xff] }
 0x37e   :  { %v2363_v62 = vsub.f32 0.0, %v2235_v27  ;;  %v1795_v59 = vadd.f32 0.2548296, %v1731_v32  ;;  %v1666_v56 = vadd.f32 -0.28449672, %v1602_v4  ;;  %vm2307_vm10 = vcmp.lt.f32.partialorder %v7560_v31, 0.0 }
 0x37f   :  { %v2486_v52 = vadd.f32 1.0, %v2422_v3  ;;  %v2362_v39 = vsub.f32 0.0, %v2234_v11  ;;  %v2175_v61 = vmul.f32 %v7561_v23, %v1855_v49  ;;  %v2174_v37 = vmul.f32 %v7562_v8, %v1854_v47  ;;  %v7564_v49 = vld [vmem:[#allocation88_spill] sm:$0xff]  ;;  %v7565_v23 = vld [vmem:[#allocation31_spill] sm:$0xff] }
 0x380   :  { %v2427_v2 = vsel %vm2299_vm6, %v2363_v62, %v2235_v27  ;;  %v1859_v13 = vmul.f32 %v6232_v41, %v1795_v59  ;;  %v1730_v30 = vmul.f32 %v6171_v45, %v1666_v56  ;;  %v1415_v18 = vadd.f32 -1.4531521, %v1351_v14  ;;  %v7567_v59 = vld [vmem:[#allocation30_spill] sm:$0xff] }
 0x381   :  { %v2550_v42 = vmul.f32 %v2486_v52, %v7563_v44  ;;  %v2491_v10 = vadd.f32 1.0, %v2427_v2  ;;  %v2426_v33 = vsel %vm2298_vm7, %v2362_v39, %v2234_v11  ;;  %v2239_v22 = vsub.f32 1.0, %v2175_v61 }
 0x382   :  { %v2490_v32 = vadd.f32 1.0, %v2426_v33  ;;  %v2238_v4 = vsub.f32 1.0, %v2174_v37  ;;  %v2179_v3 = vmul.f32 %v7564_v49, %v1859_v13  ;;  %v1794_v47 = vadd.f32 0.2548296, %v1730_v30 }
 0x383   :  { %vm2306_vm11 = vcmp.lt.f32.partialorder %v7565_v23, 0.0  ;;  %2982 = vmatmul.mubr.f32.gmra.mrb[4].mxu0 %v2550_v42  ;;  %v2555_v41 = vmul.f32 %v2491_v10, %v7566_v19  ;;  %v2367_v27 = vsub.f32 0.0, %v2239_v22  ;;  %v1479_v14 = vmul.f32 %v6287_v12, %v1415_v18  ;;  %v7568_v18 = vld [vmem:[#allocation63_spill] sm:$0xff] }
 0x384   :  { %v1350_v62 = vmul.f32 1.0614054, %v6242_v5  ;;  %v2554_v56 = vmul.f32 %v2490_v32, %v7567_v59  ;;  %v2366_v50 = vsub.f32 0.0, %v2238_v4  ;;  %v2243_v11 = vsub.f32 1.0, %v2179_v3 }
 0x385   :  { %v1858_v52 = vmul.f32 %v6171_v45, %v1794_v47  ;;  %2987 = vmatprep.mubr.f32.mxu0 %v2555_v41  ;;  %v2431_v39 = vsel %vm2303_vm8, %v2367_v27, %v2239_v22  ;;  %v1543_v61 = vadd.f32 1.4214138, %v1479_v14  ;;  %v1355_v37 = vmul.f32 1.0614054, %v6327_v34 }
 0x386   :  { %v1414_v8 = vadd.f32 -1.4531521, %v1350_v62  ;;  %v2495_v2 = vadd.f32 1.0, %v2431_v39  ;;  %v2430_v13 = vsel %vm2302_vm9, %v2366_v50, %v2238_v4  ;;  %v2371_v30 = vsub.f32 0.0, %v2243_v11 }
 0x387   :  { %v2178_v44 = vmul.f32 %v7568_v18, %v1858_v52  ;;  %2988 = vmatmul.mubr.f32.gmra.mrb[6].mxu0 %v2554_v56  ;;  %v2494_v42 = vadd.f32 1.0, %v2430_v13  ;;  %v1607_v10 = vmul.f32 %v6287_v12, %v1543_v61  ;;  %v1419_v33 = vadd.f32 -1.4531521, %v1355_v37  ;;  %v7571_v56 = vld [vmem:[#allocation76_spill] sm:$0xff] }
 0x388   :  { %v1478_v45 = vmul.f32 %v6242_v5, %v1414_v8  ;;  %v2559_v22 = vmul.f32 %v2495_v2, %v7569_v54  ;;  %v2435_v32 = vsel %vm2307_vm10, %v2371_v30, %v2243_v11  ;;  %v1354_v3 = vmul.f32 1.0614054, %v6306_v0 }
 0x389   :  { %v2242_v49 = vsub.f32 1.0, %v2178_v44  ;;  %v2558_v4 = vmul.f32 %v2494_v42, %v7570_v1  ;;  %v2499_v47 = vadd.f32 1.0, %v2435_v32  ;;  %v1671_v19 = vadd.f32 -0.28449672, %v1607_v10  ;;  %v7572_v44 = vld [vmem:[#allocation61_spill] sm:$0xff] }
 0x38a   :  { %v1542_v41 = vadd.f32 1.4214138, %v1478_v45  ;;  %2993 = vmatprep.mubr.f32.mxu0 %v2559_v22  ;;  %v1483_v14 = vmul.f32 %v6327_v34, %v1419_v33  ;;  %v1418_v62 = vadd.f32 -1.4531521, %v1354_v3  ;;  %v1359_v59 = vmul.f32 1.0614054, %v6392_v43 }
 0x38b   :  { %v2370_v27 = vsub.f32 0.0, %v2242_v49  ;;  %2994 = vmatmul.mubr.f32.gmra.mrb[8].mxu0 %v2558_v4  ;;  %v2563_v50 = vmul.f32 %v2499_v47, %v7571_v56  ;;  %v1735_v31 = vmul.f32 %v6287_v12, %v1671_v19  ;;  %v1358_v52 = vmul.f32 1.0614054, %v6357_v25  ;;  %v7573_v33 = vld [vmem:[#allocation77_spill] sm:$0xff] }
 0x38c   :  { %v1606_v11 = vmul.f32 %v6242_v5, %v1542_v41  ;;  %v1547_v61 = vadd.f32 1.4214138, %v1483_v14  ;;  %v1482_v8 = vmul.f32 %v6306_v0, %v1418_v62  ;;  %v1423_v37 = vadd.f32 -1.4531521, %v1359_v59  ;;  %v7574_v14 = vld [vmem:[#allocation75_spill] sm:$0xff] }
 0x38d   :  { %v2434_v39 = vsel %vm2306_vm11, %v2370_v27, %v2242_v49  ;;  %v6737_v2 = vadd.f32 1.0, %v6634_v20  ;;  %2999 = vmatprep.mubr.f32.mxu0 %v2563_v50  ;;  %v1799_v30 = vadd.f32 0.2548296, %v1735_v31  ;;  %vm2311_vm12 = vcmp.lt.f32.partialorder %v7572_v44, 0.0  ;;  %v7577_v44 = vld [vmem:[#allocation80_spill] sm:$0xff] }
 0x38e   :  { %v2498_v13 = vadd.f32 1.0, %v2434_v39  ;;  %v1670_v18 = vadd.f32 -0.28449672, %v1606_v11  ;;  %v1611_v42 = vmul.f32 %v6327_v34, %v1547_v61  ;;  %v1546_v10 = vadd.f32 1.4214138, %v1482_v8 }
 0x38f   :  { %v1487_v45 = vmul.f32 %v6392_v43, %v1423_v37  ;;  %v1422_v23 = vadd.f32 -1.4531521, %v1358_v52  ;;  %v1863_v22 = vmul.f32 %v6287_v12, %v1799_v30  ;;  %v1363_v20 = vmul.f32 1.0614054, %v6453_v7  ;;  %v7575_v37 = vld [vmem:[#allocation38_spill] sm:$0xff] }
 0x390   :  { %v2562_v54 = vmul.f32 %v2498_v13, %v7573_v33  ;;  %v1734_v32 = vmul.f32 %v6242_v5, %v1670_v18  ;;  %v1675_v49 = vadd.f32 -0.28449672, %v1611_v42  ;;  %v1610_v3 = vmul.f32 %v6306_v0, %v1546_v10  ;;  %v7576_v33 = vld [vmem:[#allocation50_spill] sm:$0xff] }
 0x391   :  { %v1551_v1 = vadd.f32 1.4214138, %v1487_v45  ;;  %v1486_v4 = vmul.f32 %v6357_v25, %v1422_v23  ;;  %v2183_v47 = vmul.f32 %v6290_v16, %v1863_v22  ;;  %v1427_v41 = vadd.f32 -1.4531521, %v1363_v20 }
 0x392   :  { %3000 = vmatmul.mubr.f32.gmra.mrb[10].mxu0 %v2562_v54  ;;  %v1798_v19 = vadd.f32 0.2548296, %v1734_v32  ;;  %v1362_v27 = vmul.f32 1.0614054, %v6419_v6  ;;  %vm2310_vm13 = vcmp.lt.f32.partialorder %v7574_v14, 0.0  ;;  %v1739_v12 = vmul.f32 %v6327_v34, %v1675_v49 }
 0x393   :  { %v1674_v62 = vadd.f32 -0.28449672, %v1610_v3  ;;  %v1615_v59 = vmul.f32 %v6392_v43, %v1551_v1  ;;  %v1550_v56 = vadd.f32 1.4214138, %v1486_v4  ;;  %v2247_v50 = vsub.f32 1.0, %v2183_v47 }
 0x394   :  { %v1862_v31 = vmul.f32 %v6242_v5, %v1798_v19  ;;  %v1491_v11 = vmul.f32 %v6453_v7, %v1427_v41  ;;  %v1426_v52 = vadd.f32 -1.4531521, %v1362_v27  ;;  %v1803_v39 = vadd.f32 0.2548296, %v1739_v12 }
 0x395   :  { %v1738_v16 = vmul.f32 %v6306_v0, %v1674_v62  ;;  %v1679_v61 = vadd.f32 -0.28449672, %v1615_v59  ;;  %v1614_v8 = vmul.f32 %v6357_v25, %v1550_v56  ;;  %vm2315_vm14 = vcmp.lt.f32.partialorder %v7575_v37, 0.0  ;;  %v7585_v37 = vld [vmem:[#allocation46_spill] sm:$0xff] }
 0x396   :  { %v2375_v13 = vsub.f32 0.0, %v2247_v50  ;;  %v2182_v30 = vmul.f32 %v6256_v15, %v1862_v31  ;;  %v1555_v18 = vadd.f32 1.4214138, %v1491_v11  ;;  %v1490_v42 = vmul.f32 %v6419_v6, %v1426_v52 }
 0x397   :  { %v1867_v10 = vmul.f32 %v6327_v34, %v1803_v39  ;;  %v1802_v5 = vadd.f32 0.2548296, %v1738_v16  ;;  %v1743_v45 = vmul.f32 %v6392_v43, %v1679_v61  ;;  %v1678_v23 = vadd.f32 -0.28449672, %v1614_v8  ;;  %v7579_v39 = vld [vmem:[#allocation72_spill] sm:$0xff]  ;;  %v7580_v8 = vld [vmem:[#allocation71_spill] sm:$0xff] }
 0x398   :  { %vm2314_vm15 = vcmp.lt.f32.partialorder %v7576_v33, 0.0  ;;  %v2439_v54 = vsel %vm2311_vm12, %v2375_v13, %v2247_v50  ;;  %v2246_v22 = vsub.f32 1.0, %v2182_v30  ;;  %v1619_v32 = vmul.f32 %v6453_v7, %v1555_v18  ;;  %v7578_v50 = vld [vmem:[#allocation51_spill] sm:$0xff] }
 0x399   :  { %v1554_v20 = vadd.f32 1.4214138, %v1490_v42  ;;  %v2503_v49 = vadd.f32 1.0, %v2439_v54  ;;  %v2187_v15 = vmul.f32 %v6337_v55, %v1867_v10  ;;  %v1866_v3 = vmul.f32 %v6306_v0, %v1802_v5  ;;  %v7581_v13 = vld [vmem:[#allocation83_spill] sm:$0xff] }
 0x39a   :  { %v1807_v1 = vadd.f32 0.2548296, %v1743_v45  ;;  %vm2319_vm0 = vcmp.lt.f32.partialorder %v6260_v24, 0.0  ;;  %v2374_v34 = vsub.f32 0.0, %v2246_v22  ;;  %v1742_v4 = vmul.f32 %v6357_v25, %v1678_v23  ;;  %v7582_v45 = vld [vmem:[#allocation90_spill] sm:$0xff]  ;;  %v7589_v24 = vld [vmem:[#allocation92_spill] sm:$0xff] }
 0x39b   :  { %v1683_v47 = vadd.f32 -0.28449672, %v1619_v32  ;;  %v1618_v19 = vmul.f32 %v6419_v6, %v1554_v20  ;;  %v2567_v41 = vmul.f32 %v2503_v49, %v7577_v44  ;;  %v2251_v27 = vsub.f32 1.0, %v2187_v15  ;;  %v7583_v49 = vld [vmem:[#allocation78_spill] sm:$0xff] }
 0x39c   :  { %v2186_v12 = vmul.f32 %v6312_v63, %v1866_v3  ;;  %v1871_v62 = vmul.f32 %v6392_v43, %v1807_v1  ;;  %v2438_v55 = vsel %vm2310_vm13, %v2374_v34, %v2246_v22  ;;  %v1806_v0 = vadd.f32 0.2548296, %v1742_v4  ;;  %v7584_v3 = vld [vmem:[#allocation86_spill] sm:$0xff] }
 0x39d   :  { %v1747_v59 = vmul.f32 %v6453_v7, %v1683_v47  ;;  %v1682_v56 = vadd.f32 -0.28449672, %v1618_v19  ;;  %vm2318_vm1 = vcmp.lt.f32.partialorder %v7578_v50, 0.0  ;;  %3005 = vmatprep.mubr.f32.mxu0 %v2567_v41  ;;  %v2502_v31 = vadd.f32 1.0, %v2438_v55  ;;  %v7586_v47 = vld [vmem:[#allocation79_spill] sm:$0xff] }
 0x39e   :  { %v2379_v11 = vsub.f32 0.0, %v2251_v27  ;;  %v2250_v52 = vsub.f32 1.0, %v2186_v12  ;;  %v2191_v16 = vmul.f32 %v7579_v39, %v1871_v62  ;;  %v1870_v61 = vmul.f32 %v6357_v25, %v1806_v0 }
 0x39f   :  { %v1811_v63 = vadd.f32 0.2548296, %v1747_v59  ;;  %v1746_v43 = vmul.f32 %v6419_v6, %v1682_v56  ;;  %v1367_v14 = vmul.f32 1.0614054, %v6505_v40  ;;  %vm2323_vm2 = vcmp.lt.f32.partialorder %v7580_v8, 0.0  ;;  %v7588_v59 = vld [vmem:[#allocation20_spill] sm:$0xff] }
 0x3a0   :  { %v2566_v30 = vmul.f32 %v2502_v31, %v7581_v13  ;;  %v2443_v18 = vsel %vm2315_vm14, %v2379_v11, %v2251_v27  ;;  %v2378_v42 = vsub.f32 0.0, %v2250_v52  ;;  %v2255_v10 = vsub.f32 1.0, %v2191_v16  ;;  %v7587_v27 = vld [vmem:[#allocation62_spill] sm:$0xff] }
 0x3a1   :  { %v2507_v5 = vadd.f32 1.0, %v2443_v18  ;;  %v2190_v23 = vmul.f32 %v7582_v45, %v1870_v61  ;;  %v1875_v54 = vmul.f32 %v6453_v7, %v1811_v63  ;;  %v1810_v25 = vadd.f32 0.2548296, %v1746_v43 }
 0x3a2   :  { %3006 = vmatmul.mubr.f32.gmra.mrb[12].mxu0 %v2566_v30  ;;  %v2442_v22 = vsel %vm2314_vm15, %v2378_v42, %v2250_v52  ;;  %v2383_v32 = vsub.f32 0.0, %v2255_v10  ;;  %v1431_v20 = vadd.f32 -1.4531521, %v1367_v14  ;;  %v1366_v15 = vmul.f32 1.0614054, %v7583_v49 }
 0x3a3   :  { %vm2322_vm3 = vcmp.lt.f32.partialorder %v7584_v3, 0.0  ;;  %v2571_v1 = vmul.f32 %v2507_v5, %v7585_v37  ;;  %v2506_v34 = vadd.f32 1.0, %v2442_v22  ;;  %v2254_v4 = vsub.f32 1.0, %v2190_v23  ;;  %v7590_v5 = vld [vmem:[#allocation58_spill] sm:$0xff] }
 0x3a4   :  { %v2195_v19 = vmul.f32 %v7586_v47, %v1875_v54  ;;  %v2447_v7 = vsel %vm2319_vm0, %v2383_v32, %v2255_v10  ;;  %v1874_v44 = vmul.f32 %v6419_v6, %v1810_v25  ;;  %v1495_v33 = vmul.f32 %v6505_v40, %v1431_v20 }
 0x3a5   :  { %v1430_v41 = vadd.f32 -1.4531521, %v1366_v15  ;;  %3011 = vmatprep.mubr.f32.mxu0 %v2571_v1  ;;  %v2570_v12 = vmul.f32 %v2506_v34, %v7587_v27  ;;  %v2511_v62 = vadd.f32 1.0, %v2447_v7  ;;  %v2382_v55 = vsub.f32 0.0, %v2254_v4  ;;  %v7591_v15 = vld [vmem:[#allocation73_spill] sm:$0xff]  ;;  %v7592_v27 = vld [vmem:[#allocation68_spill] sm:$0xff] }
 0x3a6   :  { %v2259_v0 = vsub.f32 1.0, %v2195_v19  ;;  %v2194_v56 = vmul.f32 %v7588_v59, %v1874_v44  ;;  %v1559_v31 = vadd.f32 1.4214138, %v1495_v33  ;;  %v1371_v52 = vmul.f32 1.0614054, %v6554_v51 }
 0x3a7   :  { %v1494_v11 = vmul.f32 %v7583_v49, %v1430_v41  ;;  %3012 = vmatmul.mubr.f32.gmra.mrb[14].mxu0 %v2570_v12  ;;  %v2575_v39 = vmul.f32 %v2511_v62, %v7589_v24  ;;  %v2446_v6 = vsel %vm2318_vm1, %v2382_v55, %v2254_v4  ;;  %v1370_v61 = vmul.f32 1.0614054, %v6522_v46  ;;  %v7593_v12 = vld [vmem:[#allocation70_spill] sm:$0xff] }
 0x3a8   :  { %v2387_v16 = vsub.f32 0.0, %v2259_v0  ;;  %v2510_v63 = vadd.f32 1.0, %v2446_v6  ;;  %v2258_v43 = vsub.f32 1.0, %v2194_v56  ;;  %v1623_v14 = vmul.f32 %v6505_v40, %v1559_v31  ;;  %v7594_v6 = vld [vmem:[#allocation55_spill] sm:$0xff] }
 0x3a9   :  { %v1558_v13 = vadd.f32 1.4214138, %v1494_v11  ;;  %3017 = vmatprep.mubr.f32.mxu0 %v2575_v39  ;;  %v1435_v18 = vadd.f32 -1.4531521, %v1371_v52  ;;  %v1434_v42 = vadd.f32 -1.4531521, %v1370_v61  ;;  %3749 = vrcp.f32 %v6737_v2 }
 0x3aa   :  { %v2451_v30 = vsel %vm2323_vm2, %v2387_v16, %v2259_v0  ;;  %v1375_v10 = vmul.f32 1.0614054, %v6589_v35  ;;  %v2574_v45 = vmul.f32 %v2510_v63, %v7590_v5  ;;  %v2386_v23 = vsub.f32 0.0, %v2258_v43 }
 0x3ab   :  { %v2515_v50 = vadd.f32 1.0, %v2451_v30  ;;  %v1687_v54 = vadd.f32 -0.28449672, %v1623_v14  ;;  %v1622_v25 = vmul.f32 %v7583_v49, %v1558_v13  ;;  %v1499_v22 = vmul.f32 %v6554_v51, %v1435_v18 }
 0x3ac   :  { %v1498_v32 = vmul.f32 %v6522_v46, %v1434_v42  ;;  %v1439_v20 = vadd.f32 -1.4531521, %v1375_v10  ;;  %3018 = vmatmul.mubr.f32.gmra.mrb[16].mxu0 %v2574_v45  ;;  %v2450_v37 = vsel %vm2322_vm3, %v2386_v23, %v2258_v43  ;;  %v1374_v34 = vmul.f32 1.0614054, %v6571_v58  ;;  %v7595_v45 = vld [vmem:[#allocation8_spill] sm:$0xff] }
 0x3ad   :  { %v2579_v8 = vmul.f32 %v2515_v50, %v7591_v15  ;;  %v1751_v1 = vmul.f32 %v6505_v40, %v1687_v54  ;;  %v2514_v4 = vadd.f32 1.0, %v2450_v37  ;;  %v1686_v47 = vadd.f32 -0.28449672, %v1622_v25  ;;  %v7596_v25 = vld [vmem:[#allocation81_spill] sm:$0xff] }
 0x3ae   :  { %v1563_v19 = vadd.f32 1.4214138, %v1499_v22  ;;  %v1503_v7 = vmul.f32 %v6589_v35, %v1439_v20  ;;  %v1562_v33 = vadd.f32 1.4214138, %v1498_v32  ;;  %v1438_v41 = vadd.f32 -1.4531521, %v1374_v34  ;;  %v6845_v34 = vpop.eup %3747 }
 0x3af   :  { %3023 = vmatprep.mubr.f32.mxu0 %v2579_v8  ;;  %v1815_v44 = vadd.f32 0.2548296, %v1751_v1  ;;  %vm2327_vm4 = vcmp.lt.f32.partialorder %v7592_v27, 0.0  ;;  %v2578_v3 = vmul.f32 %v2514_v4, %v7593_v12  ;;  %v1750_v62 = vmul.f32 %v7583_v49, %v1686_v47  ;;  %v7597_v20 = vld [vmem:[#allocation94_spill] sm:$0xff]  ;;  %v7598_v27 = vld [vmem:[#allocation7_spill] sm:$0xff] }
 0x3b0   :  { %v1627_v55 = vmul.f32 %v6554_v51, %v1563_v19  ;;  %v1567_v0 = vadd.f32 1.4214138, %v1503_v7  ;;  %v1626_v56 = vmul.f32 %v6522_v46, %v1562_v33  ;;  %v1502_v31 = vmul.f32 %v6571_v58, %v1438_v41 }
 0x3b1   :  { %v1879_v59 = vmul.f32 %v6505_v40, %v1815_v44  ;;  %v1379_v28 = vmul.f32 1.0614054, %v6638_v9  ;;  %3024 = vmatmul.mubr.f32.gmra.mrb[18].mxu0 %v2578_v3  ;;  %v1814_v11 = vadd.f32 0.2548296, %v1750_v62  ;;  %v1378_v39 = vmul.f32 1.0614054, %v6614_v17 }
 0x3b2   :  { %v1691_v52 = vadd.f32 -0.28449672, %v1627_v55  ;;  %v1631_v24 = vmul.f32 %v6589_v35, %v1567_v0  ;;  %vm2326_vm5 = vcmp.lt.f32.partialorder %v7594_v6, 0.0  ;;  %v1690_v61 = vadd.f32 -0.28449672, %v1626_v56  ;;  %v7599_v55 = vld [vmem:[#allocation9_spill] sm:$0xff] }
 0x3b3   :  { %v2199_v16 = vmul.f32 %v6509_v21, %v1879_v59  ;;  %v1566_v63 = vadd.f32 1.4214138, %v1502_v31  ;;  %v1443_v40 = vadd.f32 -1.4531521, %v1379_v28  ;;  %v1878_v43 = vmul.f32 %v7583_v49, %v1814_v11 }
 0x3b4   :  { %v1755_v14 = vmul.f32 %v6554_v51, %v1691_v52  ;;  %v1695_v13 = vadd.f32 -0.28449672, %v1631_v24  ;;  %v1442_v30 = vadd.f32 -1.4531521, %v1378_v39  ;;  %v1754_v42 = vmul.f32 %v6522_v46, %v1690_v61  ;;  %v7600_v39 = vld [vmem:[#allocation64_spill] sm:$0xff] }
 0x3b5   :  { %v2263_v18 = vsub.f32 1.0, %v2199_v16  ;;  %v1630_v10 = vmul.f32 %v6571_v58, %v1566_v63  ;;  %v1507_v5 = vmul.f32 %v6638_v9, %v1443_v40  ;;  %v2198_v50 = vmul.f32 %v7595_v45, %v1878_v43 }
 0x3b6   :  { %v1819_v23 = vadd.f32 0.2548296, %v1755_v14  ;;  %v1759_v21 = vmul.f32 %v6589_v35, %v1695_v13  ;;  %v1506_v54 = vmul.f32 %v6614_v17, %v1442_v30  ;;  %vm2331_vm6 = vcmp.lt.f32.partialorder %v7596_v25, 0.0  ;;  %v6870_v14 = vpop.eup %3749 }
 0x3b7   :  { %v2391_v49 = vsub.f32 0.0, %v2263_v18  ;;  %v1818_v22 = vadd.f32 0.2548296, %v1754_v42  ;;  %v1694_v32 = vadd.f32 -0.28449672, %v1630_v10  ;;  %vm2330_vm7 = vcmp.lt.f32.partialorder %v7597_v20, 0.0 }
 0x3b8   :  { %v2262_v15 = vsub.f32 1.0, %v2198_v50  ;;  %v1883_v8 = vmul.f32 %v6554_v51, %v1819_v23  ;;  %v1823_v37 = vadd.f32 0.2548296, %v1759_v21  ;;  %v1571_v1 = vadd.f32 1.4214138, %v1507_v5  ;;  %v7601_v50 = vld [vmem:[#allocation39_spill] sm:$0xff] }
 0x3b9   :  { %vm2335_vm8 = vcmp.lt.f32.partialorder %v6486_v26, 0.0  ;;  %v2455_v4 = vsel %vm2327_vm4, %v2391_v49, %v2263_v18  ;;  %v1882_v47 = vmul.f32 %v6522_v46, %v1818_v22  ;;  %v1758_v2 = vmul.f32 %v6571_v58, %v1694_v32  ;;  %v7602_v49 = vld [vmem:[#allocation84_spill] sm:$0xff]  ;;  %v7603_v26 = vld [vmem:[#allocation41_spill] sm:$0xff] }
 0x3ba   :  { %v1570_v19 = vadd.f32 1.4214138, %v1506_v54  ;;  %v2519_v7 = vadd.f32 1.0, %v2455_v4  ;;  %v2390_v44 = vsub.f32 0.0, %v2262_v15  ;;  %v2203_v33 = vmul.f32 %v6566_v57, %v1883_v8 }
 0x3bb   :  { %v1887_v51 = vmul.f32 %v6589_v35, %v1823_v37  ;;  %v2202_v41 = vmul.f32 %v6540_v48, %v1882_v47  ;;  %v1822_v12 = vadd.f32 0.2548296, %v1758_v2  ;;  %v1635_v3 = vmul.f32 %v6638_v9, %v1571_v1  ;;  %v7604_v1 = vld [vmem:[#allocation14_spill] sm:$0xff] }
 0x3bc   :  { %v1634_v62 = vmul.f32 %v6614_v17, %v1570_v19  ;;  %vm2334_vm9 = vcmp.lt.f32.partialorder %v7598_v27, 0.0  ;;  %v2583_v46 = vmul.f32 %v2519_v7, %v7599_v55  ;;  %v2454_v0 = vsel %vm2326_vm5, %v2390_v44, %v2262_v15  ;;  %v7606_v44 = vld [vmem:[#allocation93_spill] sm:$0xff] }
 0x3bd   :  { %v2267_v59 = vsub.f32 1.0, %v2203_v33  ;;  %v2207_v56 = vmul.f32 %v6593_v29, %v1887_v51  ;;  %v2518_v57 = vadd.f32 1.0, %v2454_v0  ;;  %v2266_v31 = vsub.f32 1.0, %v2202_v41 }
 0x3be   :  { %v1886_v35 = vmul.f32 %v6571_v58, %v1822_v12  ;;  %v1699_v48 = vadd.f32 -0.28449672, %v1635_v3  ;;  %3029 = vmatprep.mubr.f32.mxu0 %v2583_v46  ;;  %v1698_v52 = vadd.f32 -0.28449672, %v1634_v62  ;;  %v1383_v24 = vmul.f32 1.0614054, %v6654_v60 }
 0x3bf   :  { %v2395_v28 = vsub.f32 0.0, %v2267_v59  ;;  %v2271_v11 = vsub.f32 1.0, %v2207_v56  ;;  %v2582_v16 = vmul.f32 %v2518_v57, %v7600_v39  ;;  %v2394_v61 = vsub.f32 0.0, %v2266_v31  ;;  %v7607_v12 = vld [vmem:[#allocation89_spill] sm:$0xff]  ;;  %v7608_v46 = vld [vmem:[#allocation96_spill] sm:$0xff]  ;;  %v7609_v57 = vld [vmem:[#allocation91_spill] sm:$0xff] }
 0x3c0   :  { %v2206_v6 = vmul.f32 %v6583_v36, %v1886_v35  ;;  %v1763_v63 = vmul.f32 %v6638_v9, %v1699_v48  ;;  %v1762_v58 = vmul.f32 %v6614_v17, %v1698_v52  ;;  %v1447_v43 = vadd.f32 -1.4531521, %v1383_v24 }
 0x3c1   :  { %v2459_v29 = vsel %vm2331_vm6, %v2395_v28, %v2267_v59  ;;  %v2399_v40 = vsub.f32 0.0, %v2271_v11  ;;  %3030 = vmatmul.mubr.f32.gmra.mrb[20].mxu0 %v2582_v16  ;;  %v2458_v30 = vsel %vm2330_vm7, %v2394_v61, %v2266_v31  ;;  %vm2338_vm10 = vcmp.lt.f32.partialorder %v6519_v38, 0.0 }
 0x3c2   :  { %v2523_v13 = vadd.f32 1.0, %v2459_v29  ;;  %v2270_v18 = vsub.f32 1.0, %v2206_v6  ;;  %v1827_v42 = vadd.f32 0.2548296, %v1763_v63  ;;  %v2522_v10 = vadd.f32 1.0, %v2458_v30  ;;  %v7611_v29 = vld [vmem:[#allocation34_spill] sm:$0xff] }
 0x3c3   :  { %v2463_v36 = vsel %vm2335_vm8, %v2399_v40, %v2271_v11  ;;  %v1826_v5 = vadd.f32 0.2548296, %v1762_v58  ;;  %v1511_v45 = vmul.f32 %v6654_v60, %v1447_v43  ;;  %v1382_v15 = vmul.f32 1.0614054, %v6648_v53  ;;  %v7610_v11 = vld [vmem:[#allocation13_spill] sm:$0xff]  ;;  %v7612_v30 = vld [vmem:[#allocation87_spill] sm:$0xff] }
 0x3c4   :  { %v2587_v23 = vmul.f32 %v2523_v13, %v7601_v50  ;;  %v2527_v21 = vadd.f32 1.0, %v2463_v36  ;;  %v2398_v54 = vsub.f32 0.0, %v2270_v18  ;;  %v1891_v25 = vmul.f32 %v6638_v9, %v1827_v42  ;;  %v7605_v9 = vld [vmem:[#allocation11_spill] sm:$0xff] }
 0x3c5   :  { %v2586_v22 = vmul.f32 %v2522_v10, %v7602_v49  ;;  %v1890_v32 = vmul.f32 %v6614_v17, %v1826_v5  ;;  %v1575_v20 = vadd.f32 1.4214138, %v1511_v45  ;;  %v1387_v47 = vmul.f32 1.0614054, %v6870_v14  ;;  %v7613_v45 = vld [vmem:[#allocation10_spill] sm:$0xff] }
 0x3c6   :  { %3035 = vmatprep.mubr.f32.mxu0 %v2587_v23  ;;  %v2591_v8 = vmul.f32 %v2527_v21, %v7603_v26  ;;  %v2462_v37 = vsel %vm2334_vm9, %v2398_v54, %v2270_v18  ;;  %v2211_v4 = vmul.f32 %v7604_v1, %v1891_v25  ;;  %v1446_v17 = vadd.f32 -1.4531521, %v1382_v15 }
 0x3c7   :  { %3036 = vmatmul.mubr.f32.gmra.mrb[22].mxu0 %v2586_v22  ;;  %v2526_v2 = vadd.f32 1.0, %v2462_v37  ;;  %v2210_v19 = vmul.f32 %v7605_v9, %v1890_v32  ;;  %v1639_v7 = vmul.f32 %v6654_v60, %v1575_v20  ;;  %vm2339_vm11 = vcmp.lt.f32.partialorder %v7606_v44, 0.0 }
 0x3c8   :  { %3041 = vmatprep.mubr.f32.mxu0 %v2591_v8  ;;  %v2275_v33 = vsub.f32 1.0, %v2211_v4  ;;  %v1451_v51 = vadd.f32 -1.4531521, %v1387_v47  ;;  %v1386_v41 = vmul.f32 1.0614054, %v6845_v34  ;;  %v1510_v55 = vmul.f32 %v6648_v53, %v1446_v17  ;;  %v7614_v8 = vld [vmem:[#allocation95_spill] sm:$0xff] }
 0x3c9   :  { %v2590_v3 = vmul.f32 %v2526_v2, %v7607_v12  ;;  %v2274_v62 = vsub.f32 1.0, %v2210_v19  ;;  %v1703_v27 = vadd.f32 -0.28449672, %v1639_v7  ;;  %3751 = vpow2.f32 %v7608_v46  ;;  %v7615_v2 = vld [vmem:[#allocation48_spill] sm:$0xff] }
 0x3ca   :  { %v2403_v0 = vsub.f32 0.0, %v2275_v33  ;;  %v1515_v59 = vmul.f32 %v6870_v14, %v1451_v51  ;;  %v1450_v56 = vadd.f32 -1.4531521, %v1386_v41  ;;  %v2152_v31 = vmul.f32 1.442695, %v7609_v57  ;;  %v7618_v46 = vld [vmem:[#allocation16_spill] sm:$0xff] }
 0x3cb   :  { %3042 = vmatmul.mubr.f32.gmra.mrb[24].mxu0 %v2590_v3  ;;  %v2402_v35 = vsub.f32 0.0, %v2274_v62  ;;  %v1767_v48 = vmul.f32 %v6654_v60, %v1703_v27  ;;  %v1574_v28 = vadd.f32 1.4214138, %v1510_v55  ;;  %3753 = vpow2.f32 %v7610_v11  ;;  %v7616_v3 = vld [vmem:[#allocation85_spill] sm:$0xff]  ;;  %v7617_v27 = vld [vmem:[#allocation15_spill] sm:$0xff] }
 0x3cc   :  { %v2467_v52 = vsel %vm2339_vm11, %v2403_v0, %v2275_v33  ;;  %v1579_v24 = vadd.f32 1.4214138, %v1515_v59  ;;  %v1514_v39 = vmul.f32 %v6845_v34, %v1450_v56  ;;  %v930_v40 = vmul.f32 0.5, %v7611_v29 }
 0x3cd   :  { %v2531_v16 = vadd.f32 1.0, %v2467_v52  ;;  %v2466_v61 = vsel %vm2338_vm10, %v2402_v35, %v2274_v62  ;;  %v1831_v6 = vadd.f32 0.2548296, %v1767_v48  ;;  %v1638_v63 = vmul.f32 %v6648_v53, %v1574_v28 }
 0x3ce   :  { %v2530_v58 = vadd.f32 1.0, %v2466_v61  ;;  %v1643_v43 = vmul.f32 %v6870_v14, %v1579_v24  ;;  %v1578_v13 = vadd.f32 1.4214138, %v1514_v39  ;;  %3755 = vpow2.f32 %v2152_v31  ;;  %v7620_v31 = vld [vmem:[#allocation22_spill] sm:$0xff] }
 0x3cf   :  { %v2595_v18 = vmul.f32 %v2531_v16, %v7612_v30  ;;  %v1895_v42 = vmul.f32 %v6654_v60, %v1831_v6  ;;  %v1702_v10 = vadd.f32 -0.28449672, %v1638_v63  ;;  %vm2343_vm12 = vcmp.lt.f32.partialorder %v7614_v8, 0.0  ;;  %v7621_v39 = vld [vmem:[#allocation18_spill] sm:$0xff]  ;;  %v2732_v6 = vld [vmem:[%s7080_s6] sm:$0x3] }
 0x3d0   :  { %v2594_v36 = vmul.f32 %v2530_v58, %v930_v40  ;;  %v1707_v5 = vadd.f32 -0.28449672, %v1643_v43  ;;  %v1642_v38 = vmul.f32 %v6845_v34, %v1578_v13  ;;  %v935_v9 = vmul.f32 0.5, %v7615_v2  ;;  %v7622_v63 = vld [vmem:[#allocation5_spill] sm:$0xff]  ;;  %v7623_v40 = vld [vmem:[#allocation6_spill] sm:$0xff] }
 0x3d1   :  { %3047 = vmatprep.mubr.f32.mxu0 %v2595_v18  ;;  %v2215_v50 = vmul.f32 %v7613_v45, %v1895_v42  ;;  %v1766_v23 = vmul.f32 %v6648_v53, %v1702_v10  ;;  %vm2342_vm13 = vcmp.lt.f32.partialorder %v7616_v3, 0.0  ;;  %vm2347_vm14 = vcmp.lt.f32.partialorder %v7617_v27, 0.0  ;;  %v3758_v42 = vld [vmem:[%s7074_s0] sm:$0xff]  ;;  %v3763_v8 = vld [vmem:[%s7074_s0 + $0x28] sm:$0xff] }
 0x3d2   :  { %3048 = vmatmul.mubr.f32.gmra.mrb[26].mxu0 %v2594_v36  ;;  %v1771_v21 = vmul.f32 %v6870_v14, %v1707_v5  ;;  %v1706_v54 = vadd.f32 -0.28449672, %v1642_v38  ;;  %v934_v0 = vmul.f32 0.5, %v7618_v46  ;;  %v939_v35 = vmul.f32 0.5, %v7620_v31  ;;  %v3759_v36 = vld [vmem:[%s7074_s0 + $0x8] sm:$0xff] }
 0x3d3   :  { %v2279_v25 = vsub.f32 1.0, %v2215_v50  ;;  %v1830_v49 = vadd.f32 0.2548296, %v1766_v23  ;;  %v3752_v22 = vpop.eup %3751  ;;  %v938_v16 = vmul.f32 0.5, %v7621_v39  ;;  %v6929_v29 = vrot.slane %v2732_v6, %v7622_v63  ;;  %v3767_v3 = vld [vmem:[%s7074_s0 + $0x48] sm:$0xff]  ;;  %v3772_v63 = vld [vmem:[%s7074_s0 + $0x70] sm:$0xff] }
 0x3d4   :  { %v1835_v32 = vadd.f32 0.2548296, %v1771_v21  ;;  %v1770_v60 = vmul.f32 %v6845_v34, %v1706_v54  ;;  %v6932_v58 = vrot.slane %v2732_v6, %v7623_v40  ;;  %v3760_v21 = vld [vmem:[%s7074_s0 + $0x10] sm:$0xff] }
 0x3d5   :  { %v2407_v20 = vsub.f32 0.0, %v2279_v25  ;;  %v1894_v15 = vmul.f32 %v6648_v53, %v1830_v49  ;;  %v3754_v26 = vpop.eup %3753 }
 0x3d6   :  { %v1899_v37 = vmul.f32 %v6870_v14, %v1835_v32  ;;  %v1834_v1 = vadd.f32 0.2548296, %v1770_v60 }
 0x3d7   :  { %v2471_v4 = vsel %vm2343_vm12, %v2407_v20, %v2279_v25  ;;  %v2214_v47 = vmul.f32 %v3752_v22, %v1894_v15  ;;  %v3761_v25 = vld [vmem:[%s7074_s0 + $0x18] sm:$0xff]  ;;  %v3762_v15 = vld [vmem:[%s7074_s0 + $0x20] sm:$0xff] }
 0x3d8   :  { %v2535_v19 = vadd.f32 1.0, %v2471_v4  ;;  %v2219_v7 = vmul.f32 %v3754_v26, %v1899_v37  ;;  %v1898_v17 = vmul.f32 %v6845_v34, %v1834_v1  ;;  %v3756_v44 = vpop.eup %3755  ;;  %v7619_v34 = vld [vmem:[#allocation26_spill] sm:$0xff] }
 0x3d9   :  { %v2278_v33 = vsub.f32 1.0, %v2214_v47  ;;  %vm2346_vm15 = vcmp.lt.f32.partialorder %v7619_v34, 0.0 }
 0x3da   :  { %v2599_v51 = vmul.f32 %v2535_v19, %v935_v9  ;;  %v2283_v41 = vsub.f32 1.0, %v2219_v7  ;;  %v2218_v12 = vmul.f32 %v3756_v44, %v1898_v17  ;;  %v3764_v9 = vld [vmem:[%s7074_s0 + $0x30] sm:$0xff]  ;;  %v3765_v7 = vld [vmem:[%s7074_s0 + $0x38] sm:$0xff] }
 0x3db   :  { %v2406_v53 = vsub.f32 0.0, %v2278_v33 }
 0x3dc   :  { %3053 = vmatprep.mubr.f32.mxu0 %v2599_v51  ;;  %v2411_v62 = vsub.f32 0.0, %v2283_v41  ;;  %v2282_v14 = vsub.f32 1.0, %v2218_v12  ;;  %v3766_v12 = vld [vmem:[%s7074_s0 + $0x40] sm:$0xff] }
 0x3dd   :  { %v2470_v55 = vsel %vm2342_vm13, %v2406_v53, %v2278_v33 }
 0x3de   :  { %v2534_v59 = vadd.f32 1.0, %v2470_v55  ;;  %v2475_v56 = vsel %vm2347_vm14, %v2411_v62, %v2283_v41  ;;  %v2410_v57 = vsub.f32 0.0, %v2282_v14 }
 0x3df   :  { %v2539_v48 = vadd.f32 1.0, %v2475_v56  ;;  %v3769_v56 = vld [vmem:[%s7074_s0 + $0x58] sm:$0xff] }
 0x3e0   :  { %v2598_v28 = vmul.f32 %v2534_v59, %v934_v0  ;;  %v2474_v11 = vsel %vm2346_vm15, %v2410_v57, %v2282_v14  ;;  %v3768_v0 = vld [vmem:[%s7074_s0 + $0x50] sm:$0xff] }
 0x3e1   :  { %v2603_v52 = vmul.f32 %v2539_v48, %v939_v35  ;;  %v2538_v24 = vadd.f32 1.0, %v2474_v11 }
 0x3e2   :  { %3054 = vmatmul.mubr.f32.gmra.mrb[28].mxu0 %v2598_v28  ;;  %v3770_v28 = vld [vmem:[%s7074_s0 + $0x60] sm:$0xff] }
 0x3e3   :  { %3059 = vmatprep.mubr.f32.mxu0 %v2603_v52  ;;  %v2602_v61 = vmul.f32 %v2538_v24, %v938_v16  ;;  %v3771_v52 = vld [vmem:[%s7074_s0 + $0x68] sm:$0xff] }
 0x3e6   :  { %3060 = vmatmul.mubr.f32.gmra.mrb[30].mxu0 %v2602_v61 }
 0x434   :  { %v2971_v43 = vpop.f32.mrb[0].mxu0 }
 0x435   :  { %v3402_v13 = vadd.f32 %v2971_v43, %v6929_v29  ;;  %v2973_v30 = vpop.f32.mrb[1].mxu0  ;;  %v3773_v43 = vld [vmem:[%s7074_s0 + $0x78] sm:$0xff] }
 0x436   :  { %v3403_v18 = vadd.f32 %v2973_v30, %v6932_v58 }
 0x437   :  { %v3066_v10 = vadd.f32 %v3758_v42, %v3402_v13 }
 0x438   :  { %v3067_v5 = vadd.f32 %v3759_v36, %v3403_v18  ;;  %v3774_v36 = vld [vmem:[%s7074_s0 + $0x80] sm:$0xff] }
 0x439   :  { %3098 = vst [vmem:[#allocation2] sm:$0xff] %v3066_v10 }
 0x43a   :  { %3099 = vst [vmem:[#allocation2 + $0x8] sm:$0xff] %v3067_v5 }
 0x445   :  { %v2977_v38 = vpop.f32.mrb[2].mxu0 }
 0x446   :  { %v3404_v45 = vadd.f32 %v2977_v38, %v6929_v29  ;;  %v2979_v50 = vpop.f32.mrb[3].mxu0  ;;  %v3775_v38 = vld [vmem:[%s7074_s0 + $0x88] sm:$0xff] }
 0x447   :  { %v3405_v23 = vadd.f32 %v2979_v50, %v6932_v58 }
 0x448   :  { %v3068_v54 = vadd.f32 %v3760_v21, %v3404_v45 }
 0x449   :  { %v3069_v49 = vadd.f32 %v3761_v25, %v3405_v23  ;;  %v3776_v25 = vld [vmem:[%s7074_s0 + $0x90] sm:$0xff] }
 0x44a   :  { %3100 = vst [vmem:[#allocation2 + $0x10] sm:$0xff] %v3068_v54 }
 0x44b   :  { %3101 = vst [vmem:[#allocation2 + $0x18] sm:$0xff] %v3069_v49 }
 0x456   :  { %v2983_v22 = vpop.f32.mrb[4].mxu0 }
 0x457   :  { %v3406_v32 = vadd.f32 %v2983_v22, %v6929_v29  ;;  %v2985_v60 = vpop.f32.mrb[5].mxu0  ;;  %v3777_v22 = vld [vmem:[%s7074_s0 + $0x98] sm:$0xff] }
 0x458   :  { %v3407_v20 = vadd.f32 %v2985_v60, %v6932_v58 }
 0x459   :  { %v3070_v26 = vadd.f32 %v3762_v15, %v3406_v32 }
 0x45a   :  { %v3071_v37 = vadd.f32 %v3763_v8, %v3407_v20  ;;  %v2989_v1 = vpop.f32.mrb[6].mxu0  ;;  %v3778_v8 = vld [vmem:[%s7074_s0 + $0xa0] sm:$0xff] }
 0x45b   :  { %3102 = vst [vmem:[#allocation2 + $0x20] sm:$0xff] %v3070_v26  ;;  %v3408_v4 = vadd.f32 %v2989_v1, %v6929_v29  ;;  %v2991_v47 = vpop.f32.mrb[7].mxu0  ;;  %v3779_v1 = vld [vmem:[%s7074_s0 + $0xa8] sm:$0xff] }
 0x45c   :  { %3103 = vst [vmem:[#allocation2 + $0x28] sm:$0xff] %v3071_v37  ;;  %v3409_v2 = vadd.f32 %v2991_v47, %v6932_v58 }
 0x45d   :  { %v3072_v19 = vadd.f32 %v3764_v9, %v3408_v4 }
 0x45e   :  { %v3073_v17 = vadd.f32 %v3765_v7, %v3409_v2  ;;  %v2995_v44 = vpop.f32.mrb[8].mxu0  ;;  %v3780_v7 = vld [vmem:[%s7074_s0 + $0xb0] sm:$0xff] }
 0x45f   :  { %3104 = vst [vmem:[#allocation2 + $0x30] sm:$0xff] %v3072_v19  ;;  %v3410_v33 = vadd.f32 %v2995_v44, %v6929_v29  ;;  %v2997_v51 = vpop.f32.mrb[9].mxu0  ;;  %v3781_v44 = vld [vmem:[%s7074_s0 + $0xb8] sm:$0xff] }
 0x460   :  { %3105 = vst [vmem:[#allocation2 + $0x38] sm:$0xff] %v3073_v17  ;;  %v3411_v41 = vadd.f32 %v2997_v51, %v6932_v58 }
 0x461   :  { %v3074_v53 = vadd.f32 %v3766_v12, %v3410_v33 }
 0x462   :  { %v3075_v62 = vadd.f32 %v3767_v3, %v3411_v41  ;;  %v3782_v3 = vld [vmem:[%s7074_s0 + $0xc0] sm:$0xff] }
 0x463   :  { %3106 = vst [vmem:[#allocation2 + $0x40] sm:$0xff] %v3074_v53 }
 0x464   :  { %3107 = vst [vmem:[#allocation2 + $0x48] sm:$0xff] %v3075_v62 }
 0x465   :  { %v3001_v14 = vpop.f32.mrb[10].mxu0 }
 0x466   :  { %v3412_v27 = vadd.f32 %v3001_v14, %v6929_v29  ;;  %v3003_v55 = vpop.f32.mrb[11].mxu0  ;;  %v3783_v14 = vld [vmem:[%s7074_s0 + $0xc8] sm:$0xff] }
 0x467   :  { %v3413_v46 = vadd.f32 %v3003_v55, %v6932_v58 }
 0x468   :  { %v3076_v59 = vadd.f32 %v3768_v0, %v3412_v27 }
 0x469   :  { %v3077_v57 = vadd.f32 %v3769_v56, %v3413_v46  ;;  %v3784_v56 = vld [vmem:[%s7074_s0 + $0xd0] sm:$0xff] }
 0x46a   :  { %3108 = vst [vmem:[#allocation2 + $0x50] sm:$0xff] %v3076_v59 }
 0x46b   :  { %3109 = vst [vmem:[#allocation2 + $0x58] sm:$0xff] %v3077_v57 }
 0x475   :  { %v3007_v34 = vpop.f32.mrb[12].mxu0 }
 0x476   :  { %v3414_v31 = vadd.f32 %v3007_v34, %v6929_v29  ;;  %v3009_v35 = vpop.f32.mrb[13].mxu0  ;;  %v3785_v34 = vld [vmem:[%s7074_s0 + $0xd8] sm:$0xff] }
 0x477   :  { %v3415_v48 = vadd.f32 %v3009_v35, %v6932_v58 }
 0x478   :  { %v3078_v11 = vadd.f32 %v3770_v28, %v3414_v31 }
 0x479   :  { %v3079_v24 = vadd.f32 %v3771_v52, %v3415_v48  ;;  %v3786_v52 = vld [vmem:[%s7074_s0 + $0xe0] sm:$0xff] }
 0x47a   :  { %3110 = vst [vmem:[#allocation2 + $0x60] sm:$0xff] %v3078_v11  ;;  %v3013_v39 = vpop.f32.mrb[14].mxu0 }
 0x47b   :  { %3111 = vst [vmem:[#allocation2 + $0x68] sm:$0xff] %v3079_v24  ;;  %v3416_v16 = vadd.f32 %v3013_v39, %v6929_v29  ;;  %v3015_v61 = vpop.f32.mrb[15].mxu0  ;;  %v3787_v39 = vld [vmem:[%s7074_s0 + $0xe8] sm:$0xff] }
 0x47c   :  { %v3417_v6 = vadd.f32 %v3015_v61, %v6932_v58 }
 0x47d   :  { %v3080_v40 = vadd.f32 %v3772_v63, %v3416_v16 }
 0x47e   :  { %v3081_v13 = vadd.f32 %v3773_v43, %v3417_v6  ;;  %v3788_v43 = vld [vmem:[%s7074_s0 + $0xf0] sm:$0xff] }
 0x47f   :  { %3112 = vst [vmem:[#allocation2 + $0x70] sm:$0xff] %v3080_v40  ;;  %v3019_v30 = vpop.f32.mrb[16].mxu0 }
 0x480   :  { %3113 = vst [vmem:[#allocation2 + $0x78] sm:$0xff] %v3081_v13  ;;  %v3418_v18 = vadd.f32 %v3019_v30, %v6929_v29  ;;  %v3021_v42 = vpop.f32.mrb[17].mxu0  ;;  %v3789_v30 = vld [vmem:[%s7074_s0 + $0xf8] sm:$0xff] }
 0x481   :  { %v3419_v10 = vadd.f32 %v3021_v42, %v6932_v58 }
 0x482   :  { %v3082_v5 = vadd.f32 %v3774_v36, %v3418_v18 }
 0x483   :  { %v3083_v45 = vadd.f32 %v3775_v38, %v3419_v10 }
 0x484   :  { %3114 = vst [vmem:[#allocation2 + $0x80] sm:$0xff] %v3082_v5  ;;  %v3025_v50 = vpop.f32.mrb[18].mxu0 }
 0x485   :  { %3115 = vst [vmem:[#allocation2 + $0x88] sm:$0xff] %v3083_v45  ;;  %v3420_v23 = vadd.f32 %v3025_v50, %v6929_v29  ;;  %v3027_v21 = vpop.f32.mrb[19].mxu0 }
 0x486   :  { %v3421_v54 = vadd.f32 %v3027_v21, %v6932_v58 }
 0x487   :  { %v3084_v49 = vadd.f32 %v3776_v25, %v3420_v23 }
 0x488   :  { %v3085_v32 = vadd.f32 %v3777_v22, %v3421_v54 }
 0x489   :  { %3116 = vst [vmem:[#allocation2 + $0x90] sm:$0xff] %v3084_v49 }
 0x48a   :  { %3117 = vst [vmem:[#allocation2 + $0x98] sm:$0xff] %v3085_v32 }
 0x494   :  { %v3031_v60 = vpop.f32.mrb[20].mxu0 }
 0x495   :  { %v3422_v20 = vadd.f32 %v3031_v60, %v6929_v29  ;;  %v3033_v15 = vpop.f32.mrb[21].mxu0 }
 0x496   :  { %v3423_v26 = vadd.f32 %v3033_v15, %v6932_v58 }
 0x497   :  { %v3086_v37 = vadd.f32 %v3778_v8, %v3422_v20 }
 0x498   :  { %v3087_v4 = vadd.f32 %v3779_v1, %v3423_v26 }
 0x499   :  { %3118 = vst [vmem:[#allocation2 + $0xa0] sm:$0xff] %v3086_v37 }
 0x49a   :  { %v3037_v47 = vpop.f32.mrb[22].mxu0  ;;  %3119 = vst [vmem:[#allocation2 + $0xa8] sm:$0xff] %v3087_v4 }
 0x49b   :  { %v3424_v2 = vadd.f32 %v3037_v47, %v6929_v29  ;;  %v3039_v9 = vpop.f32.mrb[23].mxu0 }
 0x49c   :  { %v3425_v19 = vadd.f32 %v3039_v9, %v6932_v58 }
 0x49d   :  { %v3088_v17 = vadd.f32 %v3780_v7, %v3424_v2 }
 0x49e   :  { %v3089_v33 = vadd.f32 %v3781_v44, %v3425_v19  ;;  %v3043_v51 = vpop.f32.mrb[24].mxu0 }
 0x49f   :  { %3120 = vst [vmem:[#allocation2 + $0xb0] sm:$0xff] %v3088_v17  ;;  %v3426_v41 = vadd.f32 %v3043_v51, %v6929_v29  ;;  %v3045_v12 = vpop.f32.mrb[25].mxu0 }
 0x4a0   :  { %3121 = vst [vmem:[#allocation2 + $0xb8] sm:$0xff] %v3089_v33  ;;  %v3427_v53 = vadd.f32 %v3045_v12, %v6932_v58 }
 0x4a1   :  { %v3090_v62 = vadd.f32 %v3782_v3, %v3426_v41 }
 0x4a2   :  { %v3091_v27 = vadd.f32 %v3783_v14, %v3427_v53 }
 0x4a3   :  { %3122 = vst [vmem:[#allocation2 + $0xc0] sm:$0xff] %v3090_v62 }
 0x4a4   :  { %3123 = vst [vmem:[#allocation2 + $0xc8] sm:$0xff] %v3091_v27 }
 0x4a5   :  { %v3049_v55 = vpop.f32.mrb[26].mxu0 }
 0x4a6   :  { %v3428_v46 = vadd.f32 %v3049_v55, %v6929_v29  ;;  %v3051_v0 = vpop.f32.mrb[27].mxu0 }
 0x4a7   :  { %v3429_v59 = vadd.f32 %v3051_v0, %v6932_v58 }
 0x4a8   :  { %v3092_v57 = vadd.f32 %v3784_v56, %v3428_v46 }
 0x4a9   :  { %v3093_v31 = vadd.f32 %v3785_v34, %v3429_v59 }
 0x4aa   :  { %3124 = vst [vmem:[#allocation2 + $0xd0] sm:$0xff] %v3092_v57 }
 0x4ab   :  { %3125 = vst [vmem:[#allocation2 + $0xd8] sm:$0xff] %v3093_v31 }
 0x4b5   :  { %v3055_v35 = vpop.f32.mrb[28].mxu0 }
 0x4b6   :  { %v3430_v48 = vadd.f32 %v3055_v35, %v6929_v29  ;;  %v3057_v28 = vpop.f32.mrb[29].mxu0 }
 0x4b7   :  { %v3431_v11 = vadd.f32 %v3057_v28, %v6932_v58 }
 0x4b8   :  { %v3094_v24 = vadd.f32 %v3786_v52, %v3430_v48 }
 0x4b9   :  { %v3095_v16 = vadd.f32 %v3787_v39, %v3431_v11  ;;  %v3061_v61 = vpop.f32.mrb[30].mxu0 }
 0x4ba   :  { %3126 = vst [vmem:[#allocation2 + $0xe0] sm:$0xff] %v3094_v24  ;;  %v3432_v6 = vadd.f32 %v3061_v61, %v6929_v29  ;;  %v3063_v63 = vpop.f32.mrb[31].mxu0 }
 0x4bb   :  { %3127 = vst [vmem:[#allocation2 + $0xe8] sm:$0xff] %v3095_v16  ;;  %v3433_v40 = vadd.f32 %v3063_v63, %v6932_v58 }
 0x4bc   :  { %v3096_v13 = vadd.f32 %v3788_v43, %v3432_v6 }
 0x4bd   :  { %v3097_v18 = vadd.f32 %v3789_v30, %v3433_v40 }
 0x4be   :  { %3128 = vst [vmem:[#allocation2 + $0xf0] sm:$0xff] %v3096_v13 }
 0x4bf   :  { %3129 = vst [vmem:[#allocation2 + $0xf8] sm:$0xff] %v3097_v18 }
 0x4c0   :  { %3801 = shalt.err (!%p3798_p4)
}
 0x4c1   :  { %s3802_s21 = scalar_lea.hbm %s7081_s7, 4096 }
 0x4c2   :  { %p3803_p5 = scmp.ne.s32.totalorder %s7081_s7, %s3802_s21  ;;  %p3806_p6 = scmp.lt.u32.totalorder %s3802_s21, %s7081_s7 }
 0x4c4   :  { %p3808_p7 = pnand %p3806_p6, %p3803_p5 }
 0x4c6   :  { %3811 = shalt.err (!%p3808_p7)
}
 0x4c7   :  { %s3815_s25 = smov 256   ;;  %s3816_s4 = smov 16  }
 0x4c8   :  { %3141 = dma.vmem_to_hbm [thread:$0]  %s3136_s16, 4096, %s7081_s7, [#allocation3], %s3815_s25, %s3815_s25, %s3816_s4  }
 0x4c9   :  { %3812 = dma.done.wait [#allocation3], 4096  }
 0x4ca   :  { %3813 = vsyncadd [#allocation3], 4294963200 }
 0x4cb   :  { %3145 = vsyncpa [#allocation3], 1 }

</bundles_post_ra>
